<compile_context>
chip_gen: v7x
topology: tpu7x:2x2x1
jax: 0.10.0
libtpu: 0.0.40
codegen_flags: <defaults>
</compile_context>

<pallas_src>
import functools

import jax
import jax.numpy as jnp
from jax.experimental import pallas as pl
from jax.experimental.pallas import tpu as pltpu

_VMEM_LIMIT = 32 * 1024 * 1024   # scoped VMEM budget; safe on v7x (64 MiB phys)
_TM_MAX = 2048                   # row-tile cap (worst-case per-step VMEM ~10 MiB)
_EPS = 1e-5


def _round_up(x, m):
    return (x + m - 1) // m * m


def _pick_tm(m):
    """Row tile ~ ceil(m / num_tiles), rounded to 16 (bf16 sublanes), <= _TM_MAX."""
    num_tiles = max(1, -(-m // _TM_MAX))
    return _round_up(-(-m // num_tiles), 16)


def _apply_act(y, act):
    if act == "leaky":
        return jnp.where(y > 0, y, 0.2 * y)
    if act == "tanh":
        return jnp.tanh(y)
    return y


# ------------------------------ kernels -------------------------------------

def _gemm_act_kernel(x_ref, w_ref, o_ref, *, act):
    # bf16 tiles in, f32 MXU accumulate, f32 epilogue, bf16 store.
    y = jnp.dot(x_ref[...], w_ref[...], preferred_element_type=jnp.float32)
    o_ref[...] = _apply_act(y, act).astype(o_ref.dtype)


def _gemm_partial_stats_kernel(x_ref, w_ref, y_ref, psum_ref, psq_ref):
    # BN pass 1: tiled GEMM + per-tile partial per-channel sum / sum-of-squares.
    # Each grid step owns its own partial row -> grid axis is fully parallel.
    y = jnp.dot(x_ref[...], w_ref[...], preferred_element_type=jnp.float32)
    y_ref[...] = y.astype(y_ref.dtype)
    psum_ref[...] = jnp.sum(y, axis=0, keepdims=True)[None]
    psq_ref[...] = jnp.sum(y * y, axis=0, keepdims=True)[None]


def _affine_act_kernel(y_ref, scale_ref, shift_ref, o_ref, *, act):
    # BN pass 2: folded affine (scale = gamma*inv_std, shift = beta - mean*scale)
    # + activation, computed in f32, stored bf16 in-place over the input buffer.
    y = y_ref[...].astype(jnp.float32)
    y = y * scale_ref[...] + shift_ref[...]
    o_ref[...] = _apply_act(y, act).astype(o_ref.dtype)


# -------------------------- pallas_call wrappers -----------------------------

def _gemm_act_call(patches, w_mat, *, act, tm):
    m_pad, k = patches.shape
    c = w_mat.shape[1]
    cost = pl.CostEstimate(
        flops=2 * m_pad * k * c,
        transcendentals=m_pad * c if act == "tanh" else 0,
        bytes_accessed=(m_pad * k + k * c + m_pad * c) * 2)
    return pl.pallas_call(
        functools.partial(_gemm_act_kernel, act=act),
        out_shape=jax.ShapeDtypeStruct((m_pad, c), jnp.bfloat16),
        grid=(m_pad // tm,),
        in_specs=[pl.BlockSpec((tm, k), lambda i: (i, 0)),
                  pl.BlockSpec((k, c), lambda i: (0, 0))],   # resident weight
        out_specs=pl.BlockSpec((tm, c), lambda i: (i, 0)),
        compiler_params=pltpu.CompilerParams(
            dimension_semantics=("parallel",),               # megacore on v7x
            vmem_limit_bytes=_VMEM_LIMIT),
        cost_estimate=cost,
    )(patches, w_mat)


def _gemm_partial_stats_call(patches, w_mat, *, tm):
    m_pad, k = patches.shape
    c = w_mat.shape[1]
    nt = m_pad // tm
    cost = pl.CostEstimate(
        flops=2 * m_pad * k * c + 3 * m_pad * c,
        transcendentals=0,
        bytes_accessed=(m_pad * k + k * c + m_pad * c) * 2 + 2 * nt * c * 4)
    return pl.pallas_call(
        _gemm_partial_stats_kernel,
        out_shape=(jax.ShapeDtypeStruct((m_pad, c), jnp.bfloat16),
                   jax.ShapeDtypeStruct((nt, 1, c), jnp.float32),
                   jax.ShapeDtypeStruct((nt, 1, c), jnp.float32)),
        grid=(nt,),
        in_specs=[pl.BlockSpec((tm, k), lambda i: (i, 0)),
                  pl.BlockSpec((k, c), lambda i: (0, 0))],
        out_specs=(pl.BlockSpec((tm, c), lambda i: (i, 0)),
                   pl.BlockSpec((1, 1, c), lambda i: (i, 0, 0)),
                   pl.BlockSpec((1, 1, c), lambda i: (i, 0, 0))),
        compiler_params=pltpu.CompilerParams(
            dimension_semantics=("parallel",),               # no serialization
            vmem_limit_bytes=_VMEM_LIMIT),
        cost_estimate=cost,
    )(patches, w_mat)


def _affine_act_call(y_raw, scale, shift, *, act, tm):
    m_pad, c = y_raw.shape
    cost = pl.CostEstimate(
        flops=2 * m_pad * c,
        transcendentals=m_pad * c if act == "tanh" else 0,
        bytes_accessed=2 * m_pad * c * 2)
    return pl.pallas_call(
        functools.partial(_affine_act_kernel, act=act),
        out_shape=jax.ShapeDtypeStruct((m_pad, c), jnp.bfloat16),
        grid=(m_pad // tm,),
        in_specs=[pl.BlockSpec((tm, c), lambda i: (i, 0)),
                  pl.BlockSpec((1, c), lambda i: (0, 0)),
                  pl.BlockSpec((1, c), lambda i: (0, 0))],
        out_specs=pl.BlockSpec((tm, c), lambda i: (i, 0)),
        compiler_params=pltpu.CompilerParams(
            dimension_semantics=("parallel",),
            vmem_limit_bytes=_VMEM_LIMIT),
        cost_estimate=cost,
        input_output_aliases={0: 0},                         # write in place
    )(y_raw, scale, shift)


# -------------------------------- glue ---------------------------------------

def _im2col_nhwc(x, kh, kw, stride, pad):
    """x: (N, H, W, C) channels-last.  Returns (N*Ho*Wo, kh*kw*C) patches with
    features in (kh, kw, C) order ((i,j)-major), plus (Ho, Wo).  The kh*kw taps
    are concatenated along the existing channel (lane) axis -> no new minor
    axis + reshape across it (cheap relayout)."""
    n, h, w, c = x.shape
    xp = jnp.pad(x, ((0, 0), (pad, pad), (pad, pad), (0, 0)))
    ho = (h + 2 * pad - kh) // stride + 1
    wo = (w + 2 * pad - kw) // stride + 1
    cols = [xp[:, i:i + stride * ho:stride, j:j + stride * wo:stride, :]
            for i in range(kh) for j in range(kw)]
    p = jnp.concatenate(cols, axis=-1)                       # (N, Ho, Wo, kh*kw*C)
    return p.reshape(n * ho * wo, kh * kw * c), ho, wo


def conv_layer(x_nhwc, w, gamma=None, beta=None, *, stride, pad, act, use_bn):
    """Conv2d(bias=False) [+ BatchNorm2d(training-mode batch stats)] + activation.

    x_nhwc: (N, H, W, C_in) channels-last activation (f32 or bf16).
    w:      (C_out, C_in, kh, kw) PyTorch layout.
    Returns (N, Ho, Wo, C_out) channels-last bf16 activation.
    """
    c_out, c_in, kh, kw = w.shape
    assert c_in == x_nhwc.shape[-1]
    patches, ho, wo = _im2col_nhwc(x_nhwc, kh, kw, stride, pad)
    m, k = patches.shape

    tm = _pick_tm(m)
    m_pad = _round_up(m, tm)
    k_pad = _round_up(k, 128)                   # lane-aligned contraction (layer 1)
    c_pad = c_out if c_out <= 128 else _round_up(c_out, 128)

    # bf16 MXU inputs (halves streaming HBM traffic); accumulation stays f32.
    patches = jnp.pad(patches,
                      ((0, m_pad - m), (0, k_pad - k))).astype(jnp.bfloat16)
    # (C_out, C_in, kh, kw) -> (kh, kw, C_in, C_out) to match (i,j)-major patches.
    w_mat = jnp.pad(jnp.transpose(w, (2, 3, 1, 0)).reshape(k, c_out),
                    ((0, k_pad - k), (0, c_pad - c_out))).astype(jnp.bfloat16)

    if use_bn:
        # Pass 1: tiled GEMM + per-tile partial sums (grid axis fully parallel).
        y_raw, psum, psq = _gemm_partial_stats_call(patches, w_mat, tm=tm)
        # Tiny f32 reduction + BN fold in the wrapper.  Zero-padded rows add
        # nothing to sum/sumsq and the divisor is the real M, so batch stats
        # match the untiled computation (biased variance, eps=1e-5).
        ssum = jnp.sum(psum[:, 0, :], axis=0, keepdims=True)
        ssq = jnp.sum(psq[:, 0, :], axis=0, keepdims=True)
        mean = ssum / m
        var = jnp.maximum(ssq / m - mean * mean, 0.0)
        inv_std = jax.lax.rsqrt(var + _EPS)
        g = jnp.pad(gamma.reshape(1, c_out).astype(jnp.float32),
                    ((0, 0), (0, c_pad - c_out)), constant_values=1.0)
        b = jnp.pad(beta.reshape(1, c_out).astype(jnp.float32),
                    ((0, 0), (0, c_pad - c_out)))
        scale = g * inv_std
        shift = b - mean * scale
        # Pass 2: pure affine + activation, aliased in place over y_raw.
        y = _affine_act_call(y_raw, scale, shift, act=act, tm=tm)
    else:
        y = _gemm_act_call(patches, w_mat, act=act, tm=tm)

    n = x_nhwc.shape[0]
    return y[:m, :c_out].reshape(n, ho, wo, c_out)


if __name__ == "__main__":
    # Small but structurally faithful config: image_size=64 (so the four
    # stride-2 convs end at 4x4 and main2's 4x4 valid conv yields 1x1),
    # num_chanel=3, hidden_chanels=16, batch=2.
    B, C_IN, IMG, H = 2, 3, 64, 16

    key = jax.random.PRNGKey(0)
    ks = jax.random.split(key, 6)
    # Deterministic DCGAN-style N(0, 0.02) weight init (Conv2d, bias=False).
    w1 = 0.02 * jax.random.normal(ks[0], (H, C_IN, 4, 4), jnp.float32)
    w2 = 0.02 * jax.random.normal(ks[1], (2 * H, H, 4, 4), jnp.float32)
    w3 = 0.02 * jax.random.normal(ks[2], (4 * H, 2 * H, 4, 4), jnp.float32)
    w4 = 0.02 * jax.random.normal(ks[3], (8 * H, 4 * H, 4, 4), jnp.float32)
    w5 = 0.02 * jax.random.normal(ks[4], (1, 8 * H, 4, 4), jnp.float32)
    x = jax.random.normal(ks[5], (B, C_IN, IMG, IMG), jnp.float32)

    ones = lambda c: jnp.ones((c,), jnp.float32)    # BN gamma init
    zeros = lambda c: jnp.zeros((c,), jnp.float32)  # BN beta init

    def forward(x):
        # NCHW -> channels-last once at the model boundary.
        h0 = jnp.transpose(x, (0, 2, 3, 1))
        # main1
        h1 = conv_layer(h0, w1, stride=2, pad=1, act="leaky", use_bn=False)
        h2 = conv_layer(h1, w2, ones(2 * H), zeros(2 * H),
                        stride=2, pad=1, act="leaky", use_bn=True)
        h3 = conv_layer(h2, w3, ones(4 * H), zeros(4 * H),
                        stride=2, pad=1, act="leaky", use_bn=True)
        h4 = conv_layer(h3, w4, ones(8 * H), zeros(8 * H),
                        stride=2, pad=1, act="tanh", use_bn=True)
        h4 = h4.astype(jnp.float32)                 # (B, 4, 4, 8H)
        # main2: 4x4 valid conv to 1 channel + sigmoid. With M = batch rows and
        # C_out = 1 the work is far below pallas_call overhead, so it is a
        # plain contraction in the wrapper.
        y = jnp.einsum('bhwc,chw->b', h4, w5[0])
        y = jax.nn.sigmoid(y).reshape(x.shape[0], -1)
        h = jnp.transpose(h4, (0, 3, 1, 2))         # back to NCHW boundary
        return y, h

    y, h = jax.jit(forward)(x)
    jax.block_until_ready((y, h))
    assert y.shape == (B, 1) and h.shape == (B, 8 * H, 4, 4)

    # Pure-JAX f32 reference (training-mode BN, biased variance).  The Pallas
    # path uses bf16 intermediates, so results are tolerance-equal only.
    def ref_forward(x):
        conv = lambda t, w, s, p: jax.lax.conv_general_dilated(
            t, w, (s, s), [(p, p), (p, p)],
            dimension_numbers=('NCHW', 'OIHW', 'NCHW'))
        def bn(t):
            mu = jnp.mean(t, axis=(0, 2, 3), keepdims=True)
            var = jnp.mean((t - mu) ** 2, axis=(0, 2, 3), keepdims=True)
            return (t - mu) * jax.lax.rsqrt(var + _EPS)
        leaky = lambda t: jnp.where(t > 0, t, 0.2 * t)
        t = leaky(conv(x, w1, 2, 1))
        t = leaky(bn(conv(t, w2, 2, 1)))
        t = leaky(bn(conv(t, w3, 2, 1)))
        t = jnp.tanh(bn(conv(t, w4, 2, 1)))
        yr = jax.nn.sigmoid(conv(t, w5, 1, 0).reshape(x.shape[0], -1))
        return yr, t

    y_ref, h_ref = jax.jit(ref_forward)(x)
    err_h = float(jnp.max(jnp.abs(h - h_ref)))
    err_y = float(jnp.max(jnp.abs(y - y_ref)))
    assert err_h < 0.1 and err_y < 0.05, (err_h, err_y)
    print("KERNEL_OK")
</pallas_src>

<mosaic_0001>
module attributes {stable_mosaic.version = 11 : i64} {
  func.func @_gemm_act_kernel(%arg0: i32, %arg1: memref<2048x128xbf16, #tpu.memory_space<vmem>>, %arg2: memref<128x16xbf16, #tpu.memory_space<vmem>>, %arg3: memref<2048x16xbf16, #tpu.memory_space<vmem>>) attributes {dimension_semantics = [#tpu.dimension_semantics<parallel>], iteration_bounds = array<i64: 1>, scalar_prefetch = 0 : i64, scratch_operands = 0 : i64, tpu.core_type = #tpu.core_type<tc>, window_params = [{transform_indices = @transform_0, window_bounds = array<i64: 2048, 128>}, {pipeline_mode = #tpu.pipeline_mode<synchronous>, transform_indices = @transform_1, window_bounds = array<i64: 128, 16>}, {transform_indices = @transform_2, window_bounds = array<i64: 2048, 16>}]} {
    %c0 = arith.constant 0 : index
    %c0_0 = arith.constant 0 : index
    %0 = vector.load %arg1[%c0, %c0_0] : memref<2048x128xbf16, #tpu.memory_space<vmem>>, vector<2048x128xbf16>
    %c0_1 = arith.constant 0 : index
    %c0_2 = arith.constant 0 : index
    %1 = vector.load %arg2[%c0_1, %c0_2] : memref<128x16xbf16, #tpu.memory_space<vmem>>, vector<128x16xbf16>
    %cst = arith.constant dense<0.000000e+00> : vector<2048x16xf32>
    %2 = tpu.matmul %0, %1, %cst {dimension_numbers = #tpu.dot_dimension_numbers<[1], [0], [0], [1], [0, 0, 1, 1], [], []>} : vector<2048x128xbf16>, vector<128x16xbf16>, vector<2048x16xf32> -> vector<2048x16xf32>
    %cst_3 = arith.constant 0.000000e+00 : f32
    %3 = vector.broadcast %cst_3 : f32 to vector<2048x16xf32>
    %4 = arith.cmpf ogt, %2, %3 : vector<2048x16xf32>
    %cst_4 = arith.constant 2.000000e-01 : f32
    %5 = vector.broadcast %cst_4 : f32 to vector<2048x16xf32>
    %6 = arith.mulf %5, %2 : vector<2048x16xf32>
    %7 = arith.select %4, %2, %6 : vector<2048x16xi1>, vector<2048x16xf32>
    %8 = arith.truncf %7 : vector<2048x16xf32> to vector<2048x16xbf16>
    %c0_5 = arith.constant 0 : index
    %c0_6 = arith.constant 0 : index
    %9 = vector.load %arg3[%c0_5, %c0_6] : memref<2048x16xbf16, #tpu.memory_space<vmem>>, vector<2048x16xbf16>
    tpu.vector_store %arg3[%c0_5, %c0_6], %8 {strides = array<i32>} : memref<2048x16xbf16, #tpu.memory_space<vmem>>, vector<2048x16xbf16>,
    return
  }
  func.func @transform_0(%arg0: i32) -> (i32, i32) {
    %c0_i32 = arith.constant 0 : i32
    %c0_i32_0 = arith.constant 0 : i32
    return %arg0, %c0_i32 : i32, i32
  }
  func.func @transform_1(%arg0: i32) -> (i32, i32) {
    %c0_i32 = arith.constant 0 : i32
    %c0_i32_0 = arith.constant 0 : i32
    %c0_i32_1 = arith.constant 0 : i32
    return %c0_i32, %c0_i32_0 : i32, i32
  }
  func.func @transform_2(%arg0: i32) -> (i32, i32) {
    %c0_i32 = arith.constant 0 : i32
    %c0_i32_0 = arith.constant 0 : i32
    return %arg0, %c0_i32 : i32, i32
  }
}

module attributes {stable_mosaic.version = 11 : i64} {
  func.func @_gemm_partial_stats_kernel(%arg0: i32, %arg1: memref<512x256xbf16, #tpu.memory_space<vmem>>, %arg2: memref<256x32xbf16, #tpu.memory_space<vmem>>, %arg3: memref<512x32xbf16, #tpu.memory_space<vmem>>, %arg4: memref<1x1x32xf32, #tpu.memory_space<vmem>>, %arg5: memref<1x1x32xf32, #tpu.memory_space<vmem>>) attributes {dimension_semantics = [#tpu.dimension_semantics<parallel>], iteration_bounds = array<i64: 1>, scalar_prefetch = 0 : i64, scratch_operands = 0 : i64, tpu.core_type = #tpu.core_type<tc>, window_params = [{transform_indices = @transform_0, window_bounds = array<i64: 512, 256>}, {pipeline_mode = #tpu.pipeline_mode<synchronous>, transform_indices = @transform_1, window_bounds = array<i64: 256, 32>}, {transform_indices = @transform_2, window_bounds = array<i64: 512, 32>}, {transform_indices = @transform_3, window_bounds = array<i64: 1, 1, 32>}, {transform_indices = @transform_4, window_bounds = array<i64: 1, 1, 32>}]} {
    %c0 = arith.constant 0 : index
    %c0_0 = arith.constant 0 : index
    %0 = vector.load %arg1[%c0, %c0_0] : memref<512x256xbf16, #tpu.memory_space<vmem>>, vector<512x256xbf16>
    %c0_1 = arith.constant 0 : index
    %c0_2 = arith.constant 0 : index
    %1 = vector.load %arg2[%c0_1, %c0_2] : memref<256x32xbf16, #tpu.memory_space<vmem>>, vector<256x32xbf16>
    %cst = arith.constant dense<0.000000e+00> : vector<512x32xf32>
    %2 = tpu.matmul %0, %1, %cst {dimension_numbers = #tpu.dot_dimension_numbers<[1], [0], [0], [1], [0, 0, 1, 1], [], []>} : vector<512x256xbf16>, vector<256x32xbf16>, vector<512x32xf32> -> vector<512x32xf32>
    %3 = arith.truncf %2 : vector<512x32xf32> to vector<512x32xbf16>
    %c0_3 = arith.constant 0 : index
    %c0_4 = arith.constant 0 : index
    %4 = vector.load %arg3[%c0_3, %c0_4] : memref<512x32xbf16, #tpu.memory_space<vmem>>, vector<512x32xbf16>
    tpu.vector_store %arg3[%c0_3, %c0_4], %3 {strides = array<i32>} : memref<512x32xbf16, #tpu.memory_space<vmem>>, vector<512x32xbf16>,
    %cst_5 = arith.constant dense<0.000000e+00> : vector<32xf32>
    %5 = vector.multi_reduction <add>, %2, %cst_5 [0] : vector<512x32xf32> to vector<32xf32>
    %6 = vector.shape_cast %5 : vector<32xf32> to vector<1x32xf32>
    %7 = vector.shape_cast %6 : vector<1x32xf32> to vector<1x1x32xf32>
    %c0_6 = arith.constant 0 : index
    %c0_7 = arith.constant 0 : index
    %c0_8 = arith.constant 0 : index
    %8 = vector.load %arg4[%c0_6, %c0_7, %c0_8] : memref<1x1x32xf32, #tpu.memory_space<vmem>>, vector<1x1x32xf32>
    tpu.vector_store %arg4[%c0_6, %c0_7, %c0_8], %7 {strides = array<i32>} : memref<1x1x32xf32, #tpu.memory_space<vmem>>, vector<1x1x32xf32>,
    %9 = arith.mulf %2, %2 : vector<512x32xf32>
    %cst_9 = arith.constant dense<0.000000e+00> : vector<32xf32>
    %10 = vector.multi_reduction <add>, %9, %cst_9 [0] : vector<512x32xf32> to vector<32xf32>
    %11 = vector.shape_cast %10 : vector<32xf32> to vector<1x32xf32>
    %12 = vector.shape_cast %11 : vector<1x32xf32> to vector<1x1x32xf32>
    %c0_10 = arith.constant 0 : index
    %c0_11 = arith.constant 0 : index
    %c0_12 = arith.constant 0 : index
    %13 = vector.load %arg5[%c0_10, %c0_11, %c0_12] : memref<1x1x32xf32, #tpu.memory_space<vmem>>, vector<1x1x32xf32>
    tpu.vector_store %arg5[%c0_10, %c0_11, %c0_12], %12 {strides = array<i32>} : memref<1x1x32xf32, #tpu.memory_space<vmem>>, vector<1x1x32xf32>,
    return
  }
  func.func @transform_0(%arg0: i32) -> (i32, i32) {
    %c0_i32 = arith.constant 0 : i32
    %c0_i32_0 = arith.constant 0 : i32
    return %arg0, %c0_i32 : i32, i32
  }
  func.func @transform_1(%arg0: i32) -> (i32, i32) {
    %c0_i32 = arith.constant 0 : i32
    %c0_i32_0 = arith.constant 0 : i32
    %c0_i32_1 = arith.constant 0 : i32
    return %c0_i32, %c0_i32_0 : i32, i32
  }
  func.func @transform_2(%arg0: i32) -> (i32, i32) {
    %c0_i32 = arith.constant 0 : i32
    %c0_i32_0 = arith.constant 0 : i32
    return %arg0, %c0_i32 : i32, i32
  }
  func.func @transform_3(%arg0: i32) -> (i32, i32, i32) {
    %c0_i32 = arith.constant 0 : i32
    %c0_i32_0 = arith.constant 0 : i32
    %c0_i32_1 = arith.constant 0 : i32
    return %arg0, %c0_i32, %c0_i32_0 : i32, i32, i32
  }
  func.func @transform_4(%arg0: i32) -> (i32, i32, i32) {
    %c0_i32 = arith.constant 0 : i32
    %c0_i32_0 = arith.constant 0 : i32
    %c0_i32_1 = arith.constant 0 : i32
    return %arg0, %c0_i32, %c0_i32_0 : i32, i32, i32
  }
}

module attributes {stable_mosaic.version = 11 : i64} {
  func.func @_affine_act_kernel(%arg0: i32, %arg1: memref<512x32xbf16, #tpu.memory_space<vmem>>, %arg2: memref<1x32xf32, #tpu.memory_space<vmem>>, %arg3: memref<1x32xf32, #tpu.memory_space<vmem>>, %arg4: memref<512x32xbf16, #tpu.memory_space<vmem>>) attributes {dimension_semantics = [#tpu.dimension_semantics<parallel>], iteration_bounds = array<i64: 1>, scalar_prefetch = 0 : i64, scratch_operands = 0 : i64, tpu.core_type = #tpu.core_type<tc>, window_params = [{transform_indices = @transform_0, window_bounds = array<i64: 512, 32>}, {pipeline_mode = #tpu.pipeline_mode<synchronous>, transform_indices = @transform_1, window_bounds = array<i64: 1, 32>}, {pipeline_mode = #tpu.pipeline_mode<synchronous>, transform_indices = @transform_2, window_bounds = array<i64: 1, 32>}, {transform_indices = @transform_3, window_bounds = array<i64: 512, 32>}]} {
    %c0 = arith.constant 0 : index
    %c0_0 = arith.constant 0 : index
    %0 = vector.load %arg1[%c0, %c0_0] : memref<512x32xbf16, #tpu.memory_space<vmem>>, vector<512x32xbf16>
    %1 = arith.extf %0 : vector<512x32xbf16> to vector<512x32xf32>
    %c0_1 = arith.constant 0 : index
    %c0_2 = arith.constant 0 : index
    %2 = vector.load %arg2[%c0_1, %c0_2] : memref<1x32xf32, #tpu.memory_space<vmem>>, vector<1x32xf32>
    %3 = vector.broadcast %2 : vector<1x32xf32> to vector<512x32xf32>
    %4 = arith.mulf %1, %3 : vector<512x32xf32>
    %c0_3 = arith.constant 0 : index
    %c0_4 = arith.constant 0 : index
    %5 = vector.load %arg3[%c0_3, %c0_4] : memref<1x32xf32, #tpu.memory_space<vmem>>, vector<1x32xf32>
    %6 = vector.broadcast %5 : vector<1x32xf32> to vector<512x32xf32>
    %7 = arith.addf %4, %6 : vector<512x32xf32>
    %cst = arith.constant 0.000000e+00 : f32
    %8 = vector.broadcast %cst : f32 to vector<512x32xf32>
    %9 = arith.cmpf ogt, %7, %8 : vector<512x32xf32>
    %cst_5 = arith.constant 2.000000e-01 : f32
    %10 = vector.broadcast %cst_5 : f32 to vector<512x32xf32>
    %11 = arith.mulf %10, %7 : vector<512x32xf32>
    %12 = arith.select %9, %7, %11 : vector<512x32xi1>, vector<512x32xf32>
    %13 = arith.truncf %12 : vector<512x32xf32> to vector<512x32xbf16>
    %c0_6 = arith.constant 0 : index
    %c0_7 = arith.constant 0 : index
    %14 = vector.load %arg4[%c0_6, %c0_7] : memref<512x32xbf16, #tpu.memory_space<vmem>>, vector<512x32xbf16>
    tpu.vector_store %arg4[%c0_6, %c0_7], %13 {strides = array<i32>} : memref<512x32xbf16, #tpu.memory_space<vmem>>, vector<512x32xbf16>,
    return
  }
  func.func @transform_0(%arg0: i32) -> (i32, i32) {
    %c0_i32 = arith.constant 0 : i32
    %c0_i32_0 = arith.constant 0 : i32
    return %arg0, %c0_i32 : i32, i32
  }
  func.func @transform_1(%arg0: i32) -> (i32, i32) {
    %c0_i32 = arith.constant 0 : i32
    %c0_i32_0 = arith.constant 0 : i32
    %c0_i32_1 = arith.constant 0 : i32
    return %c0_i32, %c0_i32_0 : i32, i32
  }
  func.func @transform_2(%arg0: i32) -> (i32, i32) {
    %c0_i32 = arith.constant 0 : i32
    %c0_i32_0 = arith.constant 0 : i32
    %c0_i32_1 = arith.constant 0 : i32
    return %c0_i32, %c0_i32_0 : i32, i32
  }
  func.func @transform_3(%arg0: i32) -> (i32, i32) {
    %c0_i32 = arith.constant 0 : i32
    %c0_i32_0 = arith.constant 0 : i32
    return %arg0, %c0_i32 : i32, i32
  }
}

module attributes {stable_mosaic.version = 11 : i64} {
  func.func @_gemm_partial_stats_kernel(%arg0: i32, %arg1: memref<128x512xbf16, #tpu.memory_space<vmem>>, %arg2: memref<512x64xbf16, #tpu.memory_space<vmem>>, %arg3: memref<128x64xbf16, #tpu.memory_space<vmem>>, %arg4: memref<1x1x64xf32, #tpu.memory_space<vmem>>, %arg5: memref<1x1x64xf32, #tpu.memory_space<vmem>>) attributes {dimension_semantics = [#tpu.dimension_semantics<parallel>], iteration_bounds = array<i64: 1>, scalar_prefetch = 0 : i64, scratch_operands = 0 : i64, tpu.core_type = #tpu.core_type<tc>, window_params = [{transform_indices = @transform_0, window_bounds = array<i64: 128, 512>}, {pipeline_mode = #tpu.pipeline_mode<synchronous>, transform_indices = @transform_1, window_bounds = array<i64: 512, 64>}, {transform_indices = @transform_2, window_bounds = array<i64: 128, 64>}, {transform_indices = @transform_3, window_bounds = array<i64: 1, 1, 64>}, {transform_indices = @transform_4, window_bounds = array<i64: 1, 1, 64>}]} {
    %c0 = arith.constant 0 : index
    %c0_0 = arith.constant 0 : index
    %0 = vector.load %arg1[%c0, %c0_0] : memref<128x512xbf16, #tpu.memory_space<vmem>>, vector<128x512xbf16>
    %c0_1 = arith.constant 0 : index
    %c0_2 = arith.constant 0 : index
    %1 = vector.load %arg2[%c0_1, %c0_2] : memref<512x64xbf16, #tpu.memory_space<vmem>>, vector<512x64xbf16>
    %cst = arith.constant dense<0.000000e+00> : vector<128x64xf32>
    %2 = tpu.matmul %0, %1, %cst {dimension_numbers = #tpu.dot_dimension_numbers<[1], [0], [0], [1], [0, 0, 1, 1], [], []>} : vector<128x512xbf16>, vector<512x64xbf16>, vector<128x64xf32> -> vector<128x64xf32>
    %3 = arith.truncf %2 : vector<128x64xf32> to vector<128x64xbf16>
    %c0_3 = arith.constant 0 : index
    %c0_4 = arith.constant 0 : index
    %4 = vector.load %arg3[%c0_3, %c0_4] : memref<128x64xbf16, #tpu.memory_space<vmem>>, vector<128x64xbf16>
    tpu.vector_store %arg3[%c0_3, %c0_4], %3 {strides = array<i32>} : memref<128x64xbf16, #tpu.memory_space<vmem>>, vector<128x64xbf16>,
    %cst_5 = arith.constant dense<0.000000e+00> : vector<64xf32>
    %5 = vector.multi_reduction <add>, %2, %cst_5 [0] : vector<128x64xf32> to vector<64xf32>
    %6 = vector.shape_cast %5 : vector<64xf32> to vector<1x64xf32>
    %7 = vector.shape_cast %6 : vector<1x64xf32> to vector<1x1x64xf32>
    %c0_6 = arith.constant 0 : index
    %c0_7 = arith.constant 0 : index
    %c0_8 = arith.constant 0 : index
    %8 = vector.load %arg4[%c0_6, %c0_7, %c0_8] : memref<1x1x64xf32, #tpu.memory_space<vmem>>, vector<1x1x64xf32>
    tpu.vector_store %arg4[%c0_6, %c0_7, %c0_8], %7 {strides = array<i32>} : memref<1x1x64xf32, #tpu.memory_space<vmem>>, vector<1x1x64xf32>,
    %9 = arith.mulf %2, %2 : vector<128x64xf32>
    %cst_9 = arith.constant dense<0.000000e+00> : vector<64xf32>
    %10 = vector.multi_reduction <add>, %9, %cst_9 [0] : vector<128x64xf32> to vector<64xf32>
    %11 = vector.shape_cast %10 : vector<64xf32> to vector<1x64xf32>
    %12 = vector.shape_cast %11 : vector<1x64xf32> to vector<1x1x64xf32>
    %c0_10 = arith.constant 0 : index
    %c0_11 = arith.constant 0 : index
    %c0_12 = arith.constant 0 : index
    %13 = vector.load %arg5[%c0_10, %c0_11, %c0_12] : memref<1x1x64xf32, #tpu.memory_space<vmem>>, vector<1x1x64xf32>
    tpu.vector_store %arg5[%c0_10, %c0_11, %c0_12], %12 {strides = array<i32>} : memref<1x1x64xf32, #tpu.memory_space<vmem>>, vector<1x1x64xf32>,
    return
  }
  func.func @transform_0(%arg0: i32) -> (i32, i32) {
    %c0_i32 = arith.constant 0 : i32
    %c0_i32_0 = arith.constant 0 : i32
    return %arg0, %c0_i32 : i32, i32
  }
  func.func @transform_1(%arg0: i32) -> (i32, i32) {
    %c0_i32 = arith.constant 0 : i32
    %c0_i32_0 = arith.constant 0 : i32
    %c0_i32_1 = arith.constant 0 : i32
    return %c0_i32, %c0_i32_0 : i32, i32
  }
  func.func @transform_2(%arg0: i32) -> (i32, i32) {
    %c0_i32 = arith.constant 0 : i32
    %c0_i32_0 = arith.constant 0 : i32
    return %arg0, %c0_i32 : i32, i32
  }
  func.func @transform_3(%arg0: i32) -> (i32, i32, i32) {
    %c0_i32 = arith.constant 0 : i32
    %c0_i32_0 = arith.constant 0 : i32
    %c0_i32_1 = arith.constant 0 : i32
    return %arg0, %c0_i32, %c0_i32_0 : i32, i32, i32
  }
  func.func @transform_4(%arg0: i32) -> (i32, i32, i32) {
    %c0_i32 = arith.constant 0 : i32
    %c0_i32_0 = arith.constant 0 : i32
    %c0_i32_1 = arith.constant 0 : i32
    return %arg0, %c0_i32, %c0_i32_0 : i32, i32, i32
  }
}

module attributes {stable_mosaic.version = 11 : i64} {
  func.func @_affine_act_kernel(%arg0: i32, %arg1: memref<128x64xbf16, #tpu.memory_space<vmem>>, %arg2: memref<1x64xf32, #tpu.memory_space<vmem>>, %arg3: memref<1x64xf32, #tpu.memory_space<vmem>>, %arg4: memref<128x64xbf16, #tpu.memory_space<vmem>>) attributes {dimension_semantics = [#tpu.dimension_semantics<parallel>], iteration_bounds = array<i64: 1>, scalar_prefetch = 0 : i64, scratch_operands = 0 : i64, tpu.core_type = #tpu.core_type<tc>, window_params = [{transform_indices = @transform_0, window_bounds = array<i64: 128, 64>}, {pipeline_mode = #tpu.pipeline_mode<synchronous>, transform_indices = @transform_1, window_bounds = array<i64: 1, 64>}, {pipeline_mode = #tpu.pipeline_mode<synchronous>, transform_indices = @transform_2, window_bounds = array<i64: 1, 64>}, {transform_indices = @transform_3, window_bounds = array<i64: 128, 64>}]} {
    %c0 = arith.constant 0 : index
    %c0_0 = arith.constant 0 : index
    %0 = vector.load %arg1[%c0, %c0_0] : memref<128x64xbf16, #tpu.memory_space<vmem>>, vector<128x64xbf16>
    %1 = arith.extf %0 : vector<128x64xbf16> to vector<128x64xf32>
    %c0_1 = arith.constant 0 : index
    %c0_2 = arith.constant 0 : index
    %2 = vector.load %arg2[%c0_1, %c0_2] : memref<1x64xf32, #tpu.memory_space<vmem>>, vector<1x64xf32>
    %3 = vector.broadcast %2 : vector<1x64xf32> to vector<128x64xf32>
    %4 = arith.mulf %1, %3 : vector<128x64xf32>
    %c0_3 = arith.constant 0 : index
    %c0_4 = arith.constant 0 : index
    %5 = vector.load %arg3[%c0_3, %c0_4] : memref<1x64xf32, #tpu.memory_space<vmem>>, vector<1x64xf32>
    %6 = vector.broadcast %5 : vector<1x64xf32> to vector<128x64xf32>
    %7 = arith.addf %4, %6 : vector<128x64xf32>
    %cst = arith.constant 0.000000e+00 : f32
    %8 = vector.broadcast %cst : f32 to vector<128x64xf32>
    %9 = arith.cmpf ogt, %7, %8 : vector<128x64xf32>
    %cst_5 = arith.constant 2.000000e-01 : f32
    %10 = vector.broadcast %cst_5 : f32 to vector<128x64xf32>
    %11 = arith.mulf %10, %7 : vector<128x64xf32>
    %12 = arith.select %9, %7, %11 : vector<128x64xi1>, vector<128x64xf32>
    %13 = arith.truncf %12 : vector<128x64xf32> to vector<128x64xbf16>
    %c0_6 = arith.constant 0 : index
    %c0_7 = arith.constant 0 : index
    %14 = vector.load %arg4[%c0_6, %c0_7] : memref<128x64xbf16, #tpu.memory_space<vmem>>, vector<128x64xbf16>
    tpu.vector_store %arg4[%c0_6, %c0_7], %13 {strides = array<i32>} : memref<128x64xbf16, #tpu.memory_space<vmem>>, vector<128x64xbf16>,
    return
  }
  func.func @transform_0(%arg0: i32) -> (i32, i32) {
    %c0_i32 = arith.constant 0 : i32
    %c0_i32_0 = arith.constant 0 : i32
    return %arg0, %c0_i32 : i32, i32
  }
  func.func @transform_1(%arg0: i32) -> (i32, i32) {
    %c0_i32 = arith.constant 0 : i32
    %c0_i32_0 = arith.constant 0 : i32
    %c0_i32_1 = arith.constant 0 : i32
    return %c0_i32, %c0_i32_0 : i32, i32
  }
  func.func @transform_2(%arg0: i32) -> (i32, i32) {
    %c0_i32 = arith.constant 0 : i32
    %c0_i32_0 = arith.constant 0 : i32
    %c0_i32_1 = arith.constant 0 : i32
    return %c0_i32, %c0_i32_0 : i32, i32
  }
  func.func @transform_3(%arg0: i32) -> (i32, i32) {
    %c0_i32 = arith.constant 0 : i32
    %c0_i32_0 = arith.constant 0 : i32
    return %arg0, %c0_i32 : i32, i32
  }
}

module attributes {stable_mosaic.version = 11 : i64} {
  func.func @_gemm_partial_stats_kernel(%arg0: i32, %arg1: memref<32x1024xbf16, #tpu.memory_space<vmem>>, %arg2: memref<1024x128xbf16, #tpu.memory_space<vmem>>, %arg3: memref<32x128xbf16, #tpu.memory_space<vmem>>, %arg4: memref<1x1x128xf32, #tpu.memory_space<vmem>>, %arg5: memref<1x1x128xf32, #tpu.memory_space<vmem>>) attributes {dimension_semantics = [#tpu.dimension_semantics<parallel>], iteration_bounds = array<i64: 1>, scalar_prefetch = 0 : i64, scratch_operands = 0 : i64, tpu.core_type = #tpu.core_type<tc>, window_params = [{transform_indices = @transform_0, window_bounds = array<i64: 32, 1024>}, {pipeline_mode = #tpu.pipeline_mode<synchronous>, transform_indices = @transform_1, window_bounds = array<i64: 1024, 128>}, {transform_indices = @transform_2, window_bounds = array<i64: 32, 128>}, {transform_indices = @transform_3, window_bounds = array<i64: 1, 1, 128>}, {transform_indices = @transform_4, window_bounds = array<i64: 1, 1, 128>}]} {
    %c0 = arith.constant 0 : index
    %c0_0 = arith.constant 0 : index
    %0 = vector.load %arg1[%c0, %c0_0] : memref<32x1024xbf16, #tpu.memory_space<vmem>>, vector<32x1024xbf16>
    %c0_1 = arith.constant 0 : index
    %c0_2 = arith.constant 0 : index
    %1 = vector.load %arg2[%c0_1, %c0_2] : memref<1024x128xbf16, #tpu.memory_space<vmem>>, vector<1024x128xbf16>
    %cst = arith.constant dense<0.000000e+00> : vector<32x128xf32>
    %2 = tpu.matmul %0, %1, %cst {dimension_numbers = #tpu.dot_dimension_numbers<[1], [0], [0], [1], [0, 0, 1, 1], [], []>} : vector<32x1024xbf16>, vector<1024x128xbf16>, vector<32x128xf32> -> vector<32x128xf32>
    %3 = arith.truncf %2 : vector<32x128xf32> to vector<32x128xbf16>
    %c0_3 = arith.constant 0 : index
    %c0_4 = arith.constant 0 : index
    %4 = vector.load %arg3[%c0_3, %c0_4] : memref<32x128xbf16, #tpu.memory_space<vmem>>, vector<32x128xbf16>
    tpu.vector_store %arg3[%c0_3, %c0_4], %3 {strides = array<i32>} : memref<32x128xbf16, #tpu.memory_space<vmem>>, vector<32x128xbf16>,
    %cst_5 = arith.constant dense<0.000000e+00> : vector<128xf32>
    %5 = vector.multi_reduction <add>, %2, %cst_5 [0] : vector<32x128xf32> to vector<128xf32>
    %6 = vector.shape_cast %5 : vector<128xf32> to vector<1x128xf32>
    %7 = vector.shape_cast %6 : vector<1x128xf32> to vector<1x1x128xf32>
    %c0_6 = arith.constant 0 : index
    %c0_7 = arith.constant 0 : index
    %c0_8 = arith.constant 0 : index
    %8 = vector.load %arg4[%c0_6, %c0_7, %c0_8] : memref<1x1x128xf32, #tpu.memory_space<vmem>>, vector<1x1x128xf32>
    tpu.vector_store %arg4[%c0_6, %c0_7, %c0_8], %7 {strides = array<i32>} : memref<1x1x128xf32, #tpu.memory_space<vmem>>, vector<1x1x128xf32>,
    %9 = arith.mulf %2, %2 : vector<32x128xf32>
    %cst_9 = arith.constant dense<0.000000e+00> : vector<128xf32>
    %10 = vector.multi_reduction <add>, %9, %cst_9 [0] : vector<32x128xf32> to vector<128xf32>
    %11 = vector.shape_cast %10 : vector<128xf32> to vector<1x128xf32>
    %12 = vector.shape_cast %11 : vector<1x128xf32> to vector<1x1x128xf32>
    %c0_10 = arith.constant 0 : index
    %c0_11 = arith.constant 0 : index
    %c0_12 = arith.constant 0 : index
    %13 = vector.load %arg5[%c0_10, %c0_11, %c0_12] : memref<1x1x128xf32, #tpu.memory_space<vmem>>, vector<1x1x128xf32>
    tpu.vector_store %arg5[%c0_10, %c0_11, %c0_12], %12 {strides = array<i32>} : memref<1x1x128xf32, #tpu.memory_space<vmem>>, vector<1x1x128xf32>,
    return
  }
  func.func @transform_0(%arg0: i32) -> (i32, i32) {
    %c0_i32 = arith.constant 0 : i32
    %c0_i32_0 = arith.constant 0 : i32
    return %arg0, %c0_i32 : i32, i32
  }
  func.func @transform_1(%arg0: i32) -> (i32, i32) {
    %c0_i32 = arith.constant 0 : i32
    %c0_i32_0 = arith.constant 0 : i32
    %c0_i32_1 = arith.constant 0 : i32
    return %c0_i32, %c0_i32_0 : i32, i32
  }
  func.func @transform_2(%arg0: i32) -> (i32, i32) {
    %c0_i32 = arith.constant 0 : i32
    %c0_i32_0 = arith.constant 0 : i32
    return %arg0, %c0_i32 : i32, i32
  }
  func.func @transform_3(%arg0: i32) -> (i32, i32, i32) {
    %c0_i32 = arith.constant 0 : i32
    %c0_i32_0 = arith.constant 0 : i32
    %c0_i32_1 = arith.constant 0 : i32
    return %arg0, %c0_i32, %c0_i32_0 : i32, i32, i32
  }
  func.func @transform_4(%arg0: i32) -> (i32, i32, i32) {
    %c0_i32 = arith.constant 0 : i32
    %c0_i32_0 = arith.constant 0 : i32
    %c0_i32_1 = arith.constant 0 : i32
    return %arg0, %c0_i32, %c0_i32_0 : i32, i32, i32
  }
}

module attributes {stable_mosaic.version = 11 : i64} {
  func.func @_affine_act_kernel(%arg0: i32, %arg1: memref<32x128xbf16, #tpu.memory_space<vmem>>, %arg2: memref<1x128xf32, #tpu.memory_space<vmem>>, %arg3: memref<1x128xf32, #tpu.memory_space<vmem>>, %arg4: memref<32x128xbf16, #tpu.memory_space<vmem>>) attributes {dimension_semantics = [#tpu.dimension_semantics<parallel>], iteration_bounds = array<i64: 1>, scalar_prefetch = 0 : i64, scratch_operands = 0 : i64, tpu.core_type = #tpu.core_type<tc>, window_params = [{transform_indices = @transform_0, window_bounds = array<i64: 32, 128>}, {pipeline_mode = #tpu.pipeline_mode<synchronous>, transform_indices = @transform_1, window_bounds = array<i64: 1, 128>}, {pipeline_mode = #tpu.pipeline_mode<synchronous>, transform_indices = @transform_2, window_bounds = array<i64: 1, 128>}, {transform_indices = @transform_3, window_bounds = array<i64: 32, 128>}]} {
    %c0 = arith.constant 0 : index
    %c0_0 = arith.constant 0 : index
    %0 = vector.load %arg1[%c0, %c0_0] : memref<32x128xbf16, #tpu.memory_space<vmem>>, vector<32x128xbf16>
    %1 = arith.extf %0 : vector<32x128xbf16> to vector<32x128xf32>
    %c0_1 = arith.constant 0 : index
    %c0_2 = arith.constant 0 : index
    %2 = vector.load %arg2[%c0_1, %c0_2] : memref<1x128xf32, #tpu.memory_space<vmem>>, vector<1x128xf32>
    %3 = vector.broadcast %2 : vector<1x128xf32> to vector<32x128xf32>
    %4 = arith.mulf %1, %3 : vector<32x128xf32>
    %c0_3 = arith.constant 0 : index
    %c0_4 = arith.constant 0 : index
    %5 = vector.load %arg3[%c0_3, %c0_4] : memref<1x128xf32, #tpu.memory_space<vmem>>, vector<1x128xf32>
    %6 = vector.broadcast %5 : vector<1x128xf32> to vector<32x128xf32>
    %7 = arith.addf %4, %6 : vector<32x128xf32>
    %8 = math.tanh %7 : vector<32x128xf32>
    %9 = arith.truncf %8 : vector<32x128xf32> to vector<32x128xbf16>
    %c0_5 = arith.constant 0 : index
    %c0_6 = arith.constant 0 : index
    %10 = vector.load %arg4[%c0_5, %c0_6] : memref<32x128xbf16, #tpu.memory_space<vmem>>, vector<32x128xbf16>
    tpu.vector_store %arg4[%c0_5, %c0_6], %9 {strides = array<i32>} : memref<32x128xbf16, #tpu.memory_space<vmem>>, vector<32x128xbf16>,
    return
  }
  func.func @transform_0(%arg0: i32) -> (i32, i32) {
    %c0_i32 = arith.constant 0 : i32
    %c0_i32_0 = arith.constant 0 : i32
    return %arg0, %c0_i32 : i32, i32
  }
  func.func @transform_1(%arg0: i32) -> (i32, i32) {
    %c0_i32 = arith.constant 0 : i32
    %c0_i32_0 = arith.constant 0 : i32
    %c0_i32_1 = arith.constant 0 : i32
    return %c0_i32, %c0_i32_0 : i32, i32
  }
  func.func @transform_2(%arg0: i32) -> (i32, i32) {
    %c0_i32 = arith.constant 0 : i32
    %c0_i32_0 = arith.constant 0 : i32
    %c0_i32_1 = arith.constant 0 : i32
    return %c0_i32, %c0_i32_0 : i32, i32
  }
  func.func @transform_3(%arg0: i32) -> (i32, i32) {
    %c0_i32 = arith.constant 0 : i32
    %c0_i32_0 = arith.constant 0 : i32
    return %arg0, %c0_i32 : i32, i32
  }
}

</mosaic_0001>

<bundles_post_ra>
// kernel: forward.8
= control target key start
LH: loop header
LB: loop body
LE: loop exit
PB: predicated region body
PF: predicated region fallthrough
CT: control target
= control target key end

     0   :  { %v1836_v0 = vmov 0   ;;  %vm1072_vm0 = vcmask 257024   ;;  %vm1137_vm1 = vcmask 261120   ;;  %vm1271_vm2 = vcmask 253952   ;;  %s2748_s1 = inlined_call_operand.vmem [shape: bf16[256,32], index: 1, kind: input, shape index: {}]   ;;  %s2749_s0 = inlined_call_operand.vmem [shape: bf16[512,256], index: 0, kind: input, shape index: {}]   ;;  %s2750_s2 = inlined_call_operand.vmem [shape: bf16[512,32], index: 2, kind: output, shape index: {0}]   ;;  %s2751_s3 = inlined_call_operand.vmem [shape: f32[1,1,32], index: 3, kind: output, shape index: {1}]   ;;  %s2752_s4 = inlined_call_operand.vmem [shape: f32[1,1,32], index: 4, kind: output, shape index: {2}]  }
   0x1   :  { %527 = vmatprep.subr.bf16.mxu0 %v1836_v0  ;;  %v1724_v1 = vld [vmem:[%s2748_s1] sm:$0xff]   ;;  %1691 = vmatprep.subr.bf16.mxu1 %v1836_v0  ;;  %v1725_v2 = vld [vmem:[%s2748_s1 + $0x8] sm:$0xff]   ;;  %v1726_v3 = vld [vmem:[%s2748_s1 + $0x10] sm:$0xff]  }
   0x2   :  { %528 = vmatpush1.bf16.msra.mxu0 %v1724_v1  ;;  %1707 = vmatpush1.bf16.msra.mxu1 %v1724_v1  ;;  %v1727_v4 = vld [vmem:[%s2748_s1 + $0x18] sm:$0xff]   ;;  %v1728_v5 = vld [vmem:[%s2748_s1 + $0x20] sm:$0xff]   ;;  %v1729_v7 = vld [vmem:[%s2748_s1 + $0x28] sm:$0xff]  }
   0x3   :  { %529 = vmatprep.subr.bf16.mxu0 %v1836_v0  ;;  %1692 = vmatprep.subr.bf16.mxu1 %v1836_v0  ;;  %v1742_v6 = vld [vmem:[%s2749_s0 + $0x4] ss:$8 sps:$4 sm:$0xff]   ;;  %v1730_v8 = vld [vmem:[%s2748_s1 + $0x30] sm:$0xff]   ;;  %v1731_v9 = vld [vmem:[%s2748_s1 + $0x38] sm:$0xff]  }
   0x4   :  { %559 = vmatprep.mubr.bf16.mxu0 %v1742_v6  ;;  %v1766_v10 = vld [vmem:[%s2749_s0 + $0x104] ss:$8 sps:$4 sm:$0xff]   ;;  %v1734_v13 = vld [vmem:[%s2748_s1 + $0x50] sm:$0xff]   ;;  %v1735_v14 = vld [vmem:[%s2748_s1 + $0x58] sm:$0xff]  }
   0x5   :  { %687 = vmatprep.mubr.bf16.mxu1 %v1766_v10  ;;  %v1732_v11 = vld [vmem:[%s2748_s1 + $0x40] sm:$0xff]   ;;  %v1733_v12 = vld [vmem:[%s2748_s1 + $0x48] sm:$0xff]   ;;  %v1738_v17 = vld [vmem:[%s2748_s1 + $0x70] sm:$0xff]  }
   0x6   :  { %530 = vmatpush1.bf16.msra.mxu0 %v1725_v2  ;;  %1708 = vmatpush1.bf16.msra.mxu1 %v1725_v2  ;;  %v1736_v15 = vld [vmem:[%s2748_s1 + $0x60] sm:$0xff]   ;;  %v1737_v16 = vld [vmem:[%s2748_s1 + $0x68] sm:$0xff]   ;;  %v1739_v18 = vld [vmem:[%s2748_s1 + $0x78] sm:$0xff]  }
   0x7   :  { %531 = vmatprep.subr.bf16.mxu0 %v1836_v0  ;;  %1693 = vmatprep.subr.bf16.mxu1 %v1836_v0  ;;  %v1740_v19 = vld [vmem:[%s2749_s0] ss:$8 sps:$4 sm:$0xff]   ;;  %v1743_v21 = vld [vmem:[%s2749_s0 + $0x14] ss:$8 sps:$4 sm:$0xff]   ;;  %v1745_v23 = vld [vmem:[%s2749_s0 + $0x10] ss:$8 sps:$4 sm:$0xff]  }
   0x8   :  { %v1764_v20 = vld [vmem:[%s2749_s0 + $0x100] ss:$8 sps:$4 sm:$0xff]   ;;  %v1770_v22 = vld [vmem:[%s2749_s0 + $0x114] ss:$8 sps:$4 sm:$0xff]   ;;  %v1772_v24 = vld [vmem:[%s2749_s0 + $0x110] ss:$8 sps:$4 sm:$0xff]  }
   0x9   :  { %v1746_v25 = vld [vmem:[%s2749_s0 + $0x24] ss:$8 sps:$4 sm:$0xff]   ;;  %v1748_v27 = vld [vmem:[%s2749_s0 + $0x20] ss:$8 sps:$4 sm:$0xff]   ;;  %v1749_v29 = vld [vmem:[%s2749_s0 + $0x34] ss:$8 sps:$4 sm:$0xff]  }
   0xa   :  { %532 = vmatpush1.bf16.msra.mxu0 %v1726_v3  ;;  %1709 = vmatpush1.bf16.msra.mxu1 %v1726_v3  ;;  %v1776_v26 = vld [vmem:[%s2749_s0 + $0x124] ss:$8 sps:$4 sm:$0xff]   ;;  %v1778_v28 = vld [vmem:[%s2749_s0 + $0x120] ss:$8 sps:$4 sm:$0xff]   ;;  %v1782_v30 = vld [vmem:[%s2749_s0 + $0x134] ss:$8 sps:$4 sm:$0xff]  }
   0xb   :  { %533 = vmatprep.subr.bf16.mxu0 %v1836_v0  ;;  %1694 = vmatprep.subr.bf16.mxu1 %v1836_v0  ;;  %v1751_v31 = vld [vmem:[%s2749_s0 + $0x30] ss:$8 sps:$4 sm:$0xff]   ;;  %v1752_v33 = vld [vmem:[%s2749_s0 + $0x44] ss:$8 sps:$4 sm:$0xff]   ;;  %v1754_v35 = vld [vmem:[%s2749_s0 + $0x40] ss:$8 sps:$4 sm:$0xff]  }
   0xc   :  { %v1784_v32 = vld [vmem:[%s2749_s0 + $0x130] ss:$8 sps:$4 sm:$0xff]   ;;  %v1788_v34 = vld [vmem:[%s2749_s0 + $0x144] ss:$8 sps:$4 sm:$0xff]   ;;  %v1790_v36 = vld [vmem:[%s2749_s0 + $0x140] ss:$8 sps:$4 sm:$0xff]  }
   0xd   :  { %v1755_v37 = vld [vmem:[%s2749_s0 + $0x54] ss:$8 sps:$4 sm:$0xff]   ;;  %v1757_v39 = vld [vmem:[%s2749_s0 + $0x50] ss:$8 sps:$4 sm:$0xff]   ;;  %v1758_v41 = vld [vmem:[%s2749_s0 + $0x64] ss:$8 sps:$4 sm:$0xff]  }
   0xe   :  { %534 = vmatpush1.bf16.msra.mxu0 %v1727_v4  ;;  %1710 = vmatpush1.bf16.msra.mxu1 %v1727_v4  ;;  %v1794_v38 = vld [vmem:[%s2749_s0 + $0x154] ss:$8 sps:$4 sm:$0xff]   ;;  %v1796_v40 = vld [vmem:[%s2749_s0 + $0x150] ss:$8 sps:$4 sm:$0xff]   ;;  %v1800_v42 = vld [vmem:[%s2749_s0 + $0x164] ss:$8 sps:$4 sm:$0xff]  }
   0xf   :  { %535 = vmatprep.subr.bf16.mxu0 %v1836_v0  ;;  %1695 = vmatprep.subr.bf16.mxu1 %v1836_v0  ;;  %v1760_v43 = vld [vmem:[%s2749_s0 + $0x60] ss:$8 sps:$4 sm:$0xff]   ;;  %v1761_v45 = vld [vmem:[%s2749_s0 + $0x74] ss:$8 sps:$4 sm:$0xff]   ;;  %v1763_v47 = vld [vmem:[%s2749_s0 + $0x70] ss:$8 sps:$4 sm:$0xff]  }
  0x10   :  { %v1802_v44 = vld [vmem:[%s2749_s0 + $0x160] ss:$8 sps:$4 sm:$0xff]   ;;  %v1806_v46 = vld [vmem:[%s2749_s0 + $0x174] ss:$8 sps:$4 sm:$0xff]   ;;  %v1808_v48 = vld [vmem:[%s2749_s0 + $0x170] ss:$8 sps:$4 sm:$0xff]  }
  0x11   :  { %v1767_v49 = vld [vmem:[%s2749_s0 + $0x84] ss:$8 sps:$4 sm:$0xff]   ;;  %v1769_v51 = vld [vmem:[%s2749_s0 + $0x80] ss:$8 sps:$4 sm:$0xff]   ;;  %v1773_v53 = vld [vmem:[%s2749_s0 + $0x94] ss:$8 sps:$4 sm:$0xff]  }
  0x12   :  { %536 = vmatpush1.bf16.msra.mxu0 %v1728_v5  ;;  %1711 = vmatpush1.bf16.msra.mxu1 %v1728_v5  ;;  %v1812_v50 = vld [vmem:[%s2749_s0 + $0x184] ss:$8 sps:$4 sm:$0xff]   ;;  %v1814_v52 = vld [vmem:[%s2749_s0 + $0x180] ss:$8 sps:$4 sm:$0xff]   ;;  %v1815_v54 = vld [vmem:[%s2749_s0 + $0x194] ss:$8 sps:$4 sm:$0xff]  }
  0x13   :  { %537 = vmatprep.subr.bf16.mxu0 %v1836_v0  ;;  %1696 = vmatprep.subr.bf16.mxu1 %v1836_v0  ;;  %v1775_v55 = vld [vmem:[%s2749_s0 + $0x90] ss:$8 sps:$4 sm:$0xff]   ;;  %v1779_v57 = vld [vmem:[%s2749_s0 + $0xa4] ss:$8 sps:$4 sm:$0xff]   ;;  %v1781_v59 = vld [vmem:[%s2749_s0 + $0xa0] ss:$8 sps:$4 sm:$0xff]  }
  0x14   :  { %v1817_v56 = vld [vmem:[%s2749_s0 + $0x190] ss:$8 sps:$4 sm:$0xff]   ;;  %v1818_v58 = vld [vmem:[%s2749_s0 + $0x1a4] ss:$8 sps:$4 sm:$0xff]   ;;  %v1820_v60 = vld [vmem:[%s2749_s0 + $0x1a0] ss:$8 sps:$4 sm:$0xff]  }
  0x15   :  { %v1785_v61 = vld [vmem:[%s2749_s0 + $0xb4] ss:$8 sps:$4 sm:$0xff]   ;;  %v1787_v63 = vld [vmem:[%s2749_s0 + $0xb0] ss:$8 sps:$4 sm:$0xff]   ;;  %v1791_v1 = vld [vmem:[%s2749_s0 + $0xc4] ss:$8 sps:$4 sm:$0xff]  }
  0x16   :  { %538 = vmatpush1.bf16.msra.mxu0 %v1729_v7  ;;  %1712 = vmatpush1.bf16.msra.mxu1 %v1729_v7  ;;  %v1821_v62 = vld [vmem:[%s2749_s0 + $0x1b4] ss:$8 sps:$4 sm:$0xff]   ;;  %v1824_v2 = vld [vmem:[%s2749_s0 + $0x1c4] ss:$8 sps:$4 sm:$0xff]   ;;  %v1793_v3 = vld [vmem:[%s2749_s0 + $0xc0] ss:$8 sps:$4 sm:$0xff]  }
  0x17   :  { %539 = vmatprep.subr.bf16.mxu0 %v1836_v0  ;;  %1697 = vmatprep.subr.bf16.mxu1 %v1836_v0  ;;  %v1826_v4 = vld [vmem:[%s2749_s0 + $0x1c0] ss:$8 sps:$4 sm:$0xff]   ;;  %v1797_v5 = vld [vmem:[%s2749_s0 + $0xd4] ss:$8 sps:$4 sm:$0xff]   ;;  %v1799_v7 = vld [vmem:[%s2749_s0 + $0xd0] ss:$8 sps:$4 sm:$0xff]  }
  0x18   :  { %v1827_v6 = vld [vmem:[%s2749_s0 + $0x1d4] ss:$8 sps:$4 sm:$0xff]   ;;  %v1830_v10 = vld [vmem:[%s2749_s0 + $0x1e4] ss:$8 sps:$4 sm:$0xff]  }
  0x1a   :  { %540 = vmatpush1.bf16.msra.mxu0 %v1730_v8  ;;  %1713 = vmatpush1.bf16.msra.mxu1 %v1730_v8  ;;  %v1829_v8 = vld [vmem:[%s2749_s0 + $0x1d0] ss:$8 sps:$4 sm:$0xff]  }
  0x1b   :  { %541 = vmatprep.subr.bf16.mxu0 %v1836_v0  ;;  %1698 = vmatprep.subr.bf16.mxu1 %v1836_v0 }
  0x1e   :  { %542 = vmatpush1.bf16.msra.mxu0 %v1731_v9  ;;  %1714 = vmatpush1.bf16.msra.mxu1 %v1731_v9  ;;  %v1803_v9 = vld [vmem:[%s2749_s0 + $0xe4] ss:$8 sps:$4 sm:$0xff]  }
  0x1f   :  { %543 = vmatprep.subr.bf16.mxu0 %v1836_v0  ;;  %1699 = vmatprep.subr.bf16.mxu1 %v1836_v0 }
  0x22   :  { %544 = vmatpush1.bf16.msra.mxu0 %v1732_v11  ;;  %1715 = vmatpush1.bf16.msra.mxu1 %v1732_v11  ;;  %v1805_v11 = vld [vmem:[%s2749_s0 + $0xe0] ss:$8 sps:$4 sm:$0xff]  }
  0x23   :  { %545 = vmatprep.subr.bf16.mxu0 %v1836_v0  ;;  %1700 = vmatprep.subr.bf16.mxu1 %v1836_v0 }
  0x26   :  { %546 = vmatpush1.bf16.msra.mxu0 %v1733_v12  ;;  %1716 = vmatpush1.bf16.msra.mxu1 %v1733_v12  ;;  %v1832_v12 = vld [vmem:[%s2749_s0 + $0x1e0] ss:$8 sps:$4 sm:$0xff]  }
  0x27   :  { %547 = vmatprep.subr.bf16.mxu0 %v1836_v0  ;;  %1701 = vmatprep.subr.bf16.mxu1 %v1836_v0 }
  0x2a   :  { %548 = vmatpush1.bf16.msra.mxu0 %v1734_v13  ;;  %1717 = vmatpush1.bf16.msra.mxu1 %v1734_v13  ;;  %v1809_v13 = vld [vmem:[%s2749_s0 + $0xf4] ss:$8 sps:$4 sm:$0xff]  }
  0x2b   :  { %549 = vmatprep.subr.bf16.mxu0 %v1836_v0  ;;  %1702 = vmatprep.subr.bf16.mxu1 %v1836_v0 }
  0x2e   :  { %550 = vmatpush1.bf16.msra.mxu0 %v1735_v14  ;;  %1718 = vmatpush1.bf16.msra.mxu1 %v1735_v14  ;;  %v1833_v14 = vld [vmem:[%s2749_s0 + $0x1f4] ss:$8 sps:$4 sm:$0xff]  }
  0x2f   :  { %551 = vmatprep.subr.bf16.mxu0 %v1836_v0  ;;  %1703 = vmatprep.subr.bf16.mxu1 %v1836_v0 }
  0x32   :  { %552 = vmatpush1.bf16.msra.mxu0 %v1736_v15  ;;  %1719 = vmatpush1.bf16.msra.mxu1 %v1736_v15  ;;  %v1811_v15 = vld [vmem:[%s2749_s0 + $0xf0] ss:$8 sps:$4 sm:$0xff]  }
  0x33   :  { %553 = vmatprep.subr.bf16.mxu0 %v1836_v0  ;;  %1704 = vmatprep.subr.bf16.mxu1 %v1836_v0 }
  0x36   :  { %554 = vmatpush1.bf16.msra.mxu0 %v1737_v16  ;;  %1720 = vmatpush1.bf16.msra.mxu1 %v1737_v16  ;;  %v1835_v16 = vld [vmem:[%s2749_s0 + $0x1f0] ss:$8 sps:$4 sm:$0xff]  }
  0x37   :  { %555 = vmatprep.subr.bf16.mxu0 %v1836_v0  ;;  %1705 = vmatprep.subr.bf16.mxu1 %v1836_v0 }
  0x3a   :  { %556 = vmatpush1.bf16.msra.mxu0 %v1738_v17  ;;  %1721 = vmatpush1.bf16.msra.mxu1 %v1738_v17 }
  0x3b   :  { %557 = vmatprep.subr.bf16.mxu0 %v1836_v0  ;;  %1706 = vmatprep.subr.bf16.mxu1 %v1836_v0  ;;  %v1823_v0 = vld [vmem:[%s2749_s0 + $0x1b0] ss:$8 sps:$4 sm:$0xff]  }
  0x3e   :  { %558 = vmatpush1.bf16.msra.mxu0 %v1739_v18  ;;  %1722 = vmatpush1.bf16.msra.mxu1 %v1739_v18 }
  0x41   :  { %560 = vmatmul.mubr.bf16.vlgmr.msra.gmra.mrb[0].mxu0 %v1740_v19  ;;  %688 = vmatmul.mubr.bf16.vlgmr.msra.gmra.mrb[0].mxu1 %v1764_v20 }
  0x42   :  { %567 = vmatprep.mubr.bf16.mxu0 %v1743_v21  ;;  %695 = vmatprep.mubr.bf16.mxu1 %v1770_v22 }
  0x49   :  { %568 = vmatmul.mubr.bf16.gmra.mrb[4].mxu0 %v1745_v23  ;;  %696 = vmatmul.mubr.bf16.gmra.mrb[4].mxu1 %v1772_v24 }
  0x4a   :  { %575 = vmatprep.mubr.bf16.mxu0 %v1746_v25  ;;  %703 = vmatprep.mubr.bf16.mxu1 %v1776_v26 }
  0x51   :  { %576 = vmatmul.mubr.bf16.gmra.mrb[8].mxu0 %v1748_v27  ;;  %704 = vmatmul.mubr.bf16.gmra.mrb[8].mxu1 %v1778_v28 }
  0x52   :  { %583 = vmatprep.mubr.bf16.mxu0 %v1749_v29  ;;  %711 = vmatprep.mubr.bf16.mxu1 %v1782_v30 }
  0x59   :  { %584 = vmatmul.mubr.bf16.gmra.mrb[12].mxu0 %v1751_v31  ;;  %712 = vmatmul.mubr.bf16.gmra.mrb[12].mxu1 %v1784_v32 }
  0x5a   :  { %591 = vmatprep.mubr.bf16.mxu0 %v1752_v33  ;;  %719 = vmatprep.mubr.bf16.mxu1 %v1788_v34 }
  0x61   :  { %592 = vmatmul.mubr.bf16.gmra.mrb[16].mxu0 %v1754_v35  ;;  %720 = vmatmul.mubr.bf16.gmra.mrb[16].mxu1 %v1790_v36 }
  0x62   :  { %599 = vmatprep.mubr.bf16.mxu0 %v1755_v37  ;;  %727 = vmatprep.mubr.bf16.mxu1 %v1794_v38 }
  0x69   :  { %600 = vmatmul.mubr.bf16.gmra.mrb[20].mxu0 %v1757_v39  ;;  %728 = vmatmul.mubr.bf16.gmra.mrb[20].mxu1 %v1796_v40 }
  0x6a   :  { %607 = vmatprep.mubr.bf16.mxu0 %v1758_v41  ;;  %735 = vmatprep.mubr.bf16.mxu1 %v1800_v42 }
  0x71   :  { %608 = vmatmul.mubr.bf16.gmra.mrb[24].mxu0 %v1760_v43  ;;  %736 = vmatmul.mubr.bf16.gmra.mrb[24].mxu1 %v1802_v44 }
  0x72   :  { %615 = vmatprep.mubr.bf16.mxu0 %v1761_v45  ;;  %743 = vmatprep.mubr.bf16.mxu1 %v1806_v46 }
  0x79   :  { %616 = vmatmul.mubr.bf16.gmra.mrb[28].mxu0 %v1763_v47  ;;  %744 = vmatmul.mubr.bf16.gmra.mrb[28].mxu1 %v1808_v48 }
  0x7a   :  { %623 = vmatprep.mubr.bf16.mxu0 %v1767_v49  ;;  %751 = vmatprep.mubr.bf16.mxu1 %v1812_v50 }
  0x81   :  { %624 = vmatmul.mubr.bf16.gmra.mrb[32].mxu0 %v1769_v51  ;;  %752 = vmatmul.mubr.bf16.gmra.mrb[32].mxu1 %v1814_v52 }
  0x82   :  { %631 = vmatprep.mubr.bf16.mxu0 %v1773_v53  ;;  %759 = vmatprep.mubr.bf16.mxu1 %v1815_v54 }
  0x89   :  { %632 = vmatmul.mubr.bf16.gmra.mrb[36].mxu0 %v1775_v55  ;;  %760 = vmatmul.mubr.bf16.gmra.mrb[36].mxu1 %v1817_v56 }
  0x8a   :  { %639 = vmatprep.mubr.bf16.mxu0 %v1779_v57  ;;  %767 = vmatprep.mubr.bf16.mxu1 %v1818_v58 }
  0x91   :  { %640 = vmatmul.mubr.bf16.gmra.mrb[40].mxu0 %v1781_v59  ;;  %768 = vmatmul.mubr.bf16.gmra.mrb[40].mxu1 %v1820_v60 }
  0x92   :  { %647 = vmatprep.mubr.bf16.mxu0 %v1785_v61  ;;  %775 = vmatprep.mubr.bf16.mxu1 %v1821_v62 }
  0x99   :  { %648 = vmatmul.mubr.bf16.gmra.mrb[44].mxu0 %v1787_v63  ;;  %776 = vmatmul.mubr.bf16.gmra.mrb[44].mxu1 %v1823_v0 }
  0x9a   :  { %655 = vmatprep.mubr.bf16.mxu0 %v1791_v1  ;;  %783 = vmatprep.mubr.bf16.mxu1 %v1824_v2 }
  0xa1   :  { %656 = vmatmul.mubr.bf16.gmra.mrb[48].mxu0 %v1793_v3  ;;  %784 = vmatmul.mubr.bf16.gmra.mrb[48].mxu1 %v1826_v4 }
  0xa2   :  { %663 = vmatprep.mubr.bf16.mxu0 %v1797_v5  ;;  %791 = vmatprep.mubr.bf16.mxu1 %v1827_v6 }
  0xa9   :  { %664 = vmatmul.mubr.bf16.gmra.mrb[52].mxu0 %v1799_v7  ;;  %792 = vmatmul.mubr.bf16.gmra.mrb[52].mxu1 %v1829_v8 }
  0xaa   :  { %671 = vmatprep.mubr.bf16.mxu0 %v1803_v9  ;;  %799 = vmatprep.mubr.bf16.mxu1 %v1830_v10 }
  0xb1   :  { %672 = vmatmul.mubr.bf16.gmra.mrb[56].mxu0 %v1805_v11  ;;  %800 = vmatmul.mubr.bf16.gmra.mrb[56].mxu1 %v1832_v12 }
  0xb2   :  { %679 = vmatprep.mubr.bf16.mxu0 %v1809_v13  ;;  %807 = vmatprep.mubr.bf16.mxu1 %v1833_v14 }
  0xb9   :  { %680 = vmatmul.mubr.bf16.gmra.mrb[60].mxu0 %v1811_v15  ;;  %808 = vmatmul.mubr.bf16.gmra.mrb[60].mxu1 %v1835_v16 }
 0x114   :  { %v561_v17 = vpop.f32.mrb[0].mxu0  ;;  %v2134_v18 = vpop.f32.mrb[0].mxu1 }
 0x115   :  { %v1627_v19 = vpack.c.bf16 %v561_v17, %v561_v17  ;;  %v1273_v20 = vmul.f32 %v561_v17, %v561_v17  ;;  %v563_v21 = vpop.f32.mrb[1].mxu0  ;;  %v1659_v22 = vpack.c.bf16 %v2134_v18, %v2134_v18  ;;  %v691_v23 = vpop.f32.mrb[1].mxu1  ;;  %v1138_v26 = vsel %vm1137_vm1, %v561_v17, 0.0 }
 0x116   :  { %v564_v24 = vpop.f32.mrb[2].mxu0  ;;  %v2138_v25 = vpop.f32.mrb[2].mxu1 }
 0x117   :  { %1073 = vst.msk [vmem:[%s2750_s2] sm:$0xf] %vm1072_vm0, %v1627_v19  ;;  %v1628_v27 = vpack.c.bf16 %v564_v24, %v564_v24  ;;  %v1139_v28 = vsel %vm1137_vm1, %v564_v24, 0.0  ;;  %v1274_v29 = vmul.f32 %v564_v24, %v564_v24  ;;  %v566_v30 = vpop.f32.mrb[3].mxu0  ;;  %1105 = vst.msk [vmem:[%s2750_s2 + $0x80] sm:$0xf] %vm1072_vm0, %v1659_v22  ;;  %v1660_v33 = vpack.c.bf16 %v2138_v25, %v2138_v25 }
 0x118   :  { %v694_v31 = vpop.f32.mrb[3].mxu1  ;;  %v1140_v32 = vadd.f32 %v1139_v28, %v1138_v26  ;;  %v1337_v34 = vsel %vm1137_vm1, %v1273_v20, 0.0 }
 0x119   :  { %1074 = vst.msk [vmem:[%s2750_s2 + $0x4] sm:$0xf] %vm1072_vm0, %v1628_v27  ;;  %v1338_v35 = vsel %vm1137_vm1, %v1274_v29, 0.0  ;;  %1106 = vst.msk [vmem:[%s2750_s2 + $0x84] sm:$0xf] %vm1072_vm0, %v1660_v33 }
 0x11a   :  { %v1339_v36 = vadd.f32 %v1338_v35, %v1337_v34 }
 0x11c   :  { %v569_v37 = vpop.f32.mrb[4].mxu0  ;;  %v2162_v38 = vpop.f32.mrb[4].mxu1 }
 0x11d   :  { %v1629_v39 = vpack.c.bf16 %v569_v37, %v569_v37  ;;  %v1141_v40 = vsel %vm1137_vm1, %v569_v37, 0.0  ;;  %v1275_v41 = vmul.f32 %v569_v37, %v569_v37  ;;  %v571_v42 = vpop.f32.mrb[5].mxu0  ;;  %v1661_v43 = vpack.c.bf16 %v2162_v38, %v2162_v38  ;;  %v699_v44 = vpop.f32.mrb[5].mxu1 }
 0x11e   :  { %v1142_v45 = vadd.f32 %v1141_v40, %v1140_v32  ;;  %v572_v46 = vpop.f32.mrb[6].mxu0  ;;  %v2167_v47 = vpop.f32.mrb[6].mxu1 }
 0x11f   :  { %1075 = vst.msk [vmem:[%s2750_s2 + $0x8] sm:$0xf] %vm1072_vm0, %v1629_v39  ;;  %v1340_v48 = vsel %vm1137_vm1, %v1275_v41, 0.0  ;;  %v1630_v49 = vpack.c.bf16 %v572_v46, %v572_v46  ;;  %v1143_v50 = vsel %vm1137_vm1, %v572_v46, 0.0  ;;  %v1276_v51 = vmul.f32 %v572_v46, %v572_v46  ;;  %v574_v52 = vpop.f32.mrb[7].mxu0  ;;  %v702_v53 = vpop.f32.mrb[7].mxu1 }
 0x120   :  { %1107 = vst.msk [vmem:[%s2750_s2 + $0x88] sm:$0xf] %vm1072_vm0, %v1661_v43  ;;  %v1341_v54 = vadd.f32 %v1340_v48, %v1339_v36  ;;  %v1144_v55 = vadd.f32 %v1143_v50, %v1142_v45  ;;  %v1662_v56 = vpack.c.bf16 %v2167_v47, %v2167_v47 }
 0x121   :  { %1076 = vst.msk [vmem:[%s2750_s2 + $0xc] sm:$0xf] %vm1072_vm0, %v1630_v49  ;;  %v1342_v57 = vsel %vm1137_vm1, %v1276_v51, 0.0 }
 0x122   :  { %v1343_v58 = vadd.f32 %v1342_v57, %v1341_v54  ;;  %1108 = vst.msk [vmem:[%s2750_s2 + $0x8c] sm:$0xf] %vm1072_vm0, %v1662_v56 }
 0x124   :  { %v577_v59 = vpop.f32.mrb[8].mxu0  ;;  %v2190_v60 = vpop.f32.mrb[8].mxu1 }
 0x125   :  { %v1631_v61 = vpack.c.bf16 %v577_v59, %v577_v59  ;;  %v1145_v62 = vsel %vm1137_vm1, %v577_v59, 0.0  ;;  %v1277_v63 = vmul.f32 %v577_v59, %v577_v59  ;;  %v579_v0 = vpop.f32.mrb[9].mxu0  ;;  %v1663_v1 = vpack.c.bf16 %v2190_v60, %v2190_v60  ;;  %v707_v2 = vpop.f32.mrb[9].mxu1 }
 0x126   :  { %v1146_v3 = vadd.f32 %v1145_v62, %v1144_v55  ;;  %v580_v4 = vpop.f32.mrb[10].mxu0  ;;  %v2195_v5 = vpop.f32.mrb[10].mxu1 }
 0x127   :  { %1077 = vst.msk [vmem:[%s2750_s2 + $0x10] sm:$0xf] %vm1072_vm0, %v1631_v61  ;;  %v1344_v6 = vsel %vm1137_vm1, %v1277_v63, 0.0  ;;  %v1632_v7 = vpack.c.bf16 %v580_v4, %v580_v4  ;;  %v1147_v8 = vsel %vm1137_vm1, %v580_v4, 0.0  ;;  %v1278_v9 = vmul.f32 %v580_v4, %v580_v4  ;;  %v582_v10 = vpop.f32.mrb[11].mxu0  ;;  %v710_v11 = vpop.f32.mrb[11].mxu1 }
 0x128   :  { %1109 = vst.msk [vmem:[%s2750_s2 + $0x90] sm:$0xf] %vm1072_vm0, %v1663_v1  ;;  %v1345_v12 = vadd.f32 %v1344_v6, %v1343_v58  ;;  %v1148_v13 = vadd.f32 %v1147_v8, %v1146_v3  ;;  %v1664_v14 = vpack.c.bf16 %v2195_v5, %v2195_v5 }
 0x129   :  { %1078 = vst.msk [vmem:[%s2750_s2 + $0x14] sm:$0xf] %vm1072_vm0, %v1632_v7  ;;  %v1346_v15 = vsel %vm1137_vm1, %v1278_v9, 0.0 }
 0x12a   :  { %v1347_v16 = vadd.f32 %v1346_v15, %v1345_v12  ;;  %1110 = vst.msk [vmem:[%s2750_s2 + $0x94] sm:$0xf] %vm1072_vm0, %v1664_v14 }
 0x12c   :  { %v585_v17 = vpop.f32.mrb[12].mxu0  ;;  %v2218_v19 = vpop.f32.mrb[12].mxu1 }
 0x12d   :  { %v1633_v20 = vpack.c.bf16 %v585_v17, %v585_v17  ;;  %v1149_v21 = vsel %vm1137_vm1, %v585_v17, 0.0  ;;  %v1279_v22 = vmul.f32 %v585_v17, %v585_v17  ;;  %v587_v23 = vpop.f32.mrb[13].mxu0  ;;  %v1665_v24 = vpack.c.bf16 %v2218_v19, %v2218_v19  ;;  %v715_v26 = vpop.f32.mrb[13].mxu1 }
 0x12e   :  { %v1150_v27 = vadd.f32 %v1149_v21, %v1148_v13  ;;  %v588_v28 = vpop.f32.mrb[14].mxu0  ;;  %v2223_v29 = vpop.f32.mrb[14].mxu1 }
 0x12f   :  { %1079 = vst.msk [vmem:[%s2750_s2 + $0x18] sm:$0xf] %vm1072_vm0, %v1633_v20  ;;  %v1348_v30 = vsel %vm1137_vm1, %v1279_v22, 0.0  ;;  %v1634_v31 = vpack.c.bf16 %v588_v28, %v588_v28  ;;  %v1151_v32 = vsel %vm1137_vm1, %v588_v28, 0.0  ;;  %v1280_v33 = vmul.f32 %v588_v28, %v588_v28  ;;  %v590_v34 = vpop.f32.mrb[15].mxu0  ;;  %v718_v35 = vpop.f32.mrb[15].mxu1 }
 0x130   :  { %1111 = vst.msk [vmem:[%s2750_s2 + $0x98] sm:$0xf] %vm1072_vm0, %v1665_v24  ;;  %v1349_v36 = vadd.f32 %v1348_v30, %v1347_v16  ;;  %v1152_v37 = vadd.f32 %v1151_v32, %v1150_v27  ;;  %v1666_v39 = vpack.c.bf16 %v2223_v29, %v2223_v29 }
 0x131   :  { %1080 = vst.msk [vmem:[%s2750_s2 + $0x1c] sm:$0xf] %vm1072_vm0, %v1634_v31  ;;  %v1350_v40 = vsel %vm1137_vm1, %v1280_v33, 0.0 }
 0x132   :  { %v1351_v41 = vadd.f32 %v1350_v40, %v1349_v36  ;;  %1112 = vst.msk [vmem:[%s2750_s2 + $0x9c] sm:$0xf] %vm1072_vm0, %v1666_v39 }
 0x134   :  { %v593_v42 = vpop.f32.mrb[16].mxu0  ;;  %v2246_v43 = vpop.f32.mrb[16].mxu1 }
 0x135   :  { %v1635_v44 = vpack.c.bf16 %v593_v42, %v593_v42  ;;  %v1153_v45 = vsel %vm1137_vm1, %v593_v42, 0.0  ;;  %v1281_v46 = vmul.f32 %v593_v42, %v593_v42  ;;  %v595_v48 = vpop.f32.mrb[17].mxu0  ;;  %v1667_v49 = vpack.c.bf16 %v2246_v43, %v2246_v43  ;;  %v723_v50 = vpop.f32.mrb[17].mxu1 }
 0x136   :  { %v1154_v51 = vadd.f32 %v1153_v45, %v1152_v37  ;;  %v596_v52 = vpop.f32.mrb[18].mxu0  ;;  %v2251_v53 = vpop.f32.mrb[18].mxu1 }
 0x137   :  { %1081 = vst.msk [vmem:[%s2750_s2 + $0x20] sm:$0xf] %vm1072_vm0, %v1635_v44  ;;  %v1352_v54 = vsel %vm1137_vm1, %v1281_v46, 0.0  ;;  %v1636_v55 = vpack.c.bf16 %v596_v52, %v596_v52  ;;  %v1155_v56 = vsel %vm1137_vm1, %v596_v52, 0.0  ;;  %v1282_v57 = vmul.f32 %v596_v52, %v596_v52  ;;  %v598_v58 = vpop.f32.mrb[19].mxu0  ;;  %v726_v59 = vpop.f32.mrb[19].mxu1 }
 0x138   :  { %1113 = vst.msk [vmem:[%s2750_s2 + $0xa0] sm:$0xf] %vm1072_vm0, %v1667_v49  ;;  %v1353_v61 = vadd.f32 %v1352_v54, %v1351_v41  ;;  %v1156_v62 = vadd.f32 %v1155_v56, %v1154_v51  ;;  %v1668_v63 = vpack.c.bf16 %v2251_v53, %v2251_v53 }
 0x139   :  { %1082 = vst.msk [vmem:[%s2750_s2 + $0x24] sm:$0xf] %vm1072_vm0, %v1636_v55  ;;  %v1354_v0 = vsel %vm1137_vm1, %v1282_v57, 0.0 }
 0x13a   :  { %v1355_v1 = vadd.f32 %v1354_v0, %v1353_v61  ;;  %1114 = vst.msk [vmem:[%s2750_s2 + $0xa4] sm:$0xf] %vm1072_vm0, %v1668_v63 }
 0x13c   :  { %v601_v2 = vpop.f32.mrb[20].mxu0  ;;  %v2274_v3 = vpop.f32.mrb[20].mxu1 }
 0x13d   :  { %v1637_v4 = vpack.c.bf16 %v601_v2, %v601_v2  ;;  %v1157_v6 = vsel %vm1137_vm1, %v601_v2, 0.0  ;;  %v1283_v7 = vmul.f32 %v601_v2, %v601_v2  ;;  %v603_v8 = vpop.f32.mrb[21].mxu0  ;;  %v1669_v9 = vpack.c.bf16 %v2274_v3, %v2274_v3  ;;  %v731_v10 = vpop.f32.mrb[21].mxu1 }
 0x13e   :  { %v1158_v11 = vadd.f32 %v1157_v6, %v1156_v62  ;;  %v604_v12 = vpop.f32.mrb[22].mxu0  ;;  %v2279_v13 = vpop.f32.mrb[22].mxu1 }
 0x13f   :  { %1083 = vst.msk [vmem:[%s2750_s2 + $0x28] sm:$0xf] %vm1072_vm0, %v1637_v4  ;;  %v1356_v14 = vsel %vm1137_vm1, %v1283_v7, 0.0  ;;  %v1638_v15 = vpack.c.bf16 %v604_v12, %v604_v12  ;;  %v1159_v16 = vsel %vm1137_vm1, %v604_v12, 0.0  ;;  %v1284_v17 = vmul.f32 %v604_v12, %v604_v12  ;;  %v606_v20 = vpop.f32.mrb[23].mxu0  ;;  %v734_v21 = vpop.f32.mrb[23].mxu1 }
 0x140   :  { %1115 = vst.msk [vmem:[%s2750_s2 + $0xa8] sm:$0xf] %vm1072_vm0, %v1669_v9  ;;  %v1357_v22 = vadd.f32 %v1356_v14, %v1355_v1  ;;  %v1160_v23 = vadd.f32 %v1159_v16, %v1158_v11  ;;  %v1670_v24 = vpack.c.bf16 %v2279_v13, %v2279_v13 }
 0x141   :  { %1084 = vst.msk [vmem:[%s2750_s2 + $0x2c] sm:$0xf] %vm1072_vm0, %v1638_v15  ;;  %v1358_v26 = vsel %vm1137_vm1, %v1284_v17, 0.0 }
 0x142   :  { %v1359_v27 = vadd.f32 %v1358_v26, %v1357_v22  ;;  %1116 = vst.msk [vmem:[%s2750_s2 + $0xac] sm:$0xf] %vm1072_vm0, %v1670_v24 }
 0x144   :  { %v609_v28 = vpop.f32.mrb[24].mxu0  ;;  %v2302_v30 = vpop.f32.mrb[24].mxu1 }
 0x145   :  { %v1639_v31 = vpack.c.bf16 %v609_v28, %v609_v28  ;;  %v1161_v32 = vsel %vm1137_vm1, %v609_v28, 0.0  ;;  %v1285_v33 = vmul.f32 %v609_v28, %v609_v28  ;;  %v611_v34 = vpop.f32.mrb[25].mxu0  ;;  %v1671_v35 = vpack.c.bf16 %v2302_v30, %v2302_v30  ;;  %v739_v36 = vpop.f32.mrb[25].mxu1 }
 0x146   :  { %v1162_v37 = vadd.f32 %v1161_v32, %v1160_v23  ;;  %v612_v39 = vpop.f32.mrb[26].mxu0  ;;  %v2307_v40 = vpop.f32.mrb[26].mxu1 }
 0x147   :  { %1085 = vst.msk [vmem:[%s2750_s2 + $0x30] sm:$0xf] %vm1072_vm0, %v1639_v31  ;;  %v1360_v41 = vsel %vm1137_vm1, %v1285_v33, 0.0  ;;  %v1640_v42 = vpack.c.bf16 %v612_v39, %v612_v39  ;;  %v1163_v44 = vsel %vm1137_vm1, %v612_v39, 0.0  ;;  %v1286_v45 = vmul.f32 %v612_v39, %v612_v39  ;;  %v614_v46 = vpop.f32.mrb[27].mxu0  ;;  %v742_v48 = vpop.f32.mrb[27].mxu1 }
 0x148   :  { %1117 = vst.msk [vmem:[%s2750_s2 + $0xb0] sm:$0xf] %vm1072_vm0, %v1671_v35  ;;  %v1361_v49 = vadd.f32 %v1360_v41, %v1359_v27  ;;  %v1164_v50 = vadd.f32 %v1163_v44, %v1162_v37  ;;  %v1672_v51 = vpack.c.bf16 %v2307_v40, %v2307_v40 }
 0x149   :  { %1086 = vst.msk [vmem:[%s2750_s2 + $0x34] sm:$0xf] %vm1072_vm0, %v1640_v42  ;;  %v1362_v52 = vsel %vm1137_vm1, %v1286_v45, 0.0 }
 0x14a   :  { %v1363_v54 = vadd.f32 %v1362_v52, %v1361_v49  ;;  %1118 = vst.msk [vmem:[%s2750_s2 + $0xb4] sm:$0xf] %vm1072_vm0, %v1672_v51 }
 0x14c   :  { %v617_v55 = vpop.f32.mrb[28].mxu0  ;;  %v2330_v56 = vpop.f32.mrb[28].mxu1 }
 0x14d   :  { %v1641_v57 = vpack.c.bf16 %v617_v55, %v617_v55  ;;  %v1165_v58 = vsel %vm1137_vm1, %v617_v55, 0.0  ;;  %v1287_v59 = vmul.f32 %v617_v55, %v617_v55  ;;  %v619_v61 = vpop.f32.mrb[29].mxu0  ;;  %v1673_v62 = vpack.c.bf16 %v2330_v56, %v2330_v56  ;;  %v747_v63 = vpop.f32.mrb[29].mxu1 }
 0x14e   :  { %v1166_v0 = vadd.f32 %v1165_v58, %v1164_v50  ;;  %v620_v1 = vpop.f32.mrb[30].mxu0  ;;  %v2335_v2 = vpop.f32.mrb[30].mxu1 }
 0x14f   :  { %1087 = vst.msk [vmem:[%s2750_s2 + $0x38] sm:$0xf] %vm1072_vm0, %v1641_v57  ;;  %v1364_v4 = vsel %vm1137_vm1, %v1287_v59, 0.0  ;;  %v1642_v6 = vpack.c.bf16 %v620_v1, %v620_v1  ;;  %v1167_v7 = vsel %vm1137_vm1, %v620_v1, 0.0  ;;  %v1288_v8 = vmul.f32 %v620_v1, %v620_v1  ;;  %v622_v9 = vpop.f32.mrb[31].mxu0  ;;  %v750_v10 = vpop.f32.mrb[31].mxu1 }
 0x150   :  { %1119 = vst.msk [vmem:[%s2750_s2 + $0xb8] sm:$0xf] %vm1072_vm0, %v1673_v62  ;;  %v1365_v11 = vadd.f32 %v1364_v4, %v1363_v54  ;;  %v1168_v12 = vadd.f32 %v1167_v7, %v1166_v0  ;;  %v1674_v14 = vpack.c.bf16 %v2335_v2, %v2335_v2 }
 0x151   :  { %1088 = vst.msk [vmem:[%s2750_s2 + $0x3c] sm:$0xf] %vm1072_vm0, %v1642_v6  ;;  %v1366_v15 = vsel %vm1137_vm1, %v1288_v8, 0.0 }
 0x152   :  { %v1367_v16 = vadd.f32 %v1366_v15, %v1365_v11  ;;  %1120 = vst.msk [vmem:[%s2750_s2 + $0xbc] sm:$0xf] %vm1072_vm0, %v1674_v14 }
 0x154   :  { %v625_v17 = vpop.f32.mrb[32].mxu0  ;;  %v2358_v20 = vpop.f32.mrb[32].mxu1 }
 0x155   :  { %v1643_v21 = vpack.c.bf16 %v625_v17, %v625_v17  ;;  %v1169_v22 = vsel %vm1137_vm1, %v625_v17, 0.0  ;;  %v1289_v23 = vmul.f32 %v625_v17, %v625_v17  ;;  %v627_v24 = vpop.f32.mrb[33].mxu0  ;;  %v1675_v26 = vpack.c.bf16 %v2358_v20, %v2358_v20  ;;  %v755_v27 = vpop.f32.mrb[33].mxu1 }
 0x156   :  { %v1170_v28 = vadd.f32 %v1169_v22, %v1168_v12  ;;  %v628_v31 = vpop.f32.mrb[34].mxu0  ;;  %v2363_v32 = vpop.f32.mrb[34].mxu1 }
 0x157   :  { %1089 = vst.msk [vmem:[%s2750_s2 + $0x40] sm:$0xf] %vm1072_vm0, %v1643_v21  ;;  %v1368_v33 = vsel %vm1137_vm1, %v1289_v23, 0.0  ;;  %v1644_v34 = vpack.c.bf16 %v628_v31, %v628_v31  ;;  %v1171_v35 = vsel %vm1137_vm1, %v628_v31, 0.0  ;;  %v1290_v36 = vmul.f32 %v628_v31, %v628_v31  ;;  %v630_v37 = vpop.f32.mrb[35].mxu0  ;;  %v758_v39 = vpop.f32.mrb[35].mxu1 }
 0x158   :  { %1121 = vst.msk [vmem:[%s2750_s2 + $0xc0] sm:$0xf] %vm1072_vm0, %v1675_v26  ;;  %v1369_v41 = vadd.f32 %v1368_v33, %v1367_v16  ;;  %v1172_v42 = vadd.f32 %v1171_v35, %v1170_v28  ;;  %v1676_v44 = vpack.c.bf16 %v2363_v32, %v2363_v32 }
 0x159   :  { %1090 = vst.msk [vmem:[%s2750_s2 + $0x44] sm:$0xf] %vm1072_vm0, %v1644_v34  ;;  %v1370_v45 = vsel %vm1137_vm1, %v1290_v36, 0.0 }
 0x15a   :  { %v1371_v46 = vadd.f32 %v1370_v45, %v1369_v41  ;;  %1122 = vst.msk [vmem:[%s2750_s2 + $0xc4] sm:$0xf] %vm1072_vm0, %v1676_v44 }
 0x15c   :  { %v633_v48 = vpop.f32.mrb[36].mxu0  ;;  %v2386_v49 = vpop.f32.mrb[36].mxu1 }
 0x15d   :  { %v1645_v50 = vpack.c.bf16 %v633_v48, %v633_v48  ;;  %v1173_v51 = vsel %vm1137_vm1, %v633_v48, 0.0  ;;  %v1291_v52 = vmul.f32 %v633_v48, %v633_v48  ;;  %v635_v54 = vpop.f32.mrb[37].mxu0  ;;  %v1677_v55 = vpack.c.bf16 %v2386_v49, %v2386_v49  ;;  %v763_v57 = vpop.f32.mrb[37].mxu1 }
 0x15e   :  { %v1174_v58 = vadd.f32 %v1173_v51, %v1172_v42  ;;  %v636_v59 = vpop.f32.mrb[38].mxu0  ;;  %v2391_v61 = vpop.f32.mrb[38].mxu1 }
 0x15f   :  { %1091 = vst.msk [vmem:[%s2750_s2 + $0x48] sm:$0xf] %vm1072_vm0, %v1645_v50  ;;  %v1372_v62 = vsel %vm1137_vm1, %v1291_v52, 0.0  ;;  %v1646_v63 = vpack.c.bf16 %v636_v59, %v636_v59  ;;  %v1175_v0 = vsel %vm1137_vm1, %v636_v59, 0.0  ;;  %v1292_v1 = vmul.f32 %v636_v59, %v636_v59  ;;  %v638_v4 = vpop.f32.mrb[39].mxu0  ;;  %v766_v6 = vpop.f32.mrb[39].mxu1 }
 0x160   :  { %1123 = vst.msk [vmem:[%s2750_s2 + $0xc8] sm:$0xf] %vm1072_vm0, %v1677_v55  ;;  %v1373_v7 = vadd.f32 %v1372_v62, %v1371_v46  ;;  %v1176_v8 = vadd.f32 %v1175_v0, %v1174_v58  ;;  %v1678_v9 = vpack.c.bf16 %v2391_v61, %v2391_v61 }
 0x161   :  { %1092 = vst.msk [vmem:[%s2750_s2 + $0x4c] sm:$0xf] %vm1072_vm0, %v1646_v63  ;;  %v1374_v10 = vsel %vm1137_vm1, %v1292_v1, 0.0 }
 0x162   :  { %v1375_v11 = vadd.f32 %v1374_v10, %v1373_v7  ;;  %1124 = vst.msk [vmem:[%s2750_s2 + $0xcc] sm:$0xf] %vm1072_vm0, %v1678_v9 }
 0x164   :  { %v641_v12 = vpop.f32.mrb[40].mxu0  ;;  %v2414_v14 = vpop.f32.mrb[40].mxu1 }
 0x165   :  { %v1647_v15 = vpack.c.bf16 %v641_v12, %v641_v12  ;;  %v1177_v16 = vsel %vm1137_vm1, %v641_v12, 0.0  ;;  %v1293_v17 = vmul.f32 %v641_v12, %v641_v12  ;;  %v643_v21 = vpop.f32.mrb[41].mxu0  ;;  %v1679_v22 = vpack.c.bf16 %v2414_v14, %v2414_v14  ;;  %v771_v23 = vpop.f32.mrb[41].mxu1 }
 0x166   :  { %v1178_v24 = vadd.f32 %v1177_v16, %v1176_v8  ;;  %v644_v26 = vpop.f32.mrb[42].mxu0  ;;  %v2419_v27 = vpop.f32.mrb[42].mxu1 }
 0x167   :  { %1093 = vst.msk [vmem:[%s2750_s2 + $0x50] sm:$0xf] %vm1072_vm0, %v1647_v15  ;;  %v1376_v28 = vsel %vm1137_vm1, %v1293_v17, 0.0  ;;  %v1648_v31 = vpack.c.bf16 %v644_v26, %v644_v26  ;;  %v1179_v33 = vsel %vm1137_vm1, %v644_v26, 0.0  ;;  %v1294_v34 = vmul.f32 %v644_v26, %v644_v26  ;;  %v646_v35 = vpop.f32.mrb[43].mxu0  ;;  %v774_v36 = vpop.f32.mrb[43].mxu1 }
 0x168   :  { %1125 = vst.msk [vmem:[%s2750_s2 + $0xd0] sm:$0xf] %vm1072_vm0, %v1679_v22  ;;  %v1377_v37 = vadd.f32 %v1376_v28, %v1375_v11  ;;  %v1180_v39 = vadd.f32 %v1179_v33, %v1178_v24  ;;  %v1680_v41 = vpack.c.bf16 %v2419_v27, %v2419_v27 }
 0x169   :  { %1094 = vst.msk [vmem:[%s2750_s2 + $0x54] sm:$0xf] %vm1072_vm0, %v1648_v31  ;;  %v1378_v42 = vsel %vm1137_vm1, %v1294_v34, 0.0 }
 0x16a   :  { %v1379_v44 = vadd.f32 %v1378_v42, %v1377_v37  ;;  %1126 = vst.msk [vmem:[%s2750_s2 + $0xd4] sm:$0xf] %vm1072_vm0, %v1680_v41 }
 0x16c   :  { %v649_v45 = vpop.f32.mrb[44].mxu0  ;;  %v2442_v46 = vpop.f32.mrb[44].mxu1 }
 0x16d   :  { %v1649_v48 = vpack.c.bf16 %v649_v45, %v649_v45  ;;  %v1181_v50 = vsel %vm1137_vm1, %v649_v45, 0.0  ;;  %v1295_v51 = vmul.f32 %v649_v45, %v649_v45  ;;  %v651_v52 = vpop.f32.mrb[45].mxu0  ;;  %v1681_v54 = vpack.c.bf16 %v2442_v46, %v2442_v46  ;;  %v779_v55 = vpop.f32.mrb[45].mxu1 }
 0x16e   :  { %v1182_v57 = vadd.f32 %v1181_v50, %v1180_v39  ;;  %v652_v58 = vpop.f32.mrb[46].mxu0  ;;  %v2447_v59 = vpop.f32.mrb[46].mxu1 }
 0x16f   :  { %1095 = vst.msk [vmem:[%s2750_s2 + $0x58] sm:$0xf] %vm1072_vm0, %v1649_v48  ;;  %v1380_v62 = vsel %vm1137_vm1, %v1295_v51, 0.0  ;;  %v1650_v63 = vpack.c.bf16 %v652_v58, %v652_v58  ;;  %v1183_v0 = vsel %vm1137_vm1, %v652_v58, 0.0  ;;  %v1296_v1 = vmul.f32 %v652_v58, %v652_v58  ;;  %v654_v4 = vpop.f32.mrb[47].mxu0  ;;  %v782_v6 = vpop.f32.mrb[47].mxu1 }
 0x170   :  { %1127 = vst.msk [vmem:[%s2750_s2 + $0xd8] sm:$0xf] %vm1072_vm0, %v1681_v54  ;;  %v1381_v7 = vadd.f32 %v1380_v62, %v1379_v44  ;;  %v1184_v8 = vadd.f32 %v1183_v0, %v1182_v57  ;;  %v1682_v9 = vpack.c.bf16 %v2447_v59, %v2447_v59 }
 0x171   :  { %1096 = vst.msk [vmem:[%s2750_s2 + $0x5c] sm:$0xf] %vm1072_vm0, %v1650_v63  ;;  %v1382_v10 = vsel %vm1137_vm1, %v1296_v1, 0.0 }
 0x172   :  { %v1383_v11 = vadd.f32 %v1382_v10, %v1381_v7  ;;  %1128 = vst.msk [vmem:[%s2750_s2 + $0xdc] sm:$0xf] %vm1072_vm0, %v1682_v9 }
 0x174   :  { %v657_v12 = vpop.f32.mrb[48].mxu0  ;;  %v2470_v15 = vpop.f32.mrb[48].mxu1 }
 0x175   :  { %v1651_v16 = vpack.c.bf16 %v657_v12, %v657_v12  ;;  %v1185_v17 = vsel %vm1137_vm1, %v657_v12, 0.0  ;;  %v1297_v21 = vmul.f32 %v657_v12, %v657_v12  ;;  %v659_v22 = vpop.f32.mrb[49].mxu0  ;;  %v1683_v23 = vpack.c.bf16 %v2470_v15, %v2470_v15  ;;  %v787_v24 = vpop.f32.mrb[49].mxu1 }
 0x176   :  { %v1186_v26 = vadd.f32 %v1185_v17, %v1184_v8  ;;  %v660_v28 = vpop.f32.mrb[50].mxu0  ;;  %v2475_v31 = vpop.f32.mrb[50].mxu1 }
 0x177   :  { %1097 = vst.msk [vmem:[%s2750_s2 + $0x60] sm:$0xf] %vm1072_vm0, %v1651_v16  ;;  %v1384_v33 = vsel %vm1137_vm1, %v1297_v21, 0.0  ;;  %v1652_v34 = vpack.c.bf16 %v660_v28, %v660_v28  ;;  %v1187_v35 = vsel %vm1137_vm1, %v660_v28, 0.0  ;;  %v1298_v36 = vmul.f32 %v660_v28, %v660_v28  ;;  %v662_v37 = vpop.f32.mrb[51].mxu0  ;;  %v790_v39 = vpop.f32.mrb[51].mxu1 }
 0x178   :  { %1129 = vst.msk [vmem:[%s2750_s2 + $0xe0] sm:$0xf] %vm1072_vm0, %v1683_v23  ;;  %v1385_v41 = vadd.f32 %v1384_v33, %v1383_v11  ;;  %v1188_v42 = vadd.f32 %v1187_v35, %v1186_v26  ;;  %v1684_v44 = vpack.c.bf16 %v2475_v31, %v2475_v31 }
 0x179   :  { %1098 = vst.msk [vmem:[%s2750_s2 + $0x64] sm:$0xf] %vm1072_vm0, %v1652_v34  ;;  %v1386_v45 = vsel %vm1137_vm1, %v1298_v36, 0.0 }
 0x17a   :  { %v1387_v48 = vadd.f32 %v1386_v45, %v1385_v41  ;;  %1130 = vst.msk [vmem:[%s2750_s2 + $0xe4] sm:$0xf] %vm1072_vm0, %v1684_v44 }
 0x17c   :  { %v665_v50 = vpop.f32.mrb[52].mxu0  ;;  %v2498_v51 = vpop.f32.mrb[52].mxu1 }
 0x17d   :  { %v1653_v52 = vpack.c.bf16 %v665_v50, %v665_v50  ;;  %v1189_v54 = vsel %vm1137_vm1, %v665_v50, 0.0  ;;  %v1299_v55 = vmul.f32 %v665_v50, %v665_v50  ;;  %v667_v57 = vpop.f32.mrb[53].mxu0  ;;  %v1685_v58 = vpack.c.bf16 %v2498_v51, %v2498_v51  ;;  %v795_v62 = vpop.f32.mrb[53].mxu1 }
 0x17e   :  { %v1190_v63 = vadd.f32 %v1189_v54, %v1188_v42  ;;  %v668_v0 = vpop.f32.mrb[54].mxu0  ;;  %v2503_v1 = vpop.f32.mrb[54].mxu1 }
 0x17f   :  { %1099 = vst.msk [vmem:[%s2750_s2 + $0x68] sm:$0xf] %vm1072_vm0, %v1653_v52  ;;  %v1388_v4 = vsel %vm1137_vm1, %v1299_v55, 0.0  ;;  %v1654_v6 = vpack.c.bf16 %v668_v0, %v668_v0  ;;  %v1191_v7 = vsel %vm1137_vm1, %v668_v0, 0.0  ;;  %v1300_v8 = vmul.f32 %v668_v0, %v668_v0  ;;  %v670_v9 = vpop.f32.mrb[55].mxu0  ;;  %v798_v10 = vpop.f32.mrb[55].mxu1 }
 0x180   :  { %1131 = vst.msk [vmem:[%s2750_s2 + $0xe8] sm:$0xf] %vm1072_vm0, %v1685_v58  ;;  %v1389_v11 = vadd.f32 %v1388_v4, %v1387_v48  ;;  %v1192_v12 = vadd.f32 %v1191_v7, %v1190_v63  ;;  %v1686_v16 = vpack.c.bf16 %v2503_v1, %v2503_v1  ;;  %v1305_v10 = vmul.f32 %v2134_v18, %v2134_v18 }
 0x181   :  { %1100 = vst.msk [vmem:[%s2750_s2 + $0x6c] sm:$0xf] %vm1072_vm0, %v1654_v6  ;;  %v1390_v17 = vsel %vm1137_vm1, %v1300_v8, 0.0 }
 0x182   :  { %v1391_v21 = vadd.f32 %v1390_v17, %v1389_v11  ;;  %1132 = vst.msk [vmem:[%s2750_s2 + $0xec] sm:$0xf] %vm1072_vm0, %v1686_v16 }
 0x184   :  { %v673_v22 = vpop.f32.mrb[56].mxu0  ;;  %v2526_v23 = vpop.f32.mrb[56].mxu1 }
 0x185   :  { %v1655_v24 = vpack.c.bf16 %v673_v22, %v673_v22  ;;  %v1193_v26 = vsel %vm1137_vm1, %v673_v22, 0.0  ;;  %v1301_v28 = vmul.f32 %v673_v22, %v673_v22  ;;  %v675_v33 = vpop.f32.mrb[57].mxu0  ;;  %v1687_v34 = vpack.c.bf16 %v2526_v23, %v2526_v23  ;;  %v803_v35 = vpop.f32.mrb[57].mxu1 }
 0x186   :  { %v1194_v36 = vadd.f32 %v1193_v26, %v1192_v12  ;;  %v676_v37 = vpop.f32.mrb[58].mxu0  ;;  %v2531_v39 = vpop.f32.mrb[58].mxu1 }
 0x187   :  { %1101 = vst.msk [vmem:[%s2750_s2 + $0x70] sm:$0xf] %vm1072_vm0, %v1655_v24  ;;  %v1392_v41 = vsel %vm1137_vm1, %v1301_v28, 0.0  ;;  %v1656_v42 = vpack.c.bf16 %v676_v37, %v676_v37  ;;  %v1195_v44 = vsel %vm1137_vm1, %v676_v37, 0.0  ;;  %v1302_v45 = vmul.f32 %v676_v37, %v676_v37  ;;  %v678_v48 = vpop.f32.mrb[59].mxu0  ;;  %v806_v50 = vpop.f32.mrb[59].mxu1 }
 0x188   :  { %1133 = vst.msk [vmem:[%s2750_s2 + $0xf0] sm:$0xf] %vm1072_vm0, %v1687_v34  ;;  %v1393_v52 = vadd.f32 %v1392_v41, %v1391_v21  ;;  %v1196_v54 = vadd.f32 %v1195_v44, %v1194_v36  ;;  %v1688_v55 = vpack.c.bf16 %v2531_v39, %v2531_v39  ;;  %v1201_v36 = vsel %vm1137_vm1, %v2134_v18, 0.0 }
 0x189   :  { %1102 = vst.msk [vmem:[%s2750_s2 + $0x74] sm:$0xf] %vm1072_vm0, %v1656_v42  ;;  %v1394_v57 = vsel %vm1137_vm1, %v1302_v45, 0.0  ;;  %v1306_v37 = vmul.f32 %v2138_v25, %v2138_v25  ;;  %v1400_v45 = vsel %vm1137_vm1, %v1305_v10, 0.0  ;;  %v1203_v18 = vsel %vm1137_vm1, %v2138_v25, 0.0 }
 0x18a   :  { %v1395_v58 = vadd.f32 %v1394_v57, %v1393_v52  ;;  %1134 = vst.msk [vmem:[%s2750_s2 + $0xf4] sm:$0xf] %vm1072_vm0, %v1688_v55  ;;  %v1307_v48 = vmul.f32 %v2162_v38, %v2162_v38  ;;  %v1205_v55 = vsel %vm1137_vm1, %v2162_v38, 0.0  ;;  %v1308_v57 = vmul.f32 %v2167_v47, %v2167_v47 }
 0x18b   :  { %v1207_v25 = vsel %vm1137_vm1, %v2167_v47, 0.0  ;;  %v1209_v38 = vsel %vm1137_vm1, %v2190_v60, 0.0  ;;  %v1211_v47 = vsel %vm1137_vm1, %v2195_v5, 0.0 }
 0x18c   :  { %v681_v62 = vpop.f32.mrb[60].mxu0  ;;  %v2554_v63 = vpop.f32.mrb[60].mxu1 }
 0x18d   :  { %v1657_v0 = vpack.c.bf16 %v681_v62, %v681_v62  ;;  %v1197_v4 = vsel %vm1137_vm1, %v681_v62, 0.0  ;;  %v1303_v6 = vmul.f32 %v681_v62, %v681_v62  ;;  %v683_v7 = vpop.f32.mrb[61].mxu0  ;;  %v1689_v8 = vpack.c.bf16 %v2554_v63, %v2554_v63  ;;  %v811_v9 = vpop.f32.mrb[61].mxu1 }
 0x18e   :  { %v1198_v11 = vadd.f32 %v1197_v4, %v1196_v54  ;;  %v684_v12 = vpop.f32.mrb[62].mxu0  ;;  %v2561_v16 = vpop.f32.mrb[62].mxu1  ;;  %v1402_v54 = vsel %vm1137_vm1, %v1306_v37, 0.0  ;;  %v1309_v4 = vmul.f32 %v2190_v60, %v2190_v60  ;;  %v1310_v9 = vmul.f32 %v2195_v5, %v2195_v5 }
 0x18f   :  { %1103 = vst.msk [vmem:[%s2750_s2 + $0x78] sm:$0xf] %vm1072_vm0, %v1657_v0  ;;  %v1396_v17 = vsel %vm1137_vm1, %v1303_v6, 0.0  ;;  %v1658_v21 = vpack.c.bf16 %v684_v12, %v684_v12  ;;  %v1199_v22 = vsel %vm1137_vm1, %v684_v12, 0.0  ;;  %v1304_v24 = vmul.f32 %v684_v12, %v684_v12  ;;  %v686_v26 = vpop.f32.mrb[63].mxu0  ;;  %v814_v28 = vpop.f32.mrb[63].mxu1 }
 0x190   :  { %1135 = vst.msk [vmem:[%s2750_s2 + $0xf8] sm:$0xf] %vm1072_vm0, %v1689_v8  ;;  %v1397_v33 = vadd.f32 %v1396_v17, %v1395_v58  ;;  %v1200_v34 = vadd.f32 %v1199_v22, %v1198_v11  ;;  %v1690_v35 = vpack.c.bf16 %v2561_v16, %v2561_v16  ;;  %v1404_v0 = vsel %vm1137_vm1, %v1307_v48, 0.0 }
 0x191   :  { %1104 = vst.msk [vmem:[%s2750_s2 + $0x7c] sm:$0xf] %vm1072_vm0, %v1658_v21  ;;  %v1398_v41 = vsel %vm1137_vm1, %v1304_v24, 0.0  ;;  %v1406_v8 = vsel %vm1137_vm1, %v1308_v57, 0.0  ;;  %v1408_v12 = vsel %vm1137_vm1, %v1309_v4, 0.0  ;;  %v1311_v17 = vmul.f32 %v2218_v19, %v2218_v19 }
 0x192   :  { %v1202_v42 = vadd.f32 %v1201_v36, %v1200_v34  ;;  %v1399_v44 = vadd.f32 %v1398_v41, %v1397_v33  ;;  %1136 = vst.msk [vmem:[%s2750_s2 + $0xfc] sm:$0xf] %vm1072_vm0, %v1690_v35  ;;  %v1410_v24 = vsel %vm1137_vm1, %v1310_v9, 0.0  ;;  %v1213_v60 = vsel %vm1137_vm1, %v2218_v19, 0.0 }
 0x193   :  { %v1312_v26 = vmul.f32 %v2223_v29, %v2223_v29  ;;  %v1412_v34 = vsel %vm1137_vm1, %v1311_v17, 0.0  ;;  %v1215_v5 = vsel %vm1137_vm1, %v2223_v29, 0.0  ;;  %v1313_v35 = vmul.f32 %v2246_v43, %v2246_v43 }
 0x194   :  { %v1204_v50 = vadd.f32 %v1203_v18, %v1202_v42  ;;  %v1401_v52 = vadd.f32 %v1400_v45, %v1399_v44  ;;  %v1217_v19 = vsel %vm1137_vm1, %v2246_v43, 0.0  ;;  %v1314_v42 = vmul.f32 %v2251_v53, %v2251_v53 }
 0x195   :  { %v1414_v41 = vsel %vm1137_vm1, %v1312_v26, 0.0  ;;  %v1416_v18 = vsel %vm1137_vm1, %v1313_v35, 0.0  ;;  %v1219_v29 = vsel %vm1137_vm1, %v2251_v53, 0.0  ;;  %v1315_v48 = vmul.f32 %v2274_v3, %v2274_v3 }
 0x196   :  { %v1206_v58 = vadd.f32 %v1205_v55, %v1204_v50  ;;  %v1403_v62 = vadd.f32 %v1402_v54, %v1401_v52  ;;  %v1418_v54 = vsel %vm1137_vm1, %v1314_v42, 0.0  ;;  %v1221_v43 = vsel %vm1137_vm1, %v2274_v3, 0.0 }
 0x197   :  { %v1316_v55 = vmul.f32 %v2279_v13, %v2279_v13  ;;  %v1223_v53 = vsel %vm1137_vm1, %v2279_v13, 0.0  ;;  %v1225_v3 = vsel %vm1137_vm1, %v2302_v30, 0.0  ;;  %v1227_v13 = vsel %vm1137_vm1, %v2307_v40, 0.0 }
 0x198   :  { %v1208_v6 = vadd.f32 %v1207_v25, %v1206_v58  ;;  %v1405_v7 = vadd.f32 %v1404_v0, %v1403_v62  ;;  %v1420_v62 = vsel %vm1137_vm1, %v1315_v48, 0.0  ;;  %v1317_v0 = vmul.f32 %v2302_v30, %v2302_v30 }
 0x199   :  { %v1229_v30 = vsel %vm1137_vm1, %v2330_v56, 0.0  ;;  %v1320_v17 = vmul.f32 %v2335_v2, %v2335_v2  ;;  %v1325_v48 = vmul.f32 %v2414_v14, %v2414_v14 }
 0x19a   :  { %v1210_v10 = vadd.f32 %v1209_v38, %v1208_v6  ;;  %v1407_v11 = vadd.f32 %v1406_v8, %v1405_v7  ;;  %v1422_v6 = vsel %vm1137_vm1, %v1316_v55, 0.0  ;;  %v1318_v7 = vmul.f32 %v2307_v40, %v2307_v40 }
 0x19b   :  { %v1424_v9 = vsel %vm1137_vm1, %v1317_v0, 0.0  ;;  %v1231_v40 = vsel %vm1137_vm1, %v2335_v2, 0.0  ;;  %v1235_v2 = vsel %vm1137_vm1, %v2363_v32, 0.0 }
 0x19c   :  { %v1212_v21 = vadd.f32 %v1211_v47, %v1210_v10  ;;  %v1409_v22 = vadd.f32 %v1408_v12, %v1407_v11  ;;  %v1319_v10 = vmul.f32 %v2330_v56, %v2330_v56  ;;  %v1426_v47 = vsel %vm1137_vm1, %v1318_v7, 0.0 }
 0x19d   :  { %v1233_v56 = vsel %vm1137_vm1, %v2358_v20, 0.0 }
 0x19e   :  { %v1214_v28 = vadd.f32 %v1213_v60, %v1212_v21  ;;  %v1411_v33 = vadd.f32 %v1410_v24, %v1409_v22  ;;  %v1428_v24 = vsel %vm1137_vm1, %v1319_v10, 0.0  ;;  %v1321_v60 = vmul.f32 %v2358_v20, %v2358_v20 }
 0x19f   :  { %v1237_v20 = vsel %vm1137_vm1, %v2386_v49, 0.0  ;;  %v1330_v10 = vmul.f32 %v2475_v31, %v2475_v31 }
 0x1a0   :  { %v1216_v36 = vadd.f32 %v1215_v5, %v1214_v28  ;;  %v1413_v37 = vadd.f32 %v1412_v34, %v1411_v33  ;;  %v1430_v33 = vsel %vm1137_vm1, %v1320_v17, 0.0  ;;  %v1322_v34 = vmul.f32 %v2363_v32, %v2363_v32 }
 0x1a1   :  { %v1239_v32 = vsel %vm1137_vm1, %v2391_v61, 0.0 }
 0x1a2   :  { %v1415_v44 = vadd.f32 %v1414_v41, %v1413_v37  ;;  %v1218_v45 = vadd.f32 %v1217_v19, %v1216_v36  ;;  %v1432_v36 = vsel %vm1137_vm1, %v1321_v60, 0.0  ;;  %v1323_v37 = vmul.f32 %v2386_v49, %v2386_v49 }
 0x1a3   :  { %v1434_v42 = vsel %vm1137_vm1, %v1322_v34, 0.0  ;;  %v1241_v49 = vsel %vm1137_vm1, %v2414_v14, 0.0  ;;  %v1245_v14 = vsel %vm1137_vm1, %v2442_v46, 0.0 }
 0x1a4   :  { %v1220_v50 = vadd.f32 %v1219_v29, %v1218_v45  ;;  %v1417_v52 = vadd.f32 %v1416_v18, %v1415_v44  ;;  %v1324_v44 = vmul.f32 %v2391_v61, %v2391_v61  ;;  %v1436_v29 = vsel %vm1137_vm1, %v1323_v37, 0.0 }
 0x1a5   :  { %v1243_v61 = vsel %vm1137_vm1, %v2419_v27, 0.0  ;;  %v1259_v37 = vsel %vm1137_vm1, %v2531_v39, 0.0 }
 0x1a6   :  { %v1222_v57 = vadd.f32 %v1221_v43, %v1220_v50  ;;  %v1419_v58 = vadd.f32 %v1418_v54, %v1417_v52  ;;  %v1438_v54 = vsel %vm1137_vm1, %v1324_v44, 0.0  ;;  %v1326_v43 = vmul.f32 %v2419_v27, %v2419_v27 }
 0x1a7   :  { %v1247_v27 = vsel %vm1137_vm1, %v2447_v59, 0.0  ;;  %v1336_v44 = vmul.f32 %v2561_v16, %v2561_v16 }
 0x1a8   :  { %v1224_v25 = vadd.f32 %v1223_v53, %v1222_v57  ;;  %v1421_v4 = vadd.f32 %v1420_v62, %v1419_v58  ;;  %v1440_v58 = vsel %vm1137_vm1, %v1325_v48, 0.0  ;;  %v1327_v62 = vmul.f32 %v2442_v46, %v2442_v46 }
 0x1a9   :  { %v1249_v46 = vsel %vm1137_vm1, %v2470_v15, 0.0 }
 0x1aa   :  { %v1226_v8 = vadd.f32 %v1225_v3, %v1224_v25  ;;  %v1423_v38 = vadd.f32 %v1422_v6, %v1421_v4  ;;  %v1442_v25 = vsel %vm1137_vm1, %v1326_v43, 0.0  ;;  %v1328_v4 = vmul.f32 %v2447_v59, %v2447_v59 }
 0x1ab   :  { %v1444_v7 = vsel %vm1137_vm1, %v1327_v62, 0.0  ;;  %v1251_v59 = vsel %vm1137_vm1, %v2475_v31, 0.0  ;;  %v1255_v31 = vsel %vm1137_vm1, %v2503_v1, 0.0 }
 0x1ac   :  { %v1228_v11 = vadd.f32 %v1227_v13, %v1226_v8  ;;  %v1425_v12 = vadd.f32 %v1424_v9, %v1423_v38  ;;  %v1329_v8 = vmul.f32 %v2470_v15, %v2470_v15  ;;  %v1446_v13 = vsel %vm1137_vm1, %v1328_v4, 0.0 }
 0x1ad   :  { %v1253_v15 = vsel %vm1137_vm1, %v2498_v51, 0.0 }
 0x1ae   :  { %v1230_v21 = vadd.f32 %v1229_v30, %v1228_v11  ;;  %v1427_v22 = vadd.f32 %v1426_v47, %v1425_v12  ;;  %v1448_v47 = vsel %vm1137_vm1, %v1329_v8, 0.0  ;;  %v1331_v30 = vmul.f32 %v2498_v51, %v2498_v51 }
 0x1af   :  { %v1257_v51 = vsel %vm1137_vm1, %v2526_v23, 0.0 }
 0x1b0   :  { %v1232_v26 = vadd.f32 %v1231_v40, %v1230_v21  ;;  %v1429_v28 = vadd.f32 %v1428_v24, %v1427_v22  ;;  %v1450_v22 = vsel %vm1137_vm1, %v1330_v10, 0.0  ;;  %v1332_v24 = vmul.f32 %v2503_v1, %v2503_v1 }
 0x1b2   :  { %v1234_v5 = vadd.f32 %v1233_v56, %v1232_v26  ;;  %v1431_v35 = vadd.f32 %v1430_v33, %v1429_v28  ;;  %v1452_v26 = vsel %vm1137_vm1, %v1331_v30, 0.0  ;;  %v1333_v28 = vmul.f32 %v2526_v23, %v2526_v23 }
 0x1b3   :  { %v1454_v34 = vsel %vm1137_vm1, %v1332_v24, 0.0 }
 0x1b4   :  { %v1433_v41 = vadd.f32 %v1432_v36, %v1431_v35  ;;  %v1236_v19 = vadd.f32 %v1235_v2, %v1234_v5  ;;  %v1334_v5 = vmul.f32 %v2531_v39, %v2531_v39  ;;  %v1335_v35 = vmul.f32 %v2554_v63, %v2554_v63 }
 0x1b5   :  { %v1456_v1 = vsel %vm1137_vm1, %v1333_v28, 0.0  ;;  %v1462_v39 = vsel %vm1137_vm1, %v1336_v44, 0.0 }
 0x1b6   :  { %v1435_v45 = vadd.f32 %v1434_v42, %v1433_v41  ;;  %v1238_v18 = vadd.f32 %v1237_v20, %v1236_v19  ;;  %v1261_v41 = vsel %vm1137_vm1, %v2554_v63, 0.0  ;;  %v1458_v23 = vsel %vm1137_vm1, %v1334_v5, 0.0 }
 0x1b7   :  { %v1460_v20 = vsel %vm1137_vm1, %v1335_v35, 0.0 }
 0x1b8   :  { %v1437_v50 = vadd.f32 %v1436_v29, %v1435_v45  ;;  %v1240_v52 = vadd.f32 %v1239_v32, %v1238_v18  ;;  %v1263_v29 = vsel %vm1137_vm1, %v2561_v16, 0.0 }
 0x1ba   :  { %v1439_v55 = vadd.f32 %v1438_v54, %v1437_v50  ;;  %v1242_v57 = vadd.f32 %v1241_v49, %v1240_v52 }
 0x1bc   :  { %v1441_v53 = vadd.f32 %v1440_v58, %v1439_v55  ;;  %v1244_v0 = vadd.f32 %v1243_v61, %v1242_v57 }
 0x1be   :  { %v1443_v6 = vadd.f32 %v1442_v25, %v1441_v53  ;;  %v1246_v3 = vadd.f32 %v1245_v14, %v1244_v0 }
 0x1c0   :  { %v1445_v38 = vadd.f32 %v1444_v7, %v1443_v6  ;;  %v1248_v9 = vadd.f32 %v1247_v27, %v1246_v3 }
 0x1c2   :  { %v1447_v11 = vadd.f32 %v1446_v13, %v1445_v38  ;;  %v1250_v12 = vadd.f32 %v1249_v46, %v1248_v9 }
 0x1c4   :  { %v1449_v17 = vadd.f32 %v1448_v47, %v1447_v11  ;;  %v1252_v21 = vadd.f32 %v1251_v59, %v1250_v12 }
 0x1c6   :  { %v1451_v40 = vadd.f32 %v1450_v22, %v1449_v17  ;;  %v1254_v60 = vadd.f32 %v1253_v15, %v1252_v21 }
 0x1c8   :  { %v1453_v33 = vadd.f32 %v1452_v26, %v1451_v40  ;;  %v1256_v56 = vadd.f32 %v1255_v31, %v1254_v60 }
 0x1ca   :  { %v1455_v36 = vadd.f32 %v1454_v34, %v1453_v33  ;;  %v1258_v2 = vadd.f32 %v1257_v51, %v1256_v56 }
 0x1cc   :  { %v1457_v19 = vadd.f32 %v1456_v1, %v1455_v36  ;;  %v1260_v42 = vadd.f32 %v1259_v37, %v1258_v2 }
 0x1ce   :  { %v1459_v45 = vadd.f32 %v1458_v23, %v1457_v19  ;;  %v1262_v18 = vadd.f32 %v1261_v41, %v1260_v42 }
 0x1d0   :  { %v1461_v32 = vadd.f32 %v1460_v20, %v1459_v45  ;;  %v1264_v48 = vadd.f32 %v1263_v29, %v1262_v18 }
 0x1d2   :  { %v1265_v50 = vrot.slane %v1264_v48, 4  ;;  %v1463_v63 = vadd.f32 %v1462_v39, %v1461_v32 }
 0x1d4   :  { %v1266_v52 = vadd.f32 %v1265_v50, %v1264_v48  ;;  %v1464_v54 = vrot.slane %v1463_v63, 4 }
 0x1d6   :  { %v1267_v49 = vrot.slane %v1266_v52, 2  ;;  %v1465_v43 = vadd.f32 %v1464_v54, %v1463_v63 }
 0x1d8   :  { %v1268_v55 = vadd.f32 %v1267_v49, %v1266_v52  ;;  %v1466_v57 = vrot.slane %v1465_v43, 2 }
 0x1da   :  { %v1269_v58 = vrot.slane %v1268_v55, 1  ;;  %v1467_v61 = vadd.f32 %v1466_v57, %v1465_v43 }
 0x1dc   :  { %v1270_v62 = vadd.f32 %v1269_v58, %v1268_v55  ;;  %v1468_v53 = vrot.slane %v1467_v61, 1 }
 0x1de   :  { %1272 = vst.msk [vmem:[%s2751_s3] sm:$0x1] %vm1271_vm2, %v1270_v62  ;;  %v1469_v16 = vadd.f32 %v1468_v53, %v1467_v61 }
 0x1e0   :  { %1470 = vst.msk [vmem:[%s2752_s4] sm:$0x1] %vm1271_vm2, %v1469_v16 }

// kernel: forward.7
= control target key start
LH: loop header
LB: loop body
LE: loop exit
PB: predicated region body
PF: predicated region fallthrough
CT: control target
= control target key end

     0   :  { %vm3949_vm2 = vcmask 125952   ;;  %s6868_s1 = inlined_call_operand.vmem [shape: bf16[128,16], index: 1, kind: input, shape index: {}]   ;;  %s6869_s0 = inlined_call_operand.vmem [shape: bf16[2048,128], index: 0, kind: input, shape index: {}]   ;;  %s6870_s2 = inlined_call_operand.vmem [shape: bf16[2048,16], index: 2, kind: output, shape index: {}]  }
   0x1   :  { %v5282_v0 = vld [vmem:[%s6868_s1] sm:$0xff]   ;;  %v5283_v1 = vld [vmem:[%s6868_s1 + $0x8] sm:$0xff]   ;;  %v5284_v2 = vld [vmem:[%s6868_s1 + $0x10] sm:$0xff]  }
   0x2   :  { %4994 = vmatprep.subr.bf16.mxu0 %v5282_v0  ;;  %5266 = vmatprep.subr.bf16.mxu1 %v5282_v0  ;;  %v5285_v3 = vld [vmem:[%s6868_s1 + $0x18] sm:$0xff]   ;;  %v5290_v4 = vld [vmem:[%s6869_s0] sm:$0xff]   ;;  %v5287_v7 = vld [vmem:[%s6868_s1 + $0x28] sm:$0xff]  }
   0x3   :  { %4995 = vmatpush3.bf16.msra.mxu0 %v5282_v0  ;;  %5274 = vmatpush3.bf16.msra.mxu1 %v5282_v0  ;;  %v5291_v5 = vld [vmem:[%s6869_s0 + $0x200] sm:$0xff]   ;;  %v5288_v8 = vld [vmem:[%s6868_s1 + $0x30] sm:$0xff]   ;;  %v5289_v9 = vld [vmem:[%s6868_s1 + $0x38] sm:$0xff]  }
   0x4   :  { %4996 = vmatprep.subr.bf16.mxu0 %v5283_v1  ;;  %5267 = vmatprep.subr.bf16.mxu1 %v5283_v1  ;;  %v5286_v6 = vld [vmem:[%s6868_s1 + $0x20] sm:$0xff]   ;;  %v5292_v10 = vld [vmem:[%s6869_s0 + $0x8] sm:$0xff]   ;;  %v5294_v12 = vld [vmem:[%s6869_s0 + $0x10] sm:$0xff]  }
   0x5   :  { %5010 = vmatprep.mubr.bf16.mxu0 %v5290_v4  ;;  %5138 = vmatprep.mubr.bf16.mxu1 %v5291_v5  ;;  %v5293_v11 = vld [vmem:[%s6869_s0 + $0x208] sm:$0xff]   ;;  %v5295_v13 = vld [vmem:[%s6869_s0 + $0x210] sm:$0xff]   ;;  %v5296_v14 = vld [vmem:[%s6869_s0 + $0x18] sm:$0xff]  }
   0x6   :  { %v5297_v15 = vld [vmem:[%s6869_s0 + $0x218] sm:$0xff]   ;;  %v5298_v16 = vld [vmem:[%s6869_s0 + $0x20] sm:$0xff]   ;;  %v5300_v18 = vld [vmem:[%s6869_s0 + $0x28] sm:$0xff]  }
   0x7   :  { %4997 = vmatpush3.bf16.msra.mxu0 %v5283_v1  ;;  %5275 = vmatpush3.bf16.msra.mxu1 %v5283_v1  ;;  %v5299_v17 = vld [vmem:[%s6869_s0 + $0x220] sm:$0xff]   ;;  %v5301_v19 = vld [vmem:[%s6869_s0 + $0x228] sm:$0xff]   ;;  %v5302_v20 = vld [vmem:[%s6869_s0 + $0x30] sm:$0xff]  }
   0x8   :  { %4998 = vmatprep.subr.bf16.mxu0 %v5284_v2  ;;  %5268 = vmatprep.subr.bf16.mxu1 %v5284_v2  ;;  %v5303_v21 = vld [vmem:[%s6869_s0 + $0x230] sm:$0xff]   ;;  %v5304_v22 = vld [vmem:[%s6869_s0 + $0x38] sm:$0xff]   ;;  %v5306_v24 = vld [vmem:[%s6869_s0 + $0x40] sm:$0xff]  }
   0x9   :  { %v5305_v23 = vld [vmem:[%s6869_s0 + $0x238] sm:$0xff]   ;;  %v5307_v25 = vld [vmem:[%s6869_s0 + $0x240] sm:$0xff]   ;;  %v5308_v26 = vld [vmem:[%s6869_s0 + $0x48] sm:$0xff]  }
   0xa   :  { %v5309_v27 = vld [vmem:[%s6869_s0 + $0x248] sm:$0xff]   ;;  %v5310_v28 = vld [vmem:[%s6869_s0 + $0x50] sm:$0xff]   ;;  %v5312_v30 = vld [vmem:[%s6869_s0 + $0x58] sm:$0xff]  }
   0xb   :  { %4999 = vmatpush3.bf16.msra.mxu0 %v5284_v2  ;;  %5276 = vmatpush3.bf16.msra.mxu1 %v5284_v2  ;;  %v5311_v29 = vld [vmem:[%s6869_s0 + $0x250] sm:$0xff]   ;;  %v5313_v31 = vld [vmem:[%s6869_s0 + $0x258] sm:$0xff]   ;;  %v5314_v32 = vld [vmem:[%s6869_s0 + $0x60] sm:$0xff]  }
   0xc   :  { %5000 = vmatprep.subr.bf16.mxu0 %v5285_v3  ;;  %5269 = vmatprep.subr.bf16.mxu1 %v5285_v3  ;;  %v5315_v33 = vld [vmem:[%s6869_s0 + $0x260] sm:$0xff]   ;;  %v5316_v34 = vld [vmem:[%s6869_s0 + $0x68] sm:$0xff]   ;;  %v5318_v36 = vld [vmem:[%s6869_s0 + $0x70] sm:$0xff]  }
   0xd   :  { %v5317_v35 = vld [vmem:[%s6869_s0 + $0x268] sm:$0xff]   ;;  %v5319_v37 = vld [vmem:[%s6869_s0 + $0x270] sm:$0xff]   ;;  %v5320_v38 = vld [vmem:[%s6869_s0 + $0x78] sm:$0xff]  }
   0xe   :  { %v5321_v39 = vld [vmem:[%s6869_s0 + $0x278] sm:$0xff]   ;;  %v5322_v40 = vld [vmem:[%s6869_s0 + $0x80] sm:$0xff]   ;;  %v5324_v42 = vld [vmem:[%s6869_s0 + $0x88] sm:$0xff]  }
   0xf   :  { %5001 = vmatpush3.bf16.msra.mxu0 %v5285_v3  ;;  %5277 = vmatpush3.bf16.msra.mxu1 %v5285_v3  ;;  %v5323_v41 = vld [vmem:[%s6869_s0 + $0x280] sm:$0xff]   ;;  %v5325_v43 = vld [vmem:[%s6869_s0 + $0x288] sm:$0xff]   ;;  %v5326_v44 = vld [vmem:[%s6869_s0 + $0x90] sm:$0xff]  }
  0x10   :  { %5002 = vmatprep.subr.bf16.mxu0 %v5286_v6  ;;  %5270 = vmatprep.subr.bf16.mxu1 %v5286_v6  ;;  %v5327_v45 = vld [vmem:[%s6869_s0 + $0x290] sm:$0xff]   ;;  %v5328_v46 = vld [vmem:[%s6869_s0 + $0x98] sm:$0xff]   ;;  %v5330_v48 = vld [vmem:[%s6869_s0 + $0xa0] sm:$0xff]  }
  0x11   :  { %v5329_v47 = vld [vmem:[%s6869_s0 + $0x298] sm:$0xff]   ;;  %v5331_v49 = vld [vmem:[%s6869_s0 + $0x2a0] sm:$0xff]   ;;  %v5332_v50 = vld [vmem:[%s6869_s0 + $0xa8] sm:$0xff]  }
  0x12   :  { %v5333_v51 = vld [vmem:[%s6869_s0 + $0x2a8] sm:$0xff]   ;;  %v5334_v52 = vld [vmem:[%s6869_s0 + $0xb0] sm:$0xff]   ;;  %v5336_v54 = vld [vmem:[%s6869_s0 + $0xb8] sm:$0xff]  }
  0x13   :  { %5003 = vmatpush3.bf16.msra.mxu0 %v5286_v6  ;;  %5278 = vmatpush3.bf16.msra.mxu1 %v5286_v6  ;;  %v5335_v53 = vld [vmem:[%s6869_s0 + $0x2b0] sm:$0xff]   ;;  %v5337_v55 = vld [vmem:[%s6869_s0 + $0x2b8] sm:$0xff]   ;;  %v5338_v56 = vld [vmem:[%s6869_s0 + $0xc0] sm:$0xff]  }
  0x14   :  { %5004 = vmatprep.subr.bf16.mxu0 %v5287_v7  ;;  %5271 = vmatprep.subr.bf16.mxu1 %v5287_v7  ;;  %v5339_v57 = vld [vmem:[%s6869_s0 + $0x2c0] sm:$0xff]   ;;  %v5340_v58 = vld [vmem:[%s6869_s0 + $0xc8] sm:$0xff]   ;;  %v5342_v60 = vld [vmem:[%s6869_s0 + $0xd0] sm:$0xff]  }
  0x15   :  { %v5341_v59 = vld [vmem:[%s6869_s0 + $0x2c8] sm:$0xff]   ;;  %v5343_v61 = vld [vmem:[%s6869_s0 + $0x2d0] sm:$0xff]   ;;  %v5344_v62 = vld [vmem:[%s6869_s0 + $0xd8] sm:$0xff]  }
  0x16   :  { %v5345_v63 = vld [vmem:[%s6869_s0 + $0x2d8] sm:$0xff]   ;;  %v5346_v0 = vld [vmem:[%s6869_s0 + $0xe0] sm:$0xff]   ;;  %v5348_v2 = vld [vmem:[%s6869_s0 + $0xe8] sm:$0xff]  }
  0x17   :  { %5005 = vmatpush3.bf16.msra.mxu0 %v5287_v7  ;;  %5279 = vmatpush3.bf16.msra.mxu1 %v5287_v7  ;;  %v5347_v1 = vld [vmem:[%s6869_s0 + $0x2e0] sm:$0xff]   ;;  %v5349_v3 = vld [vmem:[%s6869_s0 + $0x2e8] sm:$0xff]   ;;  %v5350_v4 = vld [vmem:[%s6869_s0 + $0xf0] sm:$0xff]  }
  0x18   :  { %5006 = vmatprep.subr.bf16.mxu0 %v5288_v8  ;;  %5272 = vmatprep.subr.bf16.mxu1 %v5288_v8  ;;  %v5351_v5 = vld [vmem:[%s6869_s0 + $0x2f0] sm:$0xff]   ;;  %v5352_v6 = vld [vmem:[%s6869_s0 + $0xf8] sm:$0xff]  }
  0x19   :  { %v5353_v7 = vld [vmem:[%s6869_s0 + $0x2f8] sm:$0xff]  }
  0x1b   :  { %5007 = vmatpush3.bf16.msra.mxu0 %v5288_v8  ;;  %5280 = vmatpush3.bf16.msra.mxu1 %v5288_v8  ;;  %v5354_v8 = vld [vmem:[%s6869_s0 + $0x100] sm:$0xff]  }
  0x1c   :  { %5008 = vmatprep.subr.bf16.mxu0 %v5289_v9  ;;  %5273 = vmatprep.subr.bf16.mxu1 %v5289_v9 }
  0x1f   :  { %5009 = vmatpush3.bf16.msra.mxu0 %v5289_v9  ;;  %5281 = vmatpush3.bf16.msra.mxu1 %v5289_v9  ;;  %v5355_v9 = vld [vmem:[%s6869_s0 + $0x300] sm:$0xff]  }
  0x22   :  { %5011 = vmatmul.mubr.bf16.vlgmr.msra.gmra.mrb[0].mxu0 %v5292_v10  ;;  %5139 = vmatmul.mubr.bf16.vlgmr.msra.gmra.mrb[0].mxu1 %v5293_v11  ;;  %v5356_v10 = vld [vmem:[%s6869_s0 + $0x108] sm:$0xff]  }
  0x23   :  { %5014 = vmatprep.mubr.bf16.mxu0 %v5294_v12  ;;  %5142 = vmatprep.mubr.bf16.mxu1 %v5295_v13  ;;  %v5357_v11 = vld [vmem:[%s6869_s0 + $0x308] sm:$0xff]   ;;  %v5358_v12 = vld [vmem:[%s6869_s0 + $0x110] sm:$0xff]  }
  0x24   :  { %v5359_v13 = vld [vmem:[%s6869_s0 + $0x310] sm:$0xff]  }
  0x2a   :  { %5015 = vmatmul.mubr.bf16.gmra.mrb[4].mxu0 %v5296_v14  ;;  %5143 = vmatmul.mubr.bf16.gmra.mrb[4].mxu1 %v5297_v15  ;;  %v5360_v14 = vld [vmem:[%s6869_s0 + $0x118] sm:$0xff]  }
  0x2b   :  { %5018 = vmatprep.mubr.bf16.mxu0 %v5298_v16  ;;  %5146 = vmatprep.mubr.bf16.mxu1 %v5299_v17  ;;  %v5361_v15 = vld [vmem:[%s6869_s0 + $0x318] sm:$0xff]   ;;  %v5362_v16 = vld [vmem:[%s6869_s0 + $0x120] sm:$0xff]  }
  0x2c   :  { %v5363_v17 = vld [vmem:[%s6869_s0 + $0x320] sm:$0xff]  }
  0x32   :  { %5019 = vmatmul.mubr.bf16.gmra.mrb[8].mxu0 %v5300_v18  ;;  %5147 = vmatmul.mubr.bf16.gmra.mrb[8].mxu1 %v5301_v19  ;;  %v5364_v18 = vld [vmem:[%s6869_s0 + $0x128] sm:$0xff]  }
  0x33   :  { %5022 = vmatprep.mubr.bf16.mxu0 %v5302_v20  ;;  %5150 = vmatprep.mubr.bf16.mxu1 %v5303_v21  ;;  %v5365_v19 = vld [vmem:[%s6869_s0 + $0x328] sm:$0xff]   ;;  %v5366_v20 = vld [vmem:[%s6869_s0 + $0x130] sm:$0xff]  }
  0x34   :  { %v5367_v21 = vld [vmem:[%s6869_s0 + $0x330] sm:$0xff]  }
  0x3a   :  { %5023 = vmatmul.mubr.bf16.gmra.mrb[12].mxu0 %v5304_v22  ;;  %5151 = vmatmul.mubr.bf16.gmra.mrb[12].mxu1 %v5305_v23  ;;  %v5368_v22 = vld [vmem:[%s6869_s0 + $0x138] sm:$0xff]  }
  0x3b   :  { %5026 = vmatprep.mubr.bf16.mxu0 %v5306_v24  ;;  %5154 = vmatprep.mubr.bf16.mxu1 %v5307_v25  ;;  %v5369_v23 = vld [vmem:[%s6869_s0 + $0x338] sm:$0xff]   ;;  %v5370_v24 = vld [vmem:[%s6869_s0 + $0x140] sm:$0xff]  }
  0x3c   :  { %v5371_v25 = vld [vmem:[%s6869_s0 + $0x340] sm:$0xff]  }
  0x42   :  { %5027 = vmatmul.mubr.bf16.gmra.mrb[16].mxu0 %v5308_v26  ;;  %5155 = vmatmul.mubr.bf16.gmra.mrb[16].mxu1 %v5309_v27  ;;  %v5372_v26 = vld [vmem:[%s6869_s0 + $0x148] sm:$0xff]  }
  0x43   :  { %5030 = vmatprep.mubr.bf16.mxu0 %v5310_v28  ;;  %5158 = vmatprep.mubr.bf16.mxu1 %v5311_v29  ;;  %v5373_v27 = vld [vmem:[%s6869_s0 + $0x348] sm:$0xff]   ;;  %v5374_v28 = vld [vmem:[%s6869_s0 + $0x150] sm:$0xff]  }
  0x44   :  { %v5375_v29 = vld [vmem:[%s6869_s0 + $0x350] sm:$0xff]  }
  0x4a   :  { %5031 = vmatmul.mubr.bf16.gmra.mrb[20].mxu0 %v5312_v30  ;;  %5159 = vmatmul.mubr.bf16.gmra.mrb[20].mxu1 %v5313_v31  ;;  %v5376_v30 = vld [vmem:[%s6869_s0 + $0x158] sm:$0xff]  }
  0x4b   :  { %5034 = vmatprep.mubr.bf16.mxu0 %v5314_v32  ;;  %5162 = vmatprep.mubr.bf16.mxu1 %v5315_v33  ;;  %v5377_v31 = vld [vmem:[%s6869_s0 + $0x358] sm:$0xff]   ;;  %v5378_v32 = vld [vmem:[%s6869_s0 + $0x160] sm:$0xff]  }
  0x4c   :  { %v5379_v33 = vld [vmem:[%s6869_s0 + $0x360] sm:$0xff]  }
  0x52   :  { %5035 = vmatmul.mubr.bf16.gmra.mrb[24].mxu0 %v5316_v34  ;;  %5163 = vmatmul.mubr.bf16.gmra.mrb[24].mxu1 %v5317_v35  ;;  %v5380_v34 = vld [vmem:[%s6869_s0 + $0x168] sm:$0xff]  }
  0x53   :  { %5038 = vmatprep.mubr.bf16.mxu0 %v5318_v36  ;;  %5166 = vmatprep.mubr.bf16.mxu1 %v5319_v37  ;;  %v5381_v35 = vld [vmem:[%s6869_s0 + $0x368] sm:$0xff]   ;;  %v5382_v36 = vld [vmem:[%s6869_s0 + $0x170] sm:$0xff]  }
  0x54   :  { %v5383_v37 = vld [vmem:[%s6869_s0 + $0x370] sm:$0xff]  }
  0x5a   :  { %5039 = vmatmul.mubr.bf16.gmra.mrb[28].mxu0 %v5320_v38  ;;  %5167 = vmatmul.mubr.bf16.gmra.mrb[28].mxu1 %v5321_v39  ;;  %v5384_v38 = vld [vmem:[%s6869_s0 + $0x178] sm:$0xff]  }
  0x5b   :  { %5042 = vmatprep.mubr.bf16.mxu0 %v5322_v40  ;;  %5170 = vmatprep.mubr.bf16.mxu1 %v5323_v41  ;;  %v5385_v39 = vld [vmem:[%s6869_s0 + $0x378] sm:$0xff]   ;;  %v5386_v40 = vld [vmem:[%s6869_s0 + $0x180] sm:$0xff]  }
  0x5c   :  { %v5387_v41 = vld [vmem:[%s6869_s0 + $0x380] sm:$0xff]  }
  0x62   :  { %5043 = vmatmul.mubr.bf16.gmra.mrb[32].mxu0 %v5324_v42  ;;  %5171 = vmatmul.mubr.bf16.gmra.mrb[32].mxu1 %v5325_v43  ;;  %v5388_v42 = vld [vmem:[%s6869_s0 + $0x188] sm:$0xff]  }
  0x63   :  { %5046 = vmatprep.mubr.bf16.mxu0 %v5326_v44  ;;  %5174 = vmatprep.mubr.bf16.mxu1 %v5327_v45  ;;  %v5389_v43 = vld [vmem:[%s6869_s0 + $0x388] sm:$0xff]   ;;  %v5390_v44 = vld [vmem:[%s6869_s0 + $0x190] sm:$0xff]  }
  0x64   :  { %v5391_v45 = vld [vmem:[%s6869_s0 + $0x390] sm:$0xff]  }
  0x6a   :  { %5047 = vmatmul.mubr.bf16.gmra.mrb[36].mxu0 %v5328_v46  ;;  %5175 = vmatmul.mubr.bf16.gmra.mrb[36].mxu1 %v5329_v47  ;;  %v5392_v46 = vld [vmem:[%s6869_s0 + $0x198] sm:$0xff]  }
  0x6b   :  { %5050 = vmatprep.mubr.bf16.mxu0 %v5330_v48  ;;  %5178 = vmatprep.mubr.bf16.mxu1 %v5331_v49  ;;  %v5393_v47 = vld [vmem:[%s6869_s0 + $0x398] sm:$0xff]   ;;  %v5394_v48 = vld [vmem:[%s6869_s0 + $0x1a0] sm:$0xff]  }
  0x6c   :  { %v5395_v49 = vld [vmem:[%s6869_s0 + $0x3a0] sm:$0xff]  }
  0x72   :  { %5051 = vmatmul.mubr.bf16.gmra.mrb[40].mxu0 %v5332_v50  ;;  %5179 = vmatmul.mubr.bf16.gmra.mrb[40].mxu1 %v5333_v51  ;;  %v5396_v50 = vld [vmem:[%s6869_s0 + $0x1a8] sm:$0xff]  }
  0x73   :  { %5054 = vmatprep.mubr.bf16.mxu0 %v5334_v52  ;;  %5182 = vmatprep.mubr.bf16.mxu1 %v5335_v53  ;;  %v5397_v51 = vld [vmem:[%s6869_s0 + $0x3a8] sm:$0xff]   ;;  %v5398_v52 = vld [vmem:[%s6869_s0 + $0x1b0] sm:$0xff]  }
  0x74   :  { %v5399_v53 = vld [vmem:[%s6869_s0 + $0x3b0] sm:$0xff]  }
  0x7a   :  { %5055 = vmatmul.mubr.bf16.gmra.mrb[44].mxu0 %v5336_v54  ;;  %5183 = vmatmul.mubr.bf16.gmra.mrb[44].mxu1 %v5337_v55 }
  0x7b   :  { %5058 = vmatprep.mubr.bf16.mxu0 %v5338_v56  ;;  %5186 = vmatprep.mubr.bf16.mxu1 %v5339_v57  ;;  %v5400_v56 = vld [vmem:[%s6869_s0 + $0x1b8] sm:$0xff]  }
  0x7c   :  { %v5401_v57 = vld [vmem:[%s6869_s0 + $0x3b8] sm:$0xff]  }
  0x82   :  { %5059 = vmatmul.mubr.bf16.gmra.mrb[48].mxu0 %v5340_v58  ;;  %5187 = vmatmul.mubr.bf16.gmra.mrb[48].mxu1 %v5341_v59 }
  0x83   :  { %5062 = vmatprep.mubr.bf16.mxu0 %v5342_v60  ;;  %5190 = vmatprep.mubr.bf16.mxu1 %v5343_v61 }
  0x8a   :  { %5063 = vmatmul.mubr.bf16.gmra.mrb[52].mxu0 %v5344_v62  ;;  %5191 = vmatmul.mubr.bf16.gmra.mrb[52].mxu1 %v5345_v63  ;;  %v5402_v62 = vld [vmem:[%s6869_s0 + $0x1c0] sm:$0xff]  }
  0x8b   :  { %5066 = vmatprep.mubr.bf16.mxu0 %v5346_v0  ;;  %5194 = vmatprep.mubr.bf16.mxu1 %v5347_v1  ;;  %v5403_v63 = vld [vmem:[%s6869_s0 + $0x3c0] sm:$0xff]  }
  0x92   :  { %5067 = vmatmul.mubr.bf16.gmra.mrb[56].mxu0 %v5348_v2  ;;  %5195 = vmatmul.mubr.bf16.gmra.mrb[56].mxu1 %v5349_v3 }
  0x93   :  { %5070 = vmatprep.mubr.bf16.mxu0 %v5350_v4  ;;  %5198 = vmatprep.mubr.bf16.mxu1 %v5351_v5 }
  0x9a   :  { %5071 = vmatmul.mubr.bf16.gmra.mrb[60].mxu0 %v5352_v6  ;;  %5199 = vmatmul.mubr.bf16.gmra.mrb[60].mxu1 %v5353_v7 }
  0x9b   :  { %5074 = vmatprep.mubr.bf16.mxu0 %v5354_v8  ;;  %5202 = vmatprep.mubr.bf16.mxu1 %v5355_v9 }
  0xa2   :  { %5075 = vmatmul.mubr.bf16.gmra.mrb[64].mxu0 %v5356_v10  ;;  %5203 = vmatmul.mubr.bf16.gmra.mrb[64].mxu1 %v5357_v11 }
  0xa3   :  { %5078 = vmatprep.mubr.bf16.mxu0 %v5358_v12  ;;  %5206 = vmatprep.mubr.bf16.mxu1 %v5359_v13 }
  0xaa   :  { %5079 = vmatmul.mubr.bf16.gmra.mrb[68].mxu0 %v5360_v14  ;;  %5207 = vmatmul.mubr.bf16.gmra.mrb[68].mxu1 %v5361_v15 }
  0xab   :  { %5082 = vmatprep.mubr.bf16.mxu0 %v5362_v16  ;;  %5210 = vmatprep.mubr.bf16.mxu1 %v5363_v17 }
  0xb2   :  { %5083 = vmatmul.mubr.bf16.gmra.mrb[72].mxu0 %v5364_v18  ;;  %5211 = vmatmul.mubr.bf16.gmra.mrb[72].mxu1 %v5365_v19 }
  0xb3   :  { %5086 = vmatprep.mubr.bf16.mxu0 %v5366_v20  ;;  %5214 = vmatprep.mubr.bf16.mxu1 %v5367_v21 }
  0xba   :  { %5087 = vmatmul.mubr.bf16.gmra.mrb[76].mxu0 %v5368_v22  ;;  %5215 = vmatmul.mubr.bf16.gmra.mrb[76].mxu1 %v5369_v23  ;;  %v5404_v23 = vld [vmem:[%s6869_s0 + $0x1c8] sm:$0xff]  }
  0xbb   :  { %5090 = vmatprep.mubr.bf16.mxu0 %v5370_v24  ;;  %5218 = vmatprep.mubr.bf16.mxu1 %v5371_v25  ;;  %v5405_v24 = vld [vmem:[%s6869_s0 + $0x3c8] sm:$0xff]  }
  0xc2   :  { %5091 = vmatmul.mubr.bf16.gmra.mrb[80].mxu0 %v5372_v26  ;;  %5219 = vmatmul.mubr.bf16.gmra.mrb[80].mxu1 %v5373_v27 }
  0xc3   :  { %5094 = vmatprep.mubr.bf16.mxu0 %v5374_v28  ;;  %5222 = vmatprep.mubr.bf16.mxu1 %v5375_v29 }
  0xca   :  { %5095 = vmatmul.mubr.bf16.gmra.mrb[84].mxu0 %v5376_v30  ;;  %5223 = vmatmul.mubr.bf16.gmra.mrb[84].mxu1 %v5377_v31  ;;  %v5406_v30 = vld [vmem:[%s6869_s0 + $0x1d0] sm:$0xff]  }
  0xcb   :  { %5098 = vmatprep.mubr.bf16.mxu0 %v5378_v32  ;;  %5226 = vmatprep.mubr.bf16.mxu1 %v5379_v33 }
  0xd2   :  { %5099 = vmatmul.mubr.bf16.gmra.mrb[88].mxu0 %v5380_v34  ;;  %5227 = vmatmul.mubr.bf16.gmra.mrb[88].mxu1 %v5381_v35 }
  0xd3   :  { %5102 = vmatprep.mubr.bf16.mxu0 %v5382_v36  ;;  %5230 = vmatprep.mubr.bf16.mxu1 %v5383_v37  ;;  %v5407_v36 = vld [vmem:[%s6869_s0 + $0x3d0] sm:$0xff]  }
  0xda   :  { %5103 = vmatmul.mubr.bf16.gmra.mrb[92].mxu0 %v5384_v38  ;;  %5231 = vmatmul.mubr.bf16.gmra.mrb[92].mxu1 %v5385_v39 }
  0xdb   :  { %5106 = vmatprep.mubr.bf16.mxu0 %v5386_v40  ;;  %5234 = vmatprep.mubr.bf16.mxu1 %v5387_v41 }
  0xe2   :  { %5107 = vmatmul.mubr.bf16.gmra.mrb[96].mxu0 %v5388_v42  ;;  %5235 = vmatmul.mubr.bf16.gmra.mrb[96].mxu1 %v5389_v43 }
  0xe3   :  { %5110 = vmatprep.mubr.bf16.mxu0 %v5390_v44  ;;  %5238 = vmatprep.mubr.bf16.mxu1 %v5391_v45 }
  0xea   :  { %5111 = vmatmul.mubr.bf16.gmra.mrb[100].mxu0 %v5392_v46  ;;  %5239 = vmatmul.mubr.bf16.gmra.mrb[100].mxu1 %v5393_v47 }
  0xeb   :  { %5114 = vmatprep.mubr.bf16.mxu0 %v5394_v48  ;;  %5242 = vmatprep.mubr.bf16.mxu1 %v5395_v49 }
  0xf2   :  { %5115 = vmatmul.mubr.bf16.gmra.mrb[104].mxu0 %v5396_v50  ;;  %5243 = vmatmul.mubr.bf16.gmra.mrb[104].mxu1 %v5397_v51 }
  0xf3   :  { %5118 = vmatprep.mubr.bf16.mxu0 %v5398_v52  ;;  %5246 = vmatprep.mubr.bf16.mxu1 %v5399_v53 }
  0xf5   :  { %v5012_v54 = vpop.f32.mrb[0].mxu0  ;;  %v5140_v55 = vpop.f32.mrb[0].mxu1 }
  0xf6   :  { %vm2159_vm0 = vcmp.gt.f32.partialorder %v5012_v54, 0.0  ;;  %v2415_v58 = vmul.f32 0.2, %v5012_v54  ;;  %vm2287_vm1 = vcmp.gt.f32.partialorder %v5140_v55, 0.0  ;;  %v2543_v59 = vmul.f32 0.2, %v5140_v55 }
  0xf7   :  { %v1134_v60 = vpop.f32.mrb[1].mxu0  ;;  %v1646_v61 = vpop.f32.mrb[1].mxu1 }
  0xf8   :  { %v2671_v0 = vsel %vm2159_vm0, %v5012_v54, %v2415_v58  ;;  %v2799_v1 = vsel %vm2287_vm1, %v5140_v55, %v2543_v59  ;;  %vm2157_vm3 = vcmp.gt.f32.partialorder %v1134_v60, 0.0  ;;  %v2413_v2 = vmul.f32 0.2, %v1134_v60  ;;  %v5013_v3 = vpop.f32.mrb[2].mxu0  ;;  %v5141_v4 = vpop.f32.mrb[2].mxu1  ;;  %v5408_v54 = vld [vmem:[%s6869_s0 + $0x1d8] sm:$0xff]  }
  0xf9   :  { %v4604_v5 = vpack.c.bf16 %v2671_v0, %v2671_v0  ;;  %v4732_v6 = vpack.c.bf16 %v2799_v1, %v2799_v1  ;;  %vm2285_vm4 = vcmp.gt.f32.partialorder %v1646_v61, 0.0  ;;  %v2541_v7 = vmul.f32 0.2, %v1646_v61  ;;  %v1137_v8 = vpop.f32.mrb[3].mxu0  ;;  %v1649_v9 = vpop.f32.mrb[3].mxu1 }
  0xfa   :  { %v2669_v10 = vsel %vm2157_vm3, %v1134_v60, %v2413_v2  ;;  %vm2160_vm5 = vcmp.gt.f32.partialorder %v5013_v3, 0.0  ;;  %v2416_v11 = vmul.f32 0.2, %v5013_v3  ;;  %vm2288_vm6 = vcmp.gt.f32.partialorder %v5141_v4, 0.0  ;;  %5119 = vmatmul.mubr.bf16.gmra.mrb[108].mxu0 %v5400_v56  ;;  %5247 = vmatmul.mubr.bf16.gmra.mrb[108].mxu1 %v5401_v57  ;;  %v5409_v60 = vld [vmem:[%s6869_s0 + $0x3d8] sm:$0xff]   ;;  %v5410_v2 = vld [vmem:[%s6869_s0 + $0x1e0] sm:$0xff]  }
  0xfb   :  { %3952 = vst.msk [vmem:[%s6870_s2 + $0x8] sm:$0xf] %vm3949_vm2, %v4604_v5  ;;  %4080 = vst.msk [vmem:[%s6870_s2 + $0x208] sm:$0xf] %vm3949_vm2, %v4732_v6  ;;  %v4602_v12 = vpack.c.bf16 %v2669_v10, %v2669_v10  ;;  %v2797_v13 = vsel %vm2285_vm4, %v1646_v61, %v2541_v7  ;;  %v2544_v14 = vmul.f32 0.2, %v5141_v4  ;;  %5122 = vmatprep.mubr.bf16.mxu0 %v5402_v62  ;;  %5250 = vmatprep.mubr.bf16.mxu1 %v5403_v63 }
  0xfc   :  { %vm2158_vm7 = vcmp.gt.f32.partialorder %v1137_v8, 0.0  ;;  %v4730_v15 = vpack.c.bf16 %v2797_v13, %v2797_v13  ;;  %v2672_v16 = vsel %vm2160_vm5, %v5013_v3, %v2416_v11  ;;  %v2414_v17 = vmul.f32 0.2, %v1137_v8 }
  0xfd   :  { %vm2286_vm8 = vcmp.gt.f32.partialorder %v1649_v9, 0.0  ;;  %3950 = vst.msk [vmem:[%s6870_s2] sm:$0xf] %vm3949_vm2, %v4602_v12  ;;  %v4605_v18 = vpack.c.bf16 %v2672_v16, %v2672_v16  ;;  %v2800_v19 = vsel %vm2288_vm6, %v5141_v4, %v2544_v14  ;;  %v2542_v20 = vmul.f32 0.2, %v1649_v9  ;;  %v5016_v21 = vpop.f32.mrb[4].mxu0 }
  0xfe   :  { %v5144_v22 = vpop.f32.mrb[4].mxu1  ;;  %4078 = vst.msk [vmem:[%s6870_s2 + $0x200] sm:$0xf] %vm3949_vm2, %v4730_v15  ;;  %v4733_v25 = vpack.c.bf16 %v2800_v19, %v2800_v19  ;;  %v2670_v26 = vsel %vm2158_vm7, %v1137_v8, %v2414_v17  ;;  %vm2163_vm9 = vcmp.gt.f32.partialorder %v5016_v21, 0.0  ;;  %v2419_v27 = vmul.f32 0.2, %v5016_v21 }
  0xff   :  { %v1150_v28 = vpop.f32.mrb[5].mxu0  ;;  %v1662_v29 = vpop.f32.mrb[5].mxu1  ;;  %3953 = vst.msk [vmem:[%s6870_s2 + $0xc] sm:$0xf] %vm3949_vm2, %v4605_v18  ;;  %v4603_v31 = vpack.c.bf16 %v2670_v26, %v2670_v26  ;;  %v2798_v32 = vsel %vm2286_vm8, %v1649_v9, %v2542_v20  ;;  %vm2291_vm10 = vcmp.gt.f32.partialorder %v5144_v22, 0.0  ;;  %v5411_v8 = vld [vmem:[%s6869_s0 + $0x3e0] sm:$0xff]  }
 0x100   :  { %v2547_v33 = vmul.f32 0.2, %v5144_v22  ;;  %v5017_v34 = vpop.f32.mrb[6].mxu0  ;;  %v5145_v35 = vpop.f32.mrb[6].mxu1  ;;  %4081 = vst.msk [vmem:[%s6870_s2 + $0x20c] sm:$0xf] %vm3949_vm2, %v4733_v25  ;;  %v4731_v37 = vpack.c.bf16 %v2798_v32, %v2798_v32  ;;  %v2675_v38 = vsel %vm2163_vm9, %v5016_v21, %v2419_v27 }
 0x101   :  { %vm2161_vm11 = vcmp.gt.f32.partialorder %v1150_v28, 0.0  ;;  %v2417_v39 = vmul.f32 0.2, %v1150_v28  ;;  %v1153_v40 = vpop.f32.mrb[7].mxu0  ;;  %v1665_v41 = vpop.f32.mrb[7].mxu1  ;;  %v4608_v42 = vpack.c.bf16 %v2675_v38, %v2675_v38  ;;  %vm2289_vm12 = vcmp.gt.f32.partialorder %v1662_v29, 0.0 }
 0x102   :  { %3951 = vst.msk [vmem:[%s6870_s2 + $0x4] sm:$0xf] %vm3949_vm2, %v4603_v31  ;;  %v2803_v43 = vsel %vm2291_vm10, %v5144_v22, %v2547_v33  ;;  %v2545_v44 = vmul.f32 0.2, %v1662_v29  ;;  %4079 = vst.msk [vmem:[%s6870_s2 + $0x204] sm:$0xf] %vm3949_vm2, %v4731_v37  ;;  %5123 = vmatmul.mubr.bf16.gmra.mrb[112].mxu0 %v5404_v23  ;;  %5251 = vmatmul.mubr.bf16.gmra.mrb[112].mxu1 %v5405_v24 }
 0x103   :  { %v4736_v45 = vpack.c.bf16 %v2803_v43, %v2803_v43  ;;  %v2673_v46 = vsel %vm2161_vm11, %v1150_v28, %v2417_v39  ;;  %vm2164_vm13 = vcmp.gt.f32.partialorder %v5017_v34, 0.0  ;;  %v2420_v47 = vmul.f32 0.2, %v5017_v34  ;;  %3956 = vst.msk [vmem:[%s6870_s2 + $0x18] sm:$0xf] %vm3949_vm2, %v4608_v42  ;;  %5126 = vmatprep.mubr.bf16.mxu0 %v5406_v30  ;;  %5254 = vmatprep.mubr.bf16.mxu1 %v5407_v36  ;;  %v5412_v26 = vld [vmem:[%s6869_s0 + $0x1e8] sm:$0xff]  }
 0x104   :  { %v4606_v48 = vpack.c.bf16 %v2673_v46, %v2673_v46  ;;  %v2801_v49 = vsel %vm2289_vm12, %v1662_v29, %v2545_v44  ;;  %vm2292_vm14 = vcmp.gt.f32.partialorder %v5145_v35, 0.0  ;;  %v2548_v50 = vmul.f32 0.2, %v5145_v35  ;;  %v5413_v32 = vld [vmem:[%s6869_s0 + $0x3e8] sm:$0xff]   ;;  %v5414_v38 = vld [vmem:[%s6869_s0 + $0x1f0] sm:$0xff]  }
 0x105   :  { %4084 = vst.msk [vmem:[%s6870_s2 + $0x218] sm:$0xf] %vm3949_vm2, %v4736_v45  ;;  %v4734_v51 = vpack.c.bf16 %v2801_v49, %v2801_v49  ;;  %v2676_v52 = vsel %vm2164_vm13, %v5017_v34, %v2420_v47  ;;  %vm2162_vm15 = vcmp.gt.f32.partialorder %v1153_v40, 0.0  ;;  %v2418_v53 = vmul.f32 0.2, %v1153_v40  ;;  %v5020_v58 = vpop.f32.mrb[8].mxu0 }
 0x106   :  { %3954 = vst.msk [vmem:[%s6870_s2 + $0x10] sm:$0xf] %vm3949_vm2, %v4606_v48  ;;  %v4609_v55 = vpack.c.bf16 %v2676_v52, %v2676_v52  ;;  %v2804_v56 = vsel %vm2292_vm14, %v5145_v35, %v2548_v50  ;;  %vm2290_vm0 = vcmp.gt.f32.partialorder %v1665_v41, 0.0  ;;  %v2546_v57 = vmul.f32 0.2, %v1665_v41  ;;  %v5148_v59 = vpop.f32.mrb[8].mxu1 }
 0x107   :  { %4082 = vst.msk [vmem:[%s6870_s2 + $0x210] sm:$0xf] %vm3949_vm2, %v4734_v51  ;;  %v4737_v61 = vpack.c.bf16 %v2804_v56, %v2804_v56  ;;  %v2674_v62 = vsel %vm2162_vm15, %v1153_v40, %v2418_v53  ;;  %vm2167_vm1 = vcmp.gt.f32.partialorder %v5020_v58, 0.0  ;;  %v2423_v63 = vmul.f32 0.2, %v5020_v58  ;;  %v1166_v0 = vpop.f32.mrb[9].mxu0 }
 0x108   :  { %v1678_v1 = vpop.f32.mrb[9].mxu1  ;;  %3957 = vst.msk [vmem:[%s6870_s2 + $0x1c] sm:$0xf] %vm3949_vm2, %v4609_v55  ;;  %v4607_v3 = vpack.c.bf16 %v2674_v62, %v2674_v62  ;;  %v2802_v4 = vsel %vm2290_vm0, %v1665_v41, %v2546_v57  ;;  %vm2295_vm3 = vcmp.gt.f32.partialorder %v5148_v59, 0.0  ;;  %v2551_v5 = vmul.f32 0.2, %v5148_v59 }
 0x109   :  { %v5021_v6 = vpop.f32.mrb[10].mxu0  ;;  %v5149_v7 = vpop.f32.mrb[10].mxu1  ;;  %4085 = vst.msk [vmem:[%s6870_s2 + $0x21c] sm:$0xf] %vm3949_vm2, %v4737_v61  ;;  %v4735_v9 = vpack.c.bf16 %v2802_v4, %v2802_v4  ;;  %v2679_v10 = vsel %vm2167_vm1, %v5020_v58, %v2423_v63  ;;  %vm2165_vm4 = vcmp.gt.f32.partialorder %v1166_v0, 0.0  ;;  %vm2293_vm5 = vcmp.gt.f32.partialorder %v1678_v1, 0.0 }
 0x10a   :  { %v2421_v11 = vmul.f32 0.2, %v1166_v0  ;;  %v1169_v12 = vpop.f32.mrb[11].mxu0  ;;  %v1681_v13 = vpop.f32.mrb[11].mxu1  ;;  %3955 = vst.msk [vmem:[%s6870_s2 + $0x14] sm:$0xf] %vm3949_vm2, %v4607_v3  ;;  %v4612_v14 = vpack.c.bf16 %v2679_v10, %v2679_v10  ;;  %v2807_v15 = vsel %vm2295_vm3, %v5148_v59, %v2551_v5  ;;  %5127 = vmatmul.mubr.bf16.gmra.mrb[116].mxu0 %v5408_v54  ;;  %5255 = vmatmul.mubr.bf16.gmra.mrb[116].mxu1 %v5409_v60 }
 0x10b   :  { %v2549_v16 = vmul.f32 0.2, %v1678_v1  ;;  %4083 = vst.msk [vmem:[%s6870_s2 + $0x214] sm:$0xf] %vm3949_vm2, %v4735_v9  ;;  %v4740_v17 = vpack.c.bf16 %v2807_v15, %v2807_v15  ;;  %vm2168_vm6 = vcmp.gt.f32.partialorder %v5021_v6, 0.0  ;;  %vm2296_vm7 = vcmp.gt.f32.partialorder %v5149_v7, 0.0  ;;  %5130 = vmatprep.mubr.bf16.mxu0 %v5410_v2  ;;  %5258 = vmatprep.mubr.bf16.mxu1 %v5411_v8 }
 0x10c   :  { %v2677_v18 = vsel %vm2165_vm4, %v1166_v0, %v2421_v11  ;;  %v2424_v19 = vmul.f32 0.2, %v5021_v6  ;;  %3960 = vst.msk [vmem:[%s6870_s2 + $0x28] sm:$0xf] %vm3949_vm2, %v4612_v14  ;;  %v2552_v22 = vmul.f32 0.2, %v5149_v7 }
 0x10d   :  { %v4610_v20 = vpack.c.bf16 %v2677_v18, %v2677_v18  ;;  %v2805_v21 = vsel %vm2293_vm5, %v1678_v1, %v2549_v16  ;;  %4088 = vst.msk [vmem:[%s6870_s2 + $0x228] sm:$0xf] %vm3949_vm2, %v4740_v17  ;;  %vm2166_vm8 = vcmp.gt.f32.partialorder %v1169_v12, 0.0  ;;  %v2422_v25 = vmul.f32 0.2, %v1169_v12  ;;  %v5024_v30 = vpop.f32.mrb[12].mxu0 }
 0x10e   :  { %v4738_v23 = vpack.c.bf16 %v2805_v21, %v2805_v21  ;;  %v2680_v24 = vsel %vm2168_vm6, %v5021_v6, %v2424_v19  ;;  %v2808_v28 = vsel %vm2296_vm7, %v5149_v7, %v2552_v22  ;;  %vm2294_vm9 = vcmp.gt.f32.partialorder %v1681_v13, 0.0  ;;  %v5152_v31 = vpop.f32.mrb[12].mxu1  ;;  %v1182_v36 = vpop.f32.mrb[13].mxu0  ;;  %v5415_v44 = vld [vmem:[%s6869_s0 + $0x3f0] sm:$0xff]   ;;  %v5416_v3 = vld [vmem:[%s6869_s0 + $0x1f8] sm:$0xff]  }
 0x10f   :  { %3958 = vst.msk [vmem:[%s6870_s2 + $0x20] sm:$0xf] %vm3949_vm2, %v4610_v20  ;;  %v4613_v27 = vpack.c.bf16 %v2680_v24, %v2680_v24  ;;  %v2550_v29 = vmul.f32 0.2, %v1681_v13  ;;  %v4741_v33 = vpack.c.bf16 %v2808_v28, %v2808_v28  ;;  %v2678_v34 = vsel %vm2166_vm8, %v1169_v12, %v2422_v25  ;;  %v1694_v37 = vpop.f32.mrb[13].mxu1  ;;  %v5025_v42 = vpop.f32.mrb[14].mxu0 }
 0x110   :  { %4086 = vst.msk [vmem:[%s6870_s2 + $0x220] sm:$0xf] %vm3949_vm2, %v4738_v23  ;;  %vm2171_vm10 = vcmp.gt.f32.partialorder %v5024_v30, 0.0  ;;  %v2427_v35 = vmul.f32 0.2, %v5024_v30  ;;  %v4611_v39 = vpack.c.bf16 %v2678_v34, %v2678_v34  ;;  %vm2299_vm11 = vcmp.gt.f32.partialorder %v5152_v31, 0.0 }
 0x111   :  { %3961 = vst.msk [vmem:[%s6870_s2 + $0x2c] sm:$0xf] %vm3949_vm2, %v4613_v27  ;;  %v2806_v40 = vsel %vm2294_vm9, %v1681_v13, %v2550_v29  ;;  %v2555_v41 = vmul.f32 0.2, %v5152_v31  ;;  %v5153_v43 = vpop.f32.mrb[14].mxu1  ;;  %vm2169_vm12 = vcmp.gt.f32.partialorder %v1182_v36, 0.0 }
 0x112   :  { %4089 = vst.msk [vmem:[%s6870_s2 + $0x22c] sm:$0xf] %vm3949_vm2, %v4741_v33  ;;  %v4739_v45 = vpack.c.bf16 %v2806_v40, %v2806_v40  ;;  %v2683_v46 = vsel %vm2171_vm10, %v5024_v30, %v2427_v35  ;;  %v2425_v47 = vmul.f32 0.2, %v1182_v36  ;;  %v1185_v48 = vpop.f32.mrb[15].mxu0  ;;  %v1697_v49 = vpop.f32.mrb[15].mxu1  ;;  %5131 = vmatmul.mubr.bf16.gmra.mrb[120].mxu0 %v5412_v26  ;;  %5259 = vmatmul.mubr.bf16.gmra.mrb[120].mxu1 %v5413_v32 }
 0x113   :  { %3959 = vst.msk [vmem:[%s6870_s2 + $0x24] sm:$0xf] %vm3949_vm2, %v4611_v39  ;;  %v4616_v50 = vpack.c.bf16 %v2683_v46, %v2683_v46  ;;  %v2811_v51 = vsel %vm2299_vm11, %v5152_v31, %v2555_v41  ;;  %vm2297_vm13 = vcmp.gt.f32.partialorder %v1694_v37, 0.0  ;;  %v2553_v52 = vmul.f32 0.2, %v1694_v37  ;;  %5134 = vmatprep.mubr.bf16.mxu0 %v5414_v38  ;;  %5262 = vmatprep.mubr.bf16.mxu1 %v5415_v44  ;;  %v5417_v9 = vld [vmem:[%s6869_s0 + $0x3f8] sm:$0xff]  }
 0x114   :  { %4087 = vst.msk [vmem:[%s6870_s2 + $0x224] sm:$0xf] %vm3949_vm2, %v4739_v45  ;;  %v4744_v53 = vpack.c.bf16 %v2811_v51, %v2811_v51  ;;  %v2681_v54 = vsel %vm2169_vm12, %v1182_v36, %v2425_v47  ;;  %vm2172_vm14 = vcmp.gt.f32.partialorder %v5025_v42, 0.0  ;;  %v2428_v55 = vmul.f32 0.2, %v5025_v42 }
 0x115   :  { %3964 = vst.msk [vmem:[%s6870_s2 + $0x38] sm:$0xf] %vm3949_vm2, %v4616_v50  ;;  %v4614_v56 = vpack.c.bf16 %v2681_v54, %v2681_v54  ;;  %v2809_v57 = vsel %vm2297_vm13, %v1694_v37, %v2553_v52  ;;  %vm2300_vm15 = vcmp.gt.f32.partialorder %v5153_v43, 0.0  ;;  %v2556_v58 = vmul.f32 0.2, %v5153_v43  ;;  %v5028_v1 = vpop.f32.mrb[16].mxu0 }
 0x116   :  { %4092 = vst.msk [vmem:[%s6870_s2 + $0x238] sm:$0xf] %vm3949_vm2, %v4744_v53  ;;  %v4742_v59 = vpack.c.bf16 %v2809_v57, %v2809_v57  ;;  %v2684_v60 = vsel %vm2172_vm14, %v5025_v42, %v2428_v55  ;;  %vm2170_vm0 = vcmp.gt.f32.partialorder %v1185_v48, 0.0  ;;  %v2426_v61 = vmul.f32 0.2, %v1185_v48  ;;  %v5156_v2 = vpop.f32.mrb[16].mxu1 }
 0x117   :  { %3962 = vst.msk [vmem:[%s6870_s2 + $0x30] sm:$0xf] %vm3949_vm2, %v4614_v56  ;;  %v4617_v62 = vpack.c.bf16 %v2684_v60, %v2684_v60  ;;  %v2812_v63 = vsel %vm2300_vm15, %v5153_v43, %v2556_v58  ;;  %vm2298_vm1 = vcmp.gt.f32.partialorder %v1697_v49, 0.0  ;;  %v2554_v0 = vmul.f32 0.2, %v1697_v49  ;;  %v1198_v7 = vpop.f32.mrb[17].mxu0 }
 0x118   :  { %4090 = vst.msk [vmem:[%s6870_s2 + $0x230] sm:$0xf] %vm3949_vm2, %v4742_v59  ;;  %v4745_v4 = vpack.c.bf16 %v2812_v63, %v2812_v63  ;;  %v2682_v5 = vsel %vm2170_vm0, %v1185_v48, %v2426_v61  ;;  %vm2175_vm3 = vcmp.gt.f32.partialorder %v5028_v1, 0.0  ;;  %v2431_v6 = vmul.f32 0.2, %v5028_v1  ;;  %v1710_v8 = vpop.f32.mrb[17].mxu1 }
 0x119   :  { %3965 = vst.msk [vmem:[%s6870_s2 + $0x3c] sm:$0xf] %vm3949_vm2, %v4617_v62  ;;  %v4615_v10 = vpack.c.bf16 %v2682_v5, %v2682_v5  ;;  %v2810_v11 = vsel %vm2298_vm1, %v1697_v49, %v2554_v0  ;;  %vm2303_vm4 = vcmp.gt.f32.partialorder %v5156_v2, 0.0  ;;  %v2559_v12 = vmul.f32 0.2, %v5156_v2  ;;  %v5029_v13 = vpop.f32.mrb[18].mxu0 }
 0x11a   :  { %v5157_v14 = vpop.f32.mrb[18].mxu1  ;;  %4093 = vst.msk [vmem:[%s6870_s2 + $0x23c] sm:$0xf] %vm3949_vm2, %v4745_v4  ;;  %v4743_v15 = vpack.c.bf16 %v2810_v11, %v2810_v11  ;;  %v2687_v16 = vsel %vm2175_vm3, %v5028_v1, %v2431_v6  ;;  %vm2173_vm5 = vcmp.gt.f32.partialorder %v1198_v7, 0.0  ;;  %v2429_v17 = vmul.f32 0.2, %v1198_v7  ;;  %5135 = vmatmul.mubr.bf16.gmra.mrb[124].mxu0 %v5416_v3  ;;  %5263 = vmatmul.mubr.bf16.gmra.mrb[124].mxu1 %v5417_v9 }
 0x11b   :  { %v1201_v18 = vpop.f32.mrb[19].mxu0  ;;  %v1713_v19 = vpop.f32.mrb[19].mxu1  ;;  %3963 = vst.msk [vmem:[%s6870_s2 + $0x34] sm:$0xf] %vm3949_vm2, %v4615_v10  ;;  %v4620_v20 = vpack.c.bf16 %v2687_v16, %v2687_v16  ;;  %v2815_v21 = vsel %vm2303_vm4, %v5156_v2, %v2559_v12  ;;  %vm2301_vm6 = vcmp.gt.f32.partialorder %v1710_v8, 0.0  ;;  %vm2176_vm7 = vcmp.gt.f32.partialorder %v5029_v13, 0.0 }
 0x11c   :  { %v2557_v22 = vmul.f32 0.2, %v1710_v8  ;;  %4091 = vst.msk [vmem:[%s6870_s2 + $0x234] sm:$0xf] %vm3949_vm2, %v4743_v15  ;;  %v4748_v23 = vpack.c.bf16 %v2815_v21, %v2815_v21  ;;  %v2685_v24 = vsel %vm2173_vm5, %v1198_v7, %v2429_v17  ;;  %v2432_v25 = vmul.f32 0.2, %v5029_v13 }
 0x11d   :  { %3968 = vst.msk [vmem:[%s6870_s2 + $0x48] sm:$0xf] %vm3949_vm2, %v4620_v20  ;;  %v4618_v26 = vpack.c.bf16 %v2685_v24, %v2685_v24  ;;  %vm2304_vm8 = vcmp.gt.f32.partialorder %v5157_v14, 0.0  ;;  %v2560_v28 = vmul.f32 0.2, %v5157_v14  ;;  %vm2174_vm9 = vcmp.gt.f32.partialorder %v1201_v18, 0.0 }
 0x11e   :  { %v2813_v27 = vsel %vm2301_vm6, %v1710_v8, %v2557_v22  ;;  %4096 = vst.msk [vmem:[%s6870_s2 + $0x248] sm:$0xf] %vm3949_vm2, %v4748_v23  ;;  %v2688_v30 = vsel %vm2176_vm7, %v5029_v13, %v2432_v25  ;;  %v2430_v31 = vmul.f32 0.2, %v1201_v18  ;;  %vm2302_vm10 = vcmp.gt.f32.partialorder %v1713_v19, 0.0  ;;  %v5032_v35 = vpop.f32.mrb[20].mxu0 }
 0x11f   :  { %v4746_v29 = vpack.c.bf16 %v2813_v27, %v2813_v27  ;;  %3966 = vst.msk [vmem:[%s6870_s2 + $0x40] sm:$0xf] %vm3949_vm2, %v4618_v26  ;;  %v4621_v32 = vpack.c.bf16 %v2688_v30, %v2688_v30  ;;  %v2816_v33 = vsel %vm2304_vm8, %v5157_v14, %v2560_v28  ;;  %v2558_v34 = vmul.f32 0.2, %v1713_v19  ;;  %v5160_v36 = vpop.f32.mrb[20].mxu1  ;;  %v1214_v40 = vpop.f32.mrb[21].mxu0 }
 0x120   :  { %v4749_v37 = vpack.c.bf16 %v2816_v33, %v2816_v33  ;;  %v2686_v38 = vsel %vm2174_vm9, %v1201_v18, %v2430_v31  ;;  %vm2179_vm11 = vcmp.gt.f32.partialorder %v5032_v35, 0.0  ;;  %v2435_v39 = vmul.f32 0.2, %v5032_v35  ;;  %v1726_v41 = vpop.f32.mrb[21].mxu1  ;;  %v5033_v45 = vpop.f32.mrb[22].mxu0 }
 0x121   :  { %4094 = vst.msk [vmem:[%s6870_s2 + $0x240] sm:$0xf] %vm3949_vm2, %v4746_v29  ;;  %3969 = vst.msk [vmem:[%s6870_s2 + $0x4c] sm:$0xf] %vm3949_vm2, %v4621_v32  ;;  %v4619_v42 = vpack.c.bf16 %v2686_v38, %v2686_v38  ;;  %v2814_v43 = vsel %vm2302_vm10, %v1713_v19, %v2558_v34  ;;  %vm2307_vm12 = vcmp.gt.f32.partialorder %v5160_v36, 0.0  ;;  %v5161_v46 = vpop.f32.mrb[22].mxu1 }
 0x122   :  { %v2563_v44 = vmul.f32 0.2, %v5160_v36  ;;  %4097 = vst.msk [vmem:[%s6870_s2 + $0x24c] sm:$0xf] %vm3949_vm2, %v4749_v37  ;;  %v4747_v47 = vpack.c.bf16 %v2814_v43, %v2814_v43  ;;  %v2691_v48 = vsel %vm2179_vm11, %v5032_v35, %v2435_v39  ;;  %vm2177_vm13 = vcmp.gt.f32.partialorder %v1214_v40, 0.0  ;;  %v1217_v50 = vpop.f32.mrb[23].mxu0 }
 0x123   :  { %v2433_v49 = vmul.f32 0.2, %v1214_v40  ;;  %v1729_v51 = vpop.f32.mrb[23].mxu1  ;;  %3967 = vst.msk [vmem:[%s6870_s2 + $0x44] sm:$0xf] %vm3949_vm2, %v4619_v42  ;;  %v4624_v52 = vpack.c.bf16 %v2691_v48, %v2691_v48  ;;  %vm2305_vm14 = vcmp.gt.f32.partialorder %v1726_v41, 0.0 }
 0x124   :  { %v2819_v53 = vsel %vm2307_vm12, %v5160_v36, %v2563_v44  ;;  %v2561_v54 = vmul.f32 0.2, %v1726_v41  ;;  %4095 = vst.msk [vmem:[%s6870_s2 + $0x244] sm:$0xf] %vm3949_vm2, %v4747_v47  ;;  %vm2180_vm15 = vcmp.gt.f32.partialorder %v5033_v45, 0.0  ;;  %vm2308_vm0 = vcmp.gt.f32.partialorder %v5161_v46, 0.0 }
 0x125   :  { %v4752_v55 = vpack.c.bf16 %v2819_v53, %v2819_v53  ;;  %v2689_v56 = vsel %vm2177_vm13, %v1214_v40, %v2433_v49  ;;  %v2436_v57 = vmul.f32 0.2, %v5033_v45  ;;  %3972 = vst.msk [vmem:[%s6870_s2 + $0x58] sm:$0xf] %vm3949_vm2, %v4624_v52  ;;  %v2564_v60 = vmul.f32 0.2, %v5161_v46 }
 0x126   :  { %v4622_v58 = vpack.c.bf16 %v2689_v56, %v2689_v56  ;;  %v2817_v59 = vsel %vm2305_vm14, %v1726_v41, %v2561_v54  ;;  %vm2178_vm1 = vcmp.gt.f32.partialorder %v1217_v50, 0.0  ;;  %v2434_v63 = vmul.f32 0.2, %v1217_v50  ;;  %v5036_v3 = vpop.f32.mrb[24].mxu0  ;;  %v5164_v4 = vpop.f32.mrb[24].mxu1 }
 0x127   :  { %4100 = vst.msk [vmem:[%s6870_s2 + $0x258] sm:$0xf] %vm3949_vm2, %v4752_v55  ;;  %v4750_v61 = vpack.c.bf16 %v2817_v59, %v2817_v59  ;;  %v2692_v62 = vsel %vm2180_vm15, %v5033_v45, %v2436_v57  ;;  %v2820_v1 = vsel %vm2308_vm0, %v5161_v46, %v2564_v60  ;;  %vm2306_vm3 = vcmp.gt.f32.partialorder %v1729_v51, 0.0  ;;  %v1230_v8 = vpop.f32.mrb[25].mxu0  ;;  %v1742_v9 = vpop.f32.mrb[25].mxu1 }
 0x128   :  { %3970 = vst.msk [vmem:[%s6870_s2 + $0x50] sm:$0xf] %vm3949_vm2, %v4622_v58  ;;  %v4625_v0 = vpack.c.bf16 %v2692_v62, %v2692_v62  ;;  %v2562_v2 = vmul.f32 0.2, %v1729_v51  ;;  %v4753_v5 = vpack.c.bf16 %v2820_v1, %v2820_v1  ;;  %v2690_v6 = vsel %vm2178_vm1, %v1217_v50, %v2434_v63  ;;  %v5037_v13 = vpop.f32.mrb[26].mxu0  ;;  %v5165_v14 = vpop.f32.mrb[26].mxu1 }
 0x129   :  { %4098 = vst.msk [vmem:[%s6870_s2 + $0x250] sm:$0xf] %vm3949_vm2, %v4750_v61  ;;  %vm2183_vm4 = vcmp.gt.f32.partialorder %v5036_v3, 0.0  ;;  %v2439_v7 = vmul.f32 0.2, %v5036_v3  ;;  %v4623_v10 = vpack.c.bf16 %v2690_v6, %v2690_v6  ;;  %vm2311_vm5 = vcmp.gt.f32.partialorder %v5164_v4, 0.0 }
 0x12a   :  { %3973 = vst.msk [vmem:[%s6870_s2 + $0x5c] sm:$0xf] %vm3949_vm2, %v4625_v0  ;;  %v2818_v11 = vsel %vm2306_vm3, %v1729_v51, %v2562_v2  ;;  %v2567_v12 = vmul.f32 0.2, %v5164_v4  ;;  %4101 = vst.msk [vmem:[%s6870_s2 + $0x25c] sm:$0xf] %vm3949_vm2, %v4753_v5 }
 0x12b   :  { %v4751_v15 = vpack.c.bf16 %v2818_v11, %v2818_v11  ;;  %v2695_v16 = vsel %vm2183_vm4, %v5036_v3, %v2439_v7  ;;  %vm2181_vm6 = vcmp.gt.f32.partialorder %v1230_v8, 0.0  ;;  %v2437_v17 = vmul.f32 0.2, %v1230_v8  ;;  %v1233_v18 = vpop.f32.mrb[27].mxu0  ;;  %v1745_v19 = vpop.f32.mrb[27].mxu1 }
 0x12c   :  { %3971 = vst.msk [vmem:[%s6870_s2 + $0x54] sm:$0xf] %vm3949_vm2, %v4623_v10  ;;  %v4628_v20 = vpack.c.bf16 %v2695_v16, %v2695_v16  ;;  %v2823_v21 = vsel %vm2311_vm5, %v5164_v4, %v2567_v12  ;;  %vm2309_vm7 = vcmp.gt.f32.partialorder %v1742_v9, 0.0  ;;  %v2565_v22 = vmul.f32 0.2, %v1742_v9 }
 0x12d   :  { %4099 = vst.msk [vmem:[%s6870_s2 + $0x254] sm:$0xf] %vm3949_vm2, %v4751_v15  ;;  %v4756_v23 = vpack.c.bf16 %v2823_v21, %v2823_v21  ;;  %v2693_v24 = vsel %vm2181_vm6, %v1230_v8, %v2437_v17  ;;  %vm2184_vm8 = vcmp.gt.f32.partialorder %v5037_v13, 0.0  ;;  %v2440_v25 = vmul.f32 0.2, %v5037_v13  ;;  %v5040_v35 = vpop.f32.mrb[28].mxu0 }
 0x12e   :  { %3976 = vst.msk [vmem:[%s6870_s2 + $0x68] sm:$0xf] %vm3949_vm2, %v4628_v20  ;;  %v4626_v26 = vpack.c.bf16 %v2693_v24, %v2693_v24  ;;  %v2821_v27 = vsel %vm2309_vm7, %v1742_v9, %v2565_v22  ;;  %vm2312_vm9 = vcmp.gt.f32.partialorder %v5165_v14, 0.0  ;;  %v2568_v28 = vmul.f32 0.2, %v5165_v14  ;;  %v5168_v36 = vpop.f32.mrb[28].mxu1 }
 0x12f   :  { %4104 = vst.msk [vmem:[%s6870_s2 + $0x268] sm:$0xf] %vm3949_vm2, %v4756_v23  ;;  %v4754_v29 = vpack.c.bf16 %v2821_v27, %v2821_v27  ;;  %v2696_v30 = vsel %vm2184_vm8, %v5037_v13, %v2440_v25  ;;  %vm2182_vm10 = vcmp.gt.f32.partialorder %v1233_v18, 0.0  ;;  %v2438_v31 = vmul.f32 0.2, %v1233_v18  ;;  %v1246_v40 = vpop.f32.mrb[29].mxu0 }
 0x130   :  { %3974 = vst.msk [vmem:[%s6870_s2 + $0x60] sm:$0xf] %vm3949_vm2, %v4626_v26  ;;  %v4629_v32 = vpack.c.bf16 %v2696_v30, %v2696_v30  ;;  %v2824_v33 = vsel %vm2312_vm9, %v5165_v14, %v2568_v28  ;;  %vm2310_vm11 = vcmp.gt.f32.partialorder %v1745_v19, 0.0  ;;  %v2566_v34 = vmul.f32 0.2, %v1745_v19  ;;  %v1758_v41 = vpop.f32.mrb[29].mxu1 }
 0x131   :  { %4102 = vst.msk [vmem:[%s6870_s2 + $0x260] sm:$0xf] %vm3949_vm2, %v4754_v29  ;;  %v4757_v37 = vpack.c.bf16 %v2824_v33, %v2824_v33  ;;  %v2694_v38 = vsel %vm2182_vm10, %v1233_v18, %v2438_v31  ;;  %vm2187_vm12 = vcmp.gt.f32.partialorder %v5040_v35, 0.0  ;;  %v2443_v39 = vmul.f32 0.2, %v5040_v35  ;;  %v5041_v45 = vpop.f32.mrb[30].mxu0 }
 0x132   :  { %3977 = vst.msk [vmem:[%s6870_s2 + $0x6c] sm:$0xf] %vm3949_vm2, %v4629_v32  ;;  %v4627_v42 = vpack.c.bf16 %v2694_v38, %v2694_v38  ;;  %v2822_v43 = vsel %vm2310_vm11, %v1745_v19, %v2566_v34  ;;  %vm2315_vm13 = vcmp.gt.f32.partialorder %v5168_v36, 0.0  ;;  %v2571_v44 = vmul.f32 0.2, %v5168_v36  ;;  %v5169_v46 = vpop.f32.mrb[30].mxu1 }
 0x133   :  { %4105 = vst.msk [vmem:[%s6870_s2 + $0x26c] sm:$0xf] %vm3949_vm2, %v4757_v37  ;;  %v4755_v47 = vpack.c.bf16 %v2822_v43, %v2822_v43  ;;  %v2699_v48 = vsel %vm2187_vm12, %v5040_v35, %v2443_v39  ;;  %vm2185_vm14 = vcmp.gt.f32.partialorder %v1246_v40, 0.0  ;;  %v2441_v49 = vmul.f32 0.2, %v1246_v40  ;;  %v1249_v50 = vpop.f32.mrb[31].mxu0 }
 0x134   :  { %v1761_v51 = vpop.f32.mrb[31].mxu1  ;;  %3975 = vst.msk [vmem:[%s6870_s2 + $0x64] sm:$0xf] %vm3949_vm2, %v4627_v42  ;;  %v4632_v52 = vpack.c.bf16 %v2699_v48, %v2699_v48  ;;  %v2827_v53 = vsel %vm2315_vm13, %v5168_v36, %v2571_v44  ;;  %vm2313_vm15 = vcmp.gt.f32.partialorder %v1758_v41, 0.0  ;;  %v2569_v54 = vmul.f32 0.2, %v1758_v41 }
 0x135   :  { %4103 = vst.msk [vmem:[%s6870_s2 + $0x264] sm:$0xf] %vm3949_vm2, %v4755_v47  ;;  %v4760_v55 = vpack.c.bf16 %v2827_v53, %v2827_v53  ;;  %v2697_v56 = vsel %vm2185_vm14, %v1246_v40, %v2441_v49  ;;  %vm2188_vm0 = vcmp.gt.f32.partialorder %v5041_v45, 0.0  ;;  %v2444_v57 = vmul.f32 0.2, %v5041_v45  ;;  %v5044_v3 = vpop.f32.mrb[32].mxu0 }
 0x136   :  { %3980 = vst.msk [vmem:[%s6870_s2 + $0x78] sm:$0xf] %vm3949_vm2, %v4632_v52  ;;  %v4630_v58 = vpack.c.bf16 %v2697_v56, %v2697_v56  ;;  %v2825_v59 = vsel %vm2313_vm15, %v1758_v41, %v2569_v54  ;;  %vm2316_vm1 = vcmp.gt.f32.partialorder %v5169_v46, 0.0  ;;  %v2572_v60 = vmul.f32 0.2, %v5169_v46  ;;  %v5172_v4 = vpop.f32.mrb[32].mxu1 }
 0x137   :  { %4108 = vst.msk [vmem:[%s6870_s2 + $0x278] sm:$0xf] %vm3949_vm2, %v4760_v55  ;;  %v4758_v61 = vpack.c.bf16 %v2825_v59, %v2825_v59  ;;  %v2700_v62 = vsel %vm2188_vm0, %v5041_v45, %v2444_v57  ;;  %vm2186_vm3 = vcmp.gt.f32.partialorder %v1249_v50, 0.0  ;;  %v2442_v63 = vmul.f32 0.2, %v1249_v50  ;;  %v1262_v8 = vpop.f32.mrb[33].mxu0 }
 0x138   :  { %3978 = vst.msk [vmem:[%s6870_s2 + $0x70] sm:$0xf] %vm3949_vm2, %v4630_v58  ;;  %v4633_v0 = vpack.c.bf16 %v2700_v62, %v2700_v62  ;;  %v2828_v1 = vsel %vm2316_vm1, %v5169_v46, %v2572_v60  ;;  %vm2314_vm4 = vcmp.gt.f32.partialorder %v1761_v51, 0.0  ;;  %v2570_v2 = vmul.f32 0.2, %v1761_v51  ;;  %v1774_v9 = vpop.f32.mrb[33].mxu1 }
 0x139   :  { %4106 = vst.msk [vmem:[%s6870_s2 + $0x270] sm:$0xf] %vm3949_vm2, %v4758_v61  ;;  %v4761_v5 = vpack.c.bf16 %v2828_v1, %v2828_v1  ;;  %v2698_v6 = vsel %vm2186_vm3, %v1249_v50, %v2442_v63  ;;  %vm2191_vm5 = vcmp.gt.f32.partialorder %v5044_v3, 0.0  ;;  %v2447_v7 = vmul.f32 0.2, %v5044_v3  ;;  %v5045_v13 = vpop.f32.mrb[34].mxu0 }
 0x13a   :  { %3981 = vst.msk [vmem:[%s6870_s2 + $0x7c] sm:$0xf] %vm3949_vm2, %v4633_v0  ;;  %v4631_v10 = vpack.c.bf16 %v2698_v6, %v2698_v6  ;;  %v2826_v11 = vsel %vm2314_vm4, %v1761_v51, %v2570_v2  ;;  %vm2319_vm6 = vcmp.gt.f32.partialorder %v5172_v4, 0.0  ;;  %v2575_v12 = vmul.f32 0.2, %v5172_v4  ;;  %v5173_v14 = vpop.f32.mrb[34].mxu1 }
 0x13b   :  { %4109 = vst.msk [vmem:[%s6870_s2 + $0x27c] sm:$0xf] %vm3949_vm2, %v4761_v5  ;;  %v4759_v15 = vpack.c.bf16 %v2826_v11, %v2826_v11  ;;  %v2703_v16 = vsel %vm2191_vm5, %v5044_v3, %v2447_v7  ;;  %vm2189_vm7 = vcmp.gt.f32.partialorder %v1262_v8, 0.0  ;;  %v2445_v17 = vmul.f32 0.2, %v1262_v8  ;;  %v1265_v18 = vpop.f32.mrb[35].mxu0 }
 0x13c   :  { %v1777_v19 = vpop.f32.mrb[35].mxu1  ;;  %3979 = vst.msk [vmem:[%s6870_s2 + $0x74] sm:$0xf] %vm3949_vm2, %v4631_v10  ;;  %v4636_v20 = vpack.c.bf16 %v2703_v16, %v2703_v16  ;;  %v2831_v21 = vsel %vm2319_vm6, %v5172_v4, %v2575_v12  ;;  %vm2317_vm8 = vcmp.gt.f32.partialorder %v1774_v9, 0.0  ;;  %v2573_v22 = vmul.f32 0.2, %v1774_v9 }
 0x13d   :  { %4107 = vst.msk [vmem:[%s6870_s2 + $0x274] sm:$0xf] %vm3949_vm2, %v4759_v15  ;;  %v4764_v23 = vpack.c.bf16 %v2831_v21, %v2831_v21  ;;  %v2701_v24 = vsel %vm2189_vm7, %v1262_v8, %v2445_v17  ;;  %vm2192_vm9 = vcmp.gt.f32.partialorder %v5045_v13, 0.0  ;;  %v2448_v25 = vmul.f32 0.2, %v5045_v13  ;;  %v5048_v35 = vpop.f32.mrb[36].mxu0 }
 0x13e   :  { %3984 = vst.msk [vmem:[%s6870_s2 + $0x88] sm:$0xf] %vm3949_vm2, %v4636_v20  ;;  %v4634_v26 = vpack.c.bf16 %v2701_v24, %v2701_v24  ;;  %v2829_v27 = vsel %vm2317_vm8, %v1774_v9, %v2573_v22  ;;  %vm2320_vm10 = vcmp.gt.f32.partialorder %v5173_v14, 0.0  ;;  %v2576_v28 = vmul.f32 0.2, %v5173_v14  ;;  %v5176_v36 = vpop.f32.mrb[36].mxu1 }
 0x13f   :  { %4112 = vst.msk [vmem:[%s6870_s2 + $0x288] sm:$0xf] %vm3949_vm2, %v4764_v23  ;;  %v4762_v29 = vpack.c.bf16 %v2829_v27, %v2829_v27  ;;  %v2704_v30 = vsel %vm2192_vm9, %v5045_v13, %v2448_v25  ;;  %vm2190_vm11 = vcmp.gt.f32.partialorder %v1265_v18, 0.0  ;;  %v2446_v31 = vmul.f32 0.2, %v1265_v18  ;;  %v1278_v40 = vpop.f32.mrb[37].mxu0 }
 0x140   :  { %3982 = vst.msk [vmem:[%s6870_s2 + $0x80] sm:$0xf] %vm3949_vm2, %v4634_v26  ;;  %v4637_v32 = vpack.c.bf16 %v2704_v30, %v2704_v30  ;;  %v2832_v33 = vsel %vm2320_vm10, %v5173_v14, %v2576_v28  ;;  %vm2318_vm12 = vcmp.gt.f32.partialorder %v1777_v19, 0.0  ;;  %v2574_v34 = vmul.f32 0.2, %v1777_v19  ;;  %v1790_v41 = vpop.f32.mrb[37].mxu1 }
 0x141   :  { %4110 = vst.msk [vmem:[%s6870_s2 + $0x280] sm:$0xf] %vm3949_vm2, %v4762_v29  ;;  %v4765_v37 = vpack.c.bf16 %v2832_v33, %v2832_v33  ;;  %v2702_v38 = vsel %vm2190_vm11, %v1265_v18, %v2446_v31  ;;  %vm2195_vm13 = vcmp.gt.f32.partialorder %v5048_v35, 0.0  ;;  %v2451_v39 = vmul.f32 0.2, %v5048_v35  ;;  %v5049_v45 = vpop.f32.mrb[38].mxu0 }
 0x142   :  { %3985 = vst.msk [vmem:[%s6870_s2 + $0x8c] sm:$0xf] %vm3949_vm2, %v4637_v32  ;;  %v4635_v42 = vpack.c.bf16 %v2702_v38, %v2702_v38  ;;  %v2830_v43 = vsel %vm2318_vm12, %v1777_v19, %v2574_v34  ;;  %vm2323_vm14 = vcmp.gt.f32.partialorder %v5176_v36, 0.0  ;;  %v2579_v44 = vmul.f32 0.2, %v5176_v36  ;;  %v5177_v46 = vpop.f32.mrb[38].mxu1 }
 0x143   :  { %4113 = vst.msk [vmem:[%s6870_s2 + $0x28c] sm:$0xf] %vm3949_vm2, %v4765_v37  ;;  %v4763_v47 = vpack.c.bf16 %v2830_v43, %v2830_v43  ;;  %v2707_v48 = vsel %vm2195_vm13, %v5048_v35, %v2451_v39  ;;  %vm2193_vm15 = vcmp.gt.f32.partialorder %v1278_v40, 0.0  ;;  %v2449_v49 = vmul.f32 0.2, %v1278_v40  ;;  %v1281_v50 = vpop.f32.mrb[39].mxu0 }
 0x144   :  { %v1793_v51 = vpop.f32.mrb[39].mxu1  ;;  %3983 = vst.msk [vmem:[%s6870_s2 + $0x84] sm:$0xf] %vm3949_vm2, %v4635_v42  ;;  %v4640_v52 = vpack.c.bf16 %v2707_v48, %v2707_v48  ;;  %v2835_v53 = vsel %vm2323_vm14, %v5176_v36, %v2579_v44  ;;  %vm2321_vm0 = vcmp.gt.f32.partialorder %v1790_v41, 0.0  ;;  %v2577_v54 = vmul.f32 0.2, %v1790_v41 }
 0x145   :  { %4111 = vst.msk [vmem:[%s6870_s2 + $0x284] sm:$0xf] %vm3949_vm2, %v4763_v47  ;;  %v4768_v55 = vpack.c.bf16 %v2835_v53, %v2835_v53  ;;  %v2705_v56 = vsel %vm2193_vm15, %v1278_v40, %v2449_v49  ;;  %vm2196_vm1 = vcmp.gt.f32.partialorder %v5049_v45, 0.0  ;;  %v2452_v57 = vmul.f32 0.2, %v5049_v45  ;;  %v5052_v3 = vpop.f32.mrb[40].mxu0 }
 0x146   :  { %3988 = vst.msk [vmem:[%s6870_s2 + $0x98] sm:$0xf] %vm3949_vm2, %v4640_v52  ;;  %v4638_v58 = vpack.c.bf16 %v2705_v56, %v2705_v56  ;;  %v2833_v59 = vsel %vm2321_vm0, %v1790_v41, %v2577_v54  ;;  %vm2324_vm3 = vcmp.gt.f32.partialorder %v5177_v46, 0.0  ;;  %v2580_v60 = vmul.f32 0.2, %v5177_v46  ;;  %v5180_v4 = vpop.f32.mrb[40].mxu1 }
 0x147   :  { %4116 = vst.msk [vmem:[%s6870_s2 + $0x298] sm:$0xf] %vm3949_vm2, %v4768_v55  ;;  %v4766_v61 = vpack.c.bf16 %v2833_v59, %v2833_v59  ;;  %v2708_v62 = vsel %vm2196_vm1, %v5049_v45, %v2452_v57  ;;  %vm2194_vm4 = vcmp.gt.f32.partialorder %v1281_v50, 0.0  ;;  %v2450_v63 = vmul.f32 0.2, %v1281_v50  ;;  %v1294_v8 = vpop.f32.mrb[41].mxu0 }
 0x148   :  { %3986 = vst.msk [vmem:[%s6870_s2 + $0x90] sm:$0xf] %vm3949_vm2, %v4638_v58  ;;  %v4641_v0 = vpack.c.bf16 %v2708_v62, %v2708_v62  ;;  %v2836_v1 = vsel %vm2324_vm3, %v5177_v46, %v2580_v60  ;;  %vm2322_vm5 = vcmp.gt.f32.partialorder %v1793_v51, 0.0  ;;  %v2578_v2 = vmul.f32 0.2, %v1793_v51  ;;  %v1806_v9 = vpop.f32.mrb[41].mxu1 }
 0x149   :  { %4114 = vst.msk [vmem:[%s6870_s2 + $0x290] sm:$0xf] %vm3949_vm2, %v4766_v61  ;;  %v4769_v5 = vpack.c.bf16 %v2836_v1, %v2836_v1  ;;  %v2706_v6 = vsel %vm2194_vm4, %v1281_v50, %v2450_v63  ;;  %vm2199_vm6 = vcmp.gt.f32.partialorder %v5052_v3, 0.0  ;;  %v2455_v7 = vmul.f32 0.2, %v5052_v3  ;;  %v5053_v13 = vpop.f32.mrb[42].mxu0 }
 0x14a   :  { %3989 = vst.msk [vmem:[%s6870_s2 + $0x9c] sm:$0xf] %vm3949_vm2, %v4641_v0  ;;  %v4639_v10 = vpack.c.bf16 %v2706_v6, %v2706_v6  ;;  %v2834_v11 = vsel %vm2322_vm5, %v1793_v51, %v2578_v2  ;;  %vm2327_vm7 = vcmp.gt.f32.partialorder %v5180_v4, 0.0  ;;  %v2583_v12 = vmul.f32 0.2, %v5180_v4  ;;  %v5181_v14 = vpop.f32.mrb[42].mxu1 }
 0x14b   :  { %4117 = vst.msk [vmem:[%s6870_s2 + $0x29c] sm:$0xf] %vm3949_vm2, %v4769_v5  ;;  %v4767_v15 = vpack.c.bf16 %v2834_v11, %v2834_v11  ;;  %v2711_v16 = vsel %vm2199_vm6, %v5052_v3, %v2455_v7  ;;  %vm2197_vm8 = vcmp.gt.f32.partialorder %v1294_v8, 0.0  ;;  %v2453_v17 = vmul.f32 0.2, %v1294_v8  ;;  %v1297_v18 = vpop.f32.mrb[43].mxu0 }
 0x14c   :  { %v1809_v19 = vpop.f32.mrb[43].mxu1  ;;  %3987 = vst.msk [vmem:[%s6870_s2 + $0x94] sm:$0xf] %vm3949_vm2, %v4639_v10  ;;  %v4644_v20 = vpack.c.bf16 %v2711_v16, %v2711_v16  ;;  %v2839_v21 = vsel %vm2327_vm7, %v5180_v4, %v2583_v12  ;;  %vm2325_vm9 = vcmp.gt.f32.partialorder %v1806_v9, 0.0  ;;  %v2581_v22 = vmul.f32 0.2, %v1806_v9 }
 0x14d   :  { %4115 = vst.msk [vmem:[%s6870_s2 + $0x294] sm:$0xf] %vm3949_vm2, %v4767_v15  ;;  %v4772_v23 = vpack.c.bf16 %v2839_v21, %v2839_v21  ;;  %v2709_v24 = vsel %vm2197_vm8, %v1294_v8, %v2453_v17  ;;  %vm2200_vm10 = vcmp.gt.f32.partialorder %v5053_v13, 0.0  ;;  %v2456_v25 = vmul.f32 0.2, %v5053_v13  ;;  %v5056_v35 = vpop.f32.mrb[44].mxu0 }
 0x14e   :  { %3992 = vst.msk [vmem:[%s6870_s2 + $0xa8] sm:$0xf] %vm3949_vm2, %v4644_v20  ;;  %v4642_v26 = vpack.c.bf16 %v2709_v24, %v2709_v24  ;;  %v2837_v27 = vsel %vm2325_vm9, %v1806_v9, %v2581_v22  ;;  %vm2328_vm11 = vcmp.gt.f32.partialorder %v5181_v14, 0.0  ;;  %v2584_v28 = vmul.f32 0.2, %v5181_v14  ;;  %v5184_v36 = vpop.f32.mrb[44].mxu1 }
 0x14f   :  { %4120 = vst.msk [vmem:[%s6870_s2 + $0x2a8] sm:$0xf] %vm3949_vm2, %v4772_v23  ;;  %v4770_v29 = vpack.c.bf16 %v2837_v27, %v2837_v27  ;;  %v2712_v30 = vsel %vm2200_vm10, %v5053_v13, %v2456_v25  ;;  %vm2198_vm12 = vcmp.gt.f32.partialorder %v1297_v18, 0.0  ;;  %v2454_v31 = vmul.f32 0.2, %v1297_v18  ;;  %v1310_v40 = vpop.f32.mrb[45].mxu0 }
 0x150   :  { %3990 = vst.msk [vmem:[%s6870_s2 + $0xa0] sm:$0xf] %vm3949_vm2, %v4642_v26  ;;  %v4645_v32 = vpack.c.bf16 %v2712_v30, %v2712_v30  ;;  %v2840_v33 = vsel %vm2328_vm11, %v5181_v14, %v2584_v28  ;;  %vm2326_vm13 = vcmp.gt.f32.partialorder %v1809_v19, 0.0  ;;  %v2582_v34 = vmul.f32 0.2, %v1809_v19  ;;  %v1822_v41 = vpop.f32.mrb[45].mxu1 }
 0x151   :  { %4118 = vst.msk [vmem:[%s6870_s2 + $0x2a0] sm:$0xf] %vm3949_vm2, %v4770_v29  ;;  %v4773_v37 = vpack.c.bf16 %v2840_v33, %v2840_v33  ;;  %v2710_v38 = vsel %vm2198_vm12, %v1297_v18, %v2454_v31  ;;  %vm2203_vm14 = vcmp.gt.f32.partialorder %v5056_v35, 0.0  ;;  %v2459_v39 = vmul.f32 0.2, %v5056_v35  ;;  %v5057_v45 = vpop.f32.mrb[46].mxu0 }
 0x152   :  { %3993 = vst.msk [vmem:[%s6870_s2 + $0xac] sm:$0xf] %vm3949_vm2, %v4645_v32  ;;  %v4643_v42 = vpack.c.bf16 %v2710_v38, %v2710_v38  ;;  %v2838_v43 = vsel %vm2326_vm13, %v1809_v19, %v2582_v34  ;;  %vm2331_vm15 = vcmp.gt.f32.partialorder %v5184_v36, 0.0  ;;  %v2587_v44 = vmul.f32 0.2, %v5184_v36  ;;  %v5185_v46 = vpop.f32.mrb[46].mxu1 }
 0x153   :  { %4121 = vst.msk [vmem:[%s6870_s2 + $0x2ac] sm:$0xf] %vm3949_vm2, %v4773_v37  ;;  %v4771_v47 = vpack.c.bf16 %v2838_v43, %v2838_v43  ;;  %v2715_v48 = vsel %vm2203_vm14, %v5056_v35, %v2459_v39  ;;  %vm2201_vm0 = vcmp.gt.f32.partialorder %v1310_v40, 0.0  ;;  %v2457_v49 = vmul.f32 0.2, %v1310_v40  ;;  %v1313_v50 = vpop.f32.mrb[47].mxu0 }
 0x154   :  { %v1825_v51 = vpop.f32.mrb[47].mxu1  ;;  %3991 = vst.msk [vmem:[%s6870_s2 + $0xa4] sm:$0xf] %vm3949_vm2, %v4643_v42  ;;  %v4648_v52 = vpack.c.bf16 %v2715_v48, %v2715_v48  ;;  %v2843_v53 = vsel %vm2331_vm15, %v5184_v36, %v2587_v44  ;;  %vm2329_vm1 = vcmp.gt.f32.partialorder %v1822_v41, 0.0  ;;  %v2585_v54 = vmul.f32 0.2, %v1822_v41 }
 0x155   :  { %4119 = vst.msk [vmem:[%s6870_s2 + $0x2a4] sm:$0xf] %vm3949_vm2, %v4771_v47  ;;  %v4776_v55 = vpack.c.bf16 %v2843_v53, %v2843_v53  ;;  %v2713_v56 = vsel %vm2201_vm0, %v1310_v40, %v2457_v49  ;;  %vm2204_vm3 = vcmp.gt.f32.partialorder %v5057_v45, 0.0  ;;  %v2460_v57 = vmul.f32 0.2, %v5057_v45  ;;  %v5060_v3 = vpop.f32.mrb[48].mxu0 }
 0x156   :  { %3996 = vst.msk [vmem:[%s6870_s2 + $0xb8] sm:$0xf] %vm3949_vm2, %v4648_v52  ;;  %v4646_v58 = vpack.c.bf16 %v2713_v56, %v2713_v56  ;;  %v2841_v59 = vsel %vm2329_vm1, %v1822_v41, %v2585_v54  ;;  %vm2332_vm4 = vcmp.gt.f32.partialorder %v5185_v46, 0.0  ;;  %v2588_v60 = vmul.f32 0.2, %v5185_v46  ;;  %v5188_v4 = vpop.f32.mrb[48].mxu1 }
 0x157   :  { %4124 = vst.msk [vmem:[%s6870_s2 + $0x2b8] sm:$0xf] %vm3949_vm2, %v4776_v55  ;;  %v4774_v61 = vpack.c.bf16 %v2841_v59, %v2841_v59  ;;  %v2716_v62 = vsel %vm2204_vm3, %v5057_v45, %v2460_v57  ;;  %vm2202_vm5 = vcmp.gt.f32.partialorder %v1313_v50, 0.0  ;;  %v2458_v63 = vmul.f32 0.2, %v1313_v50  ;;  %v1326_v8 = vpop.f32.mrb[49].mxu0 }
 0x158   :  { %3994 = vst.msk [vmem:[%s6870_s2 + $0xb0] sm:$0xf] %vm3949_vm2, %v4646_v58  ;;  %v4649_v0 = vpack.c.bf16 %v2716_v62, %v2716_v62  ;;  %v2844_v1 = vsel %vm2332_vm4, %v5185_v46, %v2588_v60  ;;  %vm2330_vm6 = vcmp.gt.f32.partialorder %v1825_v51, 0.0  ;;  %v2586_v2 = vmul.f32 0.2, %v1825_v51  ;;  %v1838_v9 = vpop.f32.mrb[49].mxu1 }
 0x159   :  { %4122 = vst.msk [vmem:[%s6870_s2 + $0x2b0] sm:$0xf] %vm3949_vm2, %v4774_v61  ;;  %v4777_v5 = vpack.c.bf16 %v2844_v1, %v2844_v1  ;;  %v2714_v6 = vsel %vm2202_vm5, %v1313_v50, %v2458_v63  ;;  %vm2207_vm7 = vcmp.gt.f32.partialorder %v5060_v3, 0.0  ;;  %v2463_v7 = vmul.f32 0.2, %v5060_v3  ;;  %v5061_v13 = vpop.f32.mrb[50].mxu0 }
 0x15a   :  { %3997 = vst.msk [vmem:[%s6870_s2 + $0xbc] sm:$0xf] %vm3949_vm2, %v4649_v0  ;;  %v4647_v10 = vpack.c.bf16 %v2714_v6, %v2714_v6  ;;  %v2842_v11 = vsel %vm2330_vm6, %v1825_v51, %v2586_v2  ;;  %vm2335_vm8 = vcmp.gt.f32.partialorder %v5188_v4, 0.0  ;;  %v2591_v12 = vmul.f32 0.2, %v5188_v4  ;;  %v5189_v14 = vpop.f32.mrb[50].mxu1 }
 0x15b   :  { %4125 = vst.msk [vmem:[%s6870_s2 + $0x2bc] sm:$0xf] %vm3949_vm2, %v4777_v5  ;;  %v4775_v15 = vpack.c.bf16 %v2842_v11, %v2842_v11  ;;  %v2719_v16 = vsel %vm2207_vm7, %v5060_v3, %v2463_v7  ;;  %vm2205_vm9 = vcmp.gt.f32.partialorder %v1326_v8, 0.0  ;;  %v2461_v17 = vmul.f32 0.2, %v1326_v8  ;;  %v1329_v18 = vpop.f32.mrb[51].mxu0 }
 0x15c   :  { %v1841_v19 = vpop.f32.mrb[51].mxu1  ;;  %3995 = vst.msk [vmem:[%s6870_s2 + $0xb4] sm:$0xf] %vm3949_vm2, %v4647_v10  ;;  %v4652_v20 = vpack.c.bf16 %v2719_v16, %v2719_v16  ;;  %v2847_v21 = vsel %vm2335_vm8, %v5188_v4, %v2591_v12  ;;  %vm2333_vm10 = vcmp.gt.f32.partialorder %v1838_v9, 0.0  ;;  %v2589_v22 = vmul.f32 0.2, %v1838_v9 }
 0x15d   :  { %4123 = vst.msk [vmem:[%s6870_s2 + $0x2b4] sm:$0xf] %vm3949_vm2, %v4775_v15  ;;  %v4780_v23 = vpack.c.bf16 %v2847_v21, %v2847_v21  ;;  %v2717_v24 = vsel %vm2205_vm9, %v1326_v8, %v2461_v17  ;;  %vm2208_vm11 = vcmp.gt.f32.partialorder %v5061_v13, 0.0  ;;  %v2464_v25 = vmul.f32 0.2, %v5061_v13  ;;  %v5064_v35 = vpop.f32.mrb[52].mxu0 }
 0x15e   :  { %4000 = vst.msk [vmem:[%s6870_s2 + $0xc8] sm:$0xf] %vm3949_vm2, %v4652_v20  ;;  %v4650_v26 = vpack.c.bf16 %v2717_v24, %v2717_v24  ;;  %v2845_v27 = vsel %vm2333_vm10, %v1838_v9, %v2589_v22  ;;  %vm2336_vm12 = vcmp.gt.f32.partialorder %v5189_v14, 0.0  ;;  %v2592_v28 = vmul.f32 0.2, %v5189_v14  ;;  %v5192_v36 = vpop.f32.mrb[52].mxu1 }
 0x15f   :  { %4128 = vst.msk [vmem:[%s6870_s2 + $0x2c8] sm:$0xf] %vm3949_vm2, %v4780_v23  ;;  %v4778_v29 = vpack.c.bf16 %v2845_v27, %v2845_v27  ;;  %v2720_v30 = vsel %vm2208_vm11, %v5061_v13, %v2464_v25  ;;  %vm2206_vm13 = vcmp.gt.f32.partialorder %v1329_v18, 0.0  ;;  %v2462_v31 = vmul.f32 0.2, %v1329_v18  ;;  %v1342_v40 = vpop.f32.mrb[53].mxu0 }
 0x160   :  { %3998 = vst.msk [vmem:[%s6870_s2 + $0xc0] sm:$0xf] %vm3949_vm2, %v4650_v26  ;;  %v4653_v32 = vpack.c.bf16 %v2720_v30, %v2720_v30  ;;  %v2848_v33 = vsel %vm2336_vm12, %v5189_v14, %v2592_v28  ;;  %vm2334_vm14 = vcmp.gt.f32.partialorder %v1841_v19, 0.0  ;;  %v2590_v34 = vmul.f32 0.2, %v1841_v19  ;;  %v1854_v41 = vpop.f32.mrb[53].mxu1 }
 0x161   :  { %4126 = vst.msk [vmem:[%s6870_s2 + $0x2c0] sm:$0xf] %vm3949_vm2, %v4778_v29  ;;  %v4781_v37 = vpack.c.bf16 %v2848_v33, %v2848_v33  ;;  %v2718_v38 = vsel %vm2206_vm13, %v1329_v18, %v2462_v31  ;;  %vm2211_vm15 = vcmp.gt.f32.partialorder %v5064_v35, 0.0  ;;  %v2467_v39 = vmul.f32 0.2, %v5064_v35  ;;  %v5065_v45 = vpop.f32.mrb[54].mxu0 }
 0x162   :  { %4001 = vst.msk [vmem:[%s6870_s2 + $0xcc] sm:$0xf] %vm3949_vm2, %v4653_v32  ;;  %v4651_v42 = vpack.c.bf16 %v2718_v38, %v2718_v38  ;;  %v2846_v43 = vsel %vm2334_vm14, %v1841_v19, %v2590_v34  ;;  %vm2339_vm0 = vcmp.gt.f32.partialorder %v5192_v36, 0.0  ;;  %v2595_v44 = vmul.f32 0.2, %v5192_v36  ;;  %v5193_v46 = vpop.f32.mrb[54].mxu1 }
 0x163   :  { %4129 = vst.msk [vmem:[%s6870_s2 + $0x2cc] sm:$0xf] %vm3949_vm2, %v4781_v37  ;;  %v4779_v47 = vpack.c.bf16 %v2846_v43, %v2846_v43  ;;  %v2723_v48 = vsel %vm2211_vm15, %v5064_v35, %v2467_v39  ;;  %vm2209_vm1 = vcmp.gt.f32.partialorder %v1342_v40, 0.0  ;;  %v2465_v49 = vmul.f32 0.2, %v1342_v40  ;;  %v1345_v50 = vpop.f32.mrb[55].mxu0 }
 0x164   :  { %v1857_v51 = vpop.f32.mrb[55].mxu1  ;;  %3999 = vst.msk [vmem:[%s6870_s2 + $0xc4] sm:$0xf] %vm3949_vm2, %v4651_v42  ;;  %v4656_v52 = vpack.c.bf16 %v2723_v48, %v2723_v48  ;;  %v2851_v53 = vsel %vm2339_vm0, %v5192_v36, %v2595_v44  ;;  %vm2337_vm3 = vcmp.gt.f32.partialorder %v1854_v41, 0.0  ;;  %v2593_v54 = vmul.f32 0.2, %v1854_v41 }
 0x165   :  { %4127 = vst.msk [vmem:[%s6870_s2 + $0x2c4] sm:$0xf] %vm3949_vm2, %v4779_v47  ;;  %v4784_v55 = vpack.c.bf16 %v2851_v53, %v2851_v53  ;;  %v2721_v56 = vsel %vm2209_vm1, %v1342_v40, %v2465_v49  ;;  %vm2212_vm4 = vcmp.gt.f32.partialorder %v5065_v45, 0.0  ;;  %v2468_v57 = vmul.f32 0.2, %v5065_v45  ;;  %v5068_v3 = vpop.f32.mrb[56].mxu0 }
 0x166   :  { %4004 = vst.msk [vmem:[%s6870_s2 + $0xd8] sm:$0xf] %vm3949_vm2, %v4656_v52  ;;  %v4654_v58 = vpack.c.bf16 %v2721_v56, %v2721_v56  ;;  %v2849_v59 = vsel %vm2337_vm3, %v1854_v41, %v2593_v54  ;;  %vm2340_vm5 = vcmp.gt.f32.partialorder %v5193_v46, 0.0  ;;  %v2596_v60 = vmul.f32 0.2, %v5193_v46  ;;  %v5196_v4 = vpop.f32.mrb[56].mxu1 }
 0x167   :  { %4132 = vst.msk [vmem:[%s6870_s2 + $0x2d8] sm:$0xf] %vm3949_vm2, %v4784_v55  ;;  %v4782_v61 = vpack.c.bf16 %v2849_v59, %v2849_v59  ;;  %v2724_v62 = vsel %vm2212_vm4, %v5065_v45, %v2468_v57  ;;  %vm2210_vm6 = vcmp.gt.f32.partialorder %v1345_v50, 0.0  ;;  %v2466_v63 = vmul.f32 0.2, %v1345_v50  ;;  %v1358_v8 = vpop.f32.mrb[57].mxu0 }
 0x168   :  { %4002 = vst.msk [vmem:[%s6870_s2 + $0xd0] sm:$0xf] %vm3949_vm2, %v4654_v58  ;;  %v4657_v0 = vpack.c.bf16 %v2724_v62, %v2724_v62  ;;  %v2852_v1 = vsel %vm2340_vm5, %v5193_v46, %v2596_v60  ;;  %vm2338_vm7 = vcmp.gt.f32.partialorder %v1857_v51, 0.0  ;;  %v2594_v2 = vmul.f32 0.2, %v1857_v51  ;;  %v1870_v9 = vpop.f32.mrb[57].mxu1 }
 0x169   :  { %4130 = vst.msk [vmem:[%s6870_s2 + $0x2d0] sm:$0xf] %vm3949_vm2, %v4782_v61  ;;  %v4785_v5 = vpack.c.bf16 %v2852_v1, %v2852_v1  ;;  %v2722_v6 = vsel %vm2210_vm6, %v1345_v50, %v2466_v63  ;;  %vm2215_vm8 = vcmp.gt.f32.partialorder %v5068_v3, 0.0  ;;  %v2471_v7 = vmul.f32 0.2, %v5068_v3  ;;  %v5069_v13 = vpop.f32.mrb[58].mxu0 }
 0x16a   :  { %4005 = vst.msk [vmem:[%s6870_s2 + $0xdc] sm:$0xf] %vm3949_vm2, %v4657_v0  ;;  %v4655_v10 = vpack.c.bf16 %v2722_v6, %v2722_v6  ;;  %v2850_v11 = vsel %vm2338_vm7, %v1857_v51, %v2594_v2  ;;  %vm2343_vm9 = vcmp.gt.f32.partialorder %v5196_v4, 0.0  ;;  %v2599_v12 = vmul.f32 0.2, %v5196_v4  ;;  %v5197_v14 = vpop.f32.mrb[58].mxu1 }
 0x16b   :  { %4133 = vst.msk [vmem:[%s6870_s2 + $0x2dc] sm:$0xf] %vm3949_vm2, %v4785_v5  ;;  %v4783_v15 = vpack.c.bf16 %v2850_v11, %v2850_v11  ;;  %v2727_v16 = vsel %vm2215_vm8, %v5068_v3, %v2471_v7  ;;  %vm2213_vm10 = vcmp.gt.f32.partialorder %v1358_v8, 0.0  ;;  %v2469_v17 = vmul.f32 0.2, %v1358_v8  ;;  %v1361_v18 = vpop.f32.mrb[59].mxu0 }
 0x16c   :  { %v1873_v19 = vpop.f32.mrb[59].mxu1  ;;  %4003 = vst.msk [vmem:[%s6870_s2 + $0xd4] sm:$0xf] %vm3949_vm2, %v4655_v10  ;;  %v4660_v20 = vpack.c.bf16 %v2727_v16, %v2727_v16  ;;  %v2855_v21 = vsel %vm2343_vm9, %v5196_v4, %v2599_v12  ;;  %vm2341_vm11 = vcmp.gt.f32.partialorder %v1870_v9, 0.0  ;;  %v2597_v22 = vmul.f32 0.2, %v1870_v9 }
 0x16d   :  { %4131 = vst.msk [vmem:[%s6870_s2 + $0x2d4] sm:$0xf] %vm3949_vm2, %v4783_v15  ;;  %v4788_v23 = vpack.c.bf16 %v2855_v21, %v2855_v21  ;;  %v2725_v24 = vsel %vm2213_vm10, %v1358_v8, %v2469_v17  ;;  %vm2216_vm12 = vcmp.gt.f32.partialorder %v5069_v13, 0.0  ;;  %v2472_v25 = vmul.f32 0.2, %v5069_v13  ;;  %v5072_v35 = vpop.f32.mrb[60].mxu0 }
 0x16e   :  { %4008 = vst.msk [vmem:[%s6870_s2 + $0xe8] sm:$0xf] %vm3949_vm2, %v4660_v20  ;;  %v4658_v26 = vpack.c.bf16 %v2725_v24, %v2725_v24  ;;  %v2853_v27 = vsel %vm2341_vm11, %v1870_v9, %v2597_v22  ;;  %vm2344_vm13 = vcmp.gt.f32.partialorder %v5197_v14, 0.0  ;;  %v2600_v28 = vmul.f32 0.2, %v5197_v14  ;;  %v5200_v36 = vpop.f32.mrb[60].mxu1 }
 0x16f   :  { %4136 = vst.msk [vmem:[%s6870_s2 + $0x2e8] sm:$0xf] %vm3949_vm2, %v4788_v23  ;;  %v4786_v29 = vpack.c.bf16 %v2853_v27, %v2853_v27  ;;  %v2728_v30 = vsel %vm2216_vm12, %v5069_v13, %v2472_v25  ;;  %vm2214_vm14 = vcmp.gt.f32.partialorder %v1361_v18, 0.0  ;;  %v2470_v31 = vmul.f32 0.2, %v1361_v18  ;;  %v1374_v40 = vpop.f32.mrb[61].mxu0 }
 0x170   :  { %4006 = vst.msk [vmem:[%s6870_s2 + $0xe0] sm:$0xf] %vm3949_vm2, %v4658_v26  ;;  %v4661_v32 = vpack.c.bf16 %v2728_v30, %v2728_v30  ;;  %v2856_v33 = vsel %vm2344_vm13, %v5197_v14, %v2600_v28  ;;  %vm2342_vm15 = vcmp.gt.f32.partialorder %v1873_v19, 0.0  ;;  %v2598_v34 = vmul.f32 0.2, %v1873_v19  ;;  %v1886_v41 = vpop.f32.mrb[61].mxu1 }
 0x171   :  { %4134 = vst.msk [vmem:[%s6870_s2 + $0x2e0] sm:$0xf] %vm3949_vm2, %v4786_v29  ;;  %v4789_v37 = vpack.c.bf16 %v2856_v33, %v2856_v33  ;;  %v2726_v38 = vsel %vm2214_vm14, %v1361_v18, %v2470_v31  ;;  %vm2219_vm0 = vcmp.gt.f32.partialorder %v5072_v35, 0.0  ;;  %v2475_v39 = vmul.f32 0.2, %v5072_v35  ;;  %v5073_v45 = vpop.f32.mrb[62].mxu0 }
 0x172   :  { %4009 = vst.msk [vmem:[%s6870_s2 + $0xec] sm:$0xf] %vm3949_vm2, %v4661_v32  ;;  %v4659_v42 = vpack.c.bf16 %v2726_v38, %v2726_v38  ;;  %v2854_v43 = vsel %vm2342_vm15, %v1873_v19, %v2598_v34  ;;  %vm2347_vm1 = vcmp.gt.f32.partialorder %v5200_v36, 0.0  ;;  %v2603_v44 = vmul.f32 0.2, %v5200_v36  ;;  %v5201_v46 = vpop.f32.mrb[62].mxu1 }
 0x173   :  { %4137 = vst.msk [vmem:[%s6870_s2 + $0x2ec] sm:$0xf] %vm3949_vm2, %v4789_v37  ;;  %v4787_v47 = vpack.c.bf16 %v2854_v43, %v2854_v43  ;;  %v2731_v48 = vsel %vm2219_vm0, %v5072_v35, %v2475_v39  ;;  %vm2217_vm3 = vcmp.gt.f32.partialorder %v1374_v40, 0.0  ;;  %v2473_v49 = vmul.f32 0.2, %v1374_v40  ;;  %v1377_v50 = vpop.f32.mrb[63].mxu0 }
 0x174   :  { %v1889_v51 = vpop.f32.mrb[63].mxu1  ;;  %4007 = vst.msk [vmem:[%s6870_s2 + $0xe4] sm:$0xf] %vm3949_vm2, %v4659_v42  ;;  %v4664_v52 = vpack.c.bf16 %v2731_v48, %v2731_v48  ;;  %v2859_v53 = vsel %vm2347_vm1, %v5200_v36, %v2603_v44  ;;  %vm2345_vm4 = vcmp.gt.f32.partialorder %v1886_v41, 0.0  ;;  %v2601_v54 = vmul.f32 0.2, %v1886_v41 }
 0x175   :  { %4135 = vst.msk [vmem:[%s6870_s2 + $0x2e4] sm:$0xf] %vm3949_vm2, %v4787_v47  ;;  %v4792_v55 = vpack.c.bf16 %v2859_v53, %v2859_v53  ;;  %v2729_v56 = vsel %vm2217_vm3, %v1374_v40, %v2473_v49  ;;  %vm2220_vm5 = vcmp.gt.f32.partialorder %v5073_v45, 0.0  ;;  %v2476_v57 = vmul.f32 0.2, %v5073_v45  ;;  %v5076_v3 = vpop.f32.mrb[64].mxu0 }
 0x176   :  { %4012 = vst.msk [vmem:[%s6870_s2 + $0xf8] sm:$0xf] %vm3949_vm2, %v4664_v52  ;;  %v4662_v58 = vpack.c.bf16 %v2729_v56, %v2729_v56  ;;  %v2857_v59 = vsel %vm2345_vm4, %v1886_v41, %v2601_v54  ;;  %vm2348_vm6 = vcmp.gt.f32.partialorder %v5201_v46, 0.0  ;;  %v2604_v60 = vmul.f32 0.2, %v5201_v46  ;;  %v5204_v4 = vpop.f32.mrb[64].mxu1 }
 0x177   :  { %4140 = vst.msk [vmem:[%s6870_s2 + $0x2f8] sm:$0xf] %vm3949_vm2, %v4792_v55  ;;  %v4790_v61 = vpack.c.bf16 %v2857_v59, %v2857_v59  ;;  %v2732_v62 = vsel %vm2220_vm5, %v5073_v45, %v2476_v57  ;;  %vm2218_vm7 = vcmp.gt.f32.partialorder %v1377_v50, 0.0  ;;  %v2474_v63 = vmul.f32 0.2, %v1377_v50  ;;  %v1390_v8 = vpop.f32.mrb[65].mxu0 }
 0x178   :  { %4010 = vst.msk [vmem:[%s6870_s2 + $0xf0] sm:$0xf] %vm3949_vm2, %v4662_v58  ;;  %v4665_v0 = vpack.c.bf16 %v2732_v62, %v2732_v62  ;;  %v2860_v1 = vsel %vm2348_vm6, %v5201_v46, %v2604_v60  ;;  %vm2346_vm8 = vcmp.gt.f32.partialorder %v1889_v51, 0.0  ;;  %v2602_v2 = vmul.f32 0.2, %v1889_v51  ;;  %v1902_v9 = vpop.f32.mrb[65].mxu1 }
 0x179   :  { %4138 = vst.msk [vmem:[%s6870_s2 + $0x2f0] sm:$0xf] %vm3949_vm2, %v4790_v61  ;;  %v4793_v5 = vpack.c.bf16 %v2860_v1, %v2860_v1  ;;  %v2730_v6 = vsel %vm2218_vm7, %v1377_v50, %v2474_v63  ;;  %vm2223_vm9 = vcmp.gt.f32.partialorder %v5076_v3, 0.0  ;;  %v2479_v7 = vmul.f32 0.2, %v5076_v3  ;;  %v5077_v13 = vpop.f32.mrb[66].mxu0 }
 0x17a   :  { %4013 = vst.msk [vmem:[%s6870_s2 + $0xfc] sm:$0xf] %vm3949_vm2, %v4665_v0  ;;  %v4663_v10 = vpack.c.bf16 %v2730_v6, %v2730_v6  ;;  %v2858_v11 = vsel %vm2346_vm8, %v1889_v51, %v2602_v2  ;;  %vm2351_vm10 = vcmp.gt.f32.partialorder %v5204_v4, 0.0  ;;  %v2607_v12 = vmul.f32 0.2, %v5204_v4  ;;  %v5205_v14 = vpop.f32.mrb[66].mxu1 }
 0x17b   :  { %4141 = vst.msk [vmem:[%s6870_s2 + $0x2fc] sm:$0xf] %vm3949_vm2, %v4793_v5  ;;  %v4791_v15 = vpack.c.bf16 %v2858_v11, %v2858_v11  ;;  %v2735_v16 = vsel %vm2223_vm9, %v5076_v3, %v2479_v7  ;;  %vm2221_vm11 = vcmp.gt.f32.partialorder %v1390_v8, 0.0  ;;  %v2477_v17 = vmul.f32 0.2, %v1390_v8  ;;  %v1393_v18 = vpop.f32.mrb[67].mxu0 }
 0x17c   :  { %v1905_v19 = vpop.f32.mrb[67].mxu1  ;;  %4011 = vst.msk [vmem:[%s6870_s2 + $0xf4] sm:$0xf] %vm3949_vm2, %v4663_v10  ;;  %v4668_v20 = vpack.c.bf16 %v2735_v16, %v2735_v16  ;;  %v2863_v21 = vsel %vm2351_vm10, %v5204_v4, %v2607_v12  ;;  %vm2349_vm12 = vcmp.gt.f32.partialorder %v1902_v9, 0.0  ;;  %v2605_v22 = vmul.f32 0.2, %v1902_v9 }
 0x17d   :  { %4139 = vst.msk [vmem:[%s6870_s2 + $0x2f4] sm:$0xf] %vm3949_vm2, %v4791_v15  ;;  %v4796_v23 = vpack.c.bf16 %v2863_v21, %v2863_v21  ;;  %v2733_v24 = vsel %vm2221_vm11, %v1390_v8, %v2477_v17  ;;  %vm2224_vm13 = vcmp.gt.f32.partialorder %v5077_v13, 0.0  ;;  %v2480_v25 = vmul.f32 0.2, %v5077_v13  ;;  %v5080_v35 = vpop.f32.mrb[68].mxu0 }
 0x17e   :  { %4016 = vst.msk [vmem:[%s6870_s2 + $0x108] sm:$0xf] %vm3949_vm2, %v4668_v20  ;;  %v4666_v26 = vpack.c.bf16 %v2733_v24, %v2733_v24  ;;  %v2861_v27 = vsel %vm2349_vm12, %v1902_v9, %v2605_v22  ;;  %vm2352_vm14 = vcmp.gt.f32.partialorder %v5205_v14, 0.0  ;;  %v2608_v28 = vmul.f32 0.2, %v5205_v14  ;;  %v5208_v36 = vpop.f32.mrb[68].mxu1 }
 0x17f   :  { %4144 = vst.msk [vmem:[%s6870_s2 + $0x308] sm:$0xf] %vm3949_vm2, %v4796_v23  ;;  %v4794_v29 = vpack.c.bf16 %v2861_v27, %v2861_v27  ;;  %v2736_v30 = vsel %vm2224_vm13, %v5077_v13, %v2480_v25  ;;  %vm2222_vm15 = vcmp.gt.f32.partialorder %v1393_v18, 0.0  ;;  %v2478_v31 = vmul.f32 0.2, %v1393_v18  ;;  %v1406_v40 = vpop.f32.mrb[69].mxu0 }
 0x180   :  { %4014 = vst.msk [vmem:[%s6870_s2 + $0x100] sm:$0xf] %vm3949_vm2, %v4666_v26  ;;  %v4669_v32 = vpack.c.bf16 %v2736_v30, %v2736_v30  ;;  %v2864_v33 = vsel %vm2352_vm14, %v5205_v14, %v2608_v28  ;;  %vm2350_vm0 = vcmp.gt.f32.partialorder %v1905_v19, 0.0  ;;  %v2606_v34 = vmul.f32 0.2, %v1905_v19  ;;  %v1918_v41 = vpop.f32.mrb[69].mxu1 }
 0x181   :  { %4142 = vst.msk [vmem:[%s6870_s2 + $0x300] sm:$0xf] %vm3949_vm2, %v4794_v29  ;;  %v4797_v37 = vpack.c.bf16 %v2864_v33, %v2864_v33  ;;  %v2734_v38 = vsel %vm2222_vm15, %v1393_v18, %v2478_v31  ;;  %vm2227_vm1 = vcmp.gt.f32.partialorder %v5080_v35, 0.0  ;;  %v2483_v39 = vmul.f32 0.2, %v5080_v35  ;;  %v5081_v45 = vpop.f32.mrb[70].mxu0 }
 0x182   :  { %4017 = vst.msk [vmem:[%s6870_s2 + $0x10c] sm:$0xf] %vm3949_vm2, %v4669_v32  ;;  %v4667_v42 = vpack.c.bf16 %v2734_v38, %v2734_v38  ;;  %v2862_v43 = vsel %vm2350_vm0, %v1905_v19, %v2606_v34  ;;  %vm2355_vm3 = vcmp.gt.f32.partialorder %v5208_v36, 0.0  ;;  %v2611_v44 = vmul.f32 0.2, %v5208_v36  ;;  %v5209_v46 = vpop.f32.mrb[70].mxu1 }
 0x183   :  { %4145 = vst.msk [vmem:[%s6870_s2 + $0x30c] sm:$0xf] %vm3949_vm2, %v4797_v37  ;;  %v4795_v47 = vpack.c.bf16 %v2862_v43, %v2862_v43  ;;  %v2739_v48 = vsel %vm2227_vm1, %v5080_v35, %v2483_v39  ;;  %vm2225_vm4 = vcmp.gt.f32.partialorder %v1406_v40, 0.0  ;;  %v2481_v49 = vmul.f32 0.2, %v1406_v40  ;;  %v1409_v50 = vpop.f32.mrb[71].mxu0 }
 0x184   :  { %v1921_v51 = vpop.f32.mrb[71].mxu1  ;;  %4015 = vst.msk [vmem:[%s6870_s2 + $0x104] sm:$0xf] %vm3949_vm2, %v4667_v42  ;;  %v4672_v52 = vpack.c.bf16 %v2739_v48, %v2739_v48  ;;  %v2867_v53 = vsel %vm2355_vm3, %v5208_v36, %v2611_v44  ;;  %vm2353_vm5 = vcmp.gt.f32.partialorder %v1918_v41, 0.0  ;;  %v2609_v54 = vmul.f32 0.2, %v1918_v41 }
 0x185   :  { %4143 = vst.msk [vmem:[%s6870_s2 + $0x304] sm:$0xf] %vm3949_vm2, %v4795_v47  ;;  %v4800_v55 = vpack.c.bf16 %v2867_v53, %v2867_v53  ;;  %v2737_v56 = vsel %vm2225_vm4, %v1406_v40, %v2481_v49  ;;  %vm2228_vm6 = vcmp.gt.f32.partialorder %v5081_v45, 0.0  ;;  %v2484_v57 = vmul.f32 0.2, %v5081_v45  ;;  %v5084_v3 = vpop.f32.mrb[72].mxu0 }
 0x186   :  { %4020 = vst.msk [vmem:[%s6870_s2 + $0x118] sm:$0xf] %vm3949_vm2, %v4672_v52  ;;  %v4670_v58 = vpack.c.bf16 %v2737_v56, %v2737_v56  ;;  %v2865_v59 = vsel %vm2353_vm5, %v1918_v41, %v2609_v54  ;;  %vm2356_vm7 = vcmp.gt.f32.partialorder %v5209_v46, 0.0  ;;  %v2612_v60 = vmul.f32 0.2, %v5209_v46  ;;  %v5212_v4 = vpop.f32.mrb[72].mxu1 }
 0x187   :  { %4148 = vst.msk [vmem:[%s6870_s2 + $0x318] sm:$0xf] %vm3949_vm2, %v4800_v55  ;;  %v4798_v61 = vpack.c.bf16 %v2865_v59, %v2865_v59  ;;  %v2740_v62 = vsel %vm2228_vm6, %v5081_v45, %v2484_v57  ;;  %vm2226_vm8 = vcmp.gt.f32.partialorder %v1409_v50, 0.0  ;;  %v2482_v63 = vmul.f32 0.2, %v1409_v50  ;;  %v1422_v8 = vpop.f32.mrb[73].mxu0 }
 0x188   :  { %4018 = vst.msk [vmem:[%s6870_s2 + $0x110] sm:$0xf] %vm3949_vm2, %v4670_v58  ;;  %v4673_v0 = vpack.c.bf16 %v2740_v62, %v2740_v62  ;;  %v2868_v1 = vsel %vm2356_vm7, %v5209_v46, %v2612_v60  ;;  %vm2354_vm9 = vcmp.gt.f32.partialorder %v1921_v51, 0.0  ;;  %v2610_v2 = vmul.f32 0.2, %v1921_v51  ;;  %v1934_v9 = vpop.f32.mrb[73].mxu1 }
 0x189   :  { %4146 = vst.msk [vmem:[%s6870_s2 + $0x310] sm:$0xf] %vm3949_vm2, %v4798_v61  ;;  %v4801_v5 = vpack.c.bf16 %v2868_v1, %v2868_v1  ;;  %v2738_v6 = vsel %vm2226_vm8, %v1409_v50, %v2482_v63  ;;  %vm2231_vm10 = vcmp.gt.f32.partialorder %v5084_v3, 0.0  ;;  %v2487_v7 = vmul.f32 0.2, %v5084_v3  ;;  %v5085_v13 = vpop.f32.mrb[74].mxu0 }
 0x18a   :  { %4021 = vst.msk [vmem:[%s6870_s2 + $0x11c] sm:$0xf] %vm3949_vm2, %v4673_v0  ;;  %v4671_v10 = vpack.c.bf16 %v2738_v6, %v2738_v6  ;;  %v2866_v11 = vsel %vm2354_vm9, %v1921_v51, %v2610_v2  ;;  %vm2359_vm11 = vcmp.gt.f32.partialorder %v5212_v4, 0.0  ;;  %v2615_v12 = vmul.f32 0.2, %v5212_v4  ;;  %v5213_v14 = vpop.f32.mrb[74].mxu1 }
 0x18b   :  { %4149 = vst.msk [vmem:[%s6870_s2 + $0x31c] sm:$0xf] %vm3949_vm2, %v4801_v5  ;;  %v4799_v15 = vpack.c.bf16 %v2866_v11, %v2866_v11  ;;  %v2743_v16 = vsel %vm2231_vm10, %v5084_v3, %v2487_v7  ;;  %vm2229_vm12 = vcmp.gt.f32.partialorder %v1422_v8, 0.0  ;;  %v2485_v17 = vmul.f32 0.2, %v1422_v8  ;;  %v1425_v18 = vpop.f32.mrb[75].mxu0 }
 0x18c   :  { %v1937_v19 = vpop.f32.mrb[75].mxu1  ;;  %4019 = vst.msk [vmem:[%s6870_s2 + $0x114] sm:$0xf] %vm3949_vm2, %v4671_v10  ;;  %v4676_v20 = vpack.c.bf16 %v2743_v16, %v2743_v16  ;;  %v2871_v21 = vsel %vm2359_vm11, %v5212_v4, %v2615_v12  ;;  %vm2357_vm13 = vcmp.gt.f32.partialorder %v1934_v9, 0.0  ;;  %v2613_v22 = vmul.f32 0.2, %v1934_v9 }
 0x18d   :  { %4147 = vst.msk [vmem:[%s6870_s2 + $0x314] sm:$0xf] %vm3949_vm2, %v4799_v15  ;;  %v4804_v23 = vpack.c.bf16 %v2871_v21, %v2871_v21  ;;  %v2741_v24 = vsel %vm2229_vm12, %v1422_v8, %v2485_v17  ;;  %vm2232_vm14 = vcmp.gt.f32.partialorder %v5085_v13, 0.0  ;;  %v2488_v25 = vmul.f32 0.2, %v5085_v13  ;;  %v5088_v35 = vpop.f32.mrb[76].mxu0 }
 0x18e   :  { %4024 = vst.msk [vmem:[%s6870_s2 + $0x128] sm:$0xf] %vm3949_vm2, %v4676_v20  ;;  %v4674_v26 = vpack.c.bf16 %v2741_v24, %v2741_v24  ;;  %v2869_v27 = vsel %vm2357_vm13, %v1934_v9, %v2613_v22  ;;  %vm2360_vm15 = vcmp.gt.f32.partialorder %v5213_v14, 0.0  ;;  %v2616_v28 = vmul.f32 0.2, %v5213_v14  ;;  %v5216_v36 = vpop.f32.mrb[76].mxu1 }
 0x18f   :  { %4152 = vst.msk [vmem:[%s6870_s2 + $0x328] sm:$0xf] %vm3949_vm2, %v4804_v23  ;;  %v4802_v29 = vpack.c.bf16 %v2869_v27, %v2869_v27  ;;  %v2744_v30 = vsel %vm2232_vm14, %v5085_v13, %v2488_v25  ;;  %vm2230_vm0 = vcmp.gt.f32.partialorder %v1425_v18, 0.0  ;;  %v2486_v31 = vmul.f32 0.2, %v1425_v18  ;;  %v1438_v40 = vpop.f32.mrb[77].mxu0 }
 0x190   :  { %4022 = vst.msk [vmem:[%s6870_s2 + $0x120] sm:$0xf] %vm3949_vm2, %v4674_v26  ;;  %v4677_v32 = vpack.c.bf16 %v2744_v30, %v2744_v30  ;;  %v2872_v33 = vsel %vm2360_vm15, %v5213_v14, %v2616_v28  ;;  %vm2358_vm1 = vcmp.gt.f32.partialorder %v1937_v19, 0.0  ;;  %v2614_v34 = vmul.f32 0.2, %v1937_v19  ;;  %v1950_v41 = vpop.f32.mrb[77].mxu1 }
 0x191   :  { %4150 = vst.msk [vmem:[%s6870_s2 + $0x320] sm:$0xf] %vm3949_vm2, %v4802_v29  ;;  %v4805_v37 = vpack.c.bf16 %v2872_v33, %v2872_v33  ;;  %v2742_v38 = vsel %vm2230_vm0, %v1425_v18, %v2486_v31  ;;  %vm2235_vm3 = vcmp.gt.f32.partialorder %v5088_v35, 0.0  ;;  %v2491_v39 = vmul.f32 0.2, %v5088_v35  ;;  %v5089_v45 = vpop.f32.mrb[78].mxu0 }
 0x192   :  { %4025 = vst.msk [vmem:[%s6870_s2 + $0x12c] sm:$0xf] %vm3949_vm2, %v4677_v32  ;;  %v4675_v42 = vpack.c.bf16 %v2742_v38, %v2742_v38  ;;  %v2870_v43 = vsel %vm2358_vm1, %v1937_v19, %v2614_v34  ;;  %vm2363_vm4 = vcmp.gt.f32.partialorder %v5216_v36, 0.0  ;;  %v2619_v44 = vmul.f32 0.2, %v5216_v36  ;;  %v5217_v46 = vpop.f32.mrb[78].mxu1 }
 0x193   :  { %4153 = vst.msk [vmem:[%s6870_s2 + $0x32c] sm:$0xf] %vm3949_vm2, %v4805_v37  ;;  %v4803_v47 = vpack.c.bf16 %v2870_v43, %v2870_v43  ;;  %v2747_v48 = vsel %vm2235_vm3, %v5088_v35, %v2491_v39  ;;  %vm2233_vm5 = vcmp.gt.f32.partialorder %v1438_v40, 0.0  ;;  %v2489_v49 = vmul.f32 0.2, %v1438_v40  ;;  %v1441_v50 = vpop.f32.mrb[79].mxu0 }
 0x194   :  { %v1953_v51 = vpop.f32.mrb[79].mxu1  ;;  %4023 = vst.msk [vmem:[%s6870_s2 + $0x124] sm:$0xf] %vm3949_vm2, %v4675_v42  ;;  %v4680_v52 = vpack.c.bf16 %v2747_v48, %v2747_v48  ;;  %v2875_v53 = vsel %vm2363_vm4, %v5216_v36, %v2619_v44  ;;  %vm2361_vm6 = vcmp.gt.f32.partialorder %v1950_v41, 0.0  ;;  %v2617_v54 = vmul.f32 0.2, %v1950_v41 }
 0x195   :  { %4151 = vst.msk [vmem:[%s6870_s2 + $0x324] sm:$0xf] %vm3949_vm2, %v4803_v47  ;;  %v4808_v55 = vpack.c.bf16 %v2875_v53, %v2875_v53  ;;  %v2745_v56 = vsel %vm2233_vm5, %v1438_v40, %v2489_v49  ;;  %vm2236_vm7 = vcmp.gt.f32.partialorder %v5089_v45, 0.0  ;;  %v2492_v57 = vmul.f32 0.2, %v5089_v45  ;;  %v5092_v3 = vpop.f32.mrb[80].mxu0 }
 0x196   :  { %4028 = vst.msk [vmem:[%s6870_s2 + $0x138] sm:$0xf] %vm3949_vm2, %v4680_v52  ;;  %v4678_v58 = vpack.c.bf16 %v2745_v56, %v2745_v56  ;;  %v2873_v59 = vsel %vm2361_vm6, %v1950_v41, %v2617_v54  ;;  %vm2364_vm8 = vcmp.gt.f32.partialorder %v5217_v46, 0.0  ;;  %v2620_v60 = vmul.f32 0.2, %v5217_v46  ;;  %v5220_v4 = vpop.f32.mrb[80].mxu1 }
 0x197   :  { %4156 = vst.msk [vmem:[%s6870_s2 + $0x338] sm:$0xf] %vm3949_vm2, %v4808_v55  ;;  %v4806_v61 = vpack.c.bf16 %v2873_v59, %v2873_v59  ;;  %v2748_v62 = vsel %vm2236_vm7, %v5089_v45, %v2492_v57  ;;  %vm2234_vm9 = vcmp.gt.f32.partialorder %v1441_v50, 0.0  ;;  %v2490_v63 = vmul.f32 0.2, %v1441_v50  ;;  %v1454_v8 = vpop.f32.mrb[81].mxu0 }
 0x198   :  { %4026 = vst.msk [vmem:[%s6870_s2 + $0x130] sm:$0xf] %vm3949_vm2, %v4678_v58  ;;  %v4681_v0 = vpack.c.bf16 %v2748_v62, %v2748_v62  ;;  %v2876_v1 = vsel %vm2364_vm8, %v5217_v46, %v2620_v60  ;;  %vm2362_vm10 = vcmp.gt.f32.partialorder %v1953_v51, 0.0  ;;  %v2618_v2 = vmul.f32 0.2, %v1953_v51  ;;  %v1966_v9 = vpop.f32.mrb[81].mxu1 }
 0x199   :  { %4154 = vst.msk [vmem:[%s6870_s2 + $0x330] sm:$0xf] %vm3949_vm2, %v4806_v61  ;;  %v4809_v5 = vpack.c.bf16 %v2876_v1, %v2876_v1  ;;  %v2746_v6 = vsel %vm2234_vm9, %v1441_v50, %v2490_v63  ;;  %vm2239_vm11 = vcmp.gt.f32.partialorder %v5092_v3, 0.0  ;;  %v2495_v7 = vmul.f32 0.2, %v5092_v3  ;;  %v5093_v13 = vpop.f32.mrb[82].mxu0 }
 0x19a   :  { %4029 = vst.msk [vmem:[%s6870_s2 + $0x13c] sm:$0xf] %vm3949_vm2, %v4681_v0  ;;  %v4679_v10 = vpack.c.bf16 %v2746_v6, %v2746_v6  ;;  %v2874_v11 = vsel %vm2362_vm10, %v1953_v51, %v2618_v2  ;;  %vm2367_vm12 = vcmp.gt.f32.partialorder %v5220_v4, 0.0  ;;  %v2623_v12 = vmul.f32 0.2, %v5220_v4  ;;  %v5221_v14 = vpop.f32.mrb[82].mxu1 }
 0x19b   :  { %4157 = vst.msk [vmem:[%s6870_s2 + $0x33c] sm:$0xf] %vm3949_vm2, %v4809_v5  ;;  %v4807_v15 = vpack.c.bf16 %v2874_v11, %v2874_v11  ;;  %v2751_v16 = vsel %vm2239_vm11, %v5092_v3, %v2495_v7  ;;  %vm2237_vm13 = vcmp.gt.f32.partialorder %v1454_v8, 0.0  ;;  %v2493_v17 = vmul.f32 0.2, %v1454_v8  ;;  %v1457_v18 = vpop.f32.mrb[83].mxu0 }
 0x19c   :  { %v1969_v19 = vpop.f32.mrb[83].mxu1  ;;  %4027 = vst.msk [vmem:[%s6870_s2 + $0x134] sm:$0xf] %vm3949_vm2, %v4679_v10  ;;  %v4684_v20 = vpack.c.bf16 %v2751_v16, %v2751_v16  ;;  %v2879_v21 = vsel %vm2367_vm12, %v5220_v4, %v2623_v12  ;;  %vm2365_vm14 = vcmp.gt.f32.partialorder %v1966_v9, 0.0  ;;  %v2621_v22 = vmul.f32 0.2, %v1966_v9 }
 0x19d   :  { %4155 = vst.msk [vmem:[%s6870_s2 + $0x334] sm:$0xf] %vm3949_vm2, %v4807_v15  ;;  %v4812_v23 = vpack.c.bf16 %v2879_v21, %v2879_v21  ;;  %v2749_v24 = vsel %vm2237_vm13, %v1454_v8, %v2493_v17  ;;  %vm2240_vm15 = vcmp.gt.f32.partialorder %v5093_v13, 0.0  ;;  %v2496_v25 = vmul.f32 0.2, %v5093_v13  ;;  %v5096_v35 = vpop.f32.mrb[84].mxu0 }
 0x19e   :  { %4032 = vst.msk [vmem:[%s6870_s2 + $0x148] sm:$0xf] %vm3949_vm2, %v4684_v20  ;;  %v4682_v26 = vpack.c.bf16 %v2749_v24, %v2749_v24  ;;  %v2877_v27 = vsel %vm2365_vm14, %v1966_v9, %v2621_v22  ;;  %vm2368_vm0 = vcmp.gt.f32.partialorder %v5221_v14, 0.0  ;;  %v2624_v28 = vmul.f32 0.2, %v5221_v14  ;;  %v5224_v36 = vpop.f32.mrb[84].mxu1 }
 0x19f   :  { %4160 = vst.msk [vmem:[%s6870_s2 + $0x348] sm:$0xf] %vm3949_vm2, %v4812_v23  ;;  %v4810_v29 = vpack.c.bf16 %v2877_v27, %v2877_v27  ;;  %v2752_v30 = vsel %vm2240_vm15, %v5093_v13, %v2496_v25  ;;  %vm2238_vm1 = vcmp.gt.f32.partialorder %v1457_v18, 0.0  ;;  %v2494_v31 = vmul.f32 0.2, %v1457_v18  ;;  %v1470_v40 = vpop.f32.mrb[85].mxu0 }
 0x1a0   :  { %4030 = vst.msk [vmem:[%s6870_s2 + $0x140] sm:$0xf] %vm3949_vm2, %v4682_v26  ;;  %v4685_v32 = vpack.c.bf16 %v2752_v30, %v2752_v30  ;;  %v2880_v33 = vsel %vm2368_vm0, %v5221_v14, %v2624_v28  ;;  %vm2366_vm3 = vcmp.gt.f32.partialorder %v1969_v19, 0.0  ;;  %v2622_v34 = vmul.f32 0.2, %v1969_v19  ;;  %v1982_v41 = vpop.f32.mrb[85].mxu1 }
 0x1a1   :  { %4158 = vst.msk [vmem:[%s6870_s2 + $0x340] sm:$0xf] %vm3949_vm2, %v4810_v29  ;;  %v4813_v37 = vpack.c.bf16 %v2880_v33, %v2880_v33  ;;  %v2750_v38 = vsel %vm2238_vm1, %v1457_v18, %v2494_v31  ;;  %vm2243_vm4 = vcmp.gt.f32.partialorder %v5096_v35, 0.0  ;;  %v2499_v39 = vmul.f32 0.2, %v5096_v35  ;;  %v5097_v45 = vpop.f32.mrb[86].mxu0 }
 0x1a2   :  { %4033 = vst.msk [vmem:[%s6870_s2 + $0x14c] sm:$0xf] %vm3949_vm2, %v4685_v32  ;;  %v4683_v42 = vpack.c.bf16 %v2750_v38, %v2750_v38  ;;  %v2878_v43 = vsel %vm2366_vm3, %v1969_v19, %v2622_v34  ;;  %vm2371_vm5 = vcmp.gt.f32.partialorder %v5224_v36, 0.0  ;;  %v2627_v44 = vmul.f32 0.2, %v5224_v36  ;;  %v5225_v46 = vpop.f32.mrb[86].mxu1 }
 0x1a3   :  { %4161 = vst.msk [vmem:[%s6870_s2 + $0x34c] sm:$0xf] %vm3949_vm2, %v4813_v37  ;;  %v4811_v47 = vpack.c.bf16 %v2878_v43, %v2878_v43  ;;  %v2755_v48 = vsel %vm2243_vm4, %v5096_v35, %v2499_v39  ;;  %vm2241_vm6 = vcmp.gt.f32.partialorder %v1470_v40, 0.0  ;;  %v2497_v49 = vmul.f32 0.2, %v1470_v40  ;;  %v1473_v50 = vpop.f32.mrb[87].mxu0 }
 0x1a4   :  { %v1985_v51 = vpop.f32.mrb[87].mxu1  ;;  %4031 = vst.msk [vmem:[%s6870_s2 + $0x144] sm:$0xf] %vm3949_vm2, %v4683_v42  ;;  %v4688_v52 = vpack.c.bf16 %v2755_v48, %v2755_v48  ;;  %v2883_v53 = vsel %vm2371_vm5, %v5224_v36, %v2627_v44  ;;  %vm2369_vm7 = vcmp.gt.f32.partialorder %v1982_v41, 0.0  ;;  %v2625_v54 = vmul.f32 0.2, %v1982_v41 }
 0x1a5   :  { %4159 = vst.msk [vmem:[%s6870_s2 + $0x344] sm:$0xf] %vm3949_vm2, %v4811_v47  ;;  %v4816_v55 = vpack.c.bf16 %v2883_v53, %v2883_v53  ;;  %v2753_v56 = vsel %vm2241_vm6, %v1470_v40, %v2497_v49  ;;  %vm2244_vm8 = vcmp.gt.f32.partialorder %v5097_v45, 0.0  ;;  %v2500_v57 = vmul.f32 0.2, %v5097_v45  ;;  %v5100_v3 = vpop.f32.mrb[88].mxu0 }
 0x1a6   :  { %4036 = vst.msk [vmem:[%s6870_s2 + $0x158] sm:$0xf] %vm3949_vm2, %v4688_v52  ;;  %v4686_v58 = vpack.c.bf16 %v2753_v56, %v2753_v56  ;;  %v2881_v59 = vsel %vm2369_vm7, %v1982_v41, %v2625_v54  ;;  %vm2372_vm9 = vcmp.gt.f32.partialorder %v5225_v46, 0.0  ;;  %v2628_v60 = vmul.f32 0.2, %v5225_v46  ;;  %v5228_v4 = vpop.f32.mrb[88].mxu1 }
 0x1a7   :  { %4164 = vst.msk [vmem:[%s6870_s2 + $0x358] sm:$0xf] %vm3949_vm2, %v4816_v55  ;;  %v4814_v61 = vpack.c.bf16 %v2881_v59, %v2881_v59  ;;  %v2756_v62 = vsel %vm2244_vm8, %v5097_v45, %v2500_v57  ;;  %vm2242_vm10 = vcmp.gt.f32.partialorder %v1473_v50, 0.0  ;;  %v2498_v63 = vmul.f32 0.2, %v1473_v50  ;;  %v1486_v8 = vpop.f32.mrb[89].mxu0 }
 0x1a8   :  { %4034 = vst.msk [vmem:[%s6870_s2 + $0x150] sm:$0xf] %vm3949_vm2, %v4686_v58  ;;  %v4689_v0 = vpack.c.bf16 %v2756_v62, %v2756_v62  ;;  %v2884_v1 = vsel %vm2372_vm9, %v5225_v46, %v2628_v60  ;;  %vm2370_vm11 = vcmp.gt.f32.partialorder %v1985_v51, 0.0  ;;  %v2626_v2 = vmul.f32 0.2, %v1985_v51  ;;  %v1998_v9 = vpop.f32.mrb[89].mxu1 }
 0x1a9   :  { %4162 = vst.msk [vmem:[%s6870_s2 + $0x350] sm:$0xf] %vm3949_vm2, %v4814_v61  ;;  %v4817_v5 = vpack.c.bf16 %v2884_v1, %v2884_v1  ;;  %v2754_v6 = vsel %vm2242_vm10, %v1473_v50, %v2498_v63  ;;  %vm2247_vm12 = vcmp.gt.f32.partialorder %v5100_v3, 0.0  ;;  %v2503_v7 = vmul.f32 0.2, %v5100_v3  ;;  %v5101_v13 = vpop.f32.mrb[90].mxu0 }
 0x1aa   :  { %4037 = vst.msk [vmem:[%s6870_s2 + $0x15c] sm:$0xf] %vm3949_vm2, %v4689_v0  ;;  %v4687_v10 = vpack.c.bf16 %v2754_v6, %v2754_v6  ;;  %v2882_v11 = vsel %vm2370_vm11, %v1985_v51, %v2626_v2  ;;  %vm2375_vm13 = vcmp.gt.f32.partialorder %v5228_v4, 0.0  ;;  %v2631_v12 = vmul.f32 0.2, %v5228_v4  ;;  %v5229_v14 = vpop.f32.mrb[90].mxu1 }
 0x1ab   :  { %4165 = vst.msk [vmem:[%s6870_s2 + $0x35c] sm:$0xf] %vm3949_vm2, %v4817_v5  ;;  %v4815_v15 = vpack.c.bf16 %v2882_v11, %v2882_v11  ;;  %v2759_v16 = vsel %vm2247_vm12, %v5100_v3, %v2503_v7  ;;  %vm2245_vm14 = vcmp.gt.f32.partialorder %v1486_v8, 0.0  ;;  %v2501_v17 = vmul.f32 0.2, %v1486_v8  ;;  %v1489_v18 = vpop.f32.mrb[91].mxu0 }
 0x1ac   :  { %v2001_v19 = vpop.f32.mrb[91].mxu1  ;;  %4035 = vst.msk [vmem:[%s6870_s2 + $0x154] sm:$0xf] %vm3949_vm2, %v4687_v10  ;;  %v4692_v20 = vpack.c.bf16 %v2759_v16, %v2759_v16  ;;  %v2887_v21 = vsel %vm2375_vm13, %v5228_v4, %v2631_v12  ;;  %vm2373_vm15 = vcmp.gt.f32.partialorder %v1998_v9, 0.0  ;;  %v2629_v22 = vmul.f32 0.2, %v1998_v9 }
 0x1ad   :  { %4163 = vst.msk [vmem:[%s6870_s2 + $0x354] sm:$0xf] %vm3949_vm2, %v4815_v15  ;;  %v4820_v23 = vpack.c.bf16 %v2887_v21, %v2887_v21  ;;  %v2757_v24 = vsel %vm2245_vm14, %v1486_v8, %v2501_v17  ;;  %vm2248_vm0 = vcmp.gt.f32.partialorder %v5101_v13, 0.0  ;;  %v2504_v25 = vmul.f32 0.2, %v5101_v13  ;;  %v5104_v35 = vpop.f32.mrb[92].mxu0 }
 0x1ae   :  { %4040 = vst.msk [vmem:[%s6870_s2 + $0x168] sm:$0xf] %vm3949_vm2, %v4692_v20  ;;  %v4690_v26 = vpack.c.bf16 %v2757_v24, %v2757_v24  ;;  %v2885_v27 = vsel %vm2373_vm15, %v1998_v9, %v2629_v22  ;;  %vm2376_vm1 = vcmp.gt.f32.partialorder %v5229_v14, 0.0  ;;  %v2632_v28 = vmul.f32 0.2, %v5229_v14  ;;  %v5232_v36 = vpop.f32.mrb[92].mxu1 }
 0x1af   :  { %4168 = vst.msk [vmem:[%s6870_s2 + $0x368] sm:$0xf] %vm3949_vm2, %v4820_v23  ;;  %v4818_v29 = vpack.c.bf16 %v2885_v27, %v2885_v27  ;;  %v2760_v30 = vsel %vm2248_vm0, %v5101_v13, %v2504_v25  ;;  %vm2246_vm3 = vcmp.gt.f32.partialorder %v1489_v18, 0.0  ;;  %v2502_v31 = vmul.f32 0.2, %v1489_v18  ;;  %v1502_v40 = vpop.f32.mrb[93].mxu0 }
 0x1b0   :  { %4038 = vst.msk [vmem:[%s6870_s2 + $0x160] sm:$0xf] %vm3949_vm2, %v4690_v26  ;;  %v4693_v32 = vpack.c.bf16 %v2760_v30, %v2760_v30  ;;  %v2888_v33 = vsel %vm2376_vm1, %v5229_v14, %v2632_v28  ;;  %vm2374_vm4 = vcmp.gt.f32.partialorder %v2001_v19, 0.0  ;;  %v2630_v34 = vmul.f32 0.2, %v2001_v19  ;;  %v2014_v41 = vpop.f32.mrb[93].mxu1 }
 0x1b1   :  { %4166 = vst.msk [vmem:[%s6870_s2 + $0x360] sm:$0xf] %vm3949_vm2, %v4818_v29  ;;  %v4821_v37 = vpack.c.bf16 %v2888_v33, %v2888_v33  ;;  %v2758_v38 = vsel %vm2246_vm3, %v1489_v18, %v2502_v31  ;;  %vm2251_vm5 = vcmp.gt.f32.partialorder %v5104_v35, 0.0  ;;  %v2507_v39 = vmul.f32 0.2, %v5104_v35  ;;  %v5105_v45 = vpop.f32.mrb[94].mxu0 }
 0x1b2   :  { %4041 = vst.msk [vmem:[%s6870_s2 + $0x16c] sm:$0xf] %vm3949_vm2, %v4693_v32  ;;  %v4691_v42 = vpack.c.bf16 %v2758_v38, %v2758_v38  ;;  %v2886_v43 = vsel %vm2374_vm4, %v2001_v19, %v2630_v34  ;;  %vm2379_vm6 = vcmp.gt.f32.partialorder %v5232_v36, 0.0  ;;  %v2635_v44 = vmul.f32 0.2, %v5232_v36  ;;  %v5233_v46 = vpop.f32.mrb[94].mxu1 }
 0x1b3   :  { %4169 = vst.msk [vmem:[%s6870_s2 + $0x36c] sm:$0xf] %vm3949_vm2, %v4821_v37  ;;  %v4819_v47 = vpack.c.bf16 %v2886_v43, %v2886_v43  ;;  %v2763_v48 = vsel %vm2251_vm5, %v5104_v35, %v2507_v39  ;;  %vm2249_vm7 = vcmp.gt.f32.partialorder %v1502_v40, 0.0  ;;  %v2505_v49 = vmul.f32 0.2, %v1502_v40  ;;  %v1505_v50 = vpop.f32.mrb[95].mxu0 }
 0x1b4   :  { %v2017_v51 = vpop.f32.mrb[95].mxu1  ;;  %4039 = vst.msk [vmem:[%s6870_s2 + $0x164] sm:$0xf] %vm3949_vm2, %v4691_v42  ;;  %v4696_v52 = vpack.c.bf16 %v2763_v48, %v2763_v48  ;;  %v2891_v53 = vsel %vm2379_vm6, %v5232_v36, %v2635_v44  ;;  %vm2377_vm8 = vcmp.gt.f32.partialorder %v2014_v41, 0.0  ;;  %v2633_v54 = vmul.f32 0.2, %v2014_v41 }
 0x1b5   :  { %4167 = vst.msk [vmem:[%s6870_s2 + $0x364] sm:$0xf] %vm3949_vm2, %v4819_v47  ;;  %v4824_v55 = vpack.c.bf16 %v2891_v53, %v2891_v53  ;;  %v2761_v56 = vsel %vm2249_vm7, %v1502_v40, %v2505_v49  ;;  %vm2252_vm9 = vcmp.gt.f32.partialorder %v5105_v45, 0.0  ;;  %v2508_v57 = vmul.f32 0.2, %v5105_v45  ;;  %v5108_v3 = vpop.f32.mrb[96].mxu0 }
 0x1b6   :  { %4044 = vst.msk [vmem:[%s6870_s2 + $0x178] sm:$0xf] %vm3949_vm2, %v4696_v52  ;;  %v4694_v58 = vpack.c.bf16 %v2761_v56, %v2761_v56  ;;  %v2889_v59 = vsel %vm2377_vm8, %v2014_v41, %v2633_v54  ;;  %vm2380_vm10 = vcmp.gt.f32.partialorder %v5233_v46, 0.0  ;;  %v2636_v60 = vmul.f32 0.2, %v5233_v46  ;;  %v5236_v4 = vpop.f32.mrb[96].mxu1 }
 0x1b7   :  { %4172 = vst.msk [vmem:[%s6870_s2 + $0x378] sm:$0xf] %vm3949_vm2, %v4824_v55  ;;  %v4822_v61 = vpack.c.bf16 %v2889_v59, %v2889_v59  ;;  %v2764_v62 = vsel %vm2252_vm9, %v5105_v45, %v2508_v57  ;;  %vm2250_vm11 = vcmp.gt.f32.partialorder %v1505_v50, 0.0  ;;  %v2506_v63 = vmul.f32 0.2, %v1505_v50  ;;  %v1518_v8 = vpop.f32.mrb[97].mxu0 }
 0x1b8   :  { %4042 = vst.msk [vmem:[%s6870_s2 + $0x170] sm:$0xf] %vm3949_vm2, %v4694_v58  ;;  %v4697_v0 = vpack.c.bf16 %v2764_v62, %v2764_v62  ;;  %v2892_v1 = vsel %vm2380_vm10, %v5233_v46, %v2636_v60  ;;  %vm2378_vm12 = vcmp.gt.f32.partialorder %v2017_v51, 0.0  ;;  %v2634_v2 = vmul.f32 0.2, %v2017_v51  ;;  %v2030_v9 = vpop.f32.mrb[97].mxu1 }
 0x1b9   :  { %4170 = vst.msk [vmem:[%s6870_s2 + $0x370] sm:$0xf] %vm3949_vm2, %v4822_v61  ;;  %v4825_v5 = vpack.c.bf16 %v2892_v1, %v2892_v1  ;;  %v2762_v6 = vsel %vm2250_vm11, %v1505_v50, %v2506_v63  ;;  %vm2255_vm13 = vcmp.gt.f32.partialorder %v5108_v3, 0.0  ;;  %v2511_v7 = vmul.f32 0.2, %v5108_v3  ;;  %v5109_v13 = vpop.f32.mrb[98].mxu0 }
 0x1ba   :  { %4045 = vst.msk [vmem:[%s6870_s2 + $0x17c] sm:$0xf] %vm3949_vm2, %v4697_v0  ;;  %v4695_v10 = vpack.c.bf16 %v2762_v6, %v2762_v6  ;;  %v2890_v11 = vsel %vm2378_vm12, %v2017_v51, %v2634_v2  ;;  %vm2383_vm14 = vcmp.gt.f32.partialorder %v5236_v4, 0.0  ;;  %v2639_v12 = vmul.f32 0.2, %v5236_v4  ;;  %v5237_v14 = vpop.f32.mrb[98].mxu1 }
 0x1bb   :  { %4173 = vst.msk [vmem:[%s6870_s2 + $0x37c] sm:$0xf] %vm3949_vm2, %v4825_v5  ;;  %v4823_v15 = vpack.c.bf16 %v2890_v11, %v2890_v11  ;;  %v2767_v16 = vsel %vm2255_vm13, %v5108_v3, %v2511_v7  ;;  %vm2253_vm15 = vcmp.gt.f32.partialorder %v1518_v8, 0.0  ;;  %v2509_v17 = vmul.f32 0.2, %v1518_v8  ;;  %v1521_v18 = vpop.f32.mrb[99].mxu0 }
 0x1bc   :  { %v2033_v19 = vpop.f32.mrb[99].mxu1  ;;  %4043 = vst.msk [vmem:[%s6870_s2 + $0x174] sm:$0xf] %vm3949_vm2, %v4695_v10  ;;  %v4700_v20 = vpack.c.bf16 %v2767_v16, %v2767_v16  ;;  %v2895_v21 = vsel %vm2383_vm14, %v5236_v4, %v2639_v12  ;;  %vm2381_vm0 = vcmp.gt.f32.partialorder %v2030_v9, 0.0  ;;  %v2637_v22 = vmul.f32 0.2, %v2030_v9 }
 0x1bd   :  { %4171 = vst.msk [vmem:[%s6870_s2 + $0x374] sm:$0xf] %vm3949_vm2, %v4823_v15  ;;  %v4828_v23 = vpack.c.bf16 %v2895_v21, %v2895_v21  ;;  %v2765_v24 = vsel %vm2253_vm15, %v1518_v8, %v2509_v17  ;;  %vm2256_vm1 = vcmp.gt.f32.partialorder %v5109_v13, 0.0  ;;  %v2512_v25 = vmul.f32 0.2, %v5109_v13  ;;  %v5112_v35 = vpop.f32.mrb[100].mxu0 }
 0x1be   :  { %4048 = vst.msk [vmem:[%s6870_s2 + $0x188] sm:$0xf] %vm3949_vm2, %v4700_v20  ;;  %v4698_v26 = vpack.c.bf16 %v2765_v24, %v2765_v24  ;;  %v2893_v27 = vsel %vm2381_vm0, %v2030_v9, %v2637_v22  ;;  %vm2384_vm3 = vcmp.gt.f32.partialorder %v5237_v14, 0.0  ;;  %v2640_v28 = vmul.f32 0.2, %v5237_v14  ;;  %v5240_v36 = vpop.f32.mrb[100].mxu1 }
 0x1bf   :  { %4176 = vst.msk [vmem:[%s6870_s2 + $0x388] sm:$0xf] %vm3949_vm2, %v4828_v23  ;;  %v4826_v29 = vpack.c.bf16 %v2893_v27, %v2893_v27  ;;  %v2768_v30 = vsel %vm2256_vm1, %v5109_v13, %v2512_v25  ;;  %vm2254_vm4 = vcmp.gt.f32.partialorder %v1521_v18, 0.0  ;;  %v2510_v31 = vmul.f32 0.2, %v1521_v18  ;;  %v1534_v40 = vpop.f32.mrb[101].mxu0 }
 0x1c0   :  { %4046 = vst.msk [vmem:[%s6870_s2 + $0x180] sm:$0xf] %vm3949_vm2, %v4698_v26  ;;  %v4701_v32 = vpack.c.bf16 %v2768_v30, %v2768_v30  ;;  %v2896_v33 = vsel %vm2384_vm3, %v5237_v14, %v2640_v28  ;;  %vm2382_vm5 = vcmp.gt.f32.partialorder %v2033_v19, 0.0  ;;  %v2638_v34 = vmul.f32 0.2, %v2033_v19  ;;  %v2046_v41 = vpop.f32.mrb[101].mxu1 }
 0x1c1   :  { %4174 = vst.msk [vmem:[%s6870_s2 + $0x380] sm:$0xf] %vm3949_vm2, %v4826_v29  ;;  %v4829_v37 = vpack.c.bf16 %v2896_v33, %v2896_v33  ;;  %v2766_v38 = vsel %vm2254_vm4, %v1521_v18, %v2510_v31  ;;  %vm2259_vm6 = vcmp.gt.f32.partialorder %v5112_v35, 0.0  ;;  %v2515_v39 = vmul.f32 0.2, %v5112_v35  ;;  %v5113_v45 = vpop.f32.mrb[102].mxu0 }
 0x1c2   :  { %4049 = vst.msk [vmem:[%s6870_s2 + $0x18c] sm:$0xf] %vm3949_vm2, %v4701_v32  ;;  %v4699_v42 = vpack.c.bf16 %v2766_v38, %v2766_v38  ;;  %v2894_v43 = vsel %vm2382_vm5, %v2033_v19, %v2638_v34  ;;  %vm2387_vm7 = vcmp.gt.f32.partialorder %v5240_v36, 0.0  ;;  %v2643_v44 = vmul.f32 0.2, %v5240_v36  ;;  %v5241_v46 = vpop.f32.mrb[102].mxu1 }
 0x1c3   :  { %4177 = vst.msk [vmem:[%s6870_s2 + $0x38c] sm:$0xf] %vm3949_vm2, %v4829_v37  ;;  %v4827_v47 = vpack.c.bf16 %v2894_v43, %v2894_v43  ;;  %v2771_v48 = vsel %vm2259_vm6, %v5112_v35, %v2515_v39  ;;  %vm2257_vm8 = vcmp.gt.f32.partialorder %v1534_v40, 0.0  ;;  %v2513_v49 = vmul.f32 0.2, %v1534_v40  ;;  %v1537_v50 = vpop.f32.mrb[103].mxu0 }
 0x1c4   :  { %v2049_v51 = vpop.f32.mrb[103].mxu1  ;;  %4047 = vst.msk [vmem:[%s6870_s2 + $0x184] sm:$0xf] %vm3949_vm2, %v4699_v42  ;;  %v4704_v52 = vpack.c.bf16 %v2771_v48, %v2771_v48  ;;  %v2899_v53 = vsel %vm2387_vm7, %v5240_v36, %v2643_v44  ;;  %vm2385_vm9 = vcmp.gt.f32.partialorder %v2046_v41, 0.0  ;;  %v2641_v54 = vmul.f32 0.2, %v2046_v41 }
 0x1c5   :  { %4175 = vst.msk [vmem:[%s6870_s2 + $0x384] sm:$0xf] %vm3949_vm2, %v4827_v47  ;;  %v4832_v55 = vpack.c.bf16 %v2899_v53, %v2899_v53  ;;  %v2769_v56 = vsel %vm2257_vm8, %v1534_v40, %v2513_v49  ;;  %vm2260_vm10 = vcmp.gt.f32.partialorder %v5113_v45, 0.0  ;;  %v2516_v57 = vmul.f32 0.2, %v5113_v45  ;;  %v5116_v3 = vpop.f32.mrb[104].mxu0 }
 0x1c6   :  { %4052 = vst.msk [vmem:[%s6870_s2 + $0x198] sm:$0xf] %vm3949_vm2, %v4704_v52  ;;  %v4702_v58 = vpack.c.bf16 %v2769_v56, %v2769_v56  ;;  %v2897_v59 = vsel %vm2385_vm9, %v2046_v41, %v2641_v54  ;;  %vm2388_vm11 = vcmp.gt.f32.partialorder %v5241_v46, 0.0  ;;  %v2644_v60 = vmul.f32 0.2, %v5241_v46  ;;  %v5244_v4 = vpop.f32.mrb[104].mxu1 }
 0x1c7   :  { %4180 = vst.msk [vmem:[%s6870_s2 + $0x398] sm:$0xf] %vm3949_vm2, %v4832_v55  ;;  %v4830_v61 = vpack.c.bf16 %v2897_v59, %v2897_v59  ;;  %v2772_v62 = vsel %vm2260_vm10, %v5113_v45, %v2516_v57  ;;  %vm2258_vm12 = vcmp.gt.f32.partialorder %v1537_v50, 0.0  ;;  %v2514_v63 = vmul.f32 0.2, %v1537_v50  ;;  %v1550_v8 = vpop.f32.mrb[105].mxu0 }
 0x1c8   :  { %4050 = vst.msk [vmem:[%s6870_s2 + $0x190] sm:$0xf] %vm3949_vm2, %v4702_v58  ;;  %v4705_v0 = vpack.c.bf16 %v2772_v62, %v2772_v62  ;;  %v2900_v1 = vsel %vm2388_vm11, %v5241_v46, %v2644_v60  ;;  %vm2386_vm13 = vcmp.gt.f32.partialorder %v2049_v51, 0.0  ;;  %v2642_v2 = vmul.f32 0.2, %v2049_v51  ;;  %v2062_v9 = vpop.f32.mrb[105].mxu1 }
 0x1c9   :  { %4178 = vst.msk [vmem:[%s6870_s2 + $0x390] sm:$0xf] %vm3949_vm2, %v4830_v61  ;;  %v4833_v5 = vpack.c.bf16 %v2900_v1, %v2900_v1  ;;  %v2770_v6 = vsel %vm2258_vm12, %v1537_v50, %v2514_v63  ;;  %vm2263_vm14 = vcmp.gt.f32.partialorder %v5116_v3, 0.0  ;;  %v2519_v7 = vmul.f32 0.2, %v5116_v3  ;;  %v5117_v13 = vpop.f32.mrb[106].mxu0 }
 0x1ca   :  { %4053 = vst.msk [vmem:[%s6870_s2 + $0x19c] sm:$0xf] %vm3949_vm2, %v4705_v0  ;;  %v4703_v10 = vpack.c.bf16 %v2770_v6, %v2770_v6  ;;  %v2898_v11 = vsel %vm2386_vm13, %v2049_v51, %v2642_v2  ;;  %vm2391_vm15 = vcmp.gt.f32.partialorder %v5244_v4, 0.0  ;;  %v2647_v12 = vmul.f32 0.2, %v5244_v4  ;;  %v5245_v14 = vpop.f32.mrb[106].mxu1 }
 0x1cb   :  { %4181 = vst.msk [vmem:[%s6870_s2 + $0x39c] sm:$0xf] %vm3949_vm2, %v4833_v5  ;;  %v4831_v15 = vpack.c.bf16 %v2898_v11, %v2898_v11  ;;  %v2775_v16 = vsel %vm2263_vm14, %v5116_v3, %v2519_v7  ;;  %vm2261_vm0 = vcmp.gt.f32.partialorder %v1550_v8, 0.0  ;;  %v2517_v17 = vmul.f32 0.2, %v1550_v8  ;;  %v1553_v18 = vpop.f32.mrb[107].mxu0 }
 0x1cc   :  { %v2065_v19 = vpop.f32.mrb[107].mxu1  ;;  %4051 = vst.msk [vmem:[%s6870_s2 + $0x194] sm:$0xf] %vm3949_vm2, %v4703_v10  ;;  %v4708_v20 = vpack.c.bf16 %v2775_v16, %v2775_v16  ;;  %v2903_v21 = vsel %vm2391_vm15, %v5244_v4, %v2647_v12  ;;  %vm2389_vm1 = vcmp.gt.f32.partialorder %v2062_v9, 0.0  ;;  %v2645_v22 = vmul.f32 0.2, %v2062_v9 }
 0x1cd   :  { %4179 = vst.msk [vmem:[%s6870_s2 + $0x394] sm:$0xf] %vm3949_vm2, %v4831_v15  ;;  %v4836_v23 = vpack.c.bf16 %v2903_v21, %v2903_v21  ;;  %v2773_v24 = vsel %vm2261_vm0, %v1550_v8, %v2517_v17  ;;  %vm2264_vm3 = vcmp.gt.f32.partialorder %v5117_v13, 0.0  ;;  %v2520_v25 = vmul.f32 0.2, %v5117_v13  ;;  %v5120_v35 = vpop.f32.mrb[108].mxu0 }
 0x1ce   :  { %4056 = vst.msk [vmem:[%s6870_s2 + $0x1a8] sm:$0xf] %vm3949_vm2, %v4708_v20  ;;  %v4706_v26 = vpack.c.bf16 %v2773_v24, %v2773_v24  ;;  %v2901_v27 = vsel %vm2389_vm1, %v2062_v9, %v2645_v22  ;;  %vm2392_vm4 = vcmp.gt.f32.partialorder %v5245_v14, 0.0  ;;  %v2648_v28 = vmul.f32 0.2, %v5245_v14  ;;  %v5248_v36 = vpop.f32.mrb[108].mxu1 }
 0x1cf   :  { %4184 = vst.msk [vmem:[%s6870_s2 + $0x3a8] sm:$0xf] %vm3949_vm2, %v4836_v23  ;;  %v4834_v29 = vpack.c.bf16 %v2901_v27, %v2901_v27  ;;  %v2776_v30 = vsel %vm2264_vm3, %v5117_v13, %v2520_v25  ;;  %vm2262_vm5 = vcmp.gt.f32.partialorder %v1553_v18, 0.0  ;;  %v2518_v31 = vmul.f32 0.2, %v1553_v18  ;;  %v1566_v40 = vpop.f32.mrb[109].mxu0 }
 0x1d0   :  { %4054 = vst.msk [vmem:[%s6870_s2 + $0x1a0] sm:$0xf] %vm3949_vm2, %v4706_v26  ;;  %v4709_v32 = vpack.c.bf16 %v2776_v30, %v2776_v30  ;;  %v2904_v33 = vsel %vm2392_vm4, %v5245_v14, %v2648_v28  ;;  %vm2390_vm6 = vcmp.gt.f32.partialorder %v2065_v19, 0.0  ;;  %v2646_v34 = vmul.f32 0.2, %v2065_v19  ;;  %v2078_v41 = vpop.f32.mrb[109].mxu1 }
 0x1d1   :  { %4182 = vst.msk [vmem:[%s6870_s2 + $0x3a0] sm:$0xf] %vm3949_vm2, %v4834_v29  ;;  %v4837_v37 = vpack.c.bf16 %v2904_v33, %v2904_v33  ;;  %v2774_v38 = vsel %vm2262_vm5, %v1553_v18, %v2518_v31  ;;  %vm2267_vm7 = vcmp.gt.f32.partialorder %v5120_v35, 0.0  ;;  %v2523_v39 = vmul.f32 0.2, %v5120_v35  ;;  %v5121_v45 = vpop.f32.mrb[110].mxu0 }
 0x1d2   :  { %4057 = vst.msk [vmem:[%s6870_s2 + $0x1ac] sm:$0xf] %vm3949_vm2, %v4709_v32  ;;  %v4707_v42 = vpack.c.bf16 %v2774_v38, %v2774_v38  ;;  %v2902_v43 = vsel %vm2390_vm6, %v2065_v19, %v2646_v34  ;;  %vm2395_vm8 = vcmp.gt.f32.partialorder %v5248_v36, 0.0  ;;  %v2651_v44 = vmul.f32 0.2, %v5248_v36  ;;  %v5249_v46 = vpop.f32.mrb[110].mxu1 }
 0x1d3   :  { %4185 = vst.msk [vmem:[%s6870_s2 + $0x3ac] sm:$0xf] %vm3949_vm2, %v4837_v37  ;;  %v4835_v47 = vpack.c.bf16 %v2902_v43, %v2902_v43  ;;  %v2779_v48 = vsel %vm2267_vm7, %v5120_v35, %v2523_v39  ;;  %vm2265_vm9 = vcmp.gt.f32.partialorder %v1566_v40, 0.0  ;;  %v2521_v49 = vmul.f32 0.2, %v1566_v40  ;;  %v1569_v50 = vpop.f32.mrb[111].mxu0 }
 0x1d4   :  { %v2081_v51 = vpop.f32.mrb[111].mxu1  ;;  %4055 = vst.msk [vmem:[%s6870_s2 + $0x1a4] sm:$0xf] %vm3949_vm2, %v4707_v42  ;;  %v4712_v52 = vpack.c.bf16 %v2779_v48, %v2779_v48  ;;  %v2907_v53 = vsel %vm2395_vm8, %v5248_v36, %v2651_v44  ;;  %vm2393_vm10 = vcmp.gt.f32.partialorder %v2078_v41, 0.0  ;;  %v2649_v54 = vmul.f32 0.2, %v2078_v41 }
 0x1d5   :  { %4183 = vst.msk [vmem:[%s6870_s2 + $0x3a4] sm:$0xf] %vm3949_vm2, %v4835_v47  ;;  %v4840_v55 = vpack.c.bf16 %v2907_v53, %v2907_v53  ;;  %v2777_v56 = vsel %vm2265_vm9, %v1566_v40, %v2521_v49  ;;  %vm2268_vm11 = vcmp.gt.f32.partialorder %v5121_v45, 0.0  ;;  %v2524_v57 = vmul.f32 0.2, %v5121_v45  ;;  %v5124_v3 = vpop.f32.mrb[112].mxu0 }
 0x1d6   :  { %4060 = vst.msk [vmem:[%s6870_s2 + $0x1b8] sm:$0xf] %vm3949_vm2, %v4712_v52  ;;  %v4710_v58 = vpack.c.bf16 %v2777_v56, %v2777_v56  ;;  %v2905_v59 = vsel %vm2393_vm10, %v2078_v41, %v2649_v54  ;;  %vm2396_vm12 = vcmp.gt.f32.partialorder %v5249_v46, 0.0  ;;  %v2652_v60 = vmul.f32 0.2, %v5249_v46  ;;  %v5252_v4 = vpop.f32.mrb[112].mxu1 }
 0x1d7   :  { %4188 = vst.msk [vmem:[%s6870_s2 + $0x3b8] sm:$0xf] %vm3949_vm2, %v4840_v55  ;;  %v4838_v61 = vpack.c.bf16 %v2905_v59, %v2905_v59  ;;  %v2780_v62 = vsel %vm2268_vm11, %v5121_v45, %v2524_v57  ;;  %vm2266_vm13 = vcmp.gt.f32.partialorder %v1569_v50, 0.0  ;;  %v2522_v63 = vmul.f32 0.2, %v1569_v50  ;;  %v1582_v8 = vpop.f32.mrb[113].mxu0 }
 0x1d8   :  { %4058 = vst.msk [vmem:[%s6870_s2 + $0x1b0] sm:$0xf] %vm3949_vm2, %v4710_v58  ;;  %v4713_v0 = vpack.c.bf16 %v2780_v62, %v2780_v62  ;;  %v2908_v1 = vsel %vm2396_vm12, %v5249_v46, %v2652_v60  ;;  %vm2394_vm14 = vcmp.gt.f32.partialorder %v2081_v51, 0.0  ;;  %v2650_v2 = vmul.f32 0.2, %v2081_v51  ;;  %v2094_v9 = vpop.f32.mrb[113].mxu1 }
 0x1d9   :  { %4186 = vst.msk [vmem:[%s6870_s2 + $0x3b0] sm:$0xf] %vm3949_vm2, %v4838_v61  ;;  %v4841_v5 = vpack.c.bf16 %v2908_v1, %v2908_v1  ;;  %v2778_v6 = vsel %vm2266_vm13, %v1569_v50, %v2522_v63  ;;  %vm2271_vm15 = vcmp.gt.f32.partialorder %v5124_v3, 0.0  ;;  %v2527_v7 = vmul.f32 0.2, %v5124_v3  ;;  %v5125_v13 = vpop.f32.mrb[114].mxu0 }
 0x1da   :  { %4061 = vst.msk [vmem:[%s6870_s2 + $0x1bc] sm:$0xf] %vm3949_vm2, %v4713_v0  ;;  %v4711_v10 = vpack.c.bf16 %v2778_v6, %v2778_v6  ;;  %v2906_v11 = vsel %vm2394_vm14, %v2081_v51, %v2650_v2  ;;  %vm2399_vm0 = vcmp.gt.f32.partialorder %v5252_v4, 0.0  ;;  %v2655_v12 = vmul.f32 0.2, %v5252_v4  ;;  %v5253_v14 = vpop.f32.mrb[114].mxu1 }
 0x1db   :  { %4189 = vst.msk [vmem:[%s6870_s2 + $0x3bc] sm:$0xf] %vm3949_vm2, %v4841_v5  ;;  %v4839_v15 = vpack.c.bf16 %v2906_v11, %v2906_v11  ;;  %v2783_v16 = vsel %vm2271_vm15, %v5124_v3, %v2527_v7  ;;  %vm2269_vm1 = vcmp.gt.f32.partialorder %v1582_v8, 0.0  ;;  %v2525_v17 = vmul.f32 0.2, %v1582_v8  ;;  %v1585_v18 = vpop.f32.mrb[115].mxu0 }
 0x1dc   :  { %v2097_v19 = vpop.f32.mrb[115].mxu1  ;;  %4059 = vst.msk [vmem:[%s6870_s2 + $0x1b4] sm:$0xf] %vm3949_vm2, %v4711_v10  ;;  %v4716_v20 = vpack.c.bf16 %v2783_v16, %v2783_v16  ;;  %v2911_v21 = vsel %vm2399_vm0, %v5252_v4, %v2655_v12  ;;  %vm2397_vm3 = vcmp.gt.f32.partialorder %v2094_v9, 0.0  ;;  %v2653_v22 = vmul.f32 0.2, %v2094_v9 }
 0x1dd   :  { %4187 = vst.msk [vmem:[%s6870_s2 + $0x3b4] sm:$0xf] %vm3949_vm2, %v4839_v15  ;;  %v4844_v23 = vpack.c.bf16 %v2911_v21, %v2911_v21  ;;  %v2781_v24 = vsel %vm2269_vm1, %v1582_v8, %v2525_v17  ;;  %vm2272_vm4 = vcmp.gt.f32.partialorder %v5125_v13, 0.0  ;;  %v2528_v25 = vmul.f32 0.2, %v5125_v13  ;;  %v5128_v35 = vpop.f32.mrb[116].mxu0 }
 0x1de   :  { %4064 = vst.msk [vmem:[%s6870_s2 + $0x1c8] sm:$0xf] %vm3949_vm2, %v4716_v20  ;;  %v4714_v26 = vpack.c.bf16 %v2781_v24, %v2781_v24  ;;  %v2909_v27 = vsel %vm2397_vm3, %v2094_v9, %v2653_v22  ;;  %vm2400_vm5 = vcmp.gt.f32.partialorder %v5253_v14, 0.0  ;;  %v2656_v28 = vmul.f32 0.2, %v5253_v14  ;;  %v5256_v36 = vpop.f32.mrb[116].mxu1 }
 0x1df   :  { %4192 = vst.msk [vmem:[%s6870_s2 + $0x3c8] sm:$0xf] %vm3949_vm2, %v4844_v23  ;;  %v4842_v29 = vpack.c.bf16 %v2909_v27, %v2909_v27  ;;  %v2784_v30 = vsel %vm2272_vm4, %v5125_v13, %v2528_v25  ;;  %vm2270_vm6 = vcmp.gt.f32.partialorder %v1585_v18, 0.0  ;;  %v2526_v31 = vmul.f32 0.2, %v1585_v18  ;;  %v1598_v40 = vpop.f32.mrb[117].mxu0 }
 0x1e0   :  { %4062 = vst.msk [vmem:[%s6870_s2 + $0x1c0] sm:$0xf] %vm3949_vm2, %v4714_v26  ;;  %v4717_v32 = vpack.c.bf16 %v2784_v30, %v2784_v30  ;;  %v2912_v33 = vsel %vm2400_vm5, %v5253_v14, %v2656_v28  ;;  %vm2398_vm7 = vcmp.gt.f32.partialorder %v2097_v19, 0.0  ;;  %v2654_v34 = vmul.f32 0.2, %v2097_v19  ;;  %v2110_v41 = vpop.f32.mrb[117].mxu1 }
 0x1e1   :  { %4190 = vst.msk [vmem:[%s6870_s2 + $0x3c0] sm:$0xf] %vm3949_vm2, %v4842_v29  ;;  %v4845_v37 = vpack.c.bf16 %v2912_v33, %v2912_v33  ;;  %v2782_v38 = vsel %vm2270_vm6, %v1585_v18, %v2526_v31  ;;  %vm2275_vm8 = vcmp.gt.f32.partialorder %v5128_v35, 0.0  ;;  %v2531_v39 = vmul.f32 0.2, %v5128_v35  ;;  %v5129_v45 = vpop.f32.mrb[118].mxu0 }
 0x1e2   :  { %4065 = vst.msk [vmem:[%s6870_s2 + $0x1cc] sm:$0xf] %vm3949_vm2, %v4717_v32  ;;  %v4715_v42 = vpack.c.bf16 %v2782_v38, %v2782_v38  ;;  %v2910_v43 = vsel %vm2398_vm7, %v2097_v19, %v2654_v34  ;;  %vm2403_vm9 = vcmp.gt.f32.partialorder %v5256_v36, 0.0  ;;  %v2659_v44 = vmul.f32 0.2, %v5256_v36  ;;  %v5257_v46 = vpop.f32.mrb[118].mxu1 }
 0x1e3   :  { %4193 = vst.msk [vmem:[%s6870_s2 + $0x3cc] sm:$0xf] %vm3949_vm2, %v4845_v37  ;;  %v4843_v47 = vpack.c.bf16 %v2910_v43, %v2910_v43  ;;  %v2787_v48 = vsel %vm2275_vm8, %v5128_v35, %v2531_v39  ;;  %vm2273_vm10 = vcmp.gt.f32.partialorder %v1598_v40, 0.0  ;;  %v2529_v49 = vmul.f32 0.2, %v1598_v40  ;;  %v1601_v50 = vpop.f32.mrb[119].mxu0 }
 0x1e4   :  { %v2113_v51 = vpop.f32.mrb[119].mxu1  ;;  %4063 = vst.msk [vmem:[%s6870_s2 + $0x1c4] sm:$0xf] %vm3949_vm2, %v4715_v42  ;;  %v4720_v52 = vpack.c.bf16 %v2787_v48, %v2787_v48  ;;  %v2915_v53 = vsel %vm2403_vm9, %v5256_v36, %v2659_v44  ;;  %vm2401_vm11 = vcmp.gt.f32.partialorder %v2110_v41, 0.0  ;;  %v2657_v54 = vmul.f32 0.2, %v2110_v41 }
 0x1e5   :  { %4191 = vst.msk [vmem:[%s6870_s2 + $0x3c4] sm:$0xf] %vm3949_vm2, %v4843_v47  ;;  %v4848_v55 = vpack.c.bf16 %v2915_v53, %v2915_v53  ;;  %v2785_v56 = vsel %vm2273_vm10, %v1598_v40, %v2529_v49  ;;  %vm2276_vm12 = vcmp.gt.f32.partialorder %v5129_v45, 0.0  ;;  %v2532_v57 = vmul.f32 0.2, %v5129_v45  ;;  %v5132_v3 = vpop.f32.mrb[120].mxu0 }
 0x1e6   :  { %4068 = vst.msk [vmem:[%s6870_s2 + $0x1d8] sm:$0xf] %vm3949_vm2, %v4720_v52  ;;  %v4718_v58 = vpack.c.bf16 %v2785_v56, %v2785_v56  ;;  %v2913_v59 = vsel %vm2401_vm11, %v2110_v41, %v2657_v54  ;;  %vm2404_vm13 = vcmp.gt.f32.partialorder %v5257_v46, 0.0  ;;  %v2660_v60 = vmul.f32 0.2, %v5257_v46  ;;  %v5260_v4 = vpop.f32.mrb[120].mxu1 }
 0x1e7   :  { %4196 = vst.msk [vmem:[%s6870_s2 + $0x3d8] sm:$0xf] %vm3949_vm2, %v4848_v55  ;;  %v4846_v61 = vpack.c.bf16 %v2913_v59, %v2913_v59  ;;  %v2788_v62 = vsel %vm2276_vm12, %v5129_v45, %v2532_v57  ;;  %vm2274_vm14 = vcmp.gt.f32.partialorder %v1601_v50, 0.0  ;;  %v2530_v63 = vmul.f32 0.2, %v1601_v50  ;;  %v1614_v8 = vpop.f32.mrb[121].mxu0 }
 0x1e8   :  { %4066 = vst.msk [vmem:[%s6870_s2 + $0x1d0] sm:$0xf] %vm3949_vm2, %v4718_v58  ;;  %v4721_v0 = vpack.c.bf16 %v2788_v62, %v2788_v62  ;;  %v2916_v1 = vsel %vm2404_vm13, %v5257_v46, %v2660_v60  ;;  %vm2402_vm15 = vcmp.gt.f32.partialorder %v2113_v51, 0.0  ;;  %v2658_v2 = vmul.f32 0.2, %v2113_v51  ;;  %v2126_v9 = vpop.f32.mrb[121].mxu1 }
 0x1e9   :  { %4194 = vst.msk [vmem:[%s6870_s2 + $0x3d0] sm:$0xf] %vm3949_vm2, %v4846_v61  ;;  %v4849_v5 = vpack.c.bf16 %v2916_v1, %v2916_v1  ;;  %v2786_v6 = vsel %vm2274_vm14, %v1601_v50, %v2530_v63  ;;  %vm2279_vm0 = vcmp.gt.f32.partialorder %v5132_v3, 0.0  ;;  %v2535_v7 = vmul.f32 0.2, %v5132_v3  ;;  %v5133_v13 = vpop.f32.mrb[122].mxu0 }
 0x1ea   :  { %4069 = vst.msk [vmem:[%s6870_s2 + $0x1dc] sm:$0xf] %vm3949_vm2, %v4721_v0  ;;  %v4719_v10 = vpack.c.bf16 %v2786_v6, %v2786_v6  ;;  %v2914_v11 = vsel %vm2402_vm15, %v2113_v51, %v2658_v2  ;;  %vm2407_vm1 = vcmp.gt.f32.partialorder %v5260_v4, 0.0  ;;  %v2663_v12 = vmul.f32 0.2, %v5260_v4  ;;  %v5261_v14 = vpop.f32.mrb[122].mxu1 }
 0x1eb   :  { %4197 = vst.msk [vmem:[%s6870_s2 + $0x3dc] sm:$0xf] %vm3949_vm2, %v4849_v5  ;;  %v4847_v15 = vpack.c.bf16 %v2914_v11, %v2914_v11  ;;  %v2791_v16 = vsel %vm2279_vm0, %v5132_v3, %v2535_v7  ;;  %vm2277_vm3 = vcmp.gt.f32.partialorder %v1614_v8, 0.0  ;;  %v2533_v17 = vmul.f32 0.2, %v1614_v8  ;;  %v1617_v18 = vpop.f32.mrb[123].mxu0 }
 0x1ec   :  { %v2129_v19 = vpop.f32.mrb[123].mxu1  ;;  %4067 = vst.msk [vmem:[%s6870_s2 + $0x1d4] sm:$0xf] %vm3949_vm2, %v4719_v10  ;;  %v4724_v20 = vpack.c.bf16 %v2791_v16, %v2791_v16  ;;  %v2919_v21 = vsel %vm2407_vm1, %v5260_v4, %v2663_v12  ;;  %vm2405_vm4 = vcmp.gt.f32.partialorder %v2126_v9, 0.0  ;;  %v2661_v22 = vmul.f32 0.2, %v2126_v9 }
 0x1ed   :  { %4195 = vst.msk [vmem:[%s6870_s2 + $0x3d4] sm:$0xf] %vm3949_vm2, %v4847_v15  ;;  %v4852_v23 = vpack.c.bf16 %v2919_v21, %v2919_v21  ;;  %v2789_v24 = vsel %vm2277_vm3, %v1614_v8, %v2533_v17  ;;  %vm2280_vm5 = vcmp.gt.f32.partialorder %v5133_v13, 0.0  ;;  %v2536_v25 = vmul.f32 0.2, %v5133_v13  ;;  %v5136_v35 = vpop.f32.mrb[124].mxu0 }
 0x1ee   :  { %4072 = vst.msk [vmem:[%s6870_s2 + $0x1e8] sm:$0xf] %vm3949_vm2, %v4724_v20  ;;  %v4722_v26 = vpack.c.bf16 %v2789_v24, %v2789_v24  ;;  %v2917_v27 = vsel %vm2405_vm4, %v2126_v9, %v2661_v22  ;;  %vm2408_vm6 = vcmp.gt.f32.partialorder %v5261_v14, 0.0  ;;  %v2664_v28 = vmul.f32 0.2, %v5261_v14  ;;  %v5264_v36 = vpop.f32.mrb[124].mxu1 }
 0x1ef   :  { %4200 = vst.msk [vmem:[%s6870_s2 + $0x3e8] sm:$0xf] %vm3949_vm2, %v4852_v23  ;;  %v4850_v29 = vpack.c.bf16 %v2917_v27, %v2917_v27  ;;  %v2792_v30 = vsel %vm2280_vm5, %v5133_v13, %v2536_v25  ;;  %vm2278_vm7 = vcmp.gt.f32.partialorder %v1617_v18, 0.0  ;;  %v2534_v31 = vmul.f32 0.2, %v1617_v18  ;;  %v1630_v40 = vpop.f32.mrb[125].mxu0 }
 0x1f0   :  { %4070 = vst.msk [vmem:[%s6870_s2 + $0x1e0] sm:$0xf] %vm3949_vm2, %v4722_v26  ;;  %v4725_v32 = vpack.c.bf16 %v2792_v30, %v2792_v30  ;;  %v2920_v33 = vsel %vm2408_vm6, %v5261_v14, %v2664_v28  ;;  %vm2406_vm8 = vcmp.gt.f32.partialorder %v2129_v19, 0.0  ;;  %v2662_v34 = vmul.f32 0.2, %v2129_v19  ;;  %v2142_v41 = vpop.f32.mrb[125].mxu1 }
 0x1f1   :  { %4198 = vst.msk [vmem:[%s6870_s2 + $0x3e0] sm:$0xf] %vm3949_vm2, %v4850_v29  ;;  %v4853_v37 = vpack.c.bf16 %v2920_v33, %v2920_v33  ;;  %v2790_v38 = vsel %vm2278_vm7, %v1617_v18, %v2534_v31  ;;  %vm2283_vm9 = vcmp.gt.f32.partialorder %v5136_v35, 0.0  ;;  %v2539_v39 = vmul.f32 0.2, %v5136_v35  ;;  %v5137_v45 = vpop.f32.mrb[126].mxu0 }
 0x1f2   :  { %4073 = vst.msk [vmem:[%s6870_s2 + $0x1ec] sm:$0xf] %vm3949_vm2, %v4725_v32  ;;  %v4723_v42 = vpack.c.bf16 %v2790_v38, %v2790_v38  ;;  %v2918_v43 = vsel %vm2406_vm8, %v2129_v19, %v2662_v34  ;;  %vm2411_vm10 = vcmp.gt.f32.partialorder %v5264_v36, 0.0  ;;  %v2667_v44 = vmul.f32 0.2, %v5264_v36  ;;  %v5265_v46 = vpop.f32.mrb[126].mxu1 }
 0x1f3   :  { %4201 = vst.msk [vmem:[%s6870_s2 + $0x3ec] sm:$0xf] %vm3949_vm2, %v4853_v37  ;;  %v4851_v47 = vpack.c.bf16 %v2918_v43, %v2918_v43  ;;  %v2795_v48 = vsel %vm2283_vm9, %v5136_v35, %v2539_v39  ;;  %vm2281_vm11 = vcmp.gt.f32.partialorder %v1630_v40, 0.0  ;;  %v2537_v49 = vmul.f32 0.2, %v1630_v40  ;;  %v1633_v50 = vpop.f32.mrb[127].mxu0 }
 0x1f4   :  { %v2145_v51 = vpop.f32.mrb[127].mxu1  ;;  %4071 = vst.msk [vmem:[%s6870_s2 + $0x1e4] sm:$0xf] %vm3949_vm2, %v4723_v42  ;;  %v4728_v52 = vpack.c.bf16 %v2795_v48, %v2795_v48  ;;  %v2923_v53 = vsel %vm2411_vm10, %v5264_v36, %v2667_v44  ;;  %vm2409_vm12 = vcmp.gt.f32.partialorder %v2142_v41, 0.0  ;;  %v2665_v54 = vmul.f32 0.2, %v2142_v41 }
 0x1f5   :  { %4199 = vst.msk [vmem:[%s6870_s2 + $0x3e4] sm:$0xf] %vm3949_vm2, %v4851_v47  ;;  %v4856_v55 = vpack.c.bf16 %v2923_v53, %v2923_v53  ;;  %v2793_v56 = vsel %vm2281_vm11, %v1630_v40, %v2537_v49  ;;  %vm2284_vm13 = vcmp.gt.f32.partialorder %v5137_v45, 0.0  ;;  %v2540_v57 = vmul.f32 0.2, %v5137_v45 }
 0x1f6   :  { %4076 = vst.msk [vmem:[%s6870_s2 + $0x1f8] sm:$0xf] %vm3949_vm2, %v4728_v52  ;;  %v4726_v58 = vpack.c.bf16 %v2793_v56, %v2793_v56  ;;  %v2921_v59 = vsel %vm2409_vm12, %v2142_v41, %v2665_v54  ;;  %vm2412_vm14 = vcmp.gt.f32.partialorder %v5265_v46, 0.0  ;;  %v2668_v60 = vmul.f32 0.2, %v5265_v46 }
 0x1f7   :  { %4204 = vst.msk [vmem:[%s6870_s2 + $0x3f8] sm:$0xf] %vm3949_vm2, %v4856_v55  ;;  %v4854_v61 = vpack.c.bf16 %v2921_v59, %v2921_v59  ;;  %v2796_v62 = vsel %vm2284_vm13, %v5137_v45, %v2540_v57  ;;  %vm2282_vm15 = vcmp.gt.f32.partialorder %v1633_v50, 0.0  ;;  %v2538_v63 = vmul.f32 0.2, %v1633_v50 }
 0x1f8   :  { %4074 = vst.msk [vmem:[%s6870_s2 + $0x1f0] sm:$0xf] %vm3949_vm2, %v4726_v58  ;;  %v4729_v0 = vpack.c.bf16 %v2796_v62, %v2796_v62  ;;  %v2924_v1 = vsel %vm2412_vm14, %v5265_v46, %v2668_v60  ;;  %vm2410_vm0 = vcmp.gt.f32.partialorder %v2145_v51, 0.0  ;;  %v2666_v2 = vmul.f32 0.2, %v2145_v51 }
 0x1f9   :  { %4202 = vst.msk [vmem:[%s6870_s2 + $0x3f0] sm:$0xf] %vm3949_vm2, %v4854_v61  ;;  %v4857_v3 = vpack.c.bf16 %v2924_v1, %v2924_v1  ;;  %v2794_v4 = vsel %vm2282_vm15, %v1633_v50, %v2538_v63 }
 0x1fa   :  { %4077 = vst.msk [vmem:[%s6870_s2 + $0x1fc] sm:$0xf] %vm3949_vm2, %v4729_v0  ;;  %v4727_v5 = vpack.c.bf16 %v2794_v4, %v2794_v4  ;;  %v2922_v6 = vsel %vm2410_vm0, %v2145_v51, %v2666_v2 }
 0x1fb   :  { %4205 = vst.msk [vmem:[%s6870_s2 + $0x3fc] sm:$0xf] %vm3949_vm2, %v4857_v3  ;;  %v4855_v7 = vpack.c.bf16 %v2922_v6, %v2922_v6 }
 0x1fc   :  { %4075 = vst.msk [vmem:[%s6870_s2 + $0x1f4] sm:$0xf] %vm3949_vm2, %v4727_v5 }
 0x1fd   :  { %4203 = vst.msk [vmem:[%s6870_s2 + $0x3f4] sm:$0xf] %vm3949_vm2, %v4855_v7 }

// kernel: forward.9
= control target key start
LH: loop header
LB: loop body
LE: loop exit
PB: predicated region body
PF: predicated region fallthrough
CT: control target
= control target key end

     0   :  { %vm732_vm0 = vcmask 257024   ;;  %s1605_s0 = inlined_call_operand.vmem [shape: bf16[512,32], index: 0, kind: input, shape index: {}, may-alias: {0,3}]   ;;  %s1606_s1 = inlined_call_operand.vmem [shape: f32[1,32], index: 1, kind: input, shape index: {}]   ;;  %s1607_s2 = inlined_call_operand.vmem [shape: f32[1,32], index: 2, kind: input, shape index: {}]   ;;  %s1608_s3 = inlined_call_operand.vmem [shape: bf16[512,32], index: 3, kind: output, shape index: {}, may-alias: {0,3}]  }
   0x1   :  { %v932_v0 = vld [vmem:[%s1605_s0] sm:$0xff]   ;;  %v1059_v4 = vld [vmem:[%s1605_s0 + $0x8] sm:$0xff]   ;;  %v1060_v5 = vld [vmem:[%s1605_s0 + $0x10] sm:$0xff]  }
   0x2   :  { %v1118_v1 = vld [vmem:[%s1606_s1] ss:$0 sm:$0xff]  ;;  %v933_v2 = vunpack.c.l.bf16 %v932_v0  ;;  %v934_v3 = vunpack.c.h.bf16 %v932_v0  ;;  %v1061_v6 = vld [vmem:[%s1605_s0 + $0x18] sm:$0xff]   ;;  %v937_v8 = vunpack.c.l.bf16 %v1059_v4  ;;  %v938_v9 = vunpack.c.h.bf16 %v1059_v4  ;;  %v1063_v40 = vld [vmem:[%s1605_s0 + $0x28] sm:$0xff]  }
   0x3   :  { %v1132_v7 = vld [vmem:[%s1607_s2] ss:$0 sm:$0xff]  ;;  %v941_v10 = vunpack.c.l.bf16 %v1060_v5  ;;  %v942_v11 = vunpack.c.h.bf16 %v1060_v5  ;;  %v945_v14 = vunpack.c.l.bf16 %v1061_v6  ;;  %v946_v15 = vunpack.c.h.bf16 %v1061_v6 }
   0x4   :  { %v149_v12 = vmul.f32 %v933_v2, %v1118_v1  ;;  %v150_v13 = vmul.f32 %v934_v3, %v1118_v1  ;;  %v151_v16 = vmul.f32 %v937_v8, %v1118_v1  ;;  %v152_v17 = vmul.f32 %v938_v9, %v1118_v1  ;;  %v1062_v39 = vld [vmem:[%s1605_s0 + $0x20] sm:$0xff]  }
   0x5   :  { %v153_v18 = vmul.f32 %v941_v10, %v1118_v1  ;;  %v154_v19 = vmul.f32 %v942_v11, %v1118_v1  ;;  %v155_v22 = vmul.f32 %v945_v14, %v1118_v1  ;;  %v156_v23 = vmul.f32 %v946_v15, %v1118_v1 }
   0x6   :  { %v220_v20 = vadd.f32 %v1132_v7, %v149_v12  ;;  %v221_v21 = vadd.f32 %v1132_v7, %v150_v13  ;;  %v222_v24 = vadd.f32 %v1132_v7, %v151_v16  ;;  %v223_v25 = vadd.f32 %v1132_v7, %v152_v17 }
   0x7   :  { %v224_v26 = vadd.f32 %v1132_v7, %v153_v18  ;;  %v225_v27 = vadd.f32 %v1132_v7, %v154_v19  ;;  %v226_v46 = vadd.f32 %v1132_v7, %v155_v22  ;;  %v227_v47 = vadd.f32 %v1132_v7, %v156_v23 }
   0x8   :  { %vm284_vm1 = vcmp.gt.f32.partialorder %v220_v20, 0.0  ;;  %v348_v28 = vmul.f32 0.2, %v220_v20  ;;  %vm285_vm2 = vcmp.gt.f32.partialorder %v221_v21, 0.0  ;;  %v349_v29 = vmul.f32 0.2, %v221_v21 }
   0x9   :  { %vm286_vm3 = vcmp.gt.f32.partialorder %v222_v24, 0.0  ;;  %v350_v30 = vmul.f32 0.2, %v222_v24  ;;  %vm287_vm4 = vcmp.gt.f32.partialorder %v223_v25, 0.0  ;;  %v351_v31 = vmul.f32 0.2, %v223_v25 }
   0xa   :  { %v412_v32 = vsel %vm284_vm1, %v220_v20, %v348_v28  ;;  %v413_v33 = vsel %vm285_vm2, %v221_v21, %v349_v29  ;;  %vm288_vm5 = vcmp.gt.f32.partialorder %v224_v26, 0.0  ;;  %v352_v34 = vmul.f32 0.2, %v224_v26 }
   0xb   :  { %v867_v35 = vpack.c.bf16 %v412_v32, %v412_v32  ;;  %v868_v36 = vpack.c.bf16 %v413_v33, %v413_v33  ;;  %v414_v37 = vsel %vm286_vm3, %v222_v24, %v350_v30  ;;  %v415_v38 = vsel %vm287_vm4, %v223_v25, %v351_v31 }
   0xc   :  { %v869_v41 = vpack.c.bf16 %v414_v37, %v414_v37  ;;  %v870_v42 = vpack.c.bf16 %v415_v38, %v415_v38  ;;  %v416_v43 = vsel %vm288_vm5, %v224_v26, %v352_v34  ;;  %vm289_vm6 = vcmp.gt.f32.partialorder %v225_v27, 0.0 }
   0xd   :  { %733 = vst.msk [vmem:[%s1608_s3] sm:$0xf] %vm732_vm0, %v867_v35  ;;  %734 = vst.msk [vmem:[%s1608_s3 + $0x4] sm:$0xf] %vm732_vm0, %v868_v36  ;;  %v871_v44 = vpack.c.bf16 %v416_v43, %v416_v43  ;;  %v353_v45 = vmul.f32 0.2, %v225_v27  ;;  %v949_v48 = vunpack.c.l.bf16 %v1062_v39  ;;  %v950_v49 = vunpack.c.h.bf16 %v1062_v39 }
   0xe   :  { %735 = vst.msk [vmem:[%s1608_s3 + $0x8] sm:$0xf] %vm732_vm0, %v869_v41  ;;  %736 = vst.msk [vmem:[%s1608_s3 + $0xc] sm:$0xf] %vm732_vm0, %v870_v42  ;;  %v953_v50 = vunpack.c.l.bf16 %v1063_v40  ;;  %v954_v51 = vunpack.c.h.bf16 %v1063_v40  ;;  %vm290_vm7 = vcmp.gt.f32.partialorder %v226_v46, 0.0  ;;  %vm291_vm8 = vcmp.gt.f32.partialorder %v227_v47, 0.0 }
   0xf   :  { %v417_v53 = vsel %vm289_vm6, %v225_v27, %v353_v45  ;;  %v354_v54 = vmul.f32 0.2, %v226_v46  ;;  %v355_v56 = vmul.f32 0.2, %v227_v47  ;;  %v157_v57 = vmul.f32 %v949_v48, %v1118_v1 }
  0x10   :  { %v872_v55 = vpack.c.bf16 %v417_v53, %v417_v53  ;;  %v158_v58 = vmul.f32 %v950_v49, %v1118_v1  ;;  %v159_v60 = vmul.f32 %v953_v50, %v1118_v1  ;;  %v160_v61 = vmul.f32 %v954_v51, %v1118_v1 }
  0x11   :  { %v418_v59 = vsel %vm290_vm7, %v226_v46, %v354_v54  ;;  %v419_v0 = vsel %vm291_vm8, %v227_v47, %v355_v56  ;;  %v228_v2 = vadd.f32 %v1132_v7, %v157_v57 }
  0x12   :  { %v873_v63 = vpack.c.bf16 %v418_v59, %v418_v59  ;;  %v229_v3 = vadd.f32 %v1132_v7, %v158_v58  ;;  %v874_v4 = vpack.c.bf16 %v419_v0, %v419_v0  ;;  %v230_v5 = vadd.f32 %v1132_v7, %v159_v60 }
  0x13   :  { %v231_v6 = vadd.f32 %v1132_v7, %v160_v61  ;;  %vm292_vm9 = vcmp.gt.f32.partialorder %v228_v2, 0.0  ;;  %v356_v9 = vmul.f32 0.2, %v228_v2 }
  0x14   :  { %vm293_vm10 = vcmp.gt.f32.partialorder %v229_v3, 0.0  ;;  %v357_v10 = vmul.f32 0.2, %v229_v3  ;;  %vm294_vm11 = vcmp.gt.f32.partialorder %v230_v5, 0.0  ;;  %v358_v11 = vmul.f32 0.2, %v230_v5 }
  0x15   :  { %v1064_v52 = vld [vmem:[%s1605_s0 + $0x30] sm:$0xff]   ;;  %vm295_vm12 = vcmp.gt.f32.partialorder %v231_v6, 0.0  ;;  %v359_v12 = vmul.f32 0.2, %v231_v6  ;;  %v420_v13 = vsel %vm292_vm9, %v228_v2, %v356_v9 }
  0x16   :  { %737 = vst.msk [vmem:[%s1608_s3 + $0x10] sm:$0xf] %vm732_vm0, %v871_v44  ;;  %v957_v62 = vunpack.c.l.bf16 %v1064_v52  ;;  %738 = vst.msk [vmem:[%s1608_s3 + $0x14] sm:$0xf] %vm732_vm0, %v872_v55  ;;  %v958_v8 = vunpack.c.h.bf16 %v1064_v52  ;;  %v421_v14 = vsel %vm293_vm10, %v229_v3, %v357_v10  ;;  %v875_v19 = vpack.c.bf16 %v420_v13, %v420_v13 }
  0x17   :  { %739 = vst.msk [vmem:[%s1608_s3 + $0x18] sm:$0xf] %vm732_vm0, %v873_v63  ;;  %740 = vst.msk [vmem:[%s1608_s3 + $0x1c] sm:$0xf] %vm732_vm0, %v874_v4  ;;  %v876_v20 = vpack.c.bf16 %v421_v14, %v421_v14  ;;  %v422_v21 = vsel %vm294_vm11, %v230_v5, %v358_v11  ;;  %v423_v22 = vsel %vm295_vm12, %v231_v6, %v359_v12 }
  0x18   :  { %v161_v15 = vmul.f32 %v957_v62, %v1118_v1  ;;  %v162_v16 = vmul.f32 %v958_v8, %v1118_v1  ;;  %v877_v23 = vpack.c.bf16 %v422_v21, %v422_v21  ;;  %v878_v24 = vpack.c.bf16 %v423_v22, %v423_v22 }
  0x1a   :  { %v232_v25 = vadd.f32 %v1132_v7, %v161_v15  ;;  %v233_v26 = vadd.f32 %v1132_v7, %v162_v16 }
  0x1c   :  { %vm296_vm13 = vcmp.gt.f32.partialorder %v232_v25, 0.0  ;;  %v360_v32 = vmul.f32 0.2, %v232_v25  ;;  %vm297_vm14 = vcmp.gt.f32.partialorder %v233_v26, 0.0  ;;  %v361_v33 = vmul.f32 0.2, %v233_v26 }
  0x1e   :  { %v1065_v17 = vld [vmem:[%s1605_s0 + $0x38] sm:$0xff]   ;;  %v1066_v18 = vld [vmem:[%s1605_s0 + $0x40] sm:$0xff]   ;;  %v424_v38 = vsel %vm296_vm13, %v232_v25, %v360_v32  ;;  %v425_v39 = vsel %vm297_vm14, %v233_v26, %v361_v33 }
  0x1f   :  { %741 = vst.msk [vmem:[%s1608_s3 + $0x20] sm:$0xf] %vm732_vm0, %v875_v19  ;;  %742 = vst.msk [vmem:[%s1608_s3 + $0x24] sm:$0xf] %vm732_vm0, %v876_v20  ;;  %v961_v27 = vunpack.c.l.bf16 %v1065_v17  ;;  %v962_v28 = vunpack.c.h.bf16 %v1065_v17  ;;  %v965_v29 = vunpack.c.l.bf16 %v1066_v18  ;;  %v966_v30 = vunpack.c.h.bf16 %v1066_v18 }
  0x20   :  { %v879_v42 = vpack.c.bf16 %v424_v38, %v424_v38  ;;  %v880_v43 = vpack.c.bf16 %v425_v39, %v425_v39 }
  0x21   :  { %v163_v34 = vmul.f32 %v961_v27, %v1118_v1  ;;  %v164_v35 = vmul.f32 %v962_v28, %v1118_v1  ;;  %v165_v36 = vmul.f32 %v965_v29, %v1118_v1  ;;  %v166_v37 = vmul.f32 %v966_v30, %v1118_v1 }
  0x23   :  { %v234_v44 = vadd.f32 %v1132_v7, %v163_v34  ;;  %v235_v45 = vadd.f32 %v1132_v7, %v164_v35  ;;  %v236_v46 = vadd.f32 %v1132_v7, %v165_v36  ;;  %v237_v47 = vadd.f32 %v1132_v7, %v166_v37 }
  0x25   :  { %vm298_vm15 = vcmp.gt.f32.partialorder %v234_v44, 0.0  ;;  %v362_v50 = vmul.f32 0.2, %v234_v44  ;;  %vm299_vm1 = vcmp.gt.f32.partialorder %v235_v45, 0.0  ;;  %v363_v51 = vmul.f32 0.2, %v235_v45 }
  0x26   :  { %v1067_v31 = vld [vmem:[%s1605_s0 + $0x48] sm:$0xff]   ;;  %vm300_vm2 = vcmp.gt.f32.partialorder %v236_v46, 0.0  ;;  %v364_v52 = vmul.f32 0.2, %v236_v46  ;;  %vm301_vm3 = vcmp.gt.f32.partialorder %v237_v47, 0.0 }
  0x27   :  { %743 = vst.msk [vmem:[%s1608_s3 + $0x28] sm:$0xf] %vm732_vm0, %v877_v23  ;;  %744 = vst.msk [vmem:[%s1608_s3 + $0x2c] sm:$0xf] %vm732_vm0, %v878_v24  ;;  %v969_v40 = vunpack.c.l.bf16 %v1067_v31  ;;  %v970_v41 = vunpack.c.h.bf16 %v1067_v31  ;;  %v365_v53 = vmul.f32 0.2, %v237_v47  ;;  %v426_v54 = vsel %vm298_vm15, %v234_v44, %v362_v50 }
  0x28   :  { %745 = vst.msk [vmem:[%s1608_s3 + $0x30] sm:$0xf] %vm732_vm0, %v879_v42  ;;  %746 = vst.msk [vmem:[%s1608_s3 + $0x34] sm:$0xf] %vm732_vm0, %v880_v43  ;;  %v427_v55 = vsel %vm299_vm1, %v235_v45, %v363_v51  ;;  %v881_v59 = vpack.c.bf16 %v426_v54, %v426_v54  ;;  %v428_v61 = vsel %vm300_vm2, %v236_v46, %v364_v52 }
  0x29   :  { %v167_v48 = vmul.f32 %v969_v40, %v1118_v1  ;;  %v168_v49 = vmul.f32 %v970_v41, %v1118_v1  ;;  %v882_v60 = vpack.c.bf16 %v427_v55, %v427_v55  ;;  %v429_v62 = vsel %vm301_vm3, %v237_v47, %v365_v53 }
  0x2a   :  { %v883_v2 = vpack.c.bf16 %v428_v61, %v428_v61  ;;  %v884_v3 = vpack.c.bf16 %v429_v62, %v429_v62 }
  0x2b   :  { %v238_v56 = vadd.f32 %v1132_v7, %v167_v48  ;;  %v239_v57 = vadd.f32 %v1132_v7, %v168_v49 }
  0x2d   :  { %vm302_vm4 = vcmp.gt.f32.partialorder %v238_v56, 0.0  ;;  %v366_v4 = vmul.f32 0.2, %v238_v56  ;;  %vm303_vm5 = vcmp.gt.f32.partialorder %v239_v57, 0.0  ;;  %v367_v5 = vmul.f32 0.2, %v239_v57 }
  0x2f   :  { %v1068_v58 = vld [vmem:[%s1605_s0 + $0x50] sm:$0xff]   ;;  %v1069_v63 = vld [vmem:[%s1605_s0 + $0x58] sm:$0xff]   ;;  %v1070_v0 = vld [vmem:[%s1605_s0 + $0x60] sm:$0xff]   ;;  %v430_v9 = vsel %vm302_vm4, %v238_v56, %v366_v4  ;;  %v431_v15 = vsel %vm303_vm5, %v239_v57, %v367_v5 }
  0x30   :  { %747 = vst.msk [vmem:[%s1608_s3 + $0x38] sm:$0xf] %vm732_vm0, %v881_v59  ;;  %748 = vst.msk [vmem:[%s1608_s3 + $0x3c] sm:$0xf] %vm732_vm0, %v882_v60  ;;  %v973_v6 = vunpack.c.l.bf16 %v1068_v58  ;;  %v974_v8 = vunpack.c.h.bf16 %v1068_v58  ;;  %v977_v10 = vunpack.c.l.bf16 %v1069_v63  ;;  %v978_v11 = vunpack.c.h.bf16 %v1069_v63 }
  0x31   :  { %749 = vst.msk [vmem:[%s1608_s3 + $0x40] sm:$0xf] %vm732_vm0, %v883_v2  ;;  %750 = vst.msk [vmem:[%s1608_s3 + $0x44] sm:$0xf] %vm732_vm0, %v884_v3  ;;  %v981_v12 = vunpack.c.l.bf16 %v1070_v0  ;;  %v885_v14 = vpack.c.bf16 %v430_v9, %v430_v9  ;;  %v886_v18 = vpack.c.bf16 %v431_v15, %v431_v15  ;;  %v982_v21 = vunpack.c.h.bf16 %v1070_v0 }
  0x32   :  { %v169_v16 = vmul.f32 %v973_v6, %v1118_v1  ;;  %v170_v17 = vmul.f32 %v974_v8, %v1118_v1  ;;  %v171_v19 = vmul.f32 %v977_v10, %v1118_v1  ;;  %v172_v20 = vmul.f32 %v978_v11, %v1118_v1 }
  0x33   :  { %v173_v24 = vmul.f32 %v981_v12, %v1118_v1  ;;  %v174_v28 = vmul.f32 %v982_v21, %v1118_v1 }
  0x34   :  { %v240_v22 = vadd.f32 %v1132_v7, %v169_v16  ;;  %v241_v23 = vadd.f32 %v1132_v7, %v170_v17  ;;  %v242_v26 = vadd.f32 %v1132_v7, %v171_v19  ;;  %v243_v27 = vadd.f32 %v1132_v7, %v172_v20 }
  0x35   :  { %v244_v36 = vadd.f32 %v1132_v7, %v173_v24  ;;  %v245_v37 = vadd.f32 %v1132_v7, %v174_v28 }
  0x36   :  { %vm304_vm6 = vcmp.gt.f32.partialorder %v240_v22, 0.0  ;;  %v368_v30 = vmul.f32 0.2, %v240_v22  ;;  %vm305_vm7 = vcmp.gt.f32.partialorder %v241_v23, 0.0  ;;  %v369_v31 = vmul.f32 0.2, %v241_v23 }
  0x37   :  { %vm306_vm8 = vcmp.gt.f32.partialorder %v242_v26, 0.0  ;;  %v370_v32 = vmul.f32 0.2, %v242_v26  ;;  %vm307_vm9 = vcmp.gt.f32.partialorder %v243_v27, 0.0  ;;  %v371_v33 = vmul.f32 0.2, %v243_v27 }
  0x38   :  { %v1071_v13 = vld [vmem:[%s1605_s0 + $0x68] sm:$0xff]   ;;  %v432_v34 = vsel %vm304_vm6, %v240_v22, %v368_v30  ;;  %v433_v35 = vsel %vm305_vm7, %v241_v23, %v369_v31  ;;  %vm308_vm10 = vcmp.gt.f32.partialorder %v244_v36, 0.0  ;;  %v372_v46 = vmul.f32 0.2, %v244_v36 }
  0x39   :  { %751 = vst.msk [vmem:[%s1608_s3 + $0x48] sm:$0xf] %vm732_vm0, %v885_v14  ;;  %v985_v25 = vunpack.c.l.bf16 %v1071_v13  ;;  %752 = vst.msk [vmem:[%s1608_s3 + $0x4c] sm:$0xf] %vm732_vm0, %v886_v18  ;;  %v986_v29 = vunpack.c.h.bf16 %v1071_v13  ;;  %v887_v38 = vpack.c.bf16 %v432_v34, %v432_v34  ;;  %v888_v39 = vpack.c.bf16 %v433_v35, %v433_v35 }
  0x3a   :  { %v434_v40 = vsel %vm306_vm8, %v242_v26, %v370_v32  ;;  %v435_v41 = vsel %vm307_vm9, %v243_v27, %v371_v33  ;;  %vm309_vm11 = vcmp.gt.f32.partialorder %v245_v37, 0.0  ;;  %v373_v47 = vmul.f32 0.2, %v245_v37 }
  0x3b   :  { %v889_v44 = vpack.c.bf16 %v434_v40, %v434_v40  ;;  %v890_v45 = vpack.c.bf16 %v435_v41, %v435_v41  ;;  %v175_v48 = vmul.f32 %v985_v25, %v1118_v1  ;;  %v176_v49 = vmul.f32 %v986_v29, %v1118_v1 }
  0x3c   :  { %v436_v50 = vsel %vm308_vm10, %v244_v36, %v372_v46  ;;  %v437_v55 = vsel %vm309_vm11, %v245_v37, %v373_v47 }
  0x3d   :  { %v891_v54 = vpack.c.bf16 %v436_v50, %v436_v50  ;;  %v246_v56 = vadd.f32 %v1132_v7, %v175_v48  ;;  %v247_v57 = vadd.f32 %v1132_v7, %v176_v49  ;;  %v892_v58 = vpack.c.bf16 %v437_v55, %v437_v55 }
  0x3f   :  { %vm310_vm12 = vcmp.gt.f32.partialorder %v246_v56, 0.0  ;;  %v374_v63 = vmul.f32 0.2, %v246_v56  ;;  %vm311_vm13 = vcmp.gt.f32.partialorder %v247_v57, 0.0  ;;  %v375_v0 = vmul.f32 0.2, %v247_v57 }
  0x40   :  { %v1072_v42 = vld [vmem:[%s1605_s0 + $0x70] sm:$0xff]   ;;  %v1073_v43 = vld [vmem:[%s1605_s0 + $0x78] sm:$0xff]  }
  0x41   :  { %753 = vst.msk [vmem:[%s1608_s3 + $0x50] sm:$0xf] %vm732_vm0, %v887_v38  ;;  %754 = vst.msk [vmem:[%s1608_s3 + $0x54] sm:$0xf] %vm732_vm0, %v888_v39  ;;  %v989_v51 = vunpack.c.l.bf16 %v1072_v42  ;;  %v990_v52 = vunpack.c.h.bf16 %v1072_v42  ;;  %v993_v53 = vunpack.c.l.bf16 %v1073_v43  ;;  %v994_v61 = vunpack.c.h.bf16 %v1073_v43 }
  0x42   :  { %755 = vst.msk [vmem:[%s1608_s3 + $0x58] sm:$0xf] %vm732_vm0, %v889_v44  ;;  %756 = vst.msk [vmem:[%s1608_s3 + $0x5c] sm:$0xf] %vm732_vm0, %v890_v45  ;;  %v438_v6 = vsel %vm310_vm12, %v246_v56, %v374_v63  ;;  %v439_v8 = vsel %vm311_vm13, %v247_v57, %v375_v0 }
  0x43   :  { %v177_v59 = vmul.f32 %v989_v51, %v1118_v1  ;;  %v178_v60 = vmul.f32 %v990_v52, %v1118_v1  ;;  %v179_v4 = vmul.f32 %v993_v53, %v1118_v1  ;;  %v180_v5 = vmul.f32 %v994_v61, %v1118_v1 }
  0x44   :  { %v893_v12 = vpack.c.bf16 %v438_v6, %v438_v6  ;;  %v894_v13 = vpack.c.bf16 %v439_v8, %v439_v8 }
  0x45   :  { %v248_v2 = vadd.f32 %v1132_v7, %v177_v59  ;;  %v249_v3 = vadd.f32 %v1132_v7, %v178_v60  ;;  %v250_v16 = vadd.f32 %v1132_v7, %v179_v4  ;;  %v251_v17 = vadd.f32 %v1132_v7, %v180_v5 }
  0x47   :  { %vm312_vm14 = vcmp.gt.f32.partialorder %v248_v2, 0.0  ;;  %v376_v14 = vmul.f32 0.2, %v248_v2  ;;  %vm313_vm15 = vcmp.gt.f32.partialorder %v249_v3, 0.0  ;;  %v377_v15 = vmul.f32 0.2, %v249_v3 }
  0x48   :  { %vm314_vm1 = vcmp.gt.f32.partialorder %v250_v16, 0.0  ;;  %v378_v24 = vmul.f32 0.2, %v250_v16  ;;  %vm315_vm2 = vcmp.gt.f32.partialorder %v251_v17, 0.0  ;;  %v379_v26 = vmul.f32 0.2, %v251_v17 }
  0x49   :  { %v1074_v62 = vld [vmem:[%s1605_s0 + $0x80] sm:$0xff]   ;;  %v440_v18 = vsel %vm312_vm14, %v248_v2, %v376_v14  ;;  %v441_v23 = vsel %vm313_vm15, %v249_v3, %v377_v15 }
  0x4a   :  { %757 = vst.msk [vmem:[%s1608_s3 + $0x60] sm:$0xf] %vm732_vm0, %v891_v54  ;;  %758 = vst.msk [vmem:[%s1608_s3 + $0x64] sm:$0xf] %vm732_vm0, %v892_v58  ;;  %v997_v9 = vunpack.c.l.bf16 %v1074_v62  ;;  %v998_v10 = vunpack.c.h.bf16 %v1074_v62  ;;  %v895_v22 = vpack.c.bf16 %v440_v18, %v440_v18  ;;  %v896_v25 = vpack.c.bf16 %v441_v23, %v441_v23 }
  0x4b   :  { %v442_v28 = vsel %vm314_vm1, %v250_v16, %v378_v24  ;;  %v443_v34 = vsel %vm315_vm2, %v251_v17, %v379_v26 }
  0x4c   :  { %v181_v19 = vmul.f32 %v997_v9, %v1118_v1  ;;  %v182_v20 = vmul.f32 %v998_v10, %v1118_v1  ;;  %v897_v33 = vpack.c.bf16 %v442_v28, %v442_v28  ;;  %v898_v37 = vpack.c.bf16 %v443_v34, %v443_v34 }
  0x4e   :  { %v252_v27 = vadd.f32 %v1132_v7, %v181_v19  ;;  %v253_v29 = vadd.f32 %v1132_v7, %v182_v20 }
  0x50   :  { %vm316_vm3 = vcmp.gt.f32.partialorder %v252_v27, 0.0  ;;  %v380_v35 = vmul.f32 0.2, %v252_v27  ;;  %vm317_vm4 = vcmp.gt.f32.partialorder %v253_v29, 0.0  ;;  %v381_v38 = vmul.f32 0.2, %v253_v29 }
  0x51   :  { %v1075_v11 = vld [vmem:[%s1605_s0 + $0x88] sm:$0xff]  }
  0x52   :  { %759 = vst.msk [vmem:[%s1608_s3 + $0x68] sm:$0xf] %vm732_vm0, %v893_v12  ;;  %760 = vst.msk [vmem:[%s1608_s3 + $0x6c] sm:$0xf] %vm732_vm0, %v894_v13  ;;  %v1001_v21 = vunpack.c.l.bf16 %v1075_v11  ;;  %v1002_v30 = vunpack.c.h.bf16 %v1075_v11  ;;  %v444_v40 = vsel %vm316_vm3, %v252_v27, %v380_v35  ;;  %v445_v45 = vsel %vm317_vm4, %v253_v29, %v381_v38 }
  0x53   :  { %761 = vst.msk [vmem:[%s1608_s3 + $0x70] sm:$0xf] %vm732_vm0, %v895_v22  ;;  %v899_v44 = vpack.c.bf16 %v444_v40, %v444_v40  ;;  %v900_v49 = vpack.c.bf16 %v445_v45, %v445_v45 }
  0x54   :  { %v183_v31 = vmul.f32 %v1001_v21, %v1118_v1  ;;  %v184_v39 = vmul.f32 %v1002_v30, %v1118_v1 }
  0x56   :  { %v254_v41 = vadd.f32 %v1132_v7, %v183_v31  ;;  %v255_v46 = vadd.f32 %v1132_v7, %v184_v39 }
  0x58   :  { %vm318_vm5 = vcmp.gt.f32.partialorder %v254_v41, 0.0  ;;  %v382_v50 = vmul.f32 0.2, %v254_v41  ;;  %vm319_vm6 = vcmp.gt.f32.partialorder %v255_v46, 0.0  ;;  %v383_v52 = vmul.f32 0.2, %v255_v46 }
  0x5a   :  { %v1076_v32 = vld [vmem:[%s1605_s0 + $0x90] sm:$0xff]   ;;  %v446_v55 = vsel %vm318_vm5, %v254_v41, %v382_v50  ;;  %v447_v60 = vsel %vm319_vm6, %v255_v46, %v383_v52 }
  0x5b   :  { %762 = vst.msk [vmem:[%s1608_s3 + $0x74] sm:$0xf] %vm732_vm0, %v896_v25  ;;  %v1005_v42 = vunpack.c.l.bf16 %v1076_v32  ;;  %v1006_v43 = vunpack.c.h.bf16 %v1076_v32  ;;  %v901_v59 = vpack.c.bf16 %v446_v55, %v446_v55  ;;  %v902_v63 = vpack.c.bf16 %v447_v60, %v447_v60 }
  0x5d   :  { %v185_v51 = vmul.f32 %v1005_v42, %v1118_v1  ;;  %v186_v53 = vmul.f32 %v1006_v43, %v1118_v1 }
  0x5f   :  { %v256_v56 = vadd.f32 %v1132_v7, %v185_v51  ;;  %v257_v61 = vadd.f32 %v1132_v7, %v186_v53 }
  0x61   :  { %vm320_vm7 = vcmp.gt.f32.partialorder %v256_v56, 0.0  ;;  %v384_v0 = vmul.f32 0.2, %v256_v56  ;;  %vm321_vm8 = vcmp.gt.f32.partialorder %v257_v61, 0.0  ;;  %v385_v3 = vmul.f32 0.2, %v257_v61 }
  0x62   :  { %v1077_v36 = vld [vmem:[%s1605_s0 + $0x98] sm:$0xff]  }
  0x63   :  { %763 = vst.msk [vmem:[%s1608_s3 + $0x78] sm:$0xf] %vm732_vm0, %v897_v33  ;;  %764 = vst.msk [vmem:[%s1608_s3 + $0x7c] sm:$0xf] %vm732_vm0, %v898_v37  ;;  %v1009_v47 = vunpack.c.l.bf16 %v1077_v36  ;;  %v1010_v54 = vunpack.c.h.bf16 %v1077_v36  ;;  %v448_v6 = vsel %vm320_vm7, %v256_v56, %v384_v0  ;;  %v449_v12 = vsel %vm321_vm8, %v257_v61, %v385_v3 }
  0x64   :  { %v903_v11 = vpack.c.bf16 %v448_v6, %v448_v6  ;;  %v904_v14 = vpack.c.bf16 %v449_v12, %v449_v12 }
  0x65   :  { %v187_v57 = vmul.f32 %v1009_v47, %v1118_v1  ;;  %v188_v62 = vmul.f32 %v1010_v54, %v1118_v1 }
  0x67   :  { %v258_v2 = vadd.f32 %v1132_v7, %v187_v57  ;;  %v259_v4 = vadd.f32 %v1132_v7, %v188_v62 }
  0x69   :  { %vm322_vm9 = vcmp.gt.f32.partialorder %v258_v2, 0.0  ;;  %v386_v8 = vmul.f32 0.2, %v258_v2  ;;  %vm323_vm10 = vcmp.gt.f32.partialorder %v259_v4, 0.0  ;;  %v387_v13 = vmul.f32 0.2, %v259_v4 }
  0x6a   :  { %v1078_v48 = vld [vmem:[%s1605_s0 + $0xa0] sm:$0xff]  }
  0x6b   :  { %765 = vst.msk [vmem:[%s1608_s3 + $0x80] sm:$0xf] %vm732_vm0, %v899_v44  ;;  %766 = vst.msk [vmem:[%s1608_s3 + $0x84] sm:$0xf] %vm732_vm0, %v900_v49  ;;  %v1013_v58 = vunpack.c.l.bf16 %v1078_v48  ;;  %v1014_v5 = vunpack.c.h.bf16 %v1078_v48  ;;  %v450_v15 = vsel %vm322_vm9, %v258_v2, %v386_v8  ;;  %v451_v20 = vsel %vm323_vm10, %v259_v4, %v387_v13 }
  0x6c   :  { %767 = vst.msk [vmem:[%s1608_s3 + $0x88] sm:$0xf] %vm732_vm0, %v901_v59  ;;  %768 = vst.msk [vmem:[%s1608_s3 + $0x8c] sm:$0xf] %vm732_vm0, %v902_v63  ;;  %v905_v19 = vpack.c.bf16 %v450_v15, %v450_v15  ;;  %v906_v24 = vpack.c.bf16 %v451_v20, %v451_v20 }
  0x6d   :  { %v189_v9 = vmul.f32 %v1013_v58, %v1118_v1  ;;  %v190_v16 = vmul.f32 %v1014_v5, %v1118_v1 }
  0x6f   :  { %v260_v17 = vadd.f32 %v1132_v7, %v189_v9  ;;  %v261_v25 = vadd.f32 %v1132_v7, %v190_v16 }
  0x71   :  { %vm324_vm11 = vcmp.gt.f32.partialorder %v260_v17, 0.0  ;;  %v388_v26 = vmul.f32 0.2, %v260_v17  ;;  %vm325_vm12 = vcmp.gt.f32.partialorder %v261_v25, 0.0  ;;  %v389_v32 = vmul.f32 0.2, %v261_v25 }
  0x73   :  { %v1079_v10 = vld [vmem:[%s1605_s0 + $0xa8] sm:$0xff]   ;;  %v1080_v18 = vld [vmem:[%s1605_s0 + $0xb0] sm:$0xff]   ;;  %v452_v31 = vsel %vm324_vm11, %v260_v17, %v388_v26  ;;  %v453_v38 = vsel %vm325_vm12, %v261_v25, %v389_v32 }
  0x74   :  { %769 = vst.msk [vmem:[%s1608_s3 + $0x90] sm:$0xf] %vm732_vm0, %v903_v11  ;;  %v1017_v21 = vunpack.c.l.bf16 %v1079_v10  ;;  %v1018_v22 = vunpack.c.h.bf16 %v1079_v10  ;;  %v1021_v29 = vunpack.c.l.bf16 %v1080_v18  ;;  %v1022_v30 = vunpack.c.h.bf16 %v1080_v18 }
  0x75   :  { %v907_v34 = vpack.c.bf16 %v452_v31, %v452_v31  ;;  %v908_v43 = vpack.c.bf16 %v453_v38, %v453_v38 }
  0x76   :  { %v191_v27 = vmul.f32 %v1017_v21, %v1118_v1  ;;  %v192_v28 = vmul.f32 %v1018_v22, %v1118_v1  ;;  %v193_v37 = vmul.f32 %v1021_v29, %v1118_v1  ;;  %v194_v39 = vmul.f32 %v1022_v30, %v1118_v1 }
  0x78   :  { %v262_v35 = vadd.f32 %v1132_v7, %v191_v27  ;;  %v263_v36 = vadd.f32 %v1132_v7, %v192_v28  ;;  %v264_v46 = vadd.f32 %v1132_v7, %v193_v37  ;;  %v265_v47 = vadd.f32 %v1132_v7, %v194_v39 }
  0x7a   :  { %vm326_vm13 = vcmp.gt.f32.partialorder %v262_v35, 0.0  ;;  %v390_v44 = vmul.f32 0.2, %v262_v35  ;;  %vm327_vm14 = vcmp.gt.f32.partialorder %v263_v36, 0.0  ;;  %v391_v45 = vmul.f32 0.2, %v263_v36 }
  0x7b   :  { %v1081_v23 = vld [vmem:[%s1605_s0 + $0xb8] sm:$0xff]   ;;  %vm328_vm15 = vcmp.gt.f32.partialorder %v264_v46, 0.0  ;;  %v392_v55 = vmul.f32 0.2, %v264_v46  ;;  %vm329_vm1 = vcmp.gt.f32.partialorder %v265_v47, 0.0 }
  0x7c   :  { %770 = vst.msk [vmem:[%s1608_s3 + $0x94] sm:$0xf] %vm732_vm0, %v904_v14  ;;  %771 = vst.msk [vmem:[%s1608_s3 + $0x98] sm:$0xf] %vm732_vm0, %v905_v19  ;;  %v1025_v33 = vunpack.c.l.bf16 %v1081_v23  ;;  %v1026_v40 = vunpack.c.h.bf16 %v1081_v23  ;;  %v454_v49 = vsel %vm326_vm13, %v262_v35, %v390_v44  ;;  %v455_v54 = vsel %vm327_vm14, %v263_v36, %v391_v45 }
  0x7d   :  { %772 = vst.msk [vmem:[%s1608_s3 + $0x9c] sm:$0xf] %vm732_vm0, %v906_v24  ;;  %v909_v53 = vpack.c.bf16 %v454_v49, %v454_v49  ;;  %v910_v56 = vpack.c.bf16 %v455_v54, %v455_v54  ;;  %v393_v57 = vmul.f32 0.2, %v265_v47  ;;  %v456_v59 = vsel %vm328_vm15, %v264_v46, %v392_v55 }
  0x7e   :  { %v195_v41 = vmul.f32 %v1025_v33, %v1118_v1  ;;  %v196_v48 = vmul.f32 %v1026_v40, %v1118_v1  ;;  %v911_v63 = vpack.c.bf16 %v456_v59, %v456_v59 }
  0x7f   :  { %v457_v0 = vsel %vm329_vm1, %v265_v47, %v393_v57 }
  0x80   :  { %v266_v50 = vadd.f32 %v1132_v7, %v195_v41  ;;  %v267_v58 = vadd.f32 %v1132_v7, %v196_v48  ;;  %v912_v3 = vpack.c.bf16 %v457_v0, %v457_v0 }
  0x82   :  { %vm330_vm2 = vcmp.gt.f32.partialorder %v266_v50, 0.0  ;;  %v394_v60 = vmul.f32 0.2, %v266_v50  ;;  %vm331_vm3 = vcmp.gt.f32.partialorder %v267_v58, 0.0  ;;  %v395_v2 = vmul.f32 0.2, %v267_v58 }
  0x84   :  { %v1082_v42 = vld [vmem:[%s1605_s0 + $0xc0] sm:$0xff]   ;;  %v458_v4 = vsel %vm330_vm2, %v266_v50, %v394_v60  ;;  %v459_v10 = vsel %vm331_vm3, %v267_v58, %v395_v2 }
  0x85   :  { %773 = vst.msk [vmem:[%s1608_s3 + $0xa0] sm:$0xf] %vm732_vm0, %v907_v34  ;;  %774 = vst.msk [vmem:[%s1608_s3 + $0xa4] sm:$0xf] %vm732_vm0, %v908_v43  ;;  %v1029_v51 = vunpack.c.l.bf16 %v1082_v42  ;;  %v1030_v52 = vunpack.c.h.bf16 %v1082_v42  ;;  %v913_v9 = vpack.c.bf16 %v458_v4, %v458_v4  ;;  %v914_v14 = vpack.c.bf16 %v459_v10, %v459_v10 }
  0x86   :  { %775 = vst.msk [vmem:[%s1608_s3 + $0xa8] sm:$0xf] %vm732_vm0, %v909_v53 }
  0x87   :  { %v197_v61 = vmul.f32 %v1029_v51, %v1118_v1  ;;  %v198_v5 = vmul.f32 %v1030_v52, %v1118_v1 }
  0x89   :  { %v268_v6 = vadd.f32 %v1132_v7, %v197_v61  ;;  %v269_v15 = vadd.f32 %v1132_v7, %v198_v5 }
  0x8b   :  { %vm332_vm4 = vcmp.gt.f32.partialorder %v268_v6, 0.0  ;;  %v396_v16 = vmul.f32 0.2, %v268_v6  ;;  %vm333_vm5 = vcmp.gt.f32.partialorder %v269_v15, 0.0  ;;  %v397_v22 = vmul.f32 0.2, %v269_v15 }
  0x8d   :  { %v1083_v62 = vld [vmem:[%s1605_s0 + $0xc8] sm:$0xff]   ;;  %v460_v21 = vsel %vm332_vm4, %v268_v6, %v396_v16  ;;  %v461_v28 = vsel %vm333_vm5, %v269_v15, %v397_v22 }
  0x8e   :  { %776 = vst.msk [vmem:[%s1608_s3 + $0xac] sm:$0xf] %vm732_vm0, %v910_v56  ;;  %v1033_v11 = vunpack.c.l.bf16 %v1083_v62  ;;  %v1034_v12 = vunpack.c.h.bf16 %v1083_v62  ;;  %v915_v24 = vpack.c.bf16 %v460_v21, %v460_v21  ;;  %v916_v33 = vpack.c.bf16 %v461_v28, %v461_v28 }
  0x90   :  { %v199_v17 = vmul.f32 %v1033_v11, %v1118_v1  ;;  %v200_v18 = vmul.f32 %v1034_v12, %v1118_v1 }
  0x92   :  { %v270_v25 = vadd.f32 %v1132_v7, %v199_v17  ;;  %v271_v26 = vadd.f32 %v1132_v7, %v200_v18 }
  0x94   :  { %vm334_vm6 = vcmp.gt.f32.partialorder %v270_v25, 0.0  ;;  %v398_v34 = vmul.f32 0.2, %v270_v25  ;;  %vm335_vm7 = vcmp.gt.f32.partialorder %v271_v26, 0.0  ;;  %v399_v35 = vmul.f32 0.2, %v271_v26 }
  0x95   :  { %v1084_v8 = vld [vmem:[%s1605_s0 + $0xd0] sm:$0xff]  }
  0x96   :  { %777 = vst.msk [vmem:[%s1608_s3 + $0xb0] sm:$0xf] %vm732_vm0, %v911_v63  ;;  %v1037_v19 = vunpack.c.l.bf16 %v1084_v8  ;;  %v1038_v20 = vunpack.c.h.bf16 %v1084_v8  ;;  %v462_v39 = vsel %vm334_vm6, %v270_v25, %v398_v34  ;;  %v463_v44 = vsel %vm335_vm7, %v271_v26, %v399_v35 }
  0x97   :  { %v917_v43 = vpack.c.bf16 %v462_v39, %v462_v39  ;;  %v918_v46 = vpack.c.bf16 %v463_v44, %v463_v44 }
  0x98   :  { %v201_v27 = vmul.f32 %v1037_v19, %v1118_v1  ;;  %v202_v29 = vmul.f32 %v1038_v20, %v1118_v1 }
  0x9a   :  { %v272_v36 = vadd.f32 %v1132_v7, %v201_v27  ;;  %v273_v37 = vadd.f32 %v1132_v7, %v202_v29  ;;  %v1090_v27 = vld [vmem:[%s1606_s1] ss:$0 sm:$0xff] }
  0x9b   :  { %v1091_v29 = vld [vmem:[%s1607_s2] ss:$0 sm:$0xff] }
  0x9c   :  { %vm336_vm8 = vcmp.gt.f32.partialorder %v272_v36, 0.0  ;;  %v400_v45 = vmul.f32 0.2, %v272_v36  ;;  %vm337_vm9 = vcmp.gt.f32.partialorder %v273_v37, 0.0  ;;  %v401_v47 = vmul.f32 0.2, %v273_v37 }
  0x9d   :  { %v1085_v13 = vld [vmem:[%s1605_s0 + $0xd8] sm:$0xff]  }
  0x9e   :  { %778 = vst.msk [vmem:[%s1608_s3 + $0xb4] sm:$0xf] %vm732_vm0, %v912_v3  ;;  %779 = vst.msk [vmem:[%s1608_s3 + $0xb8] sm:$0xf] %vm732_vm0, %v913_v9  ;;  %v1041_v23 = vunpack.c.l.bf16 %v1085_v13  ;;  %v1042_v30 = vunpack.c.h.bf16 %v1085_v13  ;;  %v464_v49 = vsel %vm336_vm8, %v272_v36, %v400_v45  ;;  %v465_v54 = vsel %vm337_vm9, %v273_v37, %v401_v47 }
  0x9f   :  { %780 = vst.msk [vmem:[%s1608_s3 + $0xbc] sm:$0xf] %vm732_vm0, %v914_v14  ;;  %v919_v53 = vpack.c.bf16 %v464_v49, %v464_v49  ;;  %v920_v56 = vpack.c.bf16 %v465_v54, %v465_v54 }
  0xa0   :  { %v203_v31 = vmul.f32 %v1041_v23, %v1118_v1  ;;  %v204_v38 = vmul.f32 %v1042_v30, %v1118_v1 }
  0xa2   :  { %v274_v40 = vadd.f32 %v1132_v7, %v203_v31  ;;  %v275_v48 = vadd.f32 %v1132_v7, %v204_v38 }
  0xa4   :  { %vm338_vm10 = vcmp.gt.f32.partialorder %v274_v40, 0.0  ;;  %v402_v50 = vmul.f32 0.2, %v274_v40  ;;  %vm339_vm11 = vcmp.gt.f32.partialorder %v275_v48, 0.0  ;;  %v403_v55 = vmul.f32 0.2, %v275_v48 }
  0xa6   :  { %v1086_v32 = vld [vmem:[%s1605_s0 + $0xe0] sm:$0xff]   ;;  %v466_v57 = vsel %vm338_vm10, %v274_v40, %v402_v50  ;;  %v467_v62 = vsel %vm339_vm11, %v275_v48, %v403_v55 }
  0xa7   :  { %781 = vst.msk [vmem:[%s1608_s3 + $0xc0] sm:$0xf] %vm732_vm0, %v915_v24  ;;  %782 = vst.msk [vmem:[%s1608_s3 + $0xc4] sm:$0xf] %vm732_vm0, %v916_v33  ;;  %v1045_v41 = vunpack.c.l.bf16 %v1086_v32  ;;  %v1046_v42 = vunpack.c.h.bf16 %v1086_v32  ;;  %v921_v61 = vpack.c.bf16 %v466_v57, %v466_v57  ;;  %v922_v3 = vpack.c.bf16 %v467_v62, %v467_v62 }
  0xa8   :  { %783 = vst.msk [vmem:[%s1608_s3 + $0xc8] sm:$0xf] %vm732_vm0, %v917_v43 }
  0xa9   :  { %v205_v51 = vmul.f32 %v1045_v41, %v1118_v1  ;;  %v206_v58 = vmul.f32 %v1046_v42, %v1118_v1 }
  0xab   :  { %v276_v59 = vadd.f32 %v1132_v7, %v205_v51  ;;  %v277_v4 = vadd.f32 %v1132_v7, %v206_v58 }
  0xad   :  { %vm340_vm12 = vcmp.gt.f32.partialorder %v276_v59, 0.0  ;;  %v404_v5 = vmul.f32 0.2, %v276_v59  ;;  %vm341_vm13 = vcmp.gt.f32.partialorder %v277_v4, 0.0  ;;  %v405_v12 = vmul.f32 0.2, %v277_v4 }
  0xaf   :  { %v1087_v52 = vld [vmem:[%s1605_s0 + $0xe8] sm:$0xff]   ;;  %v468_v11 = vsel %vm340_vm12, %v276_v59, %v404_v5  ;;  %v469_v18 = vsel %vm341_vm13, %v277_v4, %v405_v12 }
  0xb0   :  { %784 = vst.msk [vmem:[%s1608_s3 + $0xcc] sm:$0xf] %vm732_vm0, %v918_v46  ;;  %v1049_v63 = vunpack.c.l.bf16 %v1087_v52  ;;  %v1050_v0 = vunpack.c.h.bf16 %v1087_v52  ;;  %v923_v14 = vpack.c.bf16 %v468_v11, %v468_v11  ;;  %v924_v22 = vpack.c.bf16 %v469_v18, %v469_v18 }
  0xb2   :  { %v207_v6 = vmul.f32 %v1049_v63, %v1118_v1  ;;  %v208_v8 = vmul.f32 %v1050_v0, %v1118_v1 }
  0xb4   :  { %v278_v15 = vadd.f32 %v1132_v7, %v207_v6  ;;  %v279_v16 = vadd.f32 %v1132_v7, %v208_v8 }
  0xb6   :  { %vm342_vm14 = vcmp.gt.f32.partialorder %v278_v15, 0.0  ;;  %v406_v23 = vmul.f32 0.2, %v278_v15  ;;  %vm343_vm15 = vcmp.gt.f32.partialorder %v279_v16, 0.0  ;;  %v407_v24 = vmul.f32 0.2, %v279_v16 }
  0xb7   :  { %v1088_v60 = vld [vmem:[%s1605_s0 + $0xf0] sm:$0xff]  }
  0xb8   :  { %785 = vst.msk [vmem:[%s1608_s3 + $0xd0] sm:$0xf] %vm732_vm0, %v919_v53  ;;  %v1053_v9 = vunpack.c.l.bf16 %v1088_v60  ;;  %v1054_v10 = vunpack.c.h.bf16 %v1088_v60  ;;  %v471_v32 = vsel %vm343_vm15, %v279_v16, %v407_v24 }
  0xb9   :  { %v926_v33 = vpack.c.bf16 %v471_v32, %v471_v32 }
  0xba   :  { %v209_v17 = vmul.f32 %v1053_v9, %v1118_v1  ;;  %v210_v19 = vmul.f32 %v1054_v10, %v1118_v1 }
  0xbc   :  { %v280_v25 = vadd.f32 %v1132_v7, %v209_v17  ;;  %v281_v26 = vadd.f32 %v1132_v7, %v210_v19 }
  0xbe   :  { %vm344_vm1 = vcmp.gt.f32.partialorder %v280_v25, 0.0  ;;  %v408_v7 = vmul.f32 0.2, %v280_v25  ;;  %vm345_vm2 = vcmp.gt.f32.partialorder %v281_v26, 0.0  ;;  %v409_v34 = vmul.f32 0.2, %v281_v26 }
  0xbf   :  { %v1089_v2 = vld [vmem:[%s1605_s0 + $0xf8] sm:$0xff]  }
  0xc0   :  { %786 = vst.msk [vmem:[%s1608_s3 + $0xd4] sm:$0xf] %vm732_vm0, %v920_v56  ;;  %787 = vst.msk [vmem:[%s1608_s3 + $0xd8] sm:$0xf] %vm732_vm0, %v921_v61  ;;  %v1057_v13 = vunpack.c.l.bf16 %v1089_v2  ;;  %v1058_v20 = vunpack.c.h.bf16 %v1089_v2  ;;  %v472_v36 = vsel %vm344_vm1, %v280_v25, %v408_v7  ;;  %v473_v39 = vsel %vm345_vm2, %v281_v26, %v409_v34 }
  0xc1   :  { %788 = vst.msk [vmem:[%s1608_s3 + $0xdc] sm:$0xf] %vm732_vm0, %v922_v3  ;;  %789 = vst.msk [vmem:[%s1608_s3 + $0xe0] sm:$0xf] %vm732_vm0, %v923_v14  ;;  %v927_v38 = vpack.c.bf16 %v472_v36, %v472_v36  ;;  %v928_v41 = vpack.c.bf16 %v473_v39, %v473_v39 }
  0xc2   :  { %v211_v21 = vmul.f32 %v1057_v13, %v1118_v1  ;;  %v212_v28 = vmul.f32 %v1090_v27, %v1058_v20  ;;  %790 = vst.msk [vmem:[%s1608_s3 + $0xe4] sm:$0xf] %vm732_vm0, %v924_v22  ;;  %v470_v1 = vsel %vm342_vm14, %v278_v15, %v406_v23  ;;  %792 = vst.msk [vmem:[%s1608_s3 + $0xec] sm:$0xf] %vm732_vm0, %v926_v33 }
  0xc3   :  { %v925_v31 = vpack.c.bf16 %v470_v1, %v470_v1  ;;  %793 = vst.msk [vmem:[%s1608_s3 + $0xf0] sm:$0xf] %vm732_vm0, %v927_v38  ;;  %794 = vst.msk [vmem:[%s1608_s3 + $0xf4] sm:$0xf] %vm732_vm0, %v928_v41 }
  0xc4   :  { %v282_v30 = vadd.f32 %v1091_v29, %v211_v21  ;;  %v283_v35 = vadd.f32 %v1091_v29, %v212_v28 }
  0xc5   :  { %791 = vst.msk [vmem:[%s1608_s3 + $0xe8] sm:$0xf] %vm732_vm0, %v925_v31 }
  0xc6   :  { %vm346_vm3 = vcmp.gt.f32.partialorder %v282_v30, 0.0  ;;  %v410_v37 = vmul.f32 0.2, %v282_v30  ;;  %vm347_vm4 = vcmp.gt.f32.partialorder %v283_v35, 0.0  ;;  %v411_v40 = vmul.f32 0.2, %v283_v35 }
  0xc8   :  { %v474_v42 = vsel %vm346_vm3, %v282_v30, %v410_v37  ;;  %v475_v44 = vsel %vm347_vm4, %v283_v35, %v411_v40 }
  0xc9   :  { %v929_v43 = vpack.c.bf16 %v474_v42, %v474_v42  ;;  %v930_v45 = vpack.c.bf16 %v475_v44, %v475_v44 }
  0xcb   :  { %795 = vst.msk [vmem:[%s1608_s3 + $0xf8] sm:$0xf] %vm732_vm0, %v929_v43  ;;  %796 = vst.msk [vmem:[%s1608_s3 + $0xfc] sm:$0xf] %vm732_vm0, %v930_v45 }

// kernel: forward.11
= control target key start
LH: loop header
LB: loop body
LE: loop exit
PB: predicated region body
PF: predicated region fallthrough
CT: control target
= control target key end

     0   :  { %vm204_vm0 = vcmask 519168   ;;  %s448_s0 = inlined_call_operand.vmem [shape: bf16[128,64], index: 0, kind: input, shape index: {}, may-alias: {0,3}]   ;;  %s449_s1 = inlined_call_operand.vmem [shape: f32[1,64], index: 1, kind: input, shape index: {}]   ;;  %s450_s2 = inlined_call_operand.vmem [shape: f32[1,64], index: 2, kind: input, shape index: {}]   ;;  %s451_s3 = inlined_call_operand.vmem [shape: bf16[128,64], index: 3, kind: output, shape index: {}, may-alias: {0,3}]  }
   0x1   :  { %v260_v0 = vld [vmem:[%s448_s0] sm:$0xff]   ;;  %v291_v4 = vld [vmem:[%s448_s0 + $0x8] sm:$0xff]   ;;  %v292_v5 = vld [vmem:[%s448_s0 + $0x10] sm:$0xff]  }
   0x2   :  { %v324_v1 = vld [vmem:[%s449_s1] ss:$0 sm:$0xff]  ;;  %v261_v2 = vunpack.c.l.bf16 %v260_v0  ;;  %v262_v3 = vunpack.c.h.bf16 %v260_v0  ;;  %v293_v6 = vld [vmem:[%s448_s0 + $0x18] sm:$0xff]   ;;  %v265_v8 = vunpack.c.l.bf16 %v291_v4  ;;  %v266_v9 = vunpack.c.h.bf16 %v291_v4  ;;  %v295_v40 = vld [vmem:[%s448_s0 + $0x28] sm:$0xff]  }
   0x3   :  { %v338_v7 = vld [vmem:[%s450_s2] ss:$0 sm:$0xff]  ;;  %v269_v10 = vunpack.c.l.bf16 %v292_v5  ;;  %v270_v11 = vunpack.c.h.bf16 %v292_v5  ;;  %v273_v14 = vunpack.c.l.bf16 %v293_v6  ;;  %v274_v15 = vunpack.c.h.bf16 %v293_v6 }
   0x4   :  { %v53_v12 = vmul.f32 %v261_v2, %v324_v1  ;;  %v54_v13 = vmul.f32 %v262_v3, %v324_v1  ;;  %v55_v16 = vmul.f32 %v265_v8, %v324_v1  ;;  %v56_v17 = vmul.f32 %v266_v9, %v324_v1  ;;  %v294_v39 = vld [vmem:[%s448_s0 + $0x20] sm:$0xff]  }
   0x5   :  { %v57_v18 = vmul.f32 %v269_v10, %v324_v1  ;;  %v58_v19 = vmul.f32 %v270_v11, %v324_v1  ;;  %v59_v22 = vmul.f32 %v273_v14, %v324_v1  ;;  %v60_v23 = vmul.f32 %v274_v15, %v324_v1 }
   0x6   :  { %v76_v20 = vadd.f32 %v338_v7, %v53_v12  ;;  %v77_v21 = vadd.f32 %v338_v7, %v54_v13  ;;  %v78_v24 = vadd.f32 %v338_v7, %v55_v16  ;;  %v79_v25 = vadd.f32 %v338_v7, %v56_v17 }
   0x7   :  { %v80_v26 = vadd.f32 %v338_v7, %v57_v18  ;;  %v81_v27 = vadd.f32 %v338_v7, %v58_v19  ;;  %v82_v46 = vadd.f32 %v338_v7, %v59_v22  ;;  %v83_v47 = vadd.f32 %v338_v7, %v60_v23 }
   0x8   :  { %vm92_vm1 = vcmp.gt.f32.partialorder %v76_v20, 0.0  ;;  %v108_v28 = vmul.f32 0.2, %v76_v20  ;;  %vm93_vm2 = vcmp.gt.f32.partialorder %v77_v21, 0.0  ;;  %v109_v29 = vmul.f32 0.2, %v77_v21 }
   0x9   :  { %vm94_vm3 = vcmp.gt.f32.partialorder %v78_v24, 0.0  ;;  %v110_v30 = vmul.f32 0.2, %v78_v24  ;;  %vm95_vm4 = vcmp.gt.f32.partialorder %v79_v25, 0.0  ;;  %v111_v31 = vmul.f32 0.2, %v79_v25 }
   0xa   :  { %v124_v32 = vsel %vm92_vm1, %v76_v20, %v108_v28  ;;  %v125_v33 = vsel %vm93_vm2, %v77_v21, %v109_v29  ;;  %vm96_vm5 = vcmp.gt.f32.partialorder %v80_v26, 0.0  ;;  %v112_v34 = vmul.f32 0.2, %v80_v26 }
   0xb   :  { %v243_v35 = vpack.c.bf16 %v124_v32, %v124_v32  ;;  %v244_v36 = vpack.c.bf16 %v125_v33, %v125_v33  ;;  %v126_v37 = vsel %vm94_vm3, %v78_v24, %v110_v30  ;;  %v127_v38 = vsel %vm95_vm4, %v79_v25, %v111_v31 }
   0xc   :  { %v245_v41 = vpack.c.bf16 %v126_v37, %v126_v37  ;;  %v246_v42 = vpack.c.bf16 %v127_v38, %v127_v38  ;;  %v128_v43 = vsel %vm96_vm5, %v80_v26, %v112_v34  ;;  %vm97_vm6 = vcmp.gt.f32.partialorder %v81_v27, 0.0 }
   0xd   :  { %205 = vst.msk [vmem:[%s451_s3] sm:$0xf] %vm204_vm0, %v243_v35  ;;  %206 = vst.msk [vmem:[%s451_s3 + $0x4] sm:$0xf] %vm204_vm0, %v244_v36  ;;  %v247_v44 = vpack.c.bf16 %v128_v43, %v128_v43  ;;  %v113_v45 = vmul.f32 0.2, %v81_v27  ;;  %v277_v48 = vunpack.c.l.bf16 %v294_v39  ;;  %v278_v49 = vunpack.c.h.bf16 %v294_v39 }
   0xe   :  { %207 = vst.msk [vmem:[%s451_s3 + $0x8] sm:$0xf] %vm204_vm0, %v245_v41  ;;  %208 = vst.msk [vmem:[%s451_s3 + $0xc] sm:$0xf] %vm204_vm0, %v246_v42  ;;  %v281_v50 = vunpack.c.l.bf16 %v295_v40  ;;  %v282_v51 = vunpack.c.h.bf16 %v295_v40  ;;  %vm98_vm7 = vcmp.gt.f32.partialorder %v82_v46, 0.0  ;;  %vm99_vm8 = vcmp.gt.f32.partialorder %v83_v47, 0.0 }
   0xf   :  { %v129_v53 = vsel %vm97_vm6, %v81_v27, %v113_v45  ;;  %v114_v54 = vmul.f32 0.2, %v82_v46  ;;  %v115_v56 = vmul.f32 0.2, %v83_v47  ;;  %v61_v57 = vmul.f32 %v277_v48, %v324_v1 }
  0x10   :  { %v248_v55 = vpack.c.bf16 %v129_v53, %v129_v53  ;;  %v62_v58 = vmul.f32 %v278_v49, %v324_v1  ;;  %v63_v60 = vmul.f32 %v281_v50, %v324_v1  ;;  %v64_v61 = vmul.f32 %v282_v51, %v324_v1 }
  0x11   :  { %v130_v59 = vsel %vm98_vm7, %v82_v46, %v114_v54  ;;  %v131_v0 = vsel %vm99_vm8, %v83_v47, %v115_v56  ;;  %v84_v2 = vadd.f32 %v338_v7, %v61_v57 }
  0x12   :  { %v249_v63 = vpack.c.bf16 %v130_v59, %v130_v59  ;;  %v85_v3 = vadd.f32 %v338_v7, %v62_v58  ;;  %v250_v4 = vpack.c.bf16 %v131_v0, %v131_v0  ;;  %v86_v5 = vadd.f32 %v338_v7, %v63_v60 }
  0x13   :  { %v87_v6 = vadd.f32 %v338_v7, %v64_v61  ;;  %vm100_vm9 = vcmp.gt.f32.partialorder %v84_v2, 0.0  ;;  %v116_v9 = vmul.f32 0.2, %v84_v2 }
  0x14   :  { %vm101_vm10 = vcmp.gt.f32.partialorder %v85_v3, 0.0  ;;  %v117_v10 = vmul.f32 0.2, %v85_v3  ;;  %vm102_vm11 = vcmp.gt.f32.partialorder %v86_v5, 0.0  ;;  %v118_v11 = vmul.f32 0.2, %v86_v5 }
  0x15   :  { %v296_v52 = vld [vmem:[%s448_s0 + $0x30] sm:$0xff]   ;;  %vm103_vm12 = vcmp.gt.f32.partialorder %v87_v6, 0.0  ;;  %v119_v12 = vmul.f32 0.2, %v87_v6  ;;  %v132_v13 = vsel %vm100_vm9, %v84_v2, %v116_v9 }
  0x16   :  { %209 = vst.msk [vmem:[%s451_s3 + $0x10] sm:$0xf] %vm204_vm0, %v247_v44  ;;  %v285_v62 = vunpack.c.l.bf16 %v296_v52  ;;  %210 = vst.msk [vmem:[%s451_s3 + $0x14] sm:$0xf] %vm204_vm0, %v248_v55  ;;  %v286_v8 = vunpack.c.h.bf16 %v296_v52  ;;  %v133_v14 = vsel %vm101_vm10, %v85_v3, %v117_v10  ;;  %v251_v18 = vpack.c.bf16 %v132_v13, %v132_v13 }
  0x17   :  { %211 = vst.msk [vmem:[%s451_s3 + $0x18] sm:$0xf] %vm204_vm0, %v249_v63  ;;  %212 = vst.msk [vmem:[%s451_s3 + $0x1c] sm:$0xf] %vm204_vm0, %v250_v4  ;;  %v252_v19 = vpack.c.bf16 %v133_v14, %v133_v14  ;;  %v134_v20 = vsel %vm102_vm11, %v86_v5, %v118_v11  ;;  %v135_v21 = vsel %vm103_vm12, %v87_v6, %v119_v12 }
  0x18   :  { %v65_v15 = vmul.f32 %v285_v62, %v324_v1  ;;  %v66_v16 = vmul.f32 %v286_v8, %v324_v1  ;;  %v253_v22 = vpack.c.bf16 %v134_v20, %v134_v20  ;;  %v254_v23 = vpack.c.bf16 %v135_v21, %v135_v21 }
  0x1a   :  { %v88_v24 = vadd.f32 %v338_v7, %v65_v15  ;;  %v89_v25 = vadd.f32 %v338_v7, %v66_v16 }
  0x1c   :  { %vm104_vm13 = vcmp.gt.f32.partialorder %v88_v24, 0.0  ;;  %v120_v28 = vmul.f32 0.2, %v88_v24  ;;  %vm105_vm14 = vcmp.gt.f32.partialorder %v89_v25, 0.0  ;;  %v121_v29 = vmul.f32 0.2, %v89_v25 }
  0x1e   :  { %v297_v17 = vld [vmem:[%s448_s0 + $0x38] sm:$0xff]   ;;  %v136_v32 = vsel %vm104_vm13, %v88_v24, %v120_v28  ;;  %v137_v33 = vsel %vm105_vm14, %v89_v25, %v121_v29 }
  0x1f   :  { %213 = vst.msk [vmem:[%s451_s3 + $0x20] sm:$0xf] %vm204_vm0, %v251_v18  ;;  %214 = vst.msk [vmem:[%s451_s3 + $0x24] sm:$0xf] %vm204_vm0, %v252_v19  ;;  %v289_v26 = vunpack.c.l.bf16 %v297_v17  ;;  %v290_v27 = vunpack.c.h.bf16 %v297_v17  ;;  %v255_v34 = vpack.c.bf16 %v136_v32, %v136_v32  ;;  %v256_v35 = vpack.c.bf16 %v137_v33, %v137_v33 }
  0x20   :  { %215 = vst.msk [vmem:[%s451_s3 + $0x28] sm:$0xf] %vm204_vm0, %v253_v22  ;;  %216 = vst.msk [vmem:[%s451_s3 + $0x2c] sm:$0xf] %vm204_vm0, %v254_v23 }
  0x21   :  { %v67_v30 = vmul.f32 %v289_v26, %v324_v1  ;;  %v68_v31 = vmul.f32 %v290_v27, %v324_v1  ;;  %217 = vst.msk [vmem:[%s451_s3 + $0x30] sm:$0xf] %vm204_vm0, %v255_v34  ;;  %218 = vst.msk [vmem:[%s451_s3 + $0x34] sm:$0xf] %vm204_vm0, %v256_v35 }
  0x23   :  { %v90_v36 = vadd.f32 %v338_v7, %v67_v30  ;;  %v91_v37 = vadd.f32 %v338_v7, %v68_v31 }
  0x25   :  { %vm106_vm15 = vcmp.gt.f32.partialorder %v90_v36, 0.0  ;;  %v122_v1 = vmul.f32 0.2, %v90_v36  ;;  %vm107_vm1 = vcmp.gt.f32.partialorder %v91_v37, 0.0  ;;  %v123_v38 = vmul.f32 0.2, %v91_v37 }
  0x27   :  { %v138_v39 = vsel %vm106_vm15, %v90_v36, %v122_v1  ;;  %v139_v40 = vsel %vm107_vm1, %v91_v37, %v123_v38 }
  0x28   :  { %v257_v41 = vpack.c.bf16 %v138_v39, %v138_v39  ;;  %v258_v42 = vpack.c.bf16 %v139_v40, %v139_v40 }
  0x2a   :  { %219 = vst.msk [vmem:[%s451_s3 + $0x38] sm:$0xf] %vm204_vm0, %v257_v41  ;;  %220 = vst.msk [vmem:[%s451_s3 + $0x3c] sm:$0xf] %vm204_vm0, %v258_v42 }

// kernel: forward.10
= control target key start
LH: loop header
LB: loop body
LE: loop exit
PB: predicated region body
PF: predicated region fallthrough
CT: control target
= control target key end

     0   :  { %vm721_vm0 = vcmask 519168   ;;  %vm738_vm1 = vcmask 523264   ;;  %vm776_vm2 = vcmask 516096   ;;  %s1467_s1 = inlined_call_operand.vmem [shape: bf16[512,64], index: 1, kind: input, shape index: {}]   ;;  %s1468_s0 = inlined_call_operand.vmem [shape: bf16[128,512], index: 0, kind: input, shape index: {}]   ;;  %s1469_s2 = inlined_call_operand.vmem [shape: bf16[128,64], index: 2, kind: output, shape index: {0}]   ;;  %s1470_s3 = inlined_call_operand.vmem [shape: f32[1,1,64], index: 3, kind: output, shape index: {1}]   ;;  %s1471_s4 = inlined_call_operand.vmem [shape: f32[1,1,64], index: 4, kind: output, shape index: {2}]  }
   0x1   :  { %v1068_v0 = vld [vmem:[%s1467_s1 + $0x40] sm:$0xff]   ;;  %v1072_v4 = vld [vmem:[%s1467_s1 + $0x48] sm:$0xff]   ;;  %v1076_v8 = vld [vmem:[%s1467_s1 + $0x50] sm:$0xff]  }
   0x2   :  { %v1069_v1 = vld [vmem:[%s1467_s1 + $0xc0] sm:$0xff]   ;;  %940 = vmatprep.subr.bf16.mxu0 %v1068_v0  ;;  %v1073_v5 = vld [vmem:[%s1467_s1 + $0xc8] sm:$0xff]   ;;  %v1077_v9 = vld [vmem:[%s1467_s1 + $0xd0] sm:$0xff]  }
   0x3   :  { %v1070_v2 = vld [vmem:[%s1467_s1] sm:$0xff]   ;;  %1004 = vmatprep.subr.bf16.mxu1 %v1069_v1  ;;  %v1074_v6 = vld [vmem:[%s1467_s1 + $0x8] sm:$0xff]   ;;  %v1078_v10 = vld [vmem:[%s1467_s1 + $0x10] sm:$0xff]  }
   0x4   :  { %v1071_v3 = vld [vmem:[%s1467_s1 + $0x80] sm:$0xff]   ;;  %941 = vmatpush3.bf16.msra.mxu0 %v1070_v2  ;;  %v1075_v7 = vld [vmem:[%s1467_s1 + $0x88] sm:$0xff]   ;;  %v1079_v11 = vld [vmem:[%s1467_s1 + $0x90] sm:$0xff]  }
   0x5   :  { %1005 = vmatpush3.bf16.msra.mxu1 %v1071_v3  ;;  %942 = vmatprep.subr.bf16.mxu0 %v1072_v4  ;;  %v1080_v12 = vld [vmem:[%s1467_s1 + $0x58] sm:$0xff]   ;;  %v1084_v16 = vld [vmem:[%s1467_s1 + $0x60] sm:$0xff]   ;;  %v1088_v20 = vld [vmem:[%s1467_s1 + $0x68] sm:$0xff]  }
   0x6   :  { %1006 = vmatprep.subr.bf16.mxu1 %v1073_v5  ;;  %v1081_v13 = vld [vmem:[%s1467_s1 + $0xd8] sm:$0xff]   ;;  %v1085_v17 = vld [vmem:[%s1467_s1 + $0xe0] sm:$0xff]   ;;  %v1089_v21 = vld [vmem:[%s1467_s1 + $0xe8] sm:$0xff]  }
   0x7   :  { %v1082_v14 = vld [vmem:[%s1467_s1 + $0x18] sm:$0xff]   ;;  %v1086_v18 = vld [vmem:[%s1467_s1 + $0x20] sm:$0xff]   ;;  %v1090_v22 = vld [vmem:[%s1467_s1 + $0x28] sm:$0xff]  }
   0x8   :  { %943 = vmatpush3.bf16.msra.mxu0 %v1074_v6  ;;  %v1083_v15 = vld [vmem:[%s1467_s1 + $0x98] sm:$0xff]   ;;  %v1087_v19 = vld [vmem:[%s1467_s1 + $0xa0] sm:$0xff]   ;;  %v1091_v23 = vld [vmem:[%s1467_s1 + $0xa8] sm:$0xff]  }
   0x9   :  { %1007 = vmatpush3.bf16.msra.mxu1 %v1075_v7  ;;  %944 = vmatprep.subr.bf16.mxu0 %v1076_v8  ;;  %v1092_v24 = vld [vmem:[%s1467_s1 + $0x70] sm:$0xff]   ;;  %v1096_v28 = vld [vmem:[%s1467_s1 + $0x78] sm:$0xff]  }
   0xa   :  { %1008 = vmatprep.subr.bf16.mxu1 %v1077_v9  ;;  %v1093_v25 = vld [vmem:[%s1467_s1 + $0xf0] sm:$0xff]   ;;  %v1097_v29 = vld [vmem:[%s1467_s1 + $0xf8] sm:$0xff]  }
   0xb   :  { %v1094_v26 = vld [vmem:[%s1467_s1 + $0x30] sm:$0xff]   ;;  %v1098_v30 = vld [vmem:[%s1467_s1 + $0x38] sm:$0xff]  }
   0xc   :  { %945 = vmatpush3.bf16.msra.mxu0 %v1078_v10  ;;  %v1095_v27 = vld [vmem:[%s1467_s1 + $0xb0] sm:$0xff]   ;;  %v1099_v31 = vld [vmem:[%s1467_s1 + $0xb8] sm:$0xff]  }
   0xd   :  { %1009 = vmatpush3.bf16.msra.mxu1 %v1079_v11  ;;  %946 = vmatprep.subr.bf16.mxu0 %v1080_v12  ;;  %v1100_v32 = vld [vmem:[%s1468_s0] ss:$16 sps:$4 sm:$0xff]   ;;  %v1102_v33 = vld [vmem:[%s1468_s0 + $0x4] ss:$16 sps:$4 sm:$0xff]   ;;  %v1103_v34 = vld [vmem:[%s1468_s0 + $0x8] ss:$16 sps:$4 sm:$0xff]  }
   0xe   :  { %1010 = vmatprep.subr.bf16.mxu1 %v1081_v13  ;;  %v1105_v35 = vld [vmem:[%s1468_s0 + $0xc] ss:$16 sps:$4 sm:$0xff]   ;;  %495 = vmatprep.mubr.bf16.mxu0 %v1102_v33  ;;  %v1106_v36 = vld [vmem:[%s1468_s0 + $0x24] ss:$16 sps:$4 sm:$0xff]   ;;  %v1110_v38 = vld [vmem:[%s1468_s0 + $0x20] ss:$16 sps:$4 sm:$0xff]  }
   0xf   :  { %592 = vmatprep.mubr.bf16.mxu1 %v1105_v35  ;;  %v1108_v37 = vld [vmem:[%s1468_s0 + $0x2c] ss:$16 sps:$4 sm:$0xff]   ;;  %v1111_v39 = vld [vmem:[%s1468_s0 + $0x28] ss:$16 sps:$4 sm:$0xff]   ;;  %v1112_v40 = vld [vmem:[%s1468_s0 + $0x44] ss:$16 sps:$4 sm:$0xff]  }
  0x10   :  { %947 = vmatpush3.bf16.msra.mxu0 %v1082_v14  ;;  %v1114_v41 = vld [vmem:[%s1468_s0 + $0x4c] ss:$16 sps:$4 sm:$0xff]   ;;  %v1116_v42 = vld [vmem:[%s1468_s0 + $0x40] ss:$16 sps:$4 sm:$0xff]   ;;  %v1117_v43 = vld [vmem:[%s1468_s0 + $0x48] ss:$16 sps:$4 sm:$0xff]  }
  0x11   :  { %1011 = vmatpush3.bf16.msra.mxu1 %v1083_v15  ;;  %948 = vmatprep.subr.bf16.mxu0 %v1084_v16  ;;  %v1118_v44 = vld [vmem:[%s1468_s0 + $0x64] ss:$16 sps:$4 sm:$0xff]   ;;  %v1120_v45 = vld [vmem:[%s1468_s0 + $0x6c] ss:$16 sps:$4 sm:$0xff]   ;;  %v1122_v46 = vld [vmem:[%s1468_s0 + $0x60] ss:$16 sps:$4 sm:$0xff]  }
  0x12   :  { %1012 = vmatprep.subr.bf16.mxu1 %v1085_v17  ;;  %v1123_v47 = vld [vmem:[%s1468_s0 + $0x68] ss:$16 sps:$4 sm:$0xff]   ;;  %v1124_v48 = vld [vmem:[%s1468_s0 + $0x84] ss:$16 sps:$4 sm:$0xff]   ;;  %v1126_v49 = vld [vmem:[%s1468_s0 + $0x8c] ss:$16 sps:$4 sm:$0xff]  }
  0x13   :  { %v1128_v50 = vld [vmem:[%s1468_s0 + $0x80] ss:$16 sps:$4 sm:$0xff]   ;;  %v1129_v51 = vld [vmem:[%s1468_s0 + $0x88] ss:$16 sps:$4 sm:$0xff]   ;;  %v1130_v52 = vld [vmem:[%s1468_s0 + $0xa4] ss:$16 sps:$4 sm:$0xff]  }
  0x14   :  { %949 = vmatpush3.bf16.msra.mxu0 %v1086_v18  ;;  %v1132_v53 = vld [vmem:[%s1468_s0 + $0xac] ss:$16 sps:$4 sm:$0xff]   ;;  %v1134_v54 = vld [vmem:[%s1468_s0 + $0xa0] ss:$16 sps:$4 sm:$0xff]   ;;  %v1135_v55 = vld [vmem:[%s1468_s0 + $0xa8] ss:$16 sps:$4 sm:$0xff]  }
  0x15   :  { %1013 = vmatpush3.bf16.msra.mxu1 %v1087_v19  ;;  %950 = vmatprep.subr.bf16.mxu0 %v1088_v20  ;;  %v1136_v56 = vld [vmem:[%s1468_s0 + $0xc4] ss:$16 sps:$4 sm:$0xff]   ;;  %v1138_v57 = vld [vmem:[%s1468_s0 + $0xcc] ss:$16 sps:$4 sm:$0xff]   ;;  %v1140_v58 = vld [vmem:[%s1468_s0 + $0xc0] ss:$16 sps:$4 sm:$0xff]  }
  0x16   :  { %1014 = vmatprep.subr.bf16.mxu1 %v1089_v21  ;;  %v1141_v59 = vld [vmem:[%s1468_s0 + $0xc8] ss:$16 sps:$4 sm:$0xff]   ;;  %v1142_v60 = vld [vmem:[%s1468_s0 + $0xe4] ss:$16 sps:$4 sm:$0xff]   ;;  %v1144_v61 = vld [vmem:[%s1468_s0 + $0xec] ss:$16 sps:$4 sm:$0xff]  }
  0x17   :  { %v1146_v62 = vld [vmem:[%s1468_s0 + $0xe0] ss:$16 sps:$4 sm:$0xff]   ;;  %v1147_v63 = vld [vmem:[%s1468_s0 + $0xe8] ss:$16 sps:$4 sm:$0xff]  }
  0x18   :  { %951 = vmatpush3.bf16.msra.mxu0 %v1090_v22 }
  0x19   :  { %1015 = vmatpush3.bf16.msra.mxu1 %v1091_v23  ;;  %952 = vmatprep.subr.bf16.mxu0 %v1092_v24 }
  0x1a   :  { %1016 = vmatprep.subr.bf16.mxu1 %v1093_v25 }
  0x1c   :  { %953 = vmatpush3.bf16.msra.mxu0 %v1094_v26 }
  0x1d   :  { %1017 = vmatpush3.bf16.msra.mxu1 %v1095_v27  ;;  %954 = vmatprep.subr.bf16.mxu0 %v1096_v28 }
  0x1e   :  { %1018 = vmatprep.subr.bf16.mxu1 %v1097_v29 }
  0x20   :  { %955 = vmatpush3.bf16.msra.mxu0 %v1098_v30 }
  0x21   :  { %1019 = vmatpush3.bf16.msra.mxu1 %v1099_v31 }
  0x23   :  { %496 = vmatmul.mubr.bf16.vlgmr.msra.gmra.mrb[0].mxu0 %v1100_v32 }
  0x24   :  { %593 = vmatmul.mubr.bf16.vlgmr.msra.gmra.mrb[0].mxu1 %v1103_v34  ;;  %503 = vmatprep.mubr.bf16.mxu0 %v1106_v36 }
  0x25   :  { %600 = vmatprep.mubr.bf16.mxu1 %v1108_v37 }
  0x2b   :  { %504 = vmatmul.mubr.bf16.gmra.mrb[4].mxu0 %v1110_v38 }
  0x2c   :  { %601 = vmatmul.mubr.bf16.gmra.mrb[4].mxu1 %v1111_v39  ;;  %511 = vmatprep.mubr.bf16.mxu0 %v1112_v40 }
  0x2d   :  { %608 = vmatprep.mubr.bf16.mxu1 %v1114_v41 }
  0x33   :  { %512 = vmatmul.mubr.bf16.gmra.mrb[8].mxu0 %v1116_v42 }
  0x34   :  { %609 = vmatmul.mubr.bf16.gmra.mrb[8].mxu1 %v1117_v43  ;;  %519 = vmatprep.mubr.bf16.mxu0 %v1118_v44 }
  0x35   :  { %616 = vmatprep.mubr.bf16.mxu1 %v1120_v45 }
  0x3b   :  { %520 = vmatmul.mubr.bf16.gmra.mrb[12].mxu0 %v1122_v46 }
  0x3c   :  { %617 = vmatmul.mubr.bf16.gmra.mrb[12].mxu1 %v1123_v47  ;;  %527 = vmatprep.mubr.bf16.mxu0 %v1124_v48 }
  0x3d   :  { %624 = vmatprep.mubr.bf16.mxu1 %v1126_v49 }
  0x43   :  { %528 = vmatmul.mubr.bf16.gmra.mrb[16].mxu0 %v1128_v50 }
  0x44   :  { %625 = vmatmul.mubr.bf16.gmra.mrb[16].mxu1 %v1129_v51  ;;  %535 = vmatprep.mubr.bf16.mxu0 %v1130_v52 }
  0x45   :  { %632 = vmatprep.mubr.bf16.mxu1 %v1132_v53 }
  0x4b   :  { %536 = vmatmul.mubr.bf16.gmra.mrb[20].mxu0 %v1134_v54 }
  0x4c   :  { %633 = vmatmul.mubr.bf16.gmra.mrb[20].mxu1 %v1135_v55  ;;  %543 = vmatprep.mubr.bf16.mxu0 %v1136_v56 }
  0x4d   :  { %640 = vmatprep.mubr.bf16.mxu1 %v1138_v57 }
  0x53   :  { %544 = vmatmul.mubr.bf16.gmra.mrb[24].mxu0 %v1140_v58 }
  0x54   :  { %641 = vmatmul.mubr.bf16.gmra.mrb[24].mxu1 %v1141_v59  ;;  %551 = vmatprep.mubr.bf16.mxu0 %v1142_v60 }
  0x55   :  { %648 = vmatprep.mubr.bf16.mxu1 %v1144_v61 }
  0x5b   :  { %552 = vmatmul.mubr.bf16.gmra.mrb[28].mxu0 %v1146_v62 }
  0x5c   :  { %649 = vmatmul.mubr.bf16.gmra.mrb[28].mxu1 %v1147_v63 }
  0xf6   :  { %v956_v0 = vpop.f32.mrb[0].mxu0 }
  0xf7   :  { %v1020_v1 = vpop.f32.mrb[0].mxu1  ;;  %v957_v2 = vpop.f32.mrb[1].mxu0 }
  0xf8   :  { %v958_v3 = vadd.f32 %v957_v2, %v956_v0  ;;  %v1021_v4 = vpop.f32.mrb[1].mxu1  ;;  %v959_v5 = vpop.f32.mrb[2].mxu0 }
  0xf9   :  { %v1022_v6 = vadd.f32 %v1021_v4, %v1020_v1  ;;  %v1023_v7 = vpop.f32.mrb[2].mxu1  ;;  %v960_v8 = vpop.f32.mrb[3].mxu0 }
  0xfa   :  { %v961_v9 = vadd.f32 %v960_v8, %v959_v5  ;;  %v1024_v10 = vpop.f32.mrb[3].mxu1 }
  0xfb   :  { %v595_v11 = vadd.f32 %v1022_v6, %v958_v3  ;;  %v1025_v12 = vadd.f32 %v1024_v10, %v1023_v7 }
  0xfd   :  { %v924_v13 = vpack.c.bf16 %v595_v11, %v595_v11  ;;  %v778_v14 = vmul.f32 %v595_v11, %v595_v11  ;;  %v598_v15 = vadd.f32 %v1025_v12, %v961_v9  ;;  %v739_v17 = vsel %vm738_vm1, %v595_v11, 0.0 }
  0xfe   :  { %v962_v16 = vpop.f32.mrb[4].mxu0 }
  0xff   :  { %722 = vst.msk [vmem:[%s1469_s2] sm:$0xf] %vm721_vm0, %v924_v13  ;;  %v925_v18 = vpack.c.bf16 %v598_v15, %v598_v15  ;;  %v740_v19 = vsel %vm738_vm1, %v598_v15, 0.0  ;;  %v779_v20 = vmul.f32 %v598_v15, %v598_v15  ;;  %v1026_v21 = vpop.f32.mrb[4].mxu1  ;;  %v963_v22 = vpop.f32.mrb[5].mxu0  ;;  %v794_v27 = vsel %vm738_vm1, %v778_v14, 0.0 }
 0x100   :  { %v741_v23 = vadd.f32 %v740_v19, %v739_v17  ;;  %v964_v24 = vadd.f32 %v963_v22, %v962_v16  ;;  %v1027_v25 = vpop.f32.mrb[5].mxu1  ;;  %v965_v26 = vpop.f32.mrb[6].mxu0 }
 0x101   :  { %723 = vst.msk [vmem:[%s1469_s2 + $0x4] sm:$0xf] %vm721_vm0, %v925_v18  ;;  %v795_v28 = vsel %vm738_vm1, %v779_v20, 0.0  ;;  %v1028_v29 = vadd.f32 %v1027_v25, %v1026_v21  ;;  %v1029_v30 = vpop.f32.mrb[6].mxu1  ;;  %v966_v31 = vpop.f32.mrb[7].mxu0 }
 0x102   :  { %v796_v32 = vadd.f32 %v795_v28, %v794_v27  ;;  %v967_v33 = vadd.f32 %v966_v31, %v965_v26  ;;  %v1030_v34 = vpop.f32.mrb[7].mxu1 }
 0x103   :  { %v603_v35 = vadd.f32 %v1028_v29, %v964_v24  ;;  %v1031_v36 = vadd.f32 %v1030_v34, %v1029_v30 }
 0x105   :  { %v926_v37 = vpack.c.bf16 %v603_v35, %v603_v35  ;;  %v742_v38 = vsel %vm738_vm1, %v603_v35, 0.0  ;;  %v780_v39 = vmul.f32 %v603_v35, %v603_v35  ;;  %v606_v40 = vadd.f32 %v1031_v36, %v967_v33 }
 0x106   :  { %v743_v41 = vadd.f32 %v742_v38, %v741_v23  ;;  %v968_v42 = vpop.f32.mrb[8].mxu0 }
 0x107   :  { %724 = vst.msk [vmem:[%s1469_s2 + $0x8] sm:$0xf] %vm721_vm0, %v926_v37  ;;  %v797_v43 = vsel %vm738_vm1, %v780_v39, 0.0  ;;  %v927_v44 = vpack.c.bf16 %v606_v40, %v606_v40  ;;  %v744_v45 = vsel %vm738_vm1, %v606_v40, 0.0  ;;  %v781_v46 = vmul.f32 %v606_v40, %v606_v40  ;;  %v1032_v47 = vpop.f32.mrb[8].mxu1  ;;  %v969_v48 = vpop.f32.mrb[9].mxu0 }
 0x108   :  { %v798_v49 = vadd.f32 %v797_v43, %v796_v32  ;;  %v745_v50 = vadd.f32 %v744_v45, %v743_v41  ;;  %v970_v51 = vadd.f32 %v969_v48, %v968_v42  ;;  %v1033_v52 = vpop.f32.mrb[9].mxu1  ;;  %v971_v53 = vpop.f32.mrb[10].mxu0 }
 0x109   :  { %725 = vst.msk [vmem:[%s1469_s2 + $0xc] sm:$0xf] %vm721_vm0, %v927_v44  ;;  %v799_v54 = vsel %vm738_vm1, %v781_v46, 0.0  ;;  %v1034_v55 = vadd.f32 %v1033_v52, %v1032_v47  ;;  %v1035_v56 = vpop.f32.mrb[10].mxu1  ;;  %v972_v57 = vpop.f32.mrb[11].mxu0 }
 0x10a   :  { %v800_v58 = vadd.f32 %v799_v54, %v798_v49  ;;  %v973_v59 = vadd.f32 %v972_v57, %v971_v53  ;;  %v1036_v60 = vpop.f32.mrb[11].mxu1 }
 0x10b   :  { %v611_v61 = vadd.f32 %v1034_v55, %v970_v51  ;;  %v1037_v62 = vadd.f32 %v1036_v60, %v1035_v56 }
 0x10d   :  { %v928_v63 = vpack.c.bf16 %v611_v61, %v611_v61  ;;  %v746_v0 = vsel %vm738_vm1, %v611_v61, 0.0  ;;  %v782_v1 = vmul.f32 %v611_v61, %v611_v61  ;;  %v614_v2 = vadd.f32 %v1037_v62, %v973_v59 }
 0x10e   :  { %v747_v3 = vadd.f32 %v746_v0, %v745_v50  ;;  %v974_v4 = vpop.f32.mrb[12].mxu0 }
 0x10f   :  { %726 = vst.msk [vmem:[%s1469_s2 + $0x10] sm:$0xf] %vm721_vm0, %v928_v63  ;;  %v801_v5 = vsel %vm738_vm1, %v782_v1, 0.0  ;;  %v929_v6 = vpack.c.bf16 %v614_v2, %v614_v2  ;;  %v748_v7 = vsel %vm738_vm1, %v614_v2, 0.0  ;;  %v783_v8 = vmul.f32 %v614_v2, %v614_v2  ;;  %v1038_v9 = vpop.f32.mrb[12].mxu1  ;;  %v975_v10 = vpop.f32.mrb[13].mxu0 }
 0x110   :  { %v802_v11 = vadd.f32 %v801_v5, %v800_v58  ;;  %v749_v12 = vadd.f32 %v748_v7, %v747_v3  ;;  %v976_v13 = vadd.f32 %v975_v10, %v974_v4  ;;  %v1039_v14 = vpop.f32.mrb[13].mxu1  ;;  %v977_v15 = vpop.f32.mrb[14].mxu0 }
 0x111   :  { %727 = vst.msk [vmem:[%s1469_s2 + $0x14] sm:$0xf] %vm721_vm0, %v929_v6  ;;  %v803_v16 = vsel %vm738_vm1, %v783_v8, 0.0  ;;  %v1040_v17 = vadd.f32 %v1039_v14, %v1038_v9  ;;  %v1041_v18 = vpop.f32.mrb[14].mxu1  ;;  %v978_v19 = vpop.f32.mrb[15].mxu0 }
 0x112   :  { %v804_v20 = vadd.f32 %v803_v16, %v802_v11  ;;  %v979_v21 = vadd.f32 %v978_v19, %v977_v15  ;;  %v1042_v22 = vpop.f32.mrb[15].mxu1 }
 0x113   :  { %v619_v23 = vadd.f32 %v1040_v17, %v976_v13  ;;  %v1043_v24 = vadd.f32 %v1042_v22, %v1041_v18 }
 0x115   :  { %v930_v25 = vpack.c.bf16 %v619_v23, %v619_v23  ;;  %v750_v26 = vsel %vm738_vm1, %v619_v23, 0.0  ;;  %v784_v27 = vmul.f32 %v619_v23, %v619_v23  ;;  %v622_v28 = vadd.f32 %v1043_v24, %v979_v21 }
 0x116   :  { %v751_v29 = vadd.f32 %v750_v26, %v749_v12  ;;  %v980_v30 = vpop.f32.mrb[16].mxu0 }
 0x117   :  { %728 = vst.msk [vmem:[%s1469_s2 + $0x18] sm:$0xf] %vm721_vm0, %v930_v25  ;;  %v805_v31 = vsel %vm738_vm1, %v784_v27, 0.0  ;;  %v931_v32 = vpack.c.bf16 %v622_v28, %v622_v28  ;;  %v752_v33 = vsel %vm738_vm1, %v622_v28, 0.0  ;;  %v785_v34 = vmul.f32 %v622_v28, %v622_v28  ;;  %v1044_v35 = vpop.f32.mrb[16].mxu1  ;;  %v981_v36 = vpop.f32.mrb[17].mxu0 }
 0x118   :  { %v806_v37 = vadd.f32 %v805_v31, %v804_v20  ;;  %v753_v38 = vadd.f32 %v752_v33, %v751_v29  ;;  %v982_v39 = vadd.f32 %v981_v36, %v980_v30  ;;  %v1045_v40 = vpop.f32.mrb[17].mxu1  ;;  %v983_v41 = vpop.f32.mrb[18].mxu0 }
 0x119   :  { %729 = vst.msk [vmem:[%s1469_s2 + $0x1c] sm:$0xf] %vm721_vm0, %v931_v32  ;;  %v807_v42 = vsel %vm738_vm1, %v785_v34, 0.0  ;;  %v1046_v43 = vadd.f32 %v1045_v40, %v1044_v35  ;;  %v1047_v44 = vpop.f32.mrb[18].mxu1  ;;  %v984_v45 = vpop.f32.mrb[19].mxu0 }
 0x11a   :  { %v808_v46 = vadd.f32 %v807_v42, %v806_v37  ;;  %v985_v47 = vadd.f32 %v984_v45, %v983_v41  ;;  %v1048_v48 = vpop.f32.mrb[19].mxu1 }
 0x11b   :  { %v627_v49 = vadd.f32 %v1046_v43, %v982_v39  ;;  %v1049_v50 = vadd.f32 %v1048_v48, %v1047_v44 }
 0x11d   :  { %v932_v51 = vpack.c.bf16 %v627_v49, %v627_v49  ;;  %v754_v52 = vsel %vm738_vm1, %v627_v49, 0.0  ;;  %v786_v53 = vmul.f32 %v627_v49, %v627_v49  ;;  %v630_v54 = vadd.f32 %v1049_v50, %v985_v47 }
 0x11e   :  { %v755_v55 = vadd.f32 %v754_v52, %v753_v38  ;;  %v986_v56 = vpop.f32.mrb[20].mxu0 }
 0x11f   :  { %730 = vst.msk [vmem:[%s1469_s2 + $0x20] sm:$0xf] %vm721_vm0, %v932_v51  ;;  %v809_v57 = vsel %vm738_vm1, %v786_v53, 0.0  ;;  %v933_v58 = vpack.c.bf16 %v630_v54, %v630_v54  ;;  %v756_v59 = vsel %vm738_vm1, %v630_v54, 0.0  ;;  %v787_v60 = vmul.f32 %v630_v54, %v630_v54  ;;  %v1050_v61 = vpop.f32.mrb[20].mxu1  ;;  %v987_v62 = vpop.f32.mrb[21].mxu0 }
 0x120   :  { %v810_v63 = vadd.f32 %v809_v57, %v808_v46  ;;  %v757_v0 = vadd.f32 %v756_v59, %v755_v55  ;;  %v988_v1 = vadd.f32 %v987_v62, %v986_v56  ;;  %v1051_v2 = vpop.f32.mrb[21].mxu1  ;;  %v989_v3 = vpop.f32.mrb[22].mxu0 }
 0x121   :  { %731 = vst.msk [vmem:[%s1469_s2 + $0x24] sm:$0xf] %vm721_vm0, %v933_v58  ;;  %v811_v4 = vsel %vm738_vm1, %v787_v60, 0.0  ;;  %v1052_v5 = vadd.f32 %v1051_v2, %v1050_v61  ;;  %v1053_v6 = vpop.f32.mrb[22].mxu1  ;;  %v990_v7 = vpop.f32.mrb[23].mxu0 }
 0x122   :  { %v812_v8 = vadd.f32 %v811_v4, %v810_v63  ;;  %v991_v9 = vadd.f32 %v990_v7, %v989_v3  ;;  %v1054_v10 = vpop.f32.mrb[23].mxu1 }
 0x123   :  { %v635_v11 = vadd.f32 %v1052_v5, %v988_v1  ;;  %v1055_v12 = vadd.f32 %v1054_v10, %v1053_v6 }
 0x125   :  { %v934_v13 = vpack.c.bf16 %v635_v11, %v635_v11  ;;  %v758_v14 = vsel %vm738_vm1, %v635_v11, 0.0  ;;  %v788_v15 = vmul.f32 %v635_v11, %v635_v11  ;;  %v638_v16 = vadd.f32 %v1055_v12, %v991_v9 }
 0x126   :  { %v759_v17 = vadd.f32 %v758_v14, %v757_v0  ;;  %v992_v18 = vpop.f32.mrb[24].mxu0 }
 0x127   :  { %732 = vst.msk [vmem:[%s1469_s2 + $0x28] sm:$0xf] %vm721_vm0, %v934_v13  ;;  %v813_v19 = vsel %vm738_vm1, %v788_v15, 0.0  ;;  %v935_v20 = vpack.c.bf16 %v638_v16, %v638_v16  ;;  %v760_v21 = vsel %vm738_vm1, %v638_v16, 0.0  ;;  %v789_v22 = vmul.f32 %v638_v16, %v638_v16  ;;  %v1056_v23 = vpop.f32.mrb[24].mxu1  ;;  %v993_v24 = vpop.f32.mrb[25].mxu0 }
 0x128   :  { %v814_v25 = vadd.f32 %v813_v19, %v812_v8  ;;  %v761_v26 = vadd.f32 %v760_v21, %v759_v17  ;;  %v994_v27 = vadd.f32 %v993_v24, %v992_v18  ;;  %v1057_v28 = vpop.f32.mrb[25].mxu1  ;;  %v995_v29 = vpop.f32.mrb[26].mxu0 }
 0x129   :  { %733 = vst.msk [vmem:[%s1469_s2 + $0x2c] sm:$0xf] %vm721_vm0, %v935_v20  ;;  %v815_v30 = vsel %vm738_vm1, %v789_v22, 0.0  ;;  %v1058_v31 = vadd.f32 %v1057_v28, %v1056_v23  ;;  %v1059_v32 = vpop.f32.mrb[26].mxu1  ;;  %v996_v33 = vpop.f32.mrb[27].mxu0 }
 0x12a   :  { %v816_v34 = vadd.f32 %v815_v30, %v814_v25  ;;  %v997_v35 = vadd.f32 %v996_v33, %v995_v29  ;;  %v1060_v36 = vpop.f32.mrb[27].mxu1 }
 0x12b   :  { %v643_v37 = vadd.f32 %v1058_v31, %v994_v27  ;;  %v1061_v38 = vadd.f32 %v1060_v36, %v1059_v32 }
 0x12d   :  { %v936_v39 = vpack.c.bf16 %v643_v37, %v643_v37  ;;  %v762_v40 = vsel %vm738_vm1, %v643_v37, 0.0  ;;  %v790_v41 = vmul.f32 %v643_v37, %v643_v37  ;;  %v646_v42 = vadd.f32 %v1061_v38, %v997_v35 }
 0x12e   :  { %v763_v43 = vadd.f32 %v762_v40, %v761_v26  ;;  %v998_v44 = vpop.f32.mrb[28].mxu0 }
 0x12f   :  { %734 = vst.msk [vmem:[%s1469_s2 + $0x30] sm:$0xf] %vm721_vm0, %v936_v39  ;;  %v817_v45 = vsel %vm738_vm1, %v790_v41, 0.0  ;;  %v937_v46 = vpack.c.bf16 %v646_v42, %v646_v42  ;;  %v764_v47 = vsel %vm738_vm1, %v646_v42, 0.0  ;;  %v791_v48 = vmul.f32 %v646_v42, %v646_v42  ;;  %v1062_v49 = vpop.f32.mrb[28].mxu1  ;;  %v999_v50 = vpop.f32.mrb[29].mxu0 }
 0x130   :  { %v818_v51 = vadd.f32 %v817_v45, %v816_v34  ;;  %v765_v52 = vadd.f32 %v764_v47, %v763_v43  ;;  %v1000_v53 = vadd.f32 %v999_v50, %v998_v44  ;;  %v1063_v54 = vpop.f32.mrb[29].mxu1  ;;  %v1001_v55 = vpop.f32.mrb[30].mxu0 }
 0x131   :  { %735 = vst.msk [vmem:[%s1469_s2 + $0x34] sm:$0xf] %vm721_vm0, %v937_v46  ;;  %v819_v56 = vsel %vm738_vm1, %v791_v48, 0.0  ;;  %v1064_v57 = vadd.f32 %v1063_v54, %v1062_v49  ;;  %v1065_v58 = vpop.f32.mrb[30].mxu1  ;;  %v1002_v59 = vpop.f32.mrb[31].mxu0 }
 0x132   :  { %v820_v60 = vadd.f32 %v819_v56, %v818_v51  ;;  %v1003_v61 = vadd.f32 %v1002_v59, %v1001_v55  ;;  %v1066_v62 = vpop.f32.mrb[31].mxu1 }
 0x133   :  { %v651_v63 = vadd.f32 %v1064_v57, %v1000_v53  ;;  %v1067_v0 = vadd.f32 %v1066_v62, %v1065_v58 }
 0x135   :  { %v938_v1 = vpack.c.bf16 %v651_v63, %v651_v63  ;;  %v766_v2 = vsel %vm738_vm1, %v651_v63, 0.0  ;;  %v792_v3 = vmul.f32 %v651_v63, %v651_v63  ;;  %v654_v4 = vadd.f32 %v1067_v0, %v1003_v61 }
 0x136   :  { %v767_v5 = vadd.f32 %v766_v2, %v765_v52 }
 0x137   :  { %736 = vst.msk [vmem:[%s1469_s2 + $0x38] sm:$0xf] %vm721_vm0, %v938_v1  ;;  %v821_v6 = vsel %vm738_vm1, %v792_v3, 0.0  ;;  %v939_v7 = vpack.c.bf16 %v654_v4, %v654_v4  ;;  %v768_v8 = vsel %vm738_vm1, %v654_v4, 0.0  ;;  %v793_v9 = vmul.f32 %v654_v4, %v654_v4 }
 0x138   :  { %v822_v10 = vadd.f32 %v821_v6, %v820_v60  ;;  %v769_v11 = vadd.f32 %v768_v8, %v767_v5 }
 0x139   :  { %737 = vst.msk [vmem:[%s1469_s2 + $0x3c] sm:$0xf] %vm721_vm0, %v939_v7  ;;  %v823_v12 = vsel %vm738_vm1, %v793_v9, 0.0 }
 0x13a   :  { %v770_v13 = vrot.slane %v769_v11, 4  ;;  %v824_v14 = vadd.f32 %v823_v12, %v822_v10 }
 0x13c   :  { %v771_v15 = vadd.f32 %v770_v13, %v769_v11  ;;  %v825_v16 = vrot.slane %v824_v14, 4 }
 0x13e   :  { %v772_v17 = vrot.slane %v771_v15, 2  ;;  %v826_v18 = vadd.f32 %v825_v16, %v824_v14 }
 0x140   :  { %v773_v19 = vadd.f32 %v772_v17, %v771_v15  ;;  %v827_v20 = vrot.slane %v826_v18, 2 }
 0x142   :  { %v774_v21 = vrot.slane %v773_v19, 1  ;;  %v828_v22 = vadd.f32 %v827_v20, %v826_v18 }
 0x144   :  { %v775_v23 = vadd.f32 %v774_v21, %v773_v19  ;;  %v829_v24 = vrot.slane %v828_v22, 1 }
 0x146   :  { %777 = vst.msk [vmem:[%s1470_s3] sm:$0x1] %vm776_vm2, %v775_v23  ;;  %v830_v25 = vadd.f32 %v829_v24, %v828_v22 }
 0x148   :  { %831 = vst.msk [vmem:[%s1471_s4] sm:$0x1] %vm776_vm2, %v830_v25 }

// kernel: forward.13
= control target key start
LH: loop header
LB: loop body
LE: loop exit
PB: predicated region body
PF: predicated region fallthrough
CT: control target
= control target key end

     0   :  { %s148_s0 = inlined_call_operand.vmem [shape: bf16[32,128], index: 0, kind: input, shape index: {}, may-alias: {0,3}]   ;;  %s149_s1 = inlined_call_operand.vmem [shape: f32[1,128], index: 1, kind: input, shape index: {}]   ;;  %s150_s2 = inlined_call_operand.vmem [shape: f32[1,128], index: 2, kind: input, shape index: {}]   ;;  %s151_s3 = inlined_call_operand.vmem [shape: bf16[32,128], index: 3, kind: output, shape index: {}, may-alias: {0,3}]  }
   0x1   :  { %v83_v0 = vld [vmem:[%s148_s0] sm:$0xff]   ;;  %v100_v4 = vld [vmem:[%s148_s0 + $0x8] sm:$0xff]  }
   0x2   :  { %v72_v1 = vld [vmem:[%s149_s1] ss:$0 sm:$0xff]  ;;  %v84_v2 = vunpack.c.l.bf16 %v83_v0  ;;  %v85_v3 = vunpack.c.h.bf16 %v83_v0  ;;  %v88_v6 = vunpack.c.l.bf16 %v100_v4  ;;  %v89_v7 = vunpack.c.h.bf16 %v100_v4 }
   0x3   :  { %v73_v5 = vld [vmem:[%s150_s2] ss:$0 sm:$0xff] }
   0x4   :  { %v29_v8 = vmul.f32 %v84_v2, %v72_v1  ;;  %v30_v9 = vmul.f32 %v85_v3, %v72_v1  ;;  %v31_v10 = vmul.f32 %v88_v6, %v72_v1  ;;  %v32_v11 = vmul.f32 %v89_v7, %v72_v1 }
   0x6   :  { %v40_v12 = vadd.f32 %v73_v5, %v29_v8  ;;  %v41_v13 = vadd.f32 %v73_v5, %v30_v9  ;;  %v42_v14 = vadd.f32 %v73_v5, %v31_v10  ;;  %v43_v15 = vadd.f32 %v73_v5, %v32_v11 }
   0x8   :  { %102 = vtanh.f32 %v40_v12 }
   0x9   :  { %104 = vtanh.f32 %v41_v13 }
   0xa   :  { %106 = vtanh.f32 %v42_v14 }
   0xb   :  { %108 = vtanh.f32 %v43_v15 }
  0x12   :  { %v103_v16 = vpop.eup %102 }
  0x13   :  { %v105_v17 = vpop.eup %104 }
  0x14   :  { %v107_v18 = vpop.eup %106  ;;  %v93_v19 = vpack.c.bf16 %v105_v17, %v103_v16 }
  0x15   :  { %v109_v20 = vpop.eup %108 }
  0x16   :  { %94 = vst [vmem:[%s151_s3] sm:$0xff] %v93_v19   ;;  %v98_v21 = vpack.c.bf16 %v109_v20, %v107_v18 }
  0x18   :  { %101 = vst [vmem:[%s151_s3 + $0x8] sm:$0xff] %v98_v21  }

// kernel: forward.12
= control target key start
LH: loop header
LB: loop body
LE: loop exit
PB: predicated region body
PF: predicated region fallthrough
CT: control target
= control target key end

     0   :  { %s1427_s1 = inlined_call_operand.vmem [shape: bf16[1024,128], index: 1, kind: input, shape index: {}]   ;;  %s1428_s0 = inlined_call_operand.vmem [shape: bf16[32,1024], index: 0, kind: input, shape index: {}]   ;;  %s1429_s2 = inlined_call_operand.vmem [shape: bf16[32,128], index: 2, kind: output, shape index: {0}]   ;;  %s1430_s3 = inlined_call_operand.vmem [shape: f32[1,1,128], index: 3, kind: output, shape index: {1}]   ;;  %s1431_s4 = inlined_call_operand.vmem [shape: f32[1,1,128], index: 4, kind: output, shape index: {2}]  }
   0x1   :  { %v1086_v0 = vld [vmem:[%s1427_s1 + $0x40] sm:$0xff]   ;;  %v1090_v4 = vld [vmem:[%s1427_s1 + $0x48] sm:$0xff]   ;;  %v1094_v8 = vld [vmem:[%s1427_s1 + $0x50] sm:$0xff]  }
   0x2   :  { %v1087_v1 = vld [vmem:[%s1427_s1 + $0xc0] sm:$0xff]   ;;  %974 = vmatprep.subr.bf16.mxu0 %v1086_v0  ;;  %v1091_v5 = vld [vmem:[%s1427_s1 + $0xc8] sm:$0xff]   ;;  %v1095_v9 = vld [vmem:[%s1427_s1 + $0xd0] sm:$0xff]  }
   0x3   :  { %v1088_v2 = vld [vmem:[%s1427_s1] sm:$0xff]   ;;  %1002 = vmatprep.subr.bf16.mxu1 %v1087_v1  ;;  %v1092_v6 = vld [vmem:[%s1427_s1 + $0x8] sm:$0xff]   ;;  %v1096_v10 = vld [vmem:[%s1427_s1 + $0x10] sm:$0xff]  }
   0x4   :  { %v1089_v3 = vld [vmem:[%s1427_s1 + $0x80] sm:$0xff]   ;;  %975 = vmatpush3.bf16.msra.mxu0 %v1088_v2  ;;  %v1093_v7 = vld [vmem:[%s1427_s1 + $0x88] sm:$0xff]   ;;  %v1097_v11 = vld [vmem:[%s1427_s1 + $0x90] sm:$0xff]  }
   0x5   :  { %1003 = vmatpush3.bf16.msra.mxu1 %v1089_v3  ;;  %976 = vmatprep.subr.bf16.mxu0 %v1090_v4  ;;  %v1098_v12 = vld [vmem:[%s1427_s1 + $0x58] sm:$0xff]   ;;  %v1102_v16 = vld [vmem:[%s1427_s1 + $0x60] sm:$0xff]   ;;  %v1106_v20 = vld [vmem:[%s1427_s1 + $0x68] sm:$0xff]  }
   0x6   :  { %1004 = vmatprep.subr.bf16.mxu1 %v1091_v5  ;;  %v1099_v13 = vld [vmem:[%s1427_s1 + $0xd8] sm:$0xff]   ;;  %v1103_v17 = vld [vmem:[%s1427_s1 + $0xe0] sm:$0xff]   ;;  %v1107_v21 = vld [vmem:[%s1427_s1 + $0xe8] sm:$0xff]  }
   0x7   :  { %v1100_v14 = vld [vmem:[%s1427_s1 + $0x18] sm:$0xff]   ;;  %v1104_v18 = vld [vmem:[%s1427_s1 + $0x20] sm:$0xff]   ;;  %v1108_v22 = vld [vmem:[%s1427_s1 + $0x28] sm:$0xff]  }
   0x8   :  { %977 = vmatpush3.bf16.msra.mxu0 %v1092_v6  ;;  %v1101_v15 = vld [vmem:[%s1427_s1 + $0x98] sm:$0xff]   ;;  %v1105_v19 = vld [vmem:[%s1427_s1 + $0xa0] sm:$0xff]   ;;  %v1109_v23 = vld [vmem:[%s1427_s1 + $0xa8] sm:$0xff]  }
   0x9   :  { %1005 = vmatpush3.bf16.msra.mxu1 %v1093_v7  ;;  %978 = vmatprep.subr.bf16.mxu0 %v1094_v8  ;;  %v1110_v24 = vld [vmem:[%s1427_s1 + $0x70] sm:$0xff]   ;;  %v1114_v28 = vld [vmem:[%s1427_s1 + $0x78] sm:$0xff]   ;;  %v15_v32 = vld [vmem:[%s1428_s0] sm:$0xff] }
   0xa   :  { %1006 = vmatprep.subr.bf16.mxu1 %v1095_v9  ;;  %v1111_v25 = vld [vmem:[%s1427_s1 + $0xf0] sm:$0xff]   ;;  %v1115_v29 = vld [vmem:[%s1427_s1 + $0xf8] sm:$0xff]   ;;  %v19_v33 = vld [vmem:[%s1428_s0 + $0x20] sm:$0xff] }
   0xb   :  { %v1112_v26 = vld [vmem:[%s1427_s1 + $0x30] sm:$0xff]   ;;  %v1116_v30 = vld [vmem:[%s1427_s1 + $0x38] sm:$0xff]   ;;  %v16_v34 = vld [vmem:[%s1428_s0 + $0x8] sm:$0xff]  ;;  %v875_v35 = vcombine.low %v15_v32, %v19_v33  ;;  %v876_v36 = vcombine.high %v15_v32, %v19_v33 }
   0xc   :  { %979 = vmatpush3.bf16.msra.mxu0 %v1096_v10  ;;  %v1113_v27 = vld [vmem:[%s1427_s1 + $0xb0] sm:$0xff]   ;;  %v1117_v31 = vld [vmem:[%s1427_s1 + $0xb8] sm:$0xff]   ;;  %v20_v37 = vld [vmem:[%s1428_s0 + $0x28] sm:$0xff] }
   0xd   :  { %1007 = vmatpush3.bf16.msra.mxu1 %v1097_v11  ;;  %980 = vmatprep.subr.bf16.mxu0 %v1098_v12  ;;  %v877_v38 = vcombine.low %v16_v34, %v20_v37  ;;  %v878_v39 = vcombine.high %v16_v34, %v20_v37  ;;  %v1118_v40 = vld [vmem:[%s1427_s1 + $0x140] sm:$0xff]   ;;  %v1122_v44 = vld [vmem:[%s1427_s1 + $0x148] sm:$0xff]   ;;  %v1126_v48 = vld [vmem:[%s1427_s1 + $0x150] sm:$0xff]  }
   0xe   :  { %1008 = vmatprep.subr.bf16.mxu1 %v1099_v13  ;;  %655 = vmatprep.mubr.bf16.mxu0 %v876_v36  ;;  %v1119_v41 = vld [vmem:[%s1427_s1 + $0x1c0] sm:$0xff]   ;;  %v1123_v45 = vld [vmem:[%s1427_s1 + $0x1c8] sm:$0xff]   ;;  %v1127_v49 = vld [vmem:[%s1427_s1 + $0x1d0] sm:$0xff]  }
   0xf   :  { %704 = vmatprep.mubr.bf16.mxu1 %v878_v39  ;;  %v1120_v42 = vld [vmem:[%s1427_s1 + $0x100] sm:$0xff]   ;;  %v1124_v46 = vld [vmem:[%s1427_s1 + $0x108] sm:$0xff]   ;;  %v1128_v50 = vld [vmem:[%s1427_s1 + $0x110] sm:$0xff]  }
  0x10   :  { %981 = vmatpush3.bf16.msra.mxu0 %v1100_v14  ;;  %v1121_v43 = vld [vmem:[%s1427_s1 + $0x180] sm:$0xff]   ;;  %v1125_v47 = vld [vmem:[%s1427_s1 + $0x188] sm:$0xff]   ;;  %v1129_v51 = vld [vmem:[%s1427_s1 + $0x190] sm:$0xff]  }
  0x11   :  { %1009 = vmatpush3.bf16.msra.mxu1 %v1101_v15  ;;  %982 = vmatprep.subr.bf16.mxu0 %v1102_v16  ;;  %v1130_v52 = vld [vmem:[%s1427_s1 + $0x158] sm:$0xff]   ;;  %v1134_v56 = vld [vmem:[%s1427_s1 + $0x160] sm:$0xff]   ;;  %v24_v63 = vld [vmem:[%s1428_s0 + $0x48] sm:$0xff] }
  0x12   :  { %1010 = vmatprep.subr.bf16.mxu1 %v1103_v17  ;;  %v1131_v53 = vld [vmem:[%s1427_s1 + $0x1d8] sm:$0xff]   ;;  %v1135_v57 = vld [vmem:[%s1427_s1 + $0x1e0] sm:$0xff]   ;;  %v28_v0 = vld [vmem:[%s1428_s0 + $0x68] sm:$0xff] }
  0x13   :  { %v1132_v54 = vld [vmem:[%s1427_s1 + $0x118] sm:$0xff]   ;;  %v1136_v58 = vld [vmem:[%s1427_s1 + $0x120] sm:$0xff]   ;;  %v886_v2 = vcombine.high %v24_v63, %v28_v0  ;;  %v1138_v3 = vld [vmem:[%s1427_s1 + $0x168] sm:$0xff]   ;;  %v885_v4 = vcombine.low %v24_v63, %v28_v0 }
  0x14   :  { %983 = vmatpush3.bf16.msra.mxu0 %v1104_v18  ;;  %v1133_v55 = vld [vmem:[%s1427_s1 + $0x198] sm:$0xff]   ;;  %v1137_v59 = vld [vmem:[%s1427_s1 + $0x1a0] sm:$0xff]   ;;  %v1139_v5 = vld [vmem:[%s1427_s1 + $0x1e8] sm:$0xff]  }
  0x15   :  { %1011 = vmatpush3.bf16.msra.mxu1 %v1105_v19  ;;  %984 = vmatprep.subr.bf16.mxu0 %v1106_v20  ;;  %v23_v60 = vld [vmem:[%s1428_s0 + $0x40] sm:$0xff]  ;;  %v1140_v6 = vld [vmem:[%s1427_s1 + $0x128] sm:$0xff]   ;;  %v1142_v8 = vld [vmem:[%s1427_s1 + $0x170] sm:$0xff]  }
  0x16   :  { %1012 = vmatprep.subr.bf16.mxu1 %v1107_v21  ;;  %v27_v61 = vld [vmem:[%s1428_s0 + $0x60] sm:$0xff]  ;;  %v1141_v7 = vld [vmem:[%s1427_s1 + $0x1a8] sm:$0xff]   ;;  %v1143_v9 = vld [vmem:[%s1427_s1 + $0x1f0] sm:$0xff]  }
  0x17   :  { %v884_v62 = vcombine.high %v23_v60, %v27_v61  ;;  %v883_v1 = vcombine.low %v23_v60, %v27_v61  ;;  %v1144_v10 = vld [vmem:[%s1427_s1 + $0x130] sm:$0xff]   ;;  %v1146_v12 = vld [vmem:[%s1427_s1 + $0x178] sm:$0xff]  }
  0x18   :  { %985 = vmatpush3.bf16.msra.mxu0 %v1108_v22  ;;  %v1145_v11 = vld [vmem:[%s1427_s1 + $0x1b0] sm:$0xff]   ;;  %v1147_v13 = vld [vmem:[%s1427_s1 + $0x1f8] sm:$0xff]  }
  0x19   :  { %1013 = vmatpush3.bf16.msra.mxu1 %v1109_v23  ;;  %986 = vmatprep.subr.bf16.mxu0 %v1110_v24  ;;  %v1148_v14 = vld [vmem:[%s1427_s1 + $0x138] sm:$0xff]   ;;  %v17_v16 = vld [vmem:[%s1428_s0 + $0x10] sm:$0xff] }
  0x1a   :  { %1014 = vmatprep.subr.bf16.mxu1 %v1111_v25  ;;  %v1149_v15 = vld [vmem:[%s1427_s1 + $0x1b8] sm:$0xff]   ;;  %v21_v17 = vld [vmem:[%s1428_s0 + $0x30] sm:$0xff] }
  0x1b   :  { %v18_v18 = vld [vmem:[%s1428_s0 + $0x18] sm:$0xff]  ;;  %v879_v20 = vcombine.low %v17_v16, %v21_v17  ;;  %v880_v21 = vcombine.high %v17_v16, %v21_v17  ;;  %v25_v24 = vld [vmem:[%s1428_s0 + $0x50] sm:$0xff] }
  0x1c   :  { %987 = vmatpush3.bf16.msra.mxu0 %v1112_v26  ;;  %v22_v19 = vld [vmem:[%s1428_s0 + $0x38] sm:$0xff]  ;;  %v29_v25 = vld [vmem:[%s1428_s0 + $0x70] sm:$0xff] }
  0x1d   :  { %1015 = vmatpush3.bf16.msra.mxu1 %v1113_v27  ;;  %988 = vmatprep.subr.bf16.mxu0 %v1114_v28  ;;  %v881_v22 = vcombine.low %v18_v18, %v22_v19  ;;  %v882_v23 = vcombine.high %v18_v18, %v22_v19  ;;  %v26_v26 = vld [vmem:[%s1428_s0 + $0x58] sm:$0xff]  ;;  %v888_v27 = vcombine.high %v25_v24, %v29_v25 }
  0x1e   :  { %1016 = vmatprep.subr.bf16.mxu1 %v1115_v29  ;;  %v30_v28 = vld [vmem:[%s1428_s0 + $0x78] sm:$0xff] }
  0x1f   :  { %v890_v29 = vcombine.high %v26_v26, %v30_v28 }
  0x20   :  { %989 = vmatpush3.bf16.msra.mxu0 %v1116_v30  ;;  %v887_v30 = vcombine.low %v25_v24, %v29_v25 }
  0x21   :  { %1017 = vmatpush3.bf16.msra.mxu1 %v1117_v31  ;;  %1030 = vmatprep.subr.bf16.mxu0 %v1118_v40  ;;  %v889_v31 = vcombine.low %v26_v26, %v30_v28 }
  0x22   :  { %1058 = vmatprep.subr.bf16.mxu1 %v1119_v41 }
  0x23   :  { %656 = vmatmul.mubr.bf16.vlgmr.msra.gmra.mrb[0].mxu0 %v875_v35 }
  0x24   :  { %705 = vmatmul.mubr.bf16.vlgmr.msra.gmra.mrb[0].mxu1 %v877_v38  ;;  %1031 = vmatpush3.bf16.msra.mxu0 %v1120_v42 }
  0x25   :  { %1059 = vmatpush3.bf16.msra.mxu1 %v1121_v43  ;;  %1032 = vmatprep.subr.bf16.mxu0 %v1122_v44 }
  0x26   :  { %1060 = vmatprep.subr.bf16.mxu1 %v1123_v45  ;;  %663 = vmatprep.mubr.bf16.mxu0 %v884_v62 }
  0x27   :  { %712 = vmatprep.mubr.bf16.mxu1 %v886_v2 }
  0x28   :  { %1033 = vmatpush3.bf16.msra.mxu0 %v1124_v46 }
  0x29   :  { %1061 = vmatpush3.bf16.msra.mxu1 %v1125_v47  ;;  %1034 = vmatprep.subr.bf16.mxu0 %v1126_v48 }
  0x2a   :  { %1062 = vmatprep.subr.bf16.mxu1 %v1127_v49 }
  0x2b   :  { %664 = vmatmul.mubr.bf16.gmra.mrb[4].mxu0 %v883_v1 }
  0x2c   :  { %1035 = vmatpush3.bf16.msra.mxu0 %v1128_v50  ;;  %713 = vmatmul.mubr.bf16.gmra.mrb[4].mxu1 %v885_v4 }
  0x2d   :  { %1063 = vmatpush3.bf16.msra.mxu1 %v1129_v51  ;;  %1036 = vmatprep.subr.bf16.mxu0 %v1130_v52 }
  0x2e   :  { %1064 = vmatprep.subr.bf16.mxu1 %v1131_v53  ;;  %753 = vmatprep.mubr.bf16.mxu0 %v880_v21 }
  0x2f   :  { %802 = vmatprep.mubr.bf16.mxu1 %v882_v23 }
  0x30   :  { %1037 = vmatpush3.bf16.msra.mxu0 %v1132_v54 }
  0x31   :  { %1065 = vmatpush3.bf16.msra.mxu1 %v1133_v55  ;;  %1038 = vmatprep.subr.bf16.mxu0 %v1134_v56 }
  0x32   :  { %1066 = vmatprep.subr.bf16.mxu1 %v1135_v57 }
  0x34   :  { %1039 = vmatpush3.bf16.msra.mxu0 %v1136_v58 }
  0x35   :  { %1067 = vmatpush3.bf16.msra.mxu1 %v1137_v59  ;;  %1040 = vmatprep.subr.bf16.mxu0 %v1138_v3 }
  0x36   :  { %1068 = vmatprep.subr.bf16.mxu1 %v1139_v5 }
  0x38   :  { %1041 = vmatpush3.bf16.msra.mxu0 %v1140_v6 }
  0x39   :  { %1069 = vmatpush3.bf16.msra.mxu1 %v1141_v7  ;;  %1042 = vmatprep.subr.bf16.mxu0 %v1142_v8 }
  0x3a   :  { %1070 = vmatprep.subr.bf16.mxu1 %v1143_v9 }
  0x3c   :  { %1043 = vmatpush3.bf16.msra.mxu0 %v1144_v10 }
  0x3d   :  { %1071 = vmatpush3.bf16.msra.mxu1 %v1145_v11  ;;  %1044 = vmatprep.subr.bf16.mxu0 %v1146_v12 }
  0x3e   :  { %1072 = vmatprep.subr.bf16.mxu1 %v1147_v13 }
  0x40   :  { %1045 = vmatpush3.bf16.msra.mxu0 %v1148_v14 }
  0x41   :  { %1073 = vmatpush3.bf16.msra.mxu1 %v1149_v15 }
  0x43   :  { %754 = vmatmul.mubr.bf16.vlgmr.msra.gmra.mrb[8].mxu0 %v879_v20 }
  0x44   :  { %803 = vmatmul.mubr.bf16.vlgmr.msra.gmra.mrb[8].mxu1 %v881_v22  ;;  %761 = vmatprep.mubr.bf16.mxu0 %v888_v27 }
  0x45   :  { %810 = vmatprep.mubr.bf16.mxu1 %v890_v29 }
  0x4b   :  { %762 = vmatmul.mubr.bf16.gmra.mrb[12].mxu0 %v887_v30 }
  0x4c   :  { %811 = vmatmul.mubr.bf16.gmra.mrb[12].mxu1 %v889_v31 }
  0xf6   :  { %v990_v32 = vpop.f32.mrb[0].mxu0 }
  0xf7   :  { %v1018_v33 = vpop.f32.mrb[0].mxu1  ;;  %v991_v34 = vpop.f32.mrb[1].mxu0 }
  0xf8   :  { %v992_v35 = vadd.f32 %v991_v34, %v990_v32  ;;  %v1019_v36 = vpop.f32.mrb[1].mxu1  ;;  %v993_v37 = vpop.f32.mrb[2].mxu0 }
  0xf9   :  { %v1020_v38 = vadd.f32 %v1019_v36, %v1018_v33  ;;  %v1021_v39 = vpop.f32.mrb[2].mxu1  ;;  %v994_v40 = vpop.f32.mrb[3].mxu0 }
  0xfa   :  { %v995_v41 = vadd.f32 %v994_v40, %v993_v37  ;;  %v1022_v42 = vpop.f32.mrb[3].mxu1 }
  0xfb   :  { %v707_v43 = vadd.f32 %v1020_v38, %v992_v35  ;;  %v1023_v44 = vadd.f32 %v1022_v42, %v1021_v39 }
  0xfd   :  { %v710_v45 = vadd.f32 %v1023_v44, %v995_v41 }
  0xfe   :  { %v996_v46 = vpop.f32.mrb[4].mxu0 }
  0xff   :  { %v1024_v47 = vpop.f32.mrb[4].mxu1  ;;  %v997_v48 = vpop.f32.mrb[5].mxu0 }
 0x100   :  { %v998_v49 = vadd.f32 %v997_v48, %v996_v46  ;;  %v1025_v50 = vpop.f32.mrb[5].mxu1  ;;  %v999_v51 = vpop.f32.mrb[6].mxu0 }
 0x101   :  { %v1026_v52 = vadd.f32 %v1025_v50, %v1024_v47  ;;  %v1027_v53 = vpop.f32.mrb[6].mxu1  ;;  %v1000_v54 = vpop.f32.mrb[7].mxu0 }
 0x102   :  { %v1001_v55 = vadd.f32 %v1000_v54, %v999_v51  ;;  %v1028_v56 = vpop.f32.mrb[7].mxu1 }
 0x103   :  { %v715_v57 = vadd.f32 %v1026_v52, %v998_v49  ;;  %v1029_v58 = vadd.f32 %v1028_v56, %v1027_v53 }
 0x105   :  { %v718_v59 = vadd.f32 %v1029_v58, %v1001_v55 }
 0x116   :  { %v1046_v60 = vpop.f32.mrb[8].mxu0 }
 0x117   :  { %v1074_v61 = vpop.f32.mrb[8].mxu1  ;;  %v1047_v62 = vpop.f32.mrb[9].mxu0 }
 0x118   :  { %v1075_v63 = vpop.f32.mrb[9].mxu1  ;;  %v1048_v0 = vadd.f32 %v1047_v62, %v1046_v60  ;;  %v1049_v2 = vpop.f32.mrb[10].mxu0 }
 0x119   :  { %v1076_v1 = vadd.f32 %v1075_v63, %v1074_v61  ;;  %v1077_v3 = vpop.f32.mrb[10].mxu1  ;;  %v1050_v4 = vpop.f32.mrb[11].mxu0 }
 0x11a   :  { %v1078_v5 = vpop.f32.mrb[11].mxu1  ;;  %v756_v6 = vadd.f32 %v1048_v0, %v707_v43  ;;  %v1051_v7 = vadd.f32 %v1050_v4, %v1049_v2 }
 0x11b   :  { %v1079_v8 = vadd.f32 %v1078_v5, %v1077_v3 }
 0x11c   :  { %v805_v9 = vadd.f32 %v1076_v1, %v756_v6  ;;  %v759_v10 = vadd.f32 %v1051_v7, %v710_v45 }
 0x11e   :  { %v808_v11 = vadd.f32 %v1079_v8, %v759_v10  ;;  %v1052_v12 = vpop.f32.mrb[12].mxu0  ;;  %v849_v14 = vmul.f32 %v805_v9, %v805_v9 }
 0x11f   :  { %v1080_v13 = vpop.f32.mrb[12].mxu1  ;;  %v1053_v15 = vpop.f32.mrb[13].mxu0 }
 0x120   :  { %v1081_v16 = vpop.f32.mrb[13].mxu1  ;;  %v966_v17 = vpack.c.bf16 %v808_v11, %v805_v9  ;;  %v839_v18 = vadd.f32 %v808_v11, %v805_v9  ;;  %v850_v19 = vmul.f32 %v808_v11, %v808_v11  ;;  %v1054_v20 = vadd.f32 %v1053_v15, %v1052_v12  ;;  %v1055_v21 = vpop.f32.mrb[14].mxu0 }
 0x121   :  { %v1083_v22 = vpop.f32.mrb[14].mxu1  ;;  %v1082_v23 = vadd.f32 %v1081_v16, %v1080_v13  ;;  %v1056_v24 = vpop.f32.mrb[15].mxu0 }
 0x122   :  { %v1084_v25 = vpop.f32.mrb[15].mxu1  ;;  %967 = vst [vmem:[%s1429_s2] sm:$0xff] %v966_v17   ;;  %v853_v26 = vadd.f32 %v850_v19, %v849_v14  ;;  %v764_v27 = vadd.f32 %v1054_v20, %v715_v57  ;;  %v1057_v28 = vadd.f32 %v1056_v24, %v1055_v21 }
 0x123   :  { %v1085_v29 = vadd.f32 %v1084_v25, %v1083_v22 }
 0x124   :  { %v813_v30 = vadd.f32 %v1082_v23, %v764_v27  ;;  %v767_v31 = vadd.f32 %v1057_v28, %v718_v59 }
 0x126   :  { %v840_v32 = vadd.f32 %v839_v18, %v813_v30  ;;  %v851_v33 = vmul.f32 %v813_v30, %v813_v30  ;;  %v816_v34 = vadd.f32 %v1085_v29, %v767_v31 }
 0x128   :  { %v854_v35 = vadd.f32 %v853_v26, %v851_v33  ;;  %v971_v36 = vpack.c.bf16 %v816_v34, %v813_v30  ;;  %v841_v37 = vadd.f32 %v840_v32, %v816_v34  ;;  %v852_v38 = vmul.f32 %v816_v34, %v816_v34 }
 0x12a   :  { %973 = vst [vmem:[%s1429_s2 + $0x8] sm:$0xff] %v971_v36   ;;  %v842_v39 = vrot.slane %v841_v37, 4  ;;  %v855_v40 = vadd.f32 %v854_v35, %v852_v38 }
 0x12c   :  { %v843_v41 = vadd.f32 %v842_v39, %v841_v37  ;;  %v856_v42 = vrot.slane %v855_v40, 4 }
 0x12e   :  { %v844_v43 = vrot.slane %v843_v41, 2  ;;  %v857_v44 = vadd.f32 %v856_v42, %v855_v40 }
 0x130   :  { %v845_v45 = vadd.f32 %v844_v43, %v843_v41  ;;  %v858_v46 = vrot.slane %v857_v44, 2 }
 0x132   :  { %v846_v47 = vrot.slane %v845_v45, 1  ;;  %v859_v48 = vadd.f32 %v858_v46, %v857_v44 }
 0x134   :  { %v847_v49 = vadd.f32 %v846_v47, %v845_v45  ;;  %v860_v50 = vrot.slane %v859_v48, 1 }
 0x136   :  { %848 = vst [vmem:[%s1430_s3] sm:$0x1] %v847_v49  ;;  %v861_v51 = vadd.f32 %v860_v50, %v859_v48 }
 0x138   :  { %862 = vst [vmem:[%s1431_s4] sm:$0x1] %v861_v51 }

</bundles_post_ra>
